<compile_context>
chip_gen: v5e
topology: v5e:2x2
jax: 0.10.0
libtpu: 0.0.40
codegen_flags: <defaults>
</compile_context>

<pallas_src>
import functools
import math

import jax
import jax.numpy as jnp
from jax.experimental import pallas as pl
from jax.experimental.pallas import tpu as pltpu


# Row indices inside the packed (16, D) bias / layernorm-vector block.
(_BQ1, _BK1, _BV1, _BO1,
 _BQ2, _BK2, _BV2, _BO2,
 _B2,
 _G1, _BE1, _G2, _BE2, _G3, _BE3) = range(15)
_NUM_VEC_ROWS = 16  # padded to a multiple of 8 sublanes


# ---------------------------------------------------------------------------
# In-kernel helpers
# ---------------------------------------------------------------------------
def _layernorm(h, g, b, eps=1e-5):
    # f32 statistics
    mu = jnp.mean(h, axis=-1, keepdims=True)
    var = jnp.mean((h - mu) ** 2, axis=-1, keepdims=True)
    return (h - mu) * jax.lax.rsqrt(var + eps) * g + b


def _split_heads(x2d, num_heads, d_k):
    # (S, H*d_k) -> (H, S, d_k); heads only exist around the score/PV stage.
    s = x2d.shape[0]
    return jnp.swapaxes(x2d.reshape(s, num_heads, d_k), 0, 1)


def _merge_heads(x3d):
    # (H, S, d_k) -> (S, H*d_k)
    h, s, dk = x3d.shape
    return jnp.swapaxes(x3d, 0, 1).reshape(s, h * dk)


def _attention(x_q, k, v, wq, bq, wo, bo, *, num_heads, d_k):
    """x_q: (T, D) f32; k, v: (Skv, D) bf16 (lane dense); wq, wo: (D, D) bf16;
    bq, bo: (1, D) f32. Returns (T, D) f32."""
    # Full-width query projection: one (T, D) @ (D, D) MXU pass.
    q = jnp.dot(x_q.astype(jnp.bfloat16), wq,
                preferred_element_type=jnp.float32) + bq
    q = (q * (1.0 / math.sqrt(d_k))).astype(jnp.bfloat16)

    q_h = _split_heads(q, num_heads, d_k)          # (H, T,   dk) bf16
    k_h = _split_heads(k, num_heads, d_k)          # (H, Skv, dk) bf16
    v_h = _split_heads(v, num_heads, d_k)          # (H, Skv, dk) bf16

    # Batched-head score / PV matmuls, f32 accumulation, f32 softmax statistics.
    s = jnp.einsum("hqd,hkd->hqk", q_h, k_h,
                   preferred_element_type=jnp.float32)       # (H, T, Skv)
    s = s - jnp.max(s, axis=-1, keepdims=True)
    p = jnp.exp(s)
    l = jnp.sum(p, axis=-1, keepdims=True)                   # (H, T, 1)

    ctx = jnp.einsum("hqk,hkd->hqd", p.astype(jnp.bfloat16), v_h,
                     preferred_element_type=jnp.float32)     # (H, T, dk)
    # Fold the softmax normalization into the small PV output (exact reciprocal,
    # still EUP, nearly free).
    ctx = ctx * pl.reciprocal(l, approx=False)

    ctx = _merge_heads(ctx).astype(jnp.bfloat16)             # (T, D)
    # Full-width output projection.
    return jnp.dot(ctx, wo, preferred_element_type=jnp.float32) + bo


# ---------------------------------------------------------------------------
# Kernel
# ---------------------------------------------------------------------------
def decoder_layer_kernel(
    # inputs (per grid step)
    x_ref,        # (1, S, D)      f32   full target sequence of this batch
    enc_ref,      # (1, S_enc, D)  bf16  encoder output of this batch
    wq1, wk1, wv1, wo1,     # (D, D) bf16   self-attention
    wq2, wk2, wv2, wo2,     # (D, D) bf16   cross-attention
    w1, w2,                 # (D, d_ff) / (d_ff, D) bf16
    b1,                     # (1, d_ff) f32
    vecs,                   # (16, D)   f32 packed biases + layernorm params
    # output
    out_ref,                # (1, tile_s, D)
    # scratch (persists across grid steps)
    k1_scr, v1_scr,         # (S, D)     bf16  self-attn K / V (lane dense)
    k2_scr, v2_scr,         # (S_enc, D) bf16  cross-attn K / V (lane dense)
    *, num_heads, d_k, tile_s, q_tiled,
):
    vecs_arr = vecs[...]

    def vrow(i):  # (1, D) f32 row of the packed vector block (static slice)
        return vecs_arr[i:i + 1, :]

    def compute_kv():
        # K / V depend only on the batch (full x / enc sequence), not on the
        # query tile. Full-width (S, D) @ (D, D) projections, stored lane-dense.
        x_full = x_ref[0].astype(jnp.bfloat16)     # (S, D)
        enc = enc_ref[0]                           # (S_enc, D) bf16
        k1_scr[...] = (jnp.dot(x_full, wk1[...], preferred_element_type=jnp.float32)
                       + vrow(_BK1)).astype(jnp.bfloat16)
        v1_scr[...] = (jnp.dot(x_full, wv1[...], preferred_element_type=jnp.float32)
                       + vrow(_BV1)).astype(jnp.bfloat16)
        k2_scr[...] = (jnp.dot(enc, wk2[...], preferred_element_type=jnp.float32)
                       + vrow(_BK2)).astype(jnp.bfloat16)
        v2_scr[...] = (jnp.dot(enc, wv2[...], preferred_element_type=jnp.float32)
                       + vrow(_BV2)).astype(jnp.bfloat16)

    if q_tiled:
        # Compute K/V once per batch (first q-tile), carry across q-tiles.
        pl.when(pl.program_id(1) == 0)(compute_kv)
        q_start = pl.multiple_of(pl.program_id(1) * tile_s, tile_s)
        x = x_ref[0, pl.ds(q_start, tile_s), :]       # (tile_s, D) f32 query tile
    else:
        compute_kv()
        x = x_ref[0]                                  # (S, D) f32

    # --- self attention + residual + norm1 ---
    a = _attention(x, k1_scr[...], v1_scr[...], wq1[...], vrow(_BQ1),
                   wo1[...], vrow(_BO1), num_heads=num_heads, d_k=d_k)
    x = _layernorm(x + a, vrow(_G1), vrow(_BE1))

    # --- cross attention + residual + norm2 ---
    a = _attention(x, k2_scr[...], v2_scr[...], wq2[...], vrow(_BQ2),
                   wo2[...], vrow(_BO2), num_heads=num_heads, d_k=d_k)
    x = _layernorm(x + a, vrow(_G2), vrow(_BE2))

    # --- feed forward + residual + norm3 (dropout = identity, eval mode) ---
    h = jnp.maximum(
        jnp.dot(x.astype(jnp.bfloat16), w1[...],
                preferred_element_type=jnp.float32) + b1[...], 0.0)
    ff = jnp.dot(h.astype(jnp.bfloat16), w2[...],
                 preferred_element_type=jnp.float32) + vrow(_B2)
    x = _layernorm(x + ff, vrow(_G3), vrow(_BE3))

    out_ref[0] = x.astype(out_ref.dtype)


# ---------------------------------------------------------------------------
# Wrapper
# ---------------------------------------------------------------------------
def decoder_layer(x, enc_output, params, *, num_heads):
    B, S, D = x.shape
    _, S_enc, _ = enc_output.shape
    assert D % num_heads == 0
    d_k = D // num_heads
    d_ff = params["w1"].shape[1]

    # ---- query-sequence tiling --------------------------------------------
    # Keep the full sequence per grid step when it is small (demo: S=16 ->
    # grid=(B,)); otherwise pick a large (multiple-of-8, <=256) tile so the MXU
    # sees many rows per pass and per-step pipeline overhead is amortized.
    max_tile = 256
    if S <= max_tile:
        tile_s, q_tiled = S, False
    else:
        tile_s = next((t for t in range(max_tile, 7, -8) if S % t == 0), S)
        q_tiled = tile_s != S
    num_q_tiles = S // tile_s
    grid = (B, num_q_tiles) if q_tiled else (B,)

    # ---- operand re-layout OUTSIDE the kernel (plain XLA) ------------------
    mats = [params[k].astype(jnp.bfloat16) for k in
            ("wq1", "wk1", "wv1", "wo1", "wq2", "wk2", "wv2", "wo2", "w1", "w2")]
    b1 = params["b1"].astype(jnp.float32)                       # (1, d_ff)
    # Pack every (1, D) bias / gamma / beta vector into one lane-dense block.
    vec_rows = [params[k].astype(jnp.float32) for k in
                ("bq1", "bk1", "bv1", "bo1", "bq2", "bk2", "bv2", "bo2", "b2",
                 "g1", "be1", "g2", "be2", "g3", "be3")]
    pad_rows = _NUM_VEC_ROWS - len(vec_rows)
    vecs = jnp.concatenate(vec_rows + [jnp.zeros((pad_rows, D), jnp.float32)],
                           axis=0)                              # (16, D)
    # enc_output is only ever a bf16 matmul operand (cross K/V projections).
    enc_bf16 = enc_output.astype(jnp.bfloat16)

    # ---- index maps (arity depends on whether the q-tile axis exists) ------
    if q_tiled:
        batch_map = lambda b, t: (b, 0, 0)
        out_map = lambda b, t: (b, t, 0)
        def const_map(ndim):
            return lambda b, t: (0,) * ndim
    else:
        batch_map = lambda b: (b, 0, 0)
        out_map = lambda b: (b, 0, 0)
        def const_map(ndim):
            return lambda b: (0,) * ndim

    have_buffered = hasattr(pl, "Buffered")

    def build_specs(single_buffer):
        # Weight blocks are constant over the whole grid -> single-buffer them.
        # The full-x / enc blocks are constant along the q-tile axis -> single-
        # buffer them too when query tiling is active (halves their residency).
        kw = ({"pipeline_mode": pl.Buffered(1)}
              if (single_buffer and have_buffered) else {})
        act_kw = kw if q_tiled else {}
        in_specs = [
            pl.BlockSpec((1, S, D), batch_map, **act_kw),        # full x (f32)
            pl.BlockSpec((1, S_enc, D), batch_map, **act_kw),    # full enc (bf16)
        ]
        in_specs += [pl.BlockSpec(m.shape, const_map(m.ndim), **kw) for m in mats]
        in_specs += [pl.BlockSpec(b1.shape, const_map(2), **kw),
                     pl.BlockSpec(vecs.shape, const_map(2), **kw)]
        out_spec = pl.BlockSpec((1, tile_s, D), out_map)
        return in_specs, out_spec

    # ---- VMEM budget derived from actual block sizes -----------------------
    def nbytes(shape, dtype):
        n = 1
        for d in shape:
            n *= int(d)
        return n * jnp.dtype(dtype).itemsize

    def vmem_needed(single_buffer):
        wbuf = 1 if (single_buffer and have_buffered) else 2
        abuf = wbuf if q_tiled else 2
        total = abuf * nbytes((1, S, D), x.dtype)
        total += abuf * nbytes((1, S_enc, D), jnp.bfloat16)
        total += wbuf * sum(nbytes(m.shape, m.dtype) for m in mats)
        total += wbuf * (nbytes(b1.shape, b1.dtype) + nbytes(vecs.shape, vecs.dtype))
        total += 2 * nbytes((1, tile_s, D), x.dtype)                 # output
        total += 2 * nbytes((S, D), jnp.bfloat16)                    # self K/V
        total += 2 * nbytes((S_enc, D), jnp.bfloat16)                # cross K/V
        return total

    try:  # physical VMEM: 64 MiB on v7x, 128 MiB on v5e/v6e
        vmem_cap = int(pltpu.get_tpu_info().vmem_capacity_bytes)
    except Exception:
        vmem_cap = 64 << 20

    # ---- advisory cost estimate for the XLA scheduler -----------------------
    flops = int(B * (
        4 * 2 * S * D * D            # self-attn Q, K, V, O projections
        + 2 * 2 * S * S * D          # self-attn scores + PV
        + 2 * 2 * S * D * D          # cross-attn Q, O projections
        + 2 * 2 * S_enc * D * D      # cross-attn K, V projections
        + 2 * 2 * S * S_enc * D      # cross-attn scores + PV
        + 2 * 2 * S * D * d_ff))     # FFN
    transcendentals = int(B * (num_heads * S * (S + S_enc) + 8 * S))
    bytes_accessed = int(
        nbytes(x.shape, x.dtype) + nbytes(enc_bf16.shape, enc_bf16.dtype)
        + sum(nbytes(m.shape, m.dtype) for m in mats)
        + nbytes(b1.shape, b1.dtype) + nbytes(vecs.shape, vecs.dtype)
        + B * S * D * x.dtype.itemsize)
    cost = pl.CostEstimate(flops=flops, transcendentals=transcendentals,
                           bytes_accessed=bytes_accessed)

    kernel = functools.partial(decoder_layer_kernel, num_heads=num_heads,
                               d_k=d_k, tile_s=tile_s, q_tiled=q_tiled)

    scratch_shapes = [
        pltpu.VMEM((S, D), jnp.bfloat16),       # self-attn K
        pltpu.VMEM((S, D), jnp.bfloat16),       # self-attn V
        pltpu.VMEM((S_enc, D), jnp.bfloat16),   # cross-attn K
        pltpu.VMEM((S_enc, D), jnp.bfloat16),   # cross-attn V
    ]
    dim_sem = ("parallel", "arbitrary") if q_tiled else ("parallel",)

    def run(single_buffer):
        in_specs, out_spec = build_specs(single_buffer)
        vmem_limit = int(min(vmem_cap * 7 // 8,
                             max(2 * vmem_needed(single_buffer), 32 << 20)))
        return pl.pallas_call(
            kernel,
            out_shape=jax.ShapeDtypeStruct((B, S, D), x.dtype),
            grid_spec=pltpu.PrefetchScalarGridSpec(
                num_scalar_prefetch=0,
                grid=grid,
                in_specs=in_specs,
                out_specs=out_spec,
                scratch_shapes=scratch_shapes),
            compiler_params=pltpu.CompilerParams(
                dimension_semantics=dim_sem,
                vmem_limit_bytes=vmem_limit),
            cost_estimate=cost,
        )(x, enc_bf16, *mats, b1, vecs)

    if not have_buffered:
        return run(False)
    try:
        return run(True)
    except Exception:
        # Narrow feature fallback: only reached if pipeline_mode=pl.Buffered(1)
        # itself fails to lower on this jax/libtpu combination. Genuine lowering
        # or VMEM errors will re-raise from this (more VMEM-hungry) path.
        return run(False)


# ---------------------------------------------------------------------------
# Pure-JAX reference (f32, matches the PyTorch module in eval mode)
# ---------------------------------------------------------------------------
def decoder_layer_ref(x, enc, p, *, num_heads):
    B, S, D = x.shape
    d_k = D // num_heads

    def ln(h, g, b):
        mu = h.mean(-1, keepdims=True)
        var = ((h - mu) ** 2).mean(-1, keepdims=True)
        return (h - mu) / jnp.sqrt(var + 1e-5) * g + b

    def mha(q_in, kv_in, wq, bq, wk, bk, wv, bv, wo, bo):
        Q = q_in @ wq + bq
        K = kv_in @ wk + bk
        V = kv_in @ wv + bv

        def split(t):
            b_, s_, _ = t.shape
            return t.reshape(b_, s_, num_heads, d_k).transpose(0, 2, 1, 3)

        Qh, Kh, Vh = split(Q), split(K), split(V)
        sc = jnp.einsum("bhqd,bhkd->bhqk", Qh, Kh) / math.sqrt(d_k)
        pr = jax.nn.softmax(sc, axis=-1)
        o = jnp.einsum("bhqk,bhkd->bhqd", pr, Vh)
        o = o.transpose(0, 2, 1, 3).reshape(q_in.shape[0], -1, D)
        return o @ wo + bo

    a = mha(x, x, p["wq1"], p["bq1"][0], p["wk1"], p["bk1"][0],
            p["wv1"], p["bv1"][0], p["wo1"], p["bo1"][0])
    x = ln(x + a, p["g1"][0], p["be1"][0])
    a = mha(x, enc, p["wq2"], p["bq2"][0], p["wk2"], p["bk2"][0],
            p["wv2"], p["bv2"][0], p["wo2"], p["bo2"][0])
    x = ln(x + a, p["g2"][0], p["be2"][0])
    h = jax.nn.relu(x @ p["w1"] + p["b1"][0])
    ff = h @ p["w2"] + p["b2"][0]
    x = ln(x + ff, p["g3"][0], p["be3"][0])
    return x


# ---------------------------------------------------------------------------
# Main
# ---------------------------------------------------------------------------
if __name__ == "__main__":
    B, S, S_ENC = 2, 16, 16
    D_MODEL, NUM_HEADS, D_FF = 128, 4, 256   # lane-dense feature dim (multiple of 128)

    key = jax.random.PRNGKey(0)
    keys = jax.random.split(key, 40)
    ki = iter(keys)

    def w(shape, scale=0.05):
        return jax.random.normal(next(ki), shape, jnp.float32) * scale

    # Linear weights stored pre-transposed: (in_features, out_features), so the
    # math is x @ W + b  (== PyTorch x @ W^T + b semantics).
    params = {}
    for pref in ("1", "2"):  # self-attn, cross-attn
        for name in ("q", "k", "v", "o"):
            params[f"w{name}{pref}"] = w((D_MODEL, D_MODEL))
            params[f"b{name}{pref}"] = w((1, D_MODEL))
    params["w1"] = w((D_MODEL, D_FF))
    params["b1"] = w((1, D_FF))
    params["w2"] = w((D_FF, D_MODEL))
    params["b2"] = w((1, D_MODEL))
    for i in (1, 2, 3):
        params[f"g{i}"] = 1.0 + 0.1 * jax.random.normal(next(ki), (1, D_MODEL), jnp.float32)
        params[f"be{i}"] = 0.1 * jax.random.normal(next(ki), (1, D_MODEL), jnp.float32)

    x = jax.random.normal(next(ki), (B, S, D_MODEL), jnp.float32)
    enc = jax.random.normal(next(ki), (B, S_ENC, D_MODEL), jnp.float32)

    out = decoder_layer(x, enc, params, num_heads=NUM_HEADS)
    out = jax.block_until_ready(out)

    ref = decoder_layer_ref(x, enc, params, num_heads=NUM_HEADS)
    assert out.shape == (B, S, D_MODEL)
    # Kernel uses bf16 matmul operands; reference is pure f32.
    assert jnp.allclose(out, ref, atol=3e-2, rtol=3e-2), "mismatch vs reference"
    print("KERNEL_OK")
</pallas_src>

<mosaic_0001>
module attributes {stable_mosaic.version = 11 : i64} {
  func.func @decoder_layer_kernel(%arg0: i32, %arg1: memref<1x16x128xf32, #tpu.memory_space<vmem>>, %arg2: memref<1x16x128xbf16, #tpu.memory_space<vmem>>, %arg3: memref<128x128xbf16, #tpu.memory_space<vmem>>, %arg4: memref<128x128xbf16, #tpu.memory_space<vmem>>, %arg5: memref<128x128xbf16, #tpu.memory_space<vmem>>, %arg6: memref<128x128xbf16, #tpu.memory_space<vmem>>, %arg7: memref<128x128xbf16, #tpu.memory_space<vmem>>, %arg8: memref<128x128xbf16, #tpu.memory_space<vmem>>, %arg9: memref<128x128xbf16, #tpu.memory_space<vmem>>, %arg10: memref<128x128xbf16, #tpu.memory_space<vmem>>, %arg11: memref<128x256xbf16, #tpu.memory_space<vmem>>, %arg12: memref<256x128xbf16, #tpu.memory_space<vmem>>, %arg13: memref<1x256xf32, #tpu.memory_space<vmem>>, %arg14: memref<16x128xf32, #tpu.memory_space<vmem>>, %arg15: memref<1x16x128xf32, #tpu.memory_space<vmem>>, %arg16: memref<16x128xbf16, #tpu.memory_space<vmem>>, %arg17: memref<16x128xbf16, #tpu.memory_space<vmem>>, %arg18: memref<16x128xbf16, #tpu.memory_space<vmem>>, %arg19: memref<16x128xbf16, #tpu.memory_space<vmem>>) attributes {dimension_semantics = [#tpu.dimension_semantics<parallel>], iteration_bounds = array<i64: 2>, scalar_prefetch = 0 : i64, scratch_operands = 4 : i64, tpu.core_type = #tpu.core_type<tc>, window_params = [{transform_indices = @transform_0, window_bounds = array<i64: 1, 16, 128>}, {transform_indices = @transform_1, window_bounds = array<i64: 1, 16, 128>}, {pipeline_mode = #tpu.pipeline_mode<synchronous>, transform_indices = @transform_2, window_bounds = array<i64: 128, 128>}, {pipeline_mode = #tpu.pipeline_mode<synchronous>, transform_indices = @transform_3, window_bounds = array<i64: 128, 128>}, {pipeline_mode = #tpu.pipeline_mode<synchronous>, transform_indices = @transform_4, window_bounds = array<i64: 128, 128>}, {pipeline_mode = #tpu.pipeline_mode<synchronous>, transform_indices = @transform_5, window_bounds = array<i64: 128, 128>}, {pipeline_mode = #tpu.pipeline_mode<synchronous>, transform_indices = @transform_6, window_bounds = array<i64: 128, 128>}, {pipeline_mode = #tpu.pipeline_mode<synchronous>, transform_indices = @transform_7, window_bounds = array<i64: 128, 128>}, {pipeline_mode = #tpu.pipeline_mode<synchronous>, transform_indices = @transform_8, window_bounds = array<i64: 128, 128>}, {pipeline_mode = #tpu.pipeline_mode<synchronous>, transform_indices = @transform_9, window_bounds = array<i64: 128, 128>}, {pipeline_mode = #tpu.pipeline_mode<synchronous>, transform_indices = @transform_10, window_bounds = array<i64: 128, 256>}, {pipeline_mode = #tpu.pipeline_mode<synchronous>, transform_indices = @transform_11, window_bounds = array<i64: 256, 128>}, {pipeline_mode = #tpu.pipeline_mode<synchronous>, transform_indices = @transform_12, window_bounds = array<i64: 1, 256>}, {pipeline_mode = #tpu.pipeline_mode<synchronous>, transform_indices = @transform_13, window_bounds = array<i64: 16, 128>}, {transform_indices = @transform_14, window_bounds = array<i64: 1, 16, 128>}]} {
    %c0 = arith.constant 0 : index
    %c0_0 = arith.constant 0 : index
    %0 = vector.load %arg14[%c0, %c0_0] : memref<16x128xf32, #tpu.memory_space<vmem>>, vector<16x128xf32>
    %c0_1 = arith.constant 0 : index
    %c0_2 = arith.constant 0 : index
    %c0_3 = arith.constant 0 : index
    %1 = vector.load %arg1[%c0_1, %c0_2, %c0_3] : memref<1x16x128xf32, #tpu.memory_space<vmem>>, vector<1x16x128xf32>
    %2 = vector.shape_cast %1 : vector<1x16x128xf32> to vector<16x128xf32>
    %3 = arith.truncf %2 : vector<16x128xf32> to vector<16x128xbf16>
    %c0_4 = arith.constant 0 : index
    %c0_5 = arith.constant 0 : index
    %c0_6 = arith.constant 0 : index
    %4 = vector.load %arg2[%c0_4, %c0_5, %c0_6] : memref<1x16x128xbf16, #tpu.memory_space<vmem>>, vector<1x16x128xbf16>
    %5 = vector.shape_cast %4 : vector<1x16x128xbf16> to vector<16x128xbf16>
    %c0_7 = arith.constant 0 : index
    %c0_8 = arith.constant 0 : index
    %6 = vector.load %arg4[%c0_7, %c0_8] : memref<128x128xbf16, #tpu.memory_space<vmem>>, vector<128x128xbf16>
    %cst = arith.constant dense<0.000000e+00> : vector<16x128xf32>
    %7 = tpu.matmul %3, %6, %cst {dimension_numbers = #tpu.dot_dimension_numbers<[1], [0], [0], [1], [0, 0, 1, 1], [], []>} : vector<16x128xbf16>, vector<128x128xbf16>, vector<16x128xf32> -> vector<16x128xf32>
    %8 = vector.extract_strided_slice %0 {offsets = [1, 0], sizes = [1, 128], strides = [1, 1]} : vector<16x128xf32> to vector<1x128xf32>
    %9 = vector.broadcast %8 : vector<1x128xf32> to vector<16x128xf32>
    %10 = arith.addf %7, %9 : vector<16x128xf32>
    %11 = arith.truncf %10 : vector<16x128xf32> to vector<16x128xbf16>
    %c0_9 = arith.constant 0 : index
    %c0_10 = arith.constant 0 : index
    %12 = vector.load %arg16[%c0_9, %c0_10] : memref<16x128xbf16, #tpu.memory_space<vmem>>, vector<16x128xbf16>
    tpu.vector_store %arg16[%c0_9, %c0_10], %11 {strides = array<i32>} : memref<16x128xbf16, #tpu.memory_space<vmem>>, vector<16x128xbf16>,
    %c0_11 = arith.constant 0 : index
    %c0_12 = arith.constant 0 : index
    %13 = vector.load %arg5[%c0_11, %c0_12] : memref<128x128xbf16, #tpu.memory_space<vmem>>, vector<128x128xbf16>
    %cst_13 = arith.constant dense<0.000000e+00> : vector<16x128xf32>
    %14 = tpu.matmul %3, %13, %cst_13 {dimension_numbers = #tpu.dot_dimension_numbers<[1], [0], [0], [1], [0, 0, 1, 1], [], []>} : vector<16x128xbf16>, vector<128x128xbf16>, vector<16x128xf32> -> vector<16x128xf32>
    %15 = vector.extract_strided_slice %0 {offsets = [2, 0], sizes = [1, 128], strides = [1, 1]} : vector<16x128xf32> to vector<1x128xf32>
    %16 = vector.broadcast %15 : vector<1x128xf32> to vector<16x128xf32>
    %17 = arith.addf %14, %16 : vector<16x128xf32>
    %18 = arith.truncf %17 : vector<16x128xf32> to vector<16x128xbf16>
    %c0_14 = arith.constant 0 : index
    %c0_15 = arith.constant 0 : index
    %19 = vector.load %arg17[%c0_14, %c0_15] : memref<16x128xbf16, #tpu.memory_space<vmem>>, vector<16x128xbf16>
    tpu.vector_store %arg17[%c0_14, %c0_15], %18 {strides = array<i32>} : memref<16x128xbf16, #tpu.memory_space<vmem>>, vector<16x128xbf16>,
    %c0_16 = arith.constant 0 : index
    %c0_17 = arith.constant 0 : index
    %20 = vector.load %arg8[%c0_16, %c0_17] : memref<128x128xbf16, #tpu.memory_space<vmem>>, vector<128x128xbf16>
    %cst_18 = arith.constant dense<0.000000e+00> : vector<16x128xf32>
    %21 = tpu.matmul %5, %20, %cst_18 {dimension_numbers = #tpu.dot_dimension_numbers<[1], [0], [0], [1], [0, 0, 1, 1], [], []>} : vector<16x128xbf16>, vector<128x128xbf16>, vector<16x128xf32> -> vector<16x128xf32>
    %22 = vector.extract_strided_slice %0 {offsets = [5, 0], sizes = [1, 128], strides = [1, 1]} : vector<16x128xf32> to vector<1x128xf32>
    %23 = vector.broadcast %22 : vector<1x128xf32> to vector<16x128xf32>
    %24 = arith.addf %21, %23 : vector<16x128xf32>
    %25 = arith.truncf %24 : vector<16x128xf32> to vector<16x128xbf16>
    %c0_19 = arith.constant 0 : index
    %c0_20 = arith.constant 0 : index
    %26 = vector.load %arg18[%c0_19, %c0_20] : memref<16x128xbf16, #tpu.memory_space<vmem>>, vector<16x128xbf16>
    tpu.vector_store %arg18[%c0_19, %c0_20], %25 {strides = array<i32>} : memref<16x128xbf16, #tpu.memory_space<vmem>>, vector<16x128xbf16>,
    %c0_21 = arith.constant 0 : index
    %c0_22 = arith.constant 0 : index
    %27 = vector.load %arg9[%c0_21, %c0_22] : memref<128x128xbf16, #tpu.memory_space<vmem>>, vector<128x128xbf16>
    %cst_23 = arith.constant dense<0.000000e+00> : vector<16x128xf32>
    %28 = tpu.matmul %5, %27, %cst_23 {dimension_numbers = #tpu.dot_dimension_numbers<[1], [0], [0], [1], [0, 0, 1, 1], [], []>} : vector<16x128xbf16>, vector<128x128xbf16>, vector<16x128xf32> -> vector<16x128xf32>
    %29 = vector.extract_strided_slice %0 {offsets = [6, 0], sizes = [1, 128], strides = [1, 1]} : vector<16x128xf32> to vector<1x128xf32>
    %30 = vector.broadcast %29 : vector<1x128xf32> to vector<16x128xf32>
    %31 = arith.addf %28, %30 : vector<16x128xf32>
    %32 = arith.truncf %31 : vector<16x128xf32> to vector<16x128xbf16>
    %c0_24 = arith.constant 0 : index
    %c0_25 = arith.constant 0 : index
    %33 = vector.load %arg19[%c0_24, %c0_25] : memref<16x128xbf16, #tpu.memory_space<vmem>>, vector<16x128xbf16>
    tpu.vector_store %arg19[%c0_24, %c0_25], %32 {strides = array<i32>} : memref<16x128xbf16, #tpu.memory_space<vmem>>, vector<16x128xbf16>,
    %c0_26 = arith.constant 0 : index
    %c0_27 = arith.constant 0 : index
    %c0_28 = arith.constant 0 : index
    %34 = vector.load %arg1[%c0_26, %c0_27, %c0_28] : memref<1x16x128xf32, #tpu.memory_space<vmem>>, vector<1x16x128xf32>
    %35 = vector.shape_cast %34 : vector<1x16x128xf32> to vector<16x128xf32>
    %c0_29 = arith.constant 0 : index
    %c0_30 = arith.constant 0 : index
    %36 = vector.load %arg16[%c0_29, %c0_30] : memref<16x128xbf16, #tpu.memory_space<vmem>>, vector<16x128xbf16>
    %c0_31 = arith.constant 0 : index
    %c0_32 = arith.constant 0 : index
    %37 = vector.load %arg17[%c0_31, %c0_32] : memref<16x128xbf16, #tpu.memory_space<vmem>>, vector<16x128xbf16>
    %c0_33 = arith.constant 0 : index
    %c0_34 = arith.constant 0 : index
    %38 = vector.load %arg3[%c0_33, %c0_34] : memref<128x128xbf16, #tpu.memory_space<vmem>>, vector<128x128xbf16>
    %39 = vector.extract_strided_slice %0 {offsets = [0, 0], sizes = [1, 128], strides = [1, 1]} : vector<16x128xf32> to vector<1x128xf32>
    %c0_35 = arith.constant 0 : index
    %c0_36 = arith.constant 0 : index
    %40 = vector.load %arg6[%c0_35, %c0_36] : memref<128x128xbf16, #tpu.memory_space<vmem>>, vector<128x128xbf16>
    %41 = vector.extract_strided_slice %0 {offsets = [3, 0], sizes = [1, 128], strides = [1, 1]} : vector<16x128xf32> to vector<1x128xf32>
    %42 = arith.truncf %35 : vector<16x128xf32> to vector<16x128xbf16>
    %cst_37 = arith.constant dense<0.000000e+00> : vector<16x128xf32>
    %43 = tpu.matmul %42, %38, %cst_37 {dimension_numbers = #tpu.dot_dimension_numbers<[1], [0], [0], [1], [0, 0, 1, 1], [], []>} : vector<16x128xbf16>, vector<128x128xbf16>, vector<16x128xf32> -> vector<16x128xf32>
    %44 = vector.broadcast %39 : vector<1x128xf32> to vector<16x128xf32>
    %45 = arith.addf %43, %44 : vector<16x128xf32>
    %cst_38 = arith.constant 0.176776692 : f32
    %46 = vector.broadcast %cst_38 : f32 to vector<16x128xf32>
    %47 = arith.mulf %45, %46 : vector<16x128xf32>
    %48 = arith.truncf %47 : vector<16x128xf32> to vector<16x128xbf16>
    %49 = vector.shape_cast %48 : vector<16x128xbf16> to vector<16x4x32xbf16>
    %50 = tpu.transpose %49, [1, 0, 2] : vector<16x4x32xbf16> -> vector<4x16x32xbf16>
    %51 = vector.shape_cast %36 : vector<16x128xbf16> to vector<16x4x32xbf16>
    %52 = tpu.transpose %51, [1, 0, 2] : vector<16x4x32xbf16> -> vector<4x16x32xbf16>
    %53 = vector.shape_cast %37 : vector<16x128xbf16> to vector<16x4x32xbf16>
    %54 = tpu.transpose %53, [1, 0, 2] : vector<16x4x32xbf16> -> vector<4x16x32xbf16>
    "tpu.trace_start"() <{level = 10 : i32, message = "hqd,hkd->hqk"}> : () -> ()
    %cst_39 = arith.constant dense<0.000000e+00> : vector<4x16x16xf32>
    %55 = tpu.matmul %50, %52, %cst_39 {dimension_numbers = #tpu.dot_dimension_numbers<[2], [2], [1], [1], [0, 0, 0, 1, 1, 1], [0], [0]>} : vector<4x16x32xbf16>, vector<4x16x32xbf16>, vector<4x16x16xf32> -> vector<4x16x16xf32>
    "tpu.trace_stop"() : () -> ()
    %cst_40 = arith.constant dense<0xFF800000> : vector<4x16xf32>
    %56 = vector.multi_reduction <maximumf>, %55, %cst_40 [2] : vector<4x16x16xf32> to vector<4x16xf32>
    %57 = vector.shape_cast %56 : vector<4x16xf32> to vector<4x16x1xf32>
    %58 = vector.broadcast %57 : vector<4x16x1xf32> to vector<4x16x16xf32>
    %59 = arith.subf %55, %58 : vector<4x16x16xf32>
    %60 = math.exp %59 : vector<4x16x16xf32>
    %cst_41 = arith.constant dense<0.000000e+00> : vector<4x16xf32>
    %61 = vector.multi_reduction <add>, %60, %cst_41 [2] : vector<4x16x16xf32> to vector<4x16xf32>
    %62 = vector.shape_cast %61 : vector<4x16xf32> to vector<4x16x1xf32>
    %63 = arith.truncf %60 : vector<4x16x16xf32> to vector<4x16x16xbf16>
    "tpu.trace_start"() <{level = 10 : i32, message = "hqk,hkd->hqd"}> : () -> ()
    %cst_42 = arith.constant dense<0.000000e+00> : vector<4x16x32xf32>
    %64 = tpu.matmul %63, %54, %cst_42 {dimension_numbers = #tpu.dot_dimension_numbers<[2], [1], [1], [2], [0, 0, 0, 1, 1, 2], [0], [0]>} : vector<4x16x16xbf16>, vector<4x16x32xbf16>, vector<4x16x32xf32> -> vector<4x16x32xf32>
    "tpu.trace_stop"() : () -> ()
    %65 = tpu.reciprocal %62 : vector<4x16x1xf32> -> vector<4x16x1xf32>
    %66 = vector.broadcast %65 : vector<4x16x1xf32> to vector<4x16x32xf32>
    %67 = arith.mulf %64, %66 : vector<4x16x32xf32>
    %68 = tpu.transpose %67, [1, 0, 2] : vector<4x16x32xf32> -> vector<16x4x32xf32>
    %69 = vector.shape_cast %68 : vector<16x4x32xf32> to vector<16x128xf32>
    %70 = arith.truncf %69 : vector<16x128xf32> to vector<16x128xbf16>
    %cst_43 = arith.constant dense<0.000000e+00> : vector<16x128xf32>
    %71 = tpu.matmul %70, %40, %cst_43 {dimension_numbers = #tpu.dot_dimension_numbers<[1], [0], [0], [1], [0, 0, 1, 1], [], []>} : vector<16x128xbf16>, vector<128x128xbf16>, vector<16x128xf32> -> vector<16x128xf32>
    %72 = vector.broadcast %41 : vector<1x128xf32> to vector<16x128xf32>
    %73 = arith.addf %71, %72 : vector<16x128xf32>
    %74 = arith.addf %35, %73 : vector<16x128xf32>
    %75 = vector.extract_strided_slice %0 {offsets = [9, 0], sizes = [1, 128], strides = [1, 1]} : vector<16x128xf32> to vector<1x128xf32>
    %76 = vector.extract_strided_slice %0 {offsets = [10, 0], sizes = [1, 128], strides = [1, 1]} : vector<16x128xf32> to vector<1x128xf32>
    %cst_44 = arith.constant dense<0.000000e+00> : vector<16xf32>
    %77 = vector.multi_reduction <add>, %74, %cst_44 [1] : vector<16x128xf32> to vector<16xf32>
    %78 = vector.shape_cast %77 : vector<16xf32> to vector<16x1xf32>
    %cst_45 = arith.constant 1.280000e+02 : f32
    %79 = vector.broadcast %cst_45 : f32 to vector<16x1xf32>
    %80 = arith.divf %78, %79 : vector<16x1xf32>
    %81 = vector.broadcast %80 : vector<16x1xf32> to vector<16x128xf32>
    %82 = arith.subf %74, %81 : vector<16x128xf32>
    %83 = arith.mulf %82, %82 : vector<16x128xf32>
    %cst_46 = arith.constant dense<0.000000e+00> : vector<16xf32>
    %84 = vector.multi_reduction <add>, %83, %cst_46 [1] : vector<16x128xf32> to vector<16xf32>
    %85 = vector.shape_cast %84 : vector<16xf32> to vector<16x1xf32>
    %cst_47 = arith.constant 1.280000e+02 : f32
    %86 = vector.broadcast %cst_47 : f32 to vector<16x1xf32>
    %87 = arith.divf %85, %86 : vector<16x1xf32>
    %88 = vector.broadcast %80 : vector<16x1xf32> to vector<16x128xf32>
    %89 = arith.subf %74, %88 : vector<16x128xf32>
    %cst_48 = arith.constant 9.99999974E-6 : f32
    %90 = vector.broadcast %cst_48 : f32 to vector<16x1xf32>
    %91 = arith.addf %87, %90 : vector<16x1xf32>
    %92 = math.rsqrt %91 : vector<16x1xf32>
    %93 = vector.broadcast %92 : vector<16x1xf32> to vector<16x128xf32>
    %94 = arith.mulf %89, %93 : vector<16x128xf32>
    %95 = vector.broadcast %75 : vector<1x128xf32> to vector<16x128xf32>
    %96 = arith.mulf %94, %95 : vector<16x128xf32>
    %97 = vector.broadcast %76 : vector<1x128xf32> to vector<16x128xf32>
    %98 = arith.addf %96, %97 : vector<16x128xf32>
    %c0_49 = arith.constant 0 : index
    %c0_50 = arith.constant 0 : index
    %99 = vector.load %arg18[%c0_49, %c0_50] : memref<16x128xbf16, #tpu.memory_space<vmem>>, vector<16x128xbf16>
    %c0_51 = arith.constant 0 : index
    %c0_52 = arith.constant 0 : index
    %100 = vector.load %arg19[%c0_51, %c0_52] : memref<16x128xbf16, #tpu.memory_space<vmem>>, vector<16x128xbf16>
    %c0_53 = arith.constant 0 : index
    %c0_54 = arith.constant 0 : index
    %101 = vector.load %arg7[%c0_53, %c0_54] : memref<128x128xbf16, #tpu.memory_space<vmem>>, vector<128x128xbf16>
    %102 = vector.extract_strided_slice %0 {offsets = [4, 0], sizes = [1, 128], strides = [1, 1]} : vector<16x128xf32> to vector<1x128xf32>
    %c0_55 = arith.constant 0 : index
    %c0_56 = arith.constant 0 : index
    %103 = vector.load %arg10[%c0_55, %c0_56] : memref<128x128xbf16, #tpu.memory_space<vmem>>, vector<128x128xbf16>
    %104 = vector.extract_strided_slice %0 {offsets = [7, 0], sizes = [1, 128], strides = [1, 1]} : vector<16x128xf32> to vector<1x128xf32>
    %105 = arith.truncf %98 : vector<16x128xf32> to vector<16x128xbf16>
    %cst_57 = arith.constant dense<0.000000e+00> : vector<16x128xf32>
    %106 = tpu.matmul %105, %101, %cst_57 {dimension_numbers = #tpu.dot_dimension_numbers<[1], [0], [0], [1], [0, 0, 1, 1], [], []>} : vector<16x128xbf16>, vector<128x128xbf16>, vector<16x128xf32> -> vector<16x128xf32>
    %107 = vector.broadcast %102 : vector<1x128xf32> to vector<16x128xf32>
    %108 = arith.addf %106, %107 : vector<16x128xf32>
    %cst_58 = arith.constant 0.176776692 : f32
    %109 = vector.broadcast %cst_58 : f32 to vector<16x128xf32>
    %110 = arith.mulf %108, %109 : vector<16x128xf32>
    %111 = arith.truncf %110 : vector<16x128xf32> to vector<16x128xbf16>
    %112 = vector.shape_cast %111 : vector<16x128xbf16> to vector<16x4x32xbf16>
    %113 = tpu.transpose %112, [1, 0, 2] : vector<16x4x32xbf16> -> vector<4x16x32xbf16>
    %114 = vector.shape_cast %99 : vector<16x128xbf16> to vector<16x4x32xbf16>
    %115 = tpu.transpose %114, [1, 0, 2] : vector<16x4x32xbf16> -> vector<4x16x32xbf16>
    %116 = vector.shape_cast %100 : vector<16x128xbf16> to vector<16x4x32xbf16>
    %117 = tpu.transpose %116, [1, 0, 2] : vector<16x4x32xbf16> -> vector<4x16x32xbf16>
    "tpu.trace_start"() <{level = 10 : i32, message = "hqd,hkd->hqk"}> : () -> ()
    %cst_59 = arith.constant dense<0.000000e+00> : vector<4x16x16xf32>
    %118 = tpu.matmul %113, %115, %cst_59 {dimension_numbers = #tpu.dot_dimension_numbers<[2], [2], [1], [1], [0, 0, 0, 1, 1, 1], [0], [0]>} : vector<4x16x32xbf16>, vector<4x16x32xbf16>, vector<4x16x16xf32> -> vector<4x16x16xf32>
    "tpu.trace_stop"() : () -> ()
    %cst_60 = arith.constant dense<0xFF800000> : vector<4x16xf32>
    %119 = vector.multi_reduction <maximumf>, %118, %cst_60 [2] : vector<4x16x16xf32> to vector<4x16xf32>
    %120 = vector.shape_cast %119 : vector<4x16xf32> to vector<4x16x1xf32>
    %121 = vector.broadcast %120 : vector<4x16x1xf32> to vector<4x16x16xf32>
    %122 = arith.subf %118, %121 : vector<4x16x16xf32>
    %123 = math.exp %122 : vector<4x16x16xf32>
    %cst_61 = arith.constant dense<0.000000e+00> : vector<4x16xf32>
    %124 = vector.multi_reduction <add>, %123, %cst_61 [2] : vector<4x16x16xf32> to vector<4x16xf32>
    %125 = vector.shape_cast %124 : vector<4x16xf32> to vector<4x16x1xf32>
    %126 = arith.truncf %123 : vector<4x16x16xf32> to vector<4x16x16xbf16>
    "tpu.trace_start"() <{level = 10 : i32, message = "hqk,hkd->hqd"}> : () -> ()
    %cst_62 = arith.constant dense<0.000000e+00> : vector<4x16x32xf32>
    %127 = tpu.matmul %126, %117, %cst_62 {dimension_numbers = #tpu.dot_dimension_numbers<[2], [1], [1], [2], [0, 0, 0, 1, 1, 2], [0], [0]>} : vector<4x16x16xbf16>, vector<4x16x32xbf16>, vector<4x16x32xf32> -> vector<4x16x32xf32>
    "tpu.trace_stop"() : () -> ()
    %128 = tpu.reciprocal %125 : vector<4x16x1xf32> -> vector<4x16x1xf32>
    %129 = vector.broadcast %128 : vector<4x16x1xf32> to vector<4x16x32xf32>
    %130 = arith.mulf %127, %129 : vector<4x16x32xf32>
    %131 = tpu.transpose %130, [1, 0, 2] : vector<4x16x32xf32> -> vector<16x4x32xf32>
    %132 = vector.shape_cast %131 : vector<16x4x32xf32> to vector<16x128xf32>
    %133 = arith.truncf %132 : vector<16x128xf32> to vector<16x128xbf16>
    %cst_63 = arith.constant dense<0.000000e+00> : vector<16x128xf32>
    %134 = tpu.matmul %133, %103, %cst_63 {dimension_numbers = #tpu.dot_dimension_numbers<[1], [0], [0], [1], [0, 0, 1, 1], [], []>} : vector<16x128xbf16>, vector<128x128xbf16>, vector<16x128xf32> -> vector<16x128xf32>
    %135 = vector.broadcast %104 : vector<1x128xf32> to vector<16x128xf32>
    %136 = arith.addf %134, %135 : vector<16x128xf32>
    %137 = arith.addf %98, %136 : vector<16x128xf32>
    %138 = vector.extract_strided_slice %0 {offsets = [11, 0], sizes = [1, 128], strides = [1, 1]} : vector<16x128xf32> to vector<1x128xf32>
    %139 = vector.extract_strided_slice %0 {offsets = [12, 0], sizes = [1, 128], strides = [1, 1]} : vector<16x128xf32> to vector<1x128xf32>
    %cst_64 = arith.constant dense<0.000000e+00> : vector<16xf32>
    %140 = vector.multi_reduction <add>, %137, %cst_64 [1] : vector<16x128xf32> to vector<16xf32>
    %141 = vector.shape_cast %140 : vector<16xf32> to vector<16x1xf32>
    %cst_65 = arith.constant 1.280000e+02 : f32
    %142 = vector.broadcast %cst_65 : f32 to vector<16x1xf32>
    %143 = arith.divf %141, %142 : vector<16x1xf32>
    %144 = vector.broadcast %143 : vector<16x1xf32> to vector<16x128xf32>
    %145 = arith.subf %137, %144 : vector<16x128xf32>
    %146 = arith.mulf %145, %145 : vector<16x128xf32>
    %cst_66 = arith.constant dense<0.000000e+00> : vector<16xf32>
    %147 = vector.multi_reduction <add>, %146, %cst_66 [1] : vector<16x128xf32> to vector<16xf32>
    %148 = vector.shape_cast %147 : vector<16xf32> to vector<16x1xf32>
    %cst_67 = arith.constant 1.280000e+02 : f32
    %149 = vector.broadcast %cst_67 : f32 to vector<16x1xf32>
    %150 = arith.divf %148, %149 : vector<16x1xf32>
    %151 = vector.broadcast %143 : vector<16x1xf32> to vector<16x128xf32>
    %152 = arith.subf %137, %151 : vector<16x128xf32>
    %cst_68 = arith.constant 9.99999974E-6 : f32
    %153 = vector.broadcast %cst_68 : f32 to vector<16x1xf32>
    %154 = arith.addf %150, %153 : vector<16x1xf32>
    %155 = math.rsqrt %154 : vector<16x1xf32>
    %156 = vector.broadcast %155 : vector<16x1xf32> to vector<16x128xf32>
    %157 = arith.mulf %152, %156 : vector<16x128xf32>
    %158 = vector.broadcast %138 : vector<1x128xf32> to vector<16x128xf32>
    %159 = arith.mulf %157, %158 : vector<16x128xf32>
    %160 = vector.broadcast %139 : vector<1x128xf32> to vector<16x128xf32>
    %161 = arith.addf %159, %160 : vector<16x128xf32>
    %162 = arith.truncf %161 : vector<16x128xf32> to vector<16x128xbf16>
    %c0_69 = arith.constant 0 : index
    %c0_70 = arith.constant 0 : index
    %163 = vector.load %arg11[%c0_69, %c0_70] : memref<128x256xbf16, #tpu.memory_space<vmem>>, vector<128x256xbf16>
    %cst_71 = arith.constant dense<0.000000e+00> : vector<16x256xf32>
    %164 = tpu.matmul %162, %163, %cst_71 {dimension_numbers = #tpu.dot_dimension_numbers<[1], [0], [0], [1], [0, 0, 1, 1], [], []>} : vector<16x128xbf16>, vector<128x256xbf16>, vector<16x256xf32> -> vector<16x256xf32>
    %c0_72 = arith.constant 0 : index
    %c0_73 = arith.constant 0 : index
    %165 = vector.load %arg13[%c0_72, %c0_73] : memref<1x256xf32, #tpu.memory_space<vmem>>, vector<1x256xf32>
    %166 = vector.broadcast %165 : vector<1x256xf32> to vector<16x256xf32>
    %167 = arith.addf %164, %166 : vector<16x256xf32>
    %cst_74 = arith.constant 0.000000e+00 : f32
    %168 = vector.broadcast %cst_74 : f32 to vector<16x256xf32>
    %169 = arith.maximumf %167, %168 : vector<16x256xf32>
    %170 = arith.truncf %169 : vector<16x256xf32> to vector<16x256xbf16>
    %c0_75 = arith.constant 0 : index
    %c0_76 = arith.constant 0 : index
    %171 = vector.load %arg12[%c0_75, %c0_76] : memref<256x128xbf16, #tpu.memory_space<vmem>>, vector<256x128xbf16>
    %cst_77 = arith.constant dense<0.000000e+00> : vector<16x128xf32>
    %172 = tpu.matmul %170, %171, %cst_77 {dimension_numbers = #tpu.dot_dimension_numbers<[1], [0], [0], [1], [0, 0, 1, 1], [], []>} : vector<16x256xbf16>, vector<256x128xbf16>, vector<16x128xf32> -> vector<16x128xf32>
    %173 = vector.extract_strided_slice %0 {offsets = [8, 0], sizes = [1, 128], strides = [1, 1]} : vector<16x128xf32> to vector<1x128xf32>
    %174 = vector.broadcast %173 : vector<1x128xf32> to vector<16x128xf32>
    %175 = arith.addf %172, %174 : vector<16x128xf32>
    %176 = arith.addf %161, %175 : vector<16x128xf32>
    %177 = vector.extract_strided_slice %0 {offsets = [13, 0], sizes = [1, 128], strides = [1, 1]} : vector<16x128xf32> to vector<1x128xf32>
    %178 = vector.extract_strided_slice %0 {offsets = [14, 0], sizes = [1, 128], strides = [1, 1]} : vector<16x128xf32> to vector<1x128xf32>
    %cst_78 = arith.constant dense<0.000000e+00> : vector<16xf32>
    %179 = vector.multi_reduction <add>, %176, %cst_78 [1] : vector<16x128xf32> to vector<16xf32>
    %180 = vector.shape_cast %179 : vector<16xf32> to vector<16x1xf32>
    %cst_79 = arith.constant 1.280000e+02 : f32
    %181 = vector.broadcast %cst_79 : f32 to vector<16x1xf32>
    %182 = arith.divf %180, %181 : vector<16x1xf32>
    %183 = vector.broadcast %182 : vector<16x1xf32> to vector<16x128xf32>
    %184 = arith.subf %176, %183 : vector<16x128xf32>
    %185 = arith.mulf %184, %184 : vector<16x128xf32>
    %cst_80 = arith.constant dense<0.000000e+00> : vector<16xf32>
    %186 = vector.multi_reduction <add>, %185, %cst_80 [1] : vector<16x128xf32> to vector<16xf32>
    %187 = vector.shape_cast %186 : vector<16xf32> to vector<16x1xf32>
    %cst_81 = arith.constant 1.280000e+02 : f32
    %188 = vector.broadcast %cst_81 : f32 to vector<16x1xf32>
    %189 = arith.divf %187, %188 : vector<16x1xf32>
    %190 = vector.broadcast %182 : vector<16x1xf32> to vector<16x128xf32>
    %191 = arith.subf %176, %190 : vector<16x128xf32>
    %cst_82 = arith.constant 9.99999974E-6 : f32
    %192 = vector.broadcast %cst_82 : f32 to vector<16x1xf32>
    %193 = arith.addf %189, %192 : vector<16x1xf32>
    %194 = math.rsqrt %193 : vector<16x1xf32>
    %195 = vector.broadcast %194 : vector<16x1xf32> to vector<16x128xf32>
    %196 = arith.mulf %191, %195 : vector<16x128xf32>
    %197 = vector.broadcast %177 : vector<1x128xf32> to vector<16x128xf32>
    %198 = arith.mulf %196, %197 : vector<16x128xf32>
    %199 = vector.broadcast %178 : vector<1x128xf32> to vector<16x128xf32>
    %200 = arith.addf %198, %199 : vector<16x128xf32>
    %c0_83 = arith.constant 0 : index
    %c0_84 = arith.constant 0 : index
    %c0_85 = arith.constant 0 : index
    %201 = vector.load %arg15[%c0_83, %c0_84, %c0_85] : memref<1x16x128xf32, #tpu.memory_space<vmem>>, vector<1x16x128xf32>
    %202 = vector.shape_cast %201 : vector<1x16x128xf32> to vector<16x128xf32>
    %203 = vector.shape_cast %200 : vector<16x128xf32> to vector<1x16x128xf32>
    tpu.vector_store %arg15[%c0_83, %c0_84, %c0_85], %203 {strides = array<i32>} : memref<1x16x128xf32, #tpu.memory_space<vmem>>, vector<1x16x128xf32>,
    return
  }
  func.func @transform_0(%arg0: i32) -> (i32, i32, i32) {
    %c0_i32 = arith.constant 0 : i32
    %c0_i32_0 = arith.constant 0 : i32
    %c0_i32_1 = arith.constant 0 : i32
    return %arg0, %c0_i32, %c0_i32_0 : i32, i32, i32
  }
  func.func @transform_1(%arg0: i32) -> (i32, i32, i32) {
    %c0_i32 = arith.constant 0 : i32
    %c0_i32_0 = arith.constant 0 : i32
    %c0_i32_1 = arith.constant 0 : i32
    return %arg0, %c0_i32, %c0_i32_0 : i32, i32, i32
  }
  func.func @transform_2(%arg0: i32) -> (i32, i32) {
    %c0_i32 = arith.constant 0 : i32
    %c0_i32_0 = arith.constant 0 : i32
    %c0_i32_1 = arith.constant 0 : i32
    return %c0_i32, %c0_i32_0 : i32, i32
  }
  func.func @transform_3(%arg0: i32) -> (i32, i32) {
    %c0_i32 = arith.constant 0 : i32
    %c0_i32_0 = arith.constant 0 : i32
    %c0_i32_1 = arith.constant 0 : i32
    return %c0_i32, %c0_i32_0 : i32, i32
  }
  func.func @transform_4(%arg0: i32) -> (i32, i32) {
    %c0_i32 = arith.constant 0 : i32
    %c0_i32_0 = arith.constant 0 : i32
    %c0_i32_1 = arith.constant 0 : i32
    return %c0_i32, %c0_i32_0 : i32, i32
  }
  func.func @transform_5(%arg0: i32) -> (i32, i32) {
    %c0_i32 = arith.constant 0 : i32
    %c0_i32_0 = arith.constant 0 : i32
    %c0_i32_1 = arith.constant 0 : i32
    return %c0_i32, %c0_i32_0 : i32, i32
  }
  func.func @transform_6(%arg0: i32) -> (i32, i32) {
    %c0_i32 = arith.constant 0 : i32
    %c0_i32_0 = arith.constant 0 : i32
    %c0_i32_1 = arith.constant 0 : i32
    return %c0_i32, %c0_i32_0 : i32, i32
  }
  func.func @transform_7(%arg0: i32) -> (i32, i32) {
    %c0_i32 = arith.constant 0 : i32
    %c0_i32_0 = arith.constant 0 : i32
    %c0_i32_1 = arith.constant 0 : i32
    return %c0_i32, %c0_i32_0 : i32, i32
  }
  func.func @transform_8(%arg0: i32) -> (i32, i32) {
    %c0_i32 = arith.constant 0 : i32
    %c0_i32_0 = arith.constant 0 : i32
    %c0_i32_1 = arith.constant 0 : i32
    return %c0_i32, %c0_i32_0 : i32, i32
  }
  func.func @transform_9(%arg0: i32) -> (i32, i32) {
    %c0_i32 = arith.constant 0 : i32
    %c0_i32_0 = arith.constant 0 : i32
    %c0_i32_1 = arith.constant 0 : i32
    return %c0_i32, %c0_i32_0 : i32, i32
  }
  func.func @transform_10(%arg0: i32) -> (i32, i32) {
    %c0_i32 = arith.constant 0 : i32
    %c0_i32_0 = arith.constant 0 : i32
    %c0_i32_1 = arith.constant 0 : i32
    return %c0_i32, %c0_i32_0 : i32, i32
  }
  func.func @transform_11(%arg0: i32) -> (i32, i32) {
    %c0_i32 = arith.constant 0 : i32
    %c0_i32_0 = arith.constant 0 : i32
    %c0_i32_1 = arith.constant 0 : i32
    return %c0_i32, %c0_i32_0 : i32, i32
  }
  func.func @transform_12(%arg0: i32) -> (i32, i32) {
    %c0_i32 = arith.constant 0 : i32
    %c0_i32_0 = arith.constant 0 : i32
    %c0_i32_1 = arith.constant 0 : i32
    return %c0_i32, %c0_i32_0 : i32, i32
  }
  func.func @transform_13(%arg0: i32) -> (i32, i32) {
    %c0_i32 = arith.constant 0 : i32
    %c0_i32_0 = arith.constant 0 : i32
    %c0_i32_1 = arith.constant 0 : i32
    return %c0_i32, %c0_i32_0 : i32, i32
  }
  func.func @transform_14(%arg0: i32) -> (i32, i32, i32) {
    %c0_i32 = arith.constant 0 : i32
    %c0_i32_0 = arith.constant 0 : i32
    %c0_i32_1 = arith.constant 0 : i32
    return %arg0, %c0_i32, %c0_i32_0 : i32, i32, i32
  }
}

module attributes {stable_mosaic.version = 11 : i64} {
  func.func @decoder_layer_kernel(%arg0: i32, %arg1: memref<1x16x128xf32, #tpu.memory_space<vmem>>, %arg2: memref<1x16x128xbf16, #tpu.memory_space<vmem>>, %arg3: memref<128x128xbf16, #tpu.memory_space<vmem>>, %arg4: memref<128x128xbf16, #tpu.memory_space<vmem>>, %arg5: memref<128x128xbf16, #tpu.memory_space<vmem>>, %arg6: memref<128x128xbf16, #tpu.memory_space<vmem>>, %arg7: memref<128x128xbf16, #tpu.memory_space<vmem>>, %arg8: memref<128x128xbf16, #tpu.memory_space<vmem>>, %arg9: memref<128x128xbf16, #tpu.memory_space<vmem>>, %arg10: memref<128x128xbf16, #tpu.memory_space<vmem>>, %arg11: memref<128x256xbf16, #tpu.memory_space<vmem>>, %arg12: memref<256x128xbf16, #tpu.memory_space<vmem>>, %arg13: memref<1x256xf32, #tpu.memory_space<vmem>>, %arg14: memref<16x128xf32, #tpu.memory_space<vmem>>, %arg15: memref<1x16x128xf32, #tpu.memory_space<vmem>>, %arg16: memref<16x128xbf16, #tpu.memory_space<vmem>>, %arg17: memref<16x128xbf16, #tpu.memory_space<vmem>>, %arg18: memref<16x128xbf16, #tpu.memory_space<vmem>>, %arg19: memref<16x128xbf16, #tpu.memory_space<vmem>>) attributes {dimension_semantics = [#tpu.dimension_semantics<parallel>], iteration_bounds = array<i64: 2>, scalar_prefetch = 0 : i64, scratch_operands = 4 : i64, tpu.core_type = #tpu.core_type<tc>, window_params = [{transform_indices = @transform_0, window_bounds = array<i64: 1, 16, 128>}, {transform_indices = @transform_1, window_bounds = array<i64: 1, 16, 128>}, {pipeline_mode = #tpu.pipeline_mode<synchronous>, transform_indices = @transform_2, window_bounds = array<i64: 128, 128>}, {pipeline_mode = #tpu.pipeline_mode<synchronous>, transform_indices = @transform_3, window_bounds = array<i64: 128, 128>}, {pipeline_mode = #tpu.pipeline_mode<synchronous>, transform_indices = @transform_4, window_bounds = array<i64: 128, 128>}, {pipeline_mode = #tpu.pipeline_mode<synchronous>, transform_indices = @transform_5, window_bounds = array<i64: 128, 128>}, {pipeline_mode = #tpu.pipeline_mode<synchronous>, transform_indices = @transform_6, window_bounds = array<i64: 128, 128>}, {pipeline_mode = #tpu.pipeline_mode<synchronous>, transform_indices = @transform_7, window_bounds = array<i64: 128, 128>}, {pipeline_mode = #tpu.pipeline_mode<synchronous>, transform_indices = @transform_8, window_bounds = array<i64: 128, 128>}, {pipeline_mode = #tpu.pipeline_mode<synchronous>, transform_indices = @transform_9, window_bounds = array<i64: 128, 128>}, {pipeline_mode = #tpu.pipeline_mode<synchronous>, transform_indices = @transform_10, window_bounds = array<i64: 128, 256>}, {pipeline_mode = #tpu.pipeline_mode<synchronous>, transform_indices = @transform_11, window_bounds = array<i64: 256, 128>}, {pipeline_mode = #tpu.pipeline_mode<synchronous>, transform_indices = @transform_12, window_bounds = array<i64: 1, 256>}, {pipeline_mode = #tpu.pipeline_mode<synchronous>, transform_indices = @transform_13, window_bounds = array<i64: 16, 128>}, {transform_indices = @transform_14, window_bounds = array<i64: 1, 16, 128>}]} {
    %c0 = arith.constant 0 : index
    %c0_0 = arith.constant 0 : index
    %0 = vector.load %arg14[%c0, %c0_0] : memref<16x128xf32, #tpu.memory_space<vmem>>, vector<16x128xf32>
    %c0_1 = arith.constant 0 : index
    %c0_2 = arith.constant 0 : index
    %c0_3 = arith.constant 0 : index
    %1 = vector.load %arg1[%c0_1, %c0_2, %c0_3] : memref<1x16x128xf32, #tpu.memory_space<vmem>>, vector<1x16x128xf32>
    %2 = vector.shape_cast %1 : vector<1x16x128xf32> to vector<16x128xf32>
    %3 = arith.truncf %2 : vector<16x128xf32> to vector<16x128xbf16>
    %c0_4 = arith.constant 0 : index
    %c0_5 = arith.constant 0 : index
    %c0_6 = arith.constant 0 : index
    %4 = vector.load %arg2[%c0_4, %c0_5, %c0_6] : memref<1x16x128xbf16, #tpu.memory_space<vmem>>, vector<1x16x128xbf16>
    %5 = vector.shape_cast %4 : vector<1x16x128xbf16> to vector<16x128xbf16>
    %c0_7 = arith.constant 0 : index
    %c0_8 = arith.constant 0 : index
    %6 = vector.load %arg4[%c0_7, %c0_8] : memref<128x128xbf16, #tpu.memory_space<vmem>>, vector<128x128xbf16>
    %cst = arith.constant dense<0.000000e+00> : vector<16x128xf32>
    %7 = tpu.matmul %3, %6, %cst {dimension_numbers = #tpu.dot_dimension_numbers<[1], [0], [0], [1], [0, 0, 1, 1], [], []>} : vector<16x128xbf16>, vector<128x128xbf16>, vector<16x128xf32> -> vector<16x128xf32>
    %8 = vector.extract_strided_slice %0 {offsets = [1, 0], sizes = [1, 128], strides = [1, 1]} : vector<16x128xf32> to vector<1x128xf32>
    %9 = vector.broadcast %8 : vector<1x128xf32> to vector<16x128xf32>
    %10 = arith.addf %7, %9 : vector<16x128xf32>
    %11 = arith.truncf %10 : vector<16x128xf32> to vector<16x128xbf16>
    %c0_9 = arith.constant 0 : index
    %c0_10 = arith.constant 0 : index
    %12 = vector.load %arg16[%c0_9, %c0_10] : memref<16x128xbf16, #tpu.memory_space<vmem>>, vector<16x128xbf16>
    tpu.vector_store %arg16[%c0_9, %c0_10], %11 {strides = array<i32>} : memref<16x128xbf16, #tpu.memory_space<vmem>>, vector<16x128xbf16>,
    %c0_11 = arith.constant 0 : index
    %c0_12 = arith.constant 0 : index
    %13 = vector.load %arg5[%c0_11, %c0_12] : memref<128x128xbf16, #tpu.memory_space<vmem>>, vector<128x128xbf16>
    %cst_13 = arith.constant dense<0.000000e+00> : vector<16x128xf32>
    %14 = tpu.matmul %3, %13, %cst_13 {dimension_numbers = #tpu.dot_dimension_numbers<[1], [0], [0], [1], [0, 0, 1, 1], [], []>} : vector<16x128xbf16>, vector<128x128xbf16>, vector<16x128xf32> -> vector<16x128xf32>
    %15 = vector.extract_strided_slice %0 {offsets = [2, 0], sizes = [1, 128], strides = [1, 1]} : vector<16x128xf32> to vector<1x128xf32>
    %16 = vector.broadcast %15 : vector<1x128xf32> to vector<16x128xf32>
    %17 = arith.addf %14, %16 : vector<16x128xf32>
    %18 = arith.truncf %17 : vector<16x128xf32> to vector<16x128xbf16>
    %c0_14 = arith.constant 0 : index
    %c0_15 = arith.constant 0 : index
    %19 = vector.load %arg17[%c0_14, %c0_15] : memref<16x128xbf16, #tpu.memory_space<vmem>>, vector<16x128xbf16>
    tpu.vector_store %arg17[%c0_14, %c0_15], %18 {strides = array<i32>} : memref<16x128xbf16, #tpu.memory_space<vmem>>, vector<16x128xbf16>,
    %c0_16 = arith.constant 0 : index
    %c0_17 = arith.constant 0 : index
    %20 = vector.load %arg8[%c0_16, %c0_17] : memref<128x128xbf16, #tpu.memory_space<vmem>>, vector<128x128xbf16>
    %cst_18 = arith.constant dense<0.000000e+00> : vector<16x128xf32>
    %21 = tpu.matmul %5, %20, %cst_18 {dimension_numbers = #tpu.dot_dimension_numbers<[1], [0], [0], [1], [0, 0, 1, 1], [], []>} : vector<16x128xbf16>, vector<128x128xbf16>, vector<16x128xf32> -> vector<16x128xf32>
    %22 = vector.extract_strided_slice %0 {offsets = [5, 0], sizes = [1, 128], strides = [1, 1]} : vector<16x128xf32> to vector<1x128xf32>
    %23 = vector.broadcast %22 : vector<1x128xf32> to vector<16x128xf32>
    %24 = arith.addf %21, %23 : vector<16x128xf32>
    %25 = arith.truncf %24 : vector<16x128xf32> to vector<16x128xbf16>
    %c0_19 = arith.constant 0 : index
    %c0_20 = arith.constant 0 : index
    %26 = vector.load %arg18[%c0_19, %c0_20] : memref<16x128xbf16, #tpu.memory_space<vmem>>, vector<16x128xbf16>
    tpu.vector_store %arg18[%c0_19, %c0_20], %25 {strides = array<i32>} : memref<16x128xbf16, #tpu.memory_space<vmem>>, vector<16x128xbf16>,
    %c0_21 = arith.constant 0 : index
    %c0_22 = arith.constant 0 : index
    %27 = vector.load %arg9[%c0_21, %c0_22] : memref<128x128xbf16, #tpu.memory_space<vmem>>, vector<128x128xbf16>
    %cst_23 = arith.constant dense<0.000000e+00> : vector<16x128xf32>
    %28 = tpu.matmul %5, %27, %cst_23 {dimension_numbers = #tpu.dot_dimension_numbers<[1], [0], [0], [1], [0, 0, 1, 1], [], []>} : vector<16x128xbf16>, vector<128x128xbf16>, vector<16x128xf32> -> vector<16x128xf32>
    %29 = vector.extract_strided_slice %0 {offsets = [6, 0], sizes = [1, 128], strides = [1, 1]} : vector<16x128xf32> to vector<1x128xf32>
    %30 = vector.broadcast %29 : vector<1x128xf32> to vector<16x128xf32>
    %31 = arith.addf %28, %30 : vector<16x128xf32>
    %32 = arith.truncf %31 : vector<16x128xf32> to vector<16x128xbf16>
    %c0_24 = arith.constant 0 : index
    %c0_25 = arith.constant 0 : index
    %33 = vector.load %arg19[%c0_24, %c0_25] : memref<16x128xbf16, #tpu.memory_space<vmem>>, vector<16x128xbf16>
    tpu.vector_store %arg19[%c0_24, %c0_25], %32 {strides = array<i32>} : memref<16x128xbf16, #tpu.memory_space<vmem>>, vector<16x128xbf16>,
    %c0_26 = arith.constant 0 : index
    %c0_27 = arith.constant 0 : index
    %c0_28 = arith.constant 0 : index
    %34 = vector.load %arg1[%c0_26, %c0_27, %c0_28] : memref<1x16x128xf32, #tpu.memory_space<vmem>>, vector<1x16x128xf32>
    %35 = vector.shape_cast %34 : vector<1x16x128xf32> to vector<16x128xf32>
    %c0_29 = arith.constant 0 : index
    %c0_30 = arith.constant 0 : index
    %36 = vector.load %arg16[%c0_29, %c0_30] : memref<16x128xbf16, #tpu.memory_space<vmem>>, vector<16x128xbf16>
    %c0_31 = arith.constant 0 : index
    %c0_32 = arith.constant 0 : index
    %37 = vector.load %arg17[%c0_31, %c0_32] : memref<16x128xbf16, #tpu.memory_space<vmem>>, vector<16x128xbf16>
    %c0_33 = arith.constant 0 : index
    %c0_34 = arith.constant 0 : index
    %38 = vector.load %arg3[%c0_33, %c0_34] : memref<128x128xbf16, #tpu.memory_space<vmem>>, vector<128x128xbf16>
    %39 = vector.extract_strided_slice %0 {offsets = [0, 0], sizes = [1, 128], strides = [1, 1]} : vector<16x128xf32> to vector<1x128xf32>
    %c0_35 = arith.constant 0 : index
    %c0_36 = arith.constant 0 : index
    %40 = vector.load %arg6[%c0_35, %c0_36] : memref<128x128xbf16, #tpu.memory_space<vmem>>, vector<128x128xbf16>
    %41 = vector.extract_strided_slice %0 {offsets = [3, 0], sizes = [1, 128], strides = [1, 1]} : vector<16x128xf32> to vector<1x128xf32>
    %42 = arith.truncf %35 : vector<16x128xf32> to vector<16x128xbf16>
    %cst_37 = arith.constant dense<0.000000e+00> : vector<16x128xf32>
    %43 = tpu.matmul %42, %38, %cst_37 {dimension_numbers = #tpu.dot_dimension_numbers<[1], [0], [0], [1], [0, 0, 1, 1], [], []>} : vector<16x128xbf16>, vector<128x128xbf16>, vector<16x128xf32> -> vector<16x128xf32>
    %44 = vector.broadcast %39 : vector<1x128xf32> to vector<16x128xf32>
    %45 = arith.addf %43, %44 : vector<16x128xf32>
    %cst_38 = arith.constant 0.176776692 : f32
    %46 = vector.broadcast %cst_38 : f32 to vector<16x128xf32>
    %47 = arith.mulf %45, %46 : vector<16x128xf32>
    %48 = arith.truncf %47 : vector<16x128xf32> to vector<16x128xbf16>
    %49 = vector.shape_cast %48 : vector<16x128xbf16> to vector<16x4x32xbf16>
    %50 = tpu.transpose %49, [1, 0, 2] : vector<16x4x32xbf16> -> vector<4x16x32xbf16>
    %51 = vector.shape_cast %36 : vector<16x128xbf16> to vector<16x4x32xbf16>
    %52 = tpu.transpose %51, [1, 0, 2] : vector<16x4x32xbf16> -> vector<4x16x32xbf16>
    %53 = vector.shape_cast %37 : vector<16x128xbf16> to vector<16x4x32xbf16>
    %54 = tpu.transpose %53, [1, 0, 2] : vector<16x4x32xbf16> -> vector<4x16x32xbf16>
    "tpu.trace_start"() <{level = 10 : i32, message = "hqd,hkd->hqk"}> : () -> ()
    %cst_39 = arith.constant dense<0.000000e+00> : vector<4x16x16xf32>
    %55 = tpu.matmul %50, %52, %cst_39 {dimension_numbers = #tpu.dot_dimension_numbers<[2], [2], [1], [1], [0, 0, 0, 1, 1, 1], [0], [0]>} : vector<4x16x32xbf16>, vector<4x16x32xbf16>, vector<4x16x16xf32> -> vector<4x16x16xf32>
    "tpu.trace_stop"() : () -> ()
    %cst_40 = arith.constant dense<0xFF800000> : vector<4x16xf32>
    %56 = vector.multi_reduction <maximumf>, %55, %cst_40 [2] : vector<4x16x16xf32> to vector<4x16xf32>
    %57 = vector.shape_cast %56 : vector<4x16xf32> to vector<4x16x1xf32>
    %58 = vector.broadcast %57 : vector<4x16x1xf32> to vector<4x16x16xf32>
    %59 = arith.subf %55, %58 : vector<4x16x16xf32>
    %60 = math.exp %59 : vector<4x16x16xf32>
    %cst_41 = arith.constant dense<0.000000e+00> : vector<4x16xf32>
    %61 = vector.multi_reduction <add>, %60, %cst_41 [2] : vector<4x16x16xf32> to vector<4x16xf32>
    %62 = vector.shape_cast %61 : vector<4x16xf32> to vector<4x16x1xf32>
    %63 = arith.truncf %60 : vector<4x16x16xf32> to vector<4x16x16xbf16>
    "tpu.trace_start"() <{level = 10 : i32, message = "hqk,hkd->hqd"}> : () -> ()
    %cst_42 = arith.constant dense<0.000000e+00> : vector<4x16x32xf32>
    %64 = tpu.matmul %63, %54, %cst_42 {dimension_numbers = #tpu.dot_dimension_numbers<[2], [1], [1], [2], [0, 0, 0, 1, 1, 2], [0], [0]>} : vector<4x16x16xbf16>, vector<4x16x32xbf16>, vector<4x16x32xf32> -> vector<4x16x32xf32>
    "tpu.trace_stop"() : () -> ()
    %65 = tpu.reciprocal %62 : vector<4x16x1xf32> -> vector<4x16x1xf32>
    %66 = vector.broadcast %65 : vector<4x16x1xf32> to vector<4x16x32xf32>
    %67 = arith.mulf %64, %66 : vector<4x16x32xf32>
    %68 = tpu.transpose %67, [1, 0, 2] : vector<4x16x32xf32> -> vector<16x4x32xf32>
    %69 = vector.shape_cast %68 : vector<16x4x32xf32> to vector<16x128xf32>
    %70 = arith.truncf %69 : vector<16x128xf32> to vector<16x128xbf16>
    %cst_43 = arith.constant dense<0.000000e+00> : vector<16x128xf32>
    %71 = tpu.matmul %70, %40, %cst_43 {dimension_numbers = #tpu.dot_dimension_numbers<[1], [0], [0], [1], [0, 0, 1, 1], [], []>} : vector<16x128xbf16>, vector<128x128xbf16>, vector<16x128xf32> -> vector<16x128xf32>
    %72 = vector.broadcast %41 : vector<1x128xf32> to vector<16x128xf32>
    %73 = arith.addf %71, %72 : vector<16x128xf32>
    %74 = arith.addf %35, %73 : vector<16x128xf32>
    %75 = vector.extract_strided_slice %0 {offsets = [9, 0], sizes = [1, 128], strides = [1, 1]} : vector<16x128xf32> to vector<1x128xf32>
    %76 = vector.extract_strided_slice %0 {offsets = [10, 0], sizes = [1, 128], strides = [1, 1]} : vector<16x128xf32> to vector<1x128xf32>
    %cst_44 = arith.constant dense<0.000000e+00> : vector<16xf32>
    %77 = vector.multi_reduction <add>, %74, %cst_44 [1] : vector<16x128xf32> to vector<16xf32>
    %78 = vector.shape_cast %77 : vector<16xf32> to vector<16x1xf32>
    %cst_45 = arith.constant 1.280000e+02 : f32
    %79 = vector.broadcast %cst_45 : f32 to vector<16x1xf32>
    %80 = arith.divf %78, %79 : vector<16x1xf32>
    %81 = vector.broadcast %80 : vector<16x1xf32> to vector<16x128xf32>
    %82 = arith.subf %74, %81 : vector<16x128xf32>
    %83 = arith.mulf %82, %82 : vector<16x128xf32>
    %cst_46 = arith.constant dense<0.000000e+00> : vector<16xf32>
    %84 = vector.multi_reduction <add>, %83, %cst_46 [1] : vector<16x128xf32> to vector<16xf32>
    %85 = vector.shape_cast %84 : vector<16xf32> to vector<16x1xf32>
    %cst_47 = arith.constant 1.280000e+02 : f32
    %86 = vector.broadcast %cst_47 : f32 to vector<16x1xf32>
    %87 = arith.divf %85, %86 : vector<16x1xf32>
    %88 = vector.broadcast %80 : vector<16x1xf32> to vector<16x128xf32>
    %89 = arith.subf %74, %88 : vector<16x128xf32>
    %cst_48 = arith.constant 9.99999974E-6 : f32
    %90 = vector.broadcast %cst_48 : f32 to vector<16x1xf32>
    %91 = arith.addf %87, %90 : vector<16x1xf32>
    %92 = math.rsqrt %91 : vector<16x1xf32>
    %93 = vector.broadcast %92 : vector<16x1xf32> to vector<16x128xf32>
    %94 = arith.mulf %89, %93 : vector<16x128xf32>
    %95 = vector.broadcast %75 : vector<1x128xf32> to vector<16x128xf32>
    %96 = arith.mulf %94, %95 : vector<16x128xf32>
    %97 = vector.broadcast %76 : vector<1x128xf32> to vector<16x128xf32>
    %98 = arith.addf %96, %97 : vector<16x128xf32>
    %c0_49 = arith.constant 0 : index
    %c0_50 = arith.constant 0 : index
    %99 = vector.load %arg18[%c0_49, %c0_50] : memref<16x128xbf16, #tpu.memory_space<vmem>>, vector<16x128xbf16>
    %c0_51 = arith.constant 0 : index
    %c0_52 = arith.constant 0 : index
    %100 = vector.load %arg19[%c0_51, %c0_52] : memref<16x128xbf16, #tpu.memory_space<vmem>>, vector<16x128xbf16>
    %c0_53 = arith.constant 0 : index
    %c0_54 = arith.constant 0 : index
    %101 = vector.load %arg7[%c0_53, %c0_54] : memref<128x128xbf16, #tpu.memory_space<vmem>>, vector<128x128xbf16>
    %102 = vector.extract_strided_slice %0 {offsets = [4, 0], sizes = [1, 128], strides = [1, 1]} : vector<16x128xf32> to vector<1x128xf32>
    %c0_55 = arith.constant 0 : index
    %c0_56 = arith.constant 0 : index
    %103 = vector.load %arg10[%c0_55, %c0_56] : memref<128x128xbf16, #tpu.memory_space<vmem>>, vector<128x128xbf16>
    %104 = vector.extract_strided_slice %0 {offsets = [7, 0], sizes = [1, 128], strides = [1, 1]} : vector<16x128xf32> to vector<1x128xf32>
    %105 = arith.truncf %98 : vector<16x128xf32> to vector<16x128xbf16>
    %cst_57 = arith.constant dense<0.000000e+00> : vector<16x128xf32>
    %106 = tpu.matmul %105, %101, %cst_57 {dimension_numbers = #tpu.dot_dimension_numbers<[1], [0], [0], [1], [0, 0, 1, 1], [], []>} : vector<16x128xbf16>, vector<128x128xbf16>, vector<16x128xf32> -> vector<16x128xf32>
    %107 = vector.broadcast %102 : vector<1x128xf32> to vector<16x128xf32>
    %108 = arith.addf %106, %107 : vector<16x128xf32>
    %cst_58 = arith.constant 0.176776692 : f32
    %109 = vector.broadcast %cst_58 : f32 to vector<16x128xf32>
    %110 = arith.mulf %108, %109 : vector<16x128xf32>
    %111 = arith.truncf %110 : vector<16x128xf32> to vector<16x128xbf16>
    %112 = vector.shape_cast %111 : vector<16x128xbf16> to vector<16x4x32xbf16>
    %113 = tpu.transpose %112, [1, 0, 2] : vector<16x4x32xbf16> -> vector<4x16x32xbf16>
    %114 = vector.shape_cast %99 : vector<16x128xbf16> to vector<16x4x32xbf16>
    %115 = tpu.transpose %114, [1, 0, 2] : vector<16x4x32xbf16> -> vector<4x16x32xbf16>
    %116 = vector.shape_cast %100 : vector<16x128xbf16> to vector<16x4x32xbf16>
    %117 = tpu.transpose %116, [1, 0, 2] : vector<16x4x32xbf16> -> vector<4x16x32xbf16>
    "tpu.trace_start"() <{level = 10 : i32, message = "hqd,hkd->hqk"}> : () -> ()
    %cst_59 = arith.constant dense<0.000000e+00> : vector<4x16x16xf32>
    %118 = tpu.matmul %113, %115, %cst_59 {dimension_numbers = #tpu.dot_dimension_numbers<[2], [2], [1], [1], [0, 0, 0, 1, 1, 1], [0], [0]>} : vector<4x16x32xbf16>, vector<4x16x32xbf16>, vector<4x16x16xf32> -> vector<4x16x16xf32>
    "tpu.trace_stop"() : () -> ()
    %cst_60 = arith.constant dense<0xFF800000> : vector<4x16xf32>
    %119 = vector.multi_reduction <maximumf>, %118, %cst_60 [2] : vector<4x16x16xf32> to vector<4x16xf32>
    %120 = vector.shape_cast %119 : vector<4x16xf32> to vector<4x16x1xf32>
    %121 = vector.broadcast %120 : vector<4x16x1xf32> to vector<4x16x16xf32>
    %122 = arith.subf %118, %121 : vector<4x16x16xf32>
    %123 = math.exp %122 : vector<4x16x16xf32>
    %cst_61 = arith.constant dense<0.000000e+00> : vector<4x16xf32>
    %124 = vector.multi_reduction <add>, %123, %cst_61 [2] : vector<4x16x16xf32> to vector<4x16xf32>
    %125 = vector.shape_cast %124 : vector<4x16xf32> to vector<4x16x1xf32>
    %126 = arith.truncf %123 : vector<4x16x16xf32> to vector<4x16x16xbf16>
    "tpu.trace_start"() <{level = 10 : i32, message = "hqk,hkd->hqd"}> : () -> ()
    %cst_62 = arith.constant dense<0.000000e+00> : vector<4x16x32xf32>
    %127 = tpu.matmul %126, %117, %cst_62 {dimension_numbers = #tpu.dot_dimension_numbers<[2], [1], [1], [2], [0, 0, 0, 1, 1, 2], [0], [0]>} : vector<4x16x16xbf16>, vector<4x16x32xbf16>, vector<4x16x32xf32> -> vector<4x16x32xf32>
    "tpu.trace_stop"() : () -> ()
    %128 = tpu.reciprocal %125 : vector<4x16x1xf32> -> vector<4x16x1xf32>
    %129 = vector.broadcast %128 : vector<4x16x1xf32> to vector<4x16x32xf32>
    %130 = arith.mulf %127, %129 : vector<4x16x32xf32>
    %131 = tpu.transpose %130, [1, 0, 2] : vector<4x16x32xf32> -> vector<16x4x32xf32>
    %132 = vector.shape_cast %131 : vector<16x4x32xf32> to vector<16x128xf32>
    %133 = arith.truncf %132 : vector<16x128xf32> to vector<16x128xbf16>
    %cst_63 = arith.constant dense<0.000000e+00> : vector<16x128xf32>
    %134 = tpu.matmul %133, %103, %cst_63 {dimension_numbers = #tpu.dot_dimension_numbers<[1], [0], [0], [1], [0, 0, 1, 1], [], []>} : vector<16x128xbf16>, vector<128x128xbf16>, vector<16x128xf32> -> vector<16x128xf32>
    %135 = vector.broadcast %104 : vector<1x128xf32> to vector<16x128xf32>
    %136 = arith.addf %134, %135 : vector<16x128xf32>
    %137 = arith.addf %98, %136 : vector<16x128xf32>
    %138 = vector.extract_strided_slice %0 {offsets = [11, 0], sizes = [1, 128], strides = [1, 1]} : vector<16x128xf32> to vector<1x128xf32>
    %139 = vector.extract_strided_slice %0 {offsets = [12, 0], sizes = [1, 128], strides = [1, 1]} : vector<16x128xf32> to vector<1x128xf32>
    %cst_64 = arith.constant dense<0.000000e+00> : vector<16xf32>
    %140 = vector.multi_reduction <add>, %137, %cst_64 [1] : vector<16x128xf32> to vector<16xf32>
    %141 = vector.shape_cast %140 : vector<16xf32> to vector<16x1xf32>
    %cst_65 = arith.constant 1.280000e+02 : f32
    %142 = vector.broadcast %cst_65 : f32 to vector<16x1xf32>
    %143 = arith.divf %141, %142 : vector<16x1xf32>
    %144 = vector.broadcast %143 : vector<16x1xf32> to vector<16x128xf32>
    %145 = arith.subf %137, %144 : vector<16x128xf32>
    %146 = arith.mulf %145, %145 : vector<16x128xf32>
    %cst_66 = arith.constant dense<0.000000e+00> : vector<16xf32>
    %147 = vector.multi_reduction <add>, %146, %cst_66 [1] : vector<16x128xf32> to vector<16xf32>
    %148 = vector.shape_cast %147 : vector<16xf32> to vector<16x1xf32>
    %cst_67 = arith.constant 1.280000e+02 : f32
    %149 = vector.broadcast %cst_67 : f32 to vector<16x1xf32>
    %150 = arith.divf %148, %149 : vector<16x1xf32>
    %151 = vector.broadcast %143 : vector<16x1xf32> to vector<16x128xf32>
    %152 = arith.subf %137, %151 : vector<16x128xf32>
    %cst_68 = arith.constant 9.99999974E-6 : f32
    %153 = vector.broadcast %cst_68 : f32 to vector<16x1xf32>
    %154 = arith.addf %150, %153 : vector<16x1xf32>
    %155 = math.rsqrt %154 : vector<16x1xf32>
    %156 = vector.broadcast %155 : vector<16x1xf32> to vector<16x128xf32>
    %157 = arith.mulf %152, %156 : vector<16x128xf32>
    %158 = vector.broadcast %138 : vector<1x128xf32> to vector<16x128xf32>
    %159 = arith.mulf %157, %158 : vector<16x128xf32>
    %160 = vector.broadcast %139 : vector<1x128xf32> to vector<16x128xf32>
    %161 = arith.addf %159, %160 : vector<16x128xf32>
    %162 = arith.truncf %161 : vector<16x128xf32> to vector<16x128xbf16>
    %c0_69 = arith.constant 0 : index
    %c0_70 = arith.constant 0 : index
    %163 = vector.load %arg11[%c0_69, %c0_70] : memref<128x256xbf16, #tpu.memory_space<vmem>>, vector<128x256xbf16>
    %cst_71 = arith.constant dense<0.000000e+00> : vector<16x256xf32>
    %164 = tpu.matmul %162, %163, %cst_71 {dimension_numbers = #tpu.dot_dimension_numbers<[1], [0], [0], [1], [0, 0, 1, 1], [], []>} : vector<16x128xbf16>, vector<128x256xbf16>, vector<16x256xf32> -> vector<16x256xf32>
    %c0_72 = arith.constant 0 : index
    %c0_73 = arith.constant 0 : index
    %165 = vector.load %arg13[%c0_72, %c0_73] : memref<1x256xf32, #tpu.memory_space<vmem>>, vector<1x256xf32>
    %166 = vector.broadcast %165 : vector<1x256xf32> to vector<16x256xf32>
    %167 = arith.addf %164, %166 : vector<16x256xf32>
    %cst_74 = arith.constant 0.000000e+00 : f32
    %168 = vector.broadcast %cst_74 : f32 to vector<16x256xf32>
    %169 = arith.maximumf %167, %168 : vector<16x256xf32>
    %170 = arith.truncf %169 : vector<16x256xf32> to vector<16x256xbf16>
    %c0_75 = arith.constant 0 : index
    %c0_76 = arith.constant 0 : index
    %171 = vector.load %arg12[%c0_75, %c0_76] : memref<256x128xbf16, #tpu.memory_space<vmem>>, vector<256x128xbf16>
    %cst_77 = arith.constant dense<0.000000e+00> : vector<16x128xf32>
    %172 = tpu.matmul %170, %171, %cst_77 {dimension_numbers = #tpu.dot_dimension_numbers<[1], [0], [0], [1], [0, 0, 1, 1], [], []>} : vector<16x256xbf16>, vector<256x128xbf16>, vector<16x128xf32> -> vector<16x128xf32>
    %173 = vector.extract_strided_slice %0 {offsets = [8, 0], sizes = [1, 128], strides = [1, 1]} : vector<16x128xf32> to vector<1x128xf32>
    %174 = vector.broadcast %173 : vector<1x128xf32> to vector<16x128xf32>
    %175 = arith.addf %172, %174 : vector<16x128xf32>
    %176 = arith.addf %161, %175 : vector<16x128xf32>
    %177 = vector.extract_strided_slice %0 {offsets = [13, 0], sizes = [1, 128], strides = [1, 1]} : vector<16x128xf32> to vector<1x128xf32>
    %178 = vector.extract_strided_slice %0 {offsets = [14, 0], sizes = [1, 128], strides = [1, 1]} : vector<16x128xf32> to vector<1x128xf32>
    %cst_78 = arith.constant dense<0.000000e+00> : vector<16xf32>
    %179 = vector.multi_reduction <add>, %176, %cst_78 [1] : vector<16x128xf32> to vector<16xf32>
    %180 = vector.shape_cast %179 : vector<16xf32> to vector<16x1xf32>
    %cst_79 = arith.constant 1.280000e+02 : f32
    %181 = vector.broadcast %cst_79 : f32 to vector<16x1xf32>
    %182 = arith.divf %180, %181 : vector<16x1xf32>
    %183 = vector.broadcast %182 : vector<16x1xf32> to vector<16x128xf32>
    %184 = arith.subf %176, %183 : vector<16x128xf32>
    %185 = arith.mulf %184, %184 : vector<16x128xf32>
    %cst_80 = arith.constant dense<0.000000e+00> : vector<16xf32>
    %186 = vector.multi_reduction <add>, %185, %cst_80 [1] : vector<16x128xf32> to vector<16xf32>
    %187 = vector.shape_cast %186 : vector<16xf32> to vector<16x1xf32>
    %cst_81 = arith.constant 1.280000e+02 : f32
    %188 = vector.broadcast %cst_81 : f32 to vector<16x1xf32>
    %189 = arith.divf %187, %188 : vector<16x1xf32>
    %190 = vector.broadcast %182 : vector<16x1xf32> to vector<16x128xf32>
    %191 = arith.subf %176, %190 : vector<16x128xf32>
    %cst_82 = arith.constant 9.99999974E-6 : f32
    %192 = vector.broadcast %cst_82 : f32 to vector<16x1xf32>
    %193 = arith.addf %189, %192 : vector<16x1xf32>
    %194 = math.rsqrt %193 : vector<16x1xf32>
    %195 = vector.broadcast %194 : vector<16x1xf32> to vector<16x128xf32>
    %196 = arith.mulf %191, %195 : vector<16x128xf32>
    %197 = vector.broadcast %177 : vector<1x128xf32> to vector<16x128xf32>
    %198 = arith.mulf %196, %197 : vector<16x128xf32>
    %199 = vector.broadcast %178 : vector<1x128xf32> to vector<16x128xf32>
    %200 = arith.addf %198, %199 : vector<16x128xf32>
    %c0_83 = arith.constant 0 : index
    %c0_84 = arith.constant 0 : index
    %c0_85 = arith.constant 0 : index
    %201 = vector.load %arg15[%c0_83, %c0_84, %c0_85] : memref<1x16x128xf32, #tpu.memory_space<vmem>>, vector<1x16x128xf32>
    %202 = vector.shape_cast %201 : vector<1x16x128xf32> to vector<16x128xf32>
    %203 = vector.shape_cast %200 : vector<16x128xf32> to vector<1x16x128xf32>
    tpu.vector_store %arg15[%c0_83, %c0_84, %c0_85], %203 {strides = array<i32>} : memref<1x16x128xf32, #tpu.memory_space<vmem>>, vector<1x16x128xf32>,
    return
  }
  func.func @transform_0(%arg0: i32) -> (i32, i32, i32) {
    %c0_i32 = arith.constant 0 : i32
    %c0_i32_0 = arith.constant 0 : i32
    %c0_i32_1 = arith.constant 0 : i32
    return %arg0, %c0_i32, %c0_i32_0 : i32, i32, i32
  }
  func.func @transform_1(%arg0: i32) -> (i32, i32, i32) {
    %c0_i32 = arith.constant 0 : i32
    %c0_i32_0 = arith.constant 0 : i32
    %c0_i32_1 = arith.constant 0 : i32
    return %arg0, %c0_i32, %c0_i32_0 : i32, i32, i32
  }
  func.func @transform_2(%arg0: i32) -> (i32, i32) {
    %c0_i32 = arith.constant 0 : i32
    %c0_i32_0 = arith.constant 0 : i32
    %c0_i32_1 = arith.constant 0 : i32
    return %c0_i32, %c0_i32_0 : i32, i32
  }
  func.func @transform_3(%arg0: i32) -> (i32, i32) {
    %c0_i32 = arith.constant 0 : i32
    %c0_i32_0 = arith.constant 0 : i32
    %c0_i32_1 = arith.constant 0 : i32
    return %c0_i32, %c0_i32_0 : i32, i32
  }
  func.func @transform_4(%arg0: i32) -> (i32, i32) {
    %c0_i32 = arith.constant 0 : i32
    %c0_i32_0 = arith.constant 0 : i32
    %c0_i32_1 = arith.constant 0 : i32
    return %c0_i32, %c0_i32_0 : i32, i32
  }
  func.func @transform_5(%arg0: i32) -> (i32, i32) {
    %c0_i32 = arith.constant 0 : i32
    %c0_i32_0 = arith.constant 0 : i32
    %c0_i32_1 = arith.constant 0 : i32
    return %c0_i32, %c0_i32_0 : i32, i32
  }
  func.func @transform_6(%arg0: i32) -> (i32, i32) {
    %c0_i32 = arith.constant 0 : i32
    %c0_i32_0 = arith.constant 0 : i32
    %c0_i32_1 = arith.constant 0 : i32
    return %c0_i32, %c0_i32_0 : i32, i32
  }
  func.func @transform_7(%arg0: i32) -> (i32, i32) {
    %c0_i32 = arith.constant 0 : i32
    %c0_i32_0 = arith.constant 0 : i32
    %c0_i32_1 = arith.constant 0 : i32
    return %c0_i32, %c0_i32_0 : i32, i32
  }
  func.func @transform_8(%arg0: i32) -> (i32, i32) {
    %c0_i32 = arith.constant 0 : i32
    %c0_i32_0 = arith.constant 0 : i32
    %c0_i32_1 = arith.constant 0 : i32
    return %c0_i32, %c0_i32_0 : i32, i32
  }
  func.func @transform_9(%arg0: i32) -> (i32, i32) {
    %c0_i32 = arith.constant 0 : i32
    %c0_i32_0 = arith.constant 0 : i32
    %c0_i32_1 = arith.constant 0 : i32
    return %c0_i32, %c0_i32_0 : i32, i32
  }
  func.func @transform_10(%arg0: i32) -> (i32, i32) {
    %c0_i32 = arith.constant 0 : i32
    %c0_i32_0 = arith.constant 0 : i32
    %c0_i32_1 = arith.constant 0 : i32
    return %c0_i32, %c0_i32_0 : i32, i32
  }
  func.func @transform_11(%arg0: i32) -> (i32, i32) {
    %c0_i32 = arith.constant 0 : i32
    %c0_i32_0 = arith.constant 0 : i32
    %c0_i32_1 = arith.constant 0 : i32
    return %c0_i32, %c0_i32_0 : i32, i32
  }
  func.func @transform_12(%arg0: i32) -> (i32, i32) {
    %c0_i32 = arith.constant 0 : i32
    %c0_i32_0 = arith.constant 0 : i32
    %c0_i32_1 = arith.constant 0 : i32
    return %c0_i32, %c0_i32_0 : i32, i32
  }
  func.func @transform_13(%arg0: i32) -> (i32, i32) {
    %c0_i32 = arith.constant 0 : i32
    %c0_i32_0 = arith.constant 0 : i32
    %c0_i32_1 = arith.constant 0 : i32
    return %c0_i32, %c0_i32_0 : i32, i32
  }
  func.func @transform_14(%arg0: i32) -> (i32, i32, i32) {
    %c0_i32 = arith.constant 0 : i32
    %c0_i32_0 = arith.constant 0 : i32
    %c0_i32_1 = arith.constant 0 : i32
    return %arg0, %c0_i32, %c0_i32_0 : i32, i32, i32
  }
}

</mosaic_0001>

<bundles_post_ra>
// kernel: tpu_custom_call.1
= control target key start
LH: loop header
LB: loop body
LE: loop exit
PB: predicated region body
PF: predicated region fallthrough
CT: control target
= control target key end

     0   :  { %s7724_s0 = inlined_call_operand.hbm [shape: f32[2,16,128], index: 0, kind: input, shape index: {}]   ;;  %s7725_s1 = inlined_call_operand.hbm [shape: bf16[2,16,128], index: 1, kind: input, shape index: {}]   ;;  %s7726_s2 = inlined_call_operand.hbm [shape: bf16[128,128], index: 2, kind: input, shape index: {}]   ;;  %s7727_s3 = inlined_call_operand.hbm [shape: bf16[128,128], index: 3, kind: input, shape index: {}]   ;;  %s7728_s4 = inlined_call_operand.hbm [shape: bf16[128,128], index: 4, kind: input, shape index: {}]   ;;  %s7729_s5 = inlined_call_operand.hbm [shape: bf16[128,128], index: 5, kind: input, shape index: {}]   ;;  %s7730_s6 = inlined_call_operand.hbm [shape: bf16[128,128], index: 6, kind: input, shape index: {}]   ;;  %s7731_s7 = inlined_call_operand.hbm [shape: bf16[128,128], index: 7, kind: input, shape index: {}]   ;;  %s7732_s8 = inlined_call_operand.hbm [shape: bf16[128,128], index: 8, kind: input, shape index: {}]   ;;  %s7733_s9 = inlined_call_operand.hbm [shape: bf16[128,128], index: 9, kind: input, shape index: {}]   ;;  %s7734_s10 = inlined_call_operand.hbm [shape: bf16[128,256], index: 10, kind: input, shape index: {}]   ;;  %s7735_s11 = inlined_call_operand.hbm [shape: bf16[256,128], index: 11, kind: input, shape index: {}]   ;;  %s7736_s12 = inlined_call_operand.vmem [shape: f32[1,256], index: 12, kind: input, shape index: {}]   ;;  %s7737_s13 = inlined_call_operand.hbm [shape: f32[16,128], index: 13, kind: input, shape index: {}]   ;;  %s7738_s14 = inlined_call_operand.hbm [shape: f32[2,16,128], index: 14, kind: output, shape index: {}]  }
   0x1   :  { %7744 = sst [smem:[#allocation37_spill]] %s7726_s2 }
   0x2   :  { %7745 = sst [smem:[#allocation38_spill]] %s7727_s3 }
   0x3   :  { %7746 = sst [smem:[#allocation39_spill]] %s7728_s4 }
   0x4   :  { %7747 = sst [smem:[#allocation40_spill]] %s7729_s5 }
   0x5   :  { %7748 = sst [smem:[#allocation41_spill]] %s7730_s6 }
   0x6   :  { %7749 = sst [smem:[#allocation42_spill]] %s7731_s7 }
   0x7   :  { %7750 = sst [smem:[#allocation43_spill]] %s7732_s8 }
   0x8   :  { %7751 = sst [smem:[#allocation44_spill]] %s7733_s9 }
   0x9   :  { %7752 = sst [smem:[#allocation45_spill]] %s7734_s10 }
   0xa   :  { %7753 = sst [smem:[#allocation46_spill]] %s7735_s11 }
   0xb   :  { %7754 = sst [smem:[#allocation47_spill]] %s7736_s12 }
   0xc   :  { %7755 = sst [smem:[#allocation48_spill]] %s7737_s13 }
   0xd   :  { %7756 = sst [smem:[#allocation49_spill]] %s7738_s14 }
   0xe   :  { %19 = vsyncpa [#allocation7], 0 }
   0xf   :  { %21 = vsyncpa [#allocation7 + $0x1], 0 }
  0x10   :  { %22 = vsyncpa [#allocation10], 0 }
  0x11   :  { %24 = vsyncpa [#allocation10 + $0x1], 0 }
  0x12   :  { %25 = vsyncpa [#allocation13], 0 }
  0x13   :  { %26 = vsyncpa [#allocation16], 0 }
  0x14   :  { %27 = vsyncpa [#allocation19], 0 }
  0x15   :  { %28 = vsyncpa [#allocation22], 0 }
  0x16   :  { %29 = vsyncpa [#allocation25], 0 }
  0x17   :  { %30 = vsyncpa [#allocation8], 0 }
  0x18   :  { %32 = vsyncpa [#allocation8 + $0x1], 0  ;;  %s6268_s29 = smov 0   ;;  %s6270_s30 = smov 0  }
  0x19   :  { %s6272_s15 = smov 0   ;;  %s6274_s16 = smov 0  }
  0x1a LB: > { %s7757_s2 = sld [smem:[#allocation37_spill]]  ;;  %s6292_s20 = sadd.s32 4294967295, %s6168_s16   ;;  %s6168_s16 = sphi %s6274_s16, %s7831_s16   ;;  %s6164_s15 = sphi %s6272_s15, %s7830_s15   ;;  %s6160_s30 = sphi %s6270_s30, %s7829_s30   ;;  %s6156_s29 = sphi %s6268_s29, %s7828_s29  }
  0x1b   : > { %p4833_p0 = scmp.ge.s32.totalorder %s6168_s16, 1  ;;  %p59_p1 = scmp.eq.s32.totalorder %s6292_s20, 0 }
  0x1c   : > { %p373_p2 = scmp.lt.s32.totalorder %s6168_s16, 3  ;;  %s6170_s22 = smov [#allocation11]  }
  0x1d   : > { %s386_s23 = sshll.u32 %s6170_s22, 4  ;;  %s7759_s3 = sld [smem:[#allocation38_spill]]  ;;  %s387_s23 = int_to_ptr.vmem [resolvable:$true] %s386_s23 }
  0x1e   : > { %p6297_p3 = pnand %p4833_p0, %p373_p2  ;;  %s7761_s5 = sld [smem:[#allocation40_spill]] }
  0x1f   : > { %s6171_s22 = smov [#allocation12]   ;;  %s7740_s14 = smov 64  }
  0x20   : > { %s384_s19 = sshll.u32 %s7757_s2, 4  ;;  %p5446_p4 = pneg %p6297_p3  ;;  %s385_s19 = int_to_ptr.hbm [resolvable:$true] %s384_s19 }
  0x21   : > { %s400_s2 = sshll.u32 %s6171_s22, 4  ;;  %s7741_s12 = smov 4   ;;  %s401_s2 = int_to_ptr.vmem [resolvable:$true] %s400_s2 }
  0x22   : > { %p6309_p6 = pnand %p5446_p4, %p59_p1  ;;  %s7762_s7 = sld [smem:[#allocation42_spill]] }
  0x23   : > { %s398_s26 = sshll.u32 %s7759_s3, 4  ;;  %s6174_s17 = smov [#allocation15]   ;;  %s399_s26 = int_to_ptr.hbm [resolvable:$true] %s398_s26 }
  0x24   : > { %s426_s18 = sshll.u32 %s7761_s5, 4  ;;  %s428_s22 = sshll.u32 %s6174_s17, 4  ;;  %s427_s18 = int_to_ptr.hbm [resolvable:$true] %s426_s18  ;;  %s429_s22 = int_to_ptr.vmem [resolvable:$true] %s428_s22 }
  0x25   : > { %5449 = dma.hbm_to_vmem [thread:$0]  (!%p6309_p6), %s385_s19, 1024, %s387_s23, [#allocation10], %s7740_s14, %s7740_s14, %s7741_s12  }
  0x26   : > { %5452 = dma.hbm_to_vmem [thread:$0]  (!%p6309_p6), %s399_s26, 1024, %s401_s2, [#allocation13], %s7740_s14, %s7740_s14, %s7741_s12  }
  0x27   : > { %5458 = dma.hbm_to_vmem [thread:$0]  (!%p6309_p6), %s427_s18, 1024, %s429_s22, [#allocation16], %s7740_s14, %s7740_s14, %s7741_s12  }
  0x28   : > { %s454_s28 = sshll.u32 %s7762_s7, 4  ;;  %s6175_s19 = smov [#allocation18]   ;;  %s455_s28 = int_to_ptr.hbm [resolvable:$true] %s454_s28 }
  0x29   : > { %s456_s23 = sshll.u32 %s6175_s19, 4  ;;  %s7763_s9 = sld [smem:[#allocation44_spill]]  ;;  %s457_s23 = int_to_ptr.vmem [resolvable:$true] %s456_s23 }
  0x2a   : > { %5464 = dma.hbm_to_vmem [thread:$0]  (!%p6309_p6), %s455_s28, 1024, %s457_s23, [#allocation19], %s7740_s14, %s7740_s14, %s7741_s12  }
  0x2b   : > { %s7764_s11 = sld [smem:[#allocation46_spill]]  ;;  %s6176_s17 = smov [#allocation21]  }
  0x2c   : > { %s484_s18 = sshll.u32 %s6176_s17, 4  ;;  %s6177_s3 = smov [#allocation24]   ;;  %s485_s18 = int_to_ptr.vmem [resolvable:$true] %s484_s18 }
  0x2d   : > { %s512_s5 = sshll.u32 %s6177_s3, 4  ;;  %s7765_s4 = sld [smem:[#allocation39_spill]]  ;;  %s513_s5 = int_to_ptr.vmem [resolvable:$true] %s512_s5 }
  0x2e   : > { %s7766_s6 = sld [smem:[#allocation41_spill]]  ;;  %s6178_s17 = smov [#allocation14]  }
  0x2f   : > { %s482_s2 = sshll.u32 %s7763_s9, 4  ;;  %s7767_s8 = sld [smem:[#allocation43_spill]]  ;;  %s483_s2 = int_to_ptr.hbm [resolvable:$true] %s482_s2 }
  0x30   : > { %5470 = dma.hbm_to_vmem [thread:$0]  (!%p6309_p6), %s483_s2, 1024, %s485_s18, [#allocation22], %s7740_s14, %s7740_s14, %s7741_s12  }
  0x31   : > { %s510_s25 = sshll.u32 %s7764_s11, 4  ;;  %s414_s2 = sshll.u32 %s6178_s17, 4  ;;  %s511_s25 = int_to_ptr.hbm [resolvable:$true] %s510_s25  ;;  %s415_s2 = int_to_ptr.vmem [resolvable:$true] %s414_s2 }
  0x32   : > { %5476 = dma.hbm_to_vmem [thread:$0]  (!%p6309_p6), %s511_s25, 2048, %s513_s5, [#allocation25], %s7740_s14, %s7740_s14, %s7741_s12  }
  0x33   : > { %s412_s28 = sshll.u32 %s7765_s4, 4  ;;  %s6179_s18 = smov [#allocation17]   ;;  %s413_s28 = int_to_ptr.hbm [resolvable:$true] %s412_s28 }
  0x34   : > { %s440_s24 = sshll.u32 %s7766_s6, 4  ;;  %s442_s3 = sshll.u32 %s6179_s18, 4  ;;  %s441_s24 = int_to_ptr.hbm [resolvable:$true] %s440_s24  ;;  %s443_s3 = int_to_ptr.vmem [resolvable:$true] %s442_s3 }
  0x35   : > { %5455 = dma.hbm_to_vmem [thread:$0]  (!%p6309_p6), %s413_s28, 1024, %s415_s2, [#allocation13], %s7740_s14, %s7740_s14, %s7741_s12  }
  0x36   : > { %s468_s25 = sshll.u32 %s7767_s8, 4  ;;  %s7768_s10 = sld [smem:[#allocation45_spill]]  ;;  %s469_s25 = int_to_ptr.hbm [resolvable:$true] %s468_s25 }
  0x37   : > { %5461 = dma.hbm_to_vmem [thread:$0]  (!%p6309_p6), %s441_s24, 1024, %s443_s3, [#allocation16], %s7740_s14, %s7740_s14, %s7741_s12  }
  0x38   : > { %s6180_s17 = smov [#allocation20]   ;;  %s6181_s2 = smov [#allocation23]  }
  0x39   : > { %s470_s28 = sshll.u32 %s6180_s17, 4  ;;  %s498_s24 = sshll.u32 %s6181_s2, 4  ;;  %s471_s28 = int_to_ptr.vmem [resolvable:$true] %s470_s28  ;;  %s499_s24 = int_to_ptr.vmem [resolvable:$true] %s498_s24 }
  0x3a   : > { %5467 = dma.hbm_to_vmem [thread:$0]  (!%p6309_p6), %s469_s25, 1024, %s471_s28, [#allocation19], %s7740_s14, %s7740_s14, %s7741_s12  }
  0x3b   : > { %s7742_s18 = smov 128   ;;  %s7743_s3 = smov 8  }
  0x3c   : > { %s496_s26 = sshll.u32 %s7768_s10, 4  ;;  %s7769_s13 = sld [smem:[#allocation48_spill]]  ;;  %s497_s26 = int_to_ptr.hbm [resolvable:$true] %s496_s26 }
  0x3d   : > { %5473 = dma.hbm_to_vmem [thread:$0]  (!%p6309_p6), %s497_s26, 2048, %s499_s24, [#allocation22], %s7742_s18, %s7742_s18, %s7743_s3  }
  0x3e   : > { %s6184_s5 = smov [#allocation26]   ;;  %s4832_s17 = sadd.s32 4294967294, %s6168_s16  }
  0x3f   : > { %s529_s23 = sshll.u32 %s6184_s5, 4  ;;  %s6397_s28 = sadd.s32 1, %s6168_s16   ;;  %s530_s23 = int_to_ptr.vmem [resolvable:$true] %s529_s23 }
  0x40   : > { %s45_s26 = sadd.s32 1, %s6164_s15  ;;  %s42_s2 = ssub.s32 %s6168_s16, %s6397_s28 }
  0x41   : > { %p52_p7 = scmp.ne.s32.totalorder %s6164_s15, %s6160_s30  ;;  %p43_p8 = scmp.eq.s32.totalorder %s42_s2, 0 }
  0x42   : > { %s527_s25 = sshll.u32 %s7769_s13, 4  ;;  %p53_p9 = scmp.eq.s32.totalorder %s6168_s16, 0  ;;  %s528_s25 = int_to_ptr.hbm [resolvable:$true] %s527_s25 }
  0x43   : > { %5479 = dma.hbm_to_vmem [thread:$0]  (!%p6309_p6), %s528_s25, 256, %s530_s23, [#allocation25], %s7742_s18, %s7742_s18, %s7743_s3  }
  0x44   : > { %p58_p10 = scmp.ne.s32.totalorder %s6160_s30, %s6156_s29  ;;  %p360_p11 = scmp.eq.s32.totalorder %s6292_s20, 1 }
  0x45   : > { %s6409_s24 = scalar_select %p43_p8, %s6164_s15, %s45_s26  }
  0x46   : > { %p6411_p12 = por %p53_p9, %p52_p7  ;;  %p6417_p13 = por %p59_p1, %p58_p10 }
  0x47   : > { %p6421_p0 = por %p360_p11, %p52_p7  ;;  %p366_p2 = scmp.eq.s32.totalorder %s4832_s17, 1 }
  0x48   : > { %p5502_p4 = scmp.lt.s32.totalorder %s6168_s16, 2  ;;  %s6427_s25 = sand.u32 1, %s6164_s15  }
  0x49   : > { %p6429_p6 = por %p366_p2, %p58_p10  ;;  %s4846_s23 = sshll.u32 %s6427_s25, 4 }
  0x4a   : > { %s5276_s26 = sshll.u32 %s6168_s16, 4  ;;  %s547_s3 = scalar_lea.vmem [#allocation6], %s4846_s23 }
  0x4b   : > { %s552_s12 = scalar_lea.hbm %s7724_s0, %s5276_s26  ;;  %s555_s4 = sshll.u32 %s547_s3, 4  ;;  %s556_s4 = int_to_ptr.vmem [resolvable:$true] %s555_s4 }
  0x4c   : > { %s553_s18 = sshll.u32 %s552_s12, 4  ;;  %p6440_p7 = pnand %p5502_p4, %p6411_p12  ;;  %s554_s18 = int_to_ptr.hbm [resolvable:$true] %s553_s18 }
  0x4d   : > { %s565_s6 = sand.u32 1, %s6168_s16   ;;  %s4849_s7 = sshll.u32 %s6427_s25, 3 }
  0x4e   : > { %s544_s8 = scalar_lea.sflag [#allocation7], %s6427_s25  ;;  %s6014_s9 = sshra.s32 %s554_s18, 4  ;;  %s6015_s9 = int_to_ptr.hbm [resolvable:$true] %s6014_s9 }
  0x4f   : > { %s6016_s10 = scalar_lea.hbm %s6015_s9, 16  ;;  %p6018_p9 = pneg %p6440_p7 }
  0x50   : > { %p6017_p8 = scmp.ne.s32.totalorder %s6015_s9, %s6016_s10  ;;  %s6021_s3 = scalar_lea.hbm %s7724_s0, 32 }
  0x51   : > { %p6022_p12 = scmp.lt.s32.totalorder %s6015_s9, %s7724_s0  ;;  %p6023_p2 = scmp.lt.s32.totalorder %s6021_s3, %s6016_s10 }
  0x52   : > { %p6019_p10 = pnand %p6018_p9, %p6017_p8 }
  0x53   : > { %p6024_p4 = por %p6023_p2, %p6022_p12 }
  0x54   : > { %p6020_p11 = pneg %p6019_p10 }
  0x56   : > { %p6025_p5 = pnand %p6024_p4, %p6020_p11 }
  0x58   : > { %6028 = shalt.err (!%p6025_p5)
}
  0x59   : > { %s7775_s25 = smov 8   ;;  %s7776_s26 = smov 128  }
  0x5a   : > { %5483 = dma.hbm_to_vmem [thread:$0]  (!%p6440_p7), %s554_s18, 256, %s556_s4, %s544_s8, %s7776_s26, %s7776_s26, %s7775_s25  }
  0x5b   : > { %s5277_s2 = sshll.u32 %s6168_s16, 3  ;;  %s569_s11 = scalar_lea.vmem [#allocation9], %s4849_s7 }
  0x5c   : > { %s577_s12 = sshll.u32 %s569_s11, 4  ;;  %s574_s27 = scalar_lea.hbm %s7725_s1, %s5277_s2  ;;  %s578_s12 = int_to_ptr.vmem [resolvable:$true] %s577_s12 }
  0x5d   : > { %s575_s9 = sshll.u32 %s574_s27, 4  ;;  %s566_s10 = scalar_lea.sflag [#allocation10], %s565_s6  ;;  %s576_s9 = int_to_ptr.hbm [resolvable:$true] %s575_s9 }
  0x5e   : > { %s6044_s3 = sshra.s32 %s576_s9, 4  ;;  %s6051_s7 = scalar_lea.hbm %s7725_s1, 16  ;;  %s6045_s3 = int_to_ptr.hbm [resolvable:$true] %s6044_s3 }
  0x5f   : > { %s6046_s23 = scalar_lea.hbm %s6045_s3, 8  ;;  %p6052_p11 = scmp.lt.s32.totalorder %s6045_s3, %s7725_s1 }
  0x60   : > { %p6047_p5 = scmp.ne.s32.totalorder %s6045_s3, %s6046_s23  ;;  %p6053_p12 = scmp.lt.s32.totalorder %s6051_s7, %s6046_s23 }
  0x62   : > { %p6049_p8 = pnand %p6047_p5, %p6018_p9  ;;  %p6054_p2 = por %p6053_p12, %p6052_p11 }
  0x64   : > { %p6050_p10 = pneg %p6049_p8 }
  0x66   : > { %p6055_p4 = pnand %p6054_p2, %p6050_p10 }
  0x68   : > { %6058 = shalt.err (!%p6055_p4)
}
  0x69   : > { %s7777_s6 = smov 4   ;;  %s7778_s13 = smov 64  }
  0x6a   : > { %5486 = dma.hbm_to_vmem [thread:$0]  (!%p6440_p7), %s576_s9, 128, %s578_s12, %s566_s10, %s7778_s13, %s7778_s13, %s7777_s6  }
  0x6b   : > { %589 = sbr.rel (%p6297_p3) target bundleno = 3341 (0xd0d), region = 76  ;;  %s6484_s25 = sand.u32 (!%p6297_p3), 1, %s6160_s30  }
  0x6c   : > { %s4853_s26 = sshll.u32 (!%p6297_p3), %s6484_s25, 4  ;;  %s592_s2 = scalar_lea.sflag (!%p6297_p3), [#allocation7], %s6484_s25 }
  0x6d   : > { %s6490_s14 = scalar_lea.vmem (!%p6297_p3), [#allocation6], %s4853_s26 }
  0x70   : > { %6119 = dma.done.wait (%p6417_p13), %s592_s2, 256  }
  0x71   : > { %6121 = vsyncadd (%p6417_p13), %s592_s2, 4294967040  ;;  %s601_s21 = sand.u32 1, %s6292_s20   ;;  %s4854_s17 = sshll.u32 %s6484_s25, 3 }
  0x72   : > { %s602_s12 = scalar_lea.sflag [#allocation10], %s601_s21  ;;  %s6498_s27 = scalar_lea.vmem [#allocation9], %s4854_s17 }
  0x73   : > { %6123 = dma.done.wait (%p6417_p13), %s602_s12, 128  }
  0x74   : > { %6125 = vsyncadd (%p6417_p13), %s602_s12, 4294967168 }
  0x75   : > { %6127 = dma.done.wait (%p59_p1), [#allocation10], 1024  }
  0x76   : > { %6129 = vsyncadd (%p59_p1), [#allocation10], 4294966272 }
  0x77   : > { %6131 = dma.done.wait (%p59_p1), [#allocation13], 2048  }
  0x78   : > { %6133 = vsyncadd (%p59_p1), [#allocation13], 4294965248 }
  0x79   : > { %6135 = dma.done.wait (%p59_p1), [#allocation16], 2048  }
  0x7a   : > { %6137 = vsyncadd (%p59_p1), [#allocation16], 4294965248 }
  0x7b   : > { %6139 = dma.done.wait (%p59_p1), [#allocation19], 2048  }
  0x7c   : > { %6141 = vsyncadd (%p59_p1), [#allocation19], 4294965248 }
  0x7d   : > { %6143 = dma.done.wait (%p59_p1), [#allocation22], 3072  }
  0x7e   : > { %6145 = vsyncadd (%p59_p1), [#allocation22], 4294964224 }
  0x7f   : > { %6147 = dma.done.wait (%p59_p1), [#allocation25], 2304  }
  0x80   : > { %6149 = vsyncadd (%p59_p1), [#allocation25], 4294964992  ;;  %v5286_v0 = vld [vmem:[#allocation12 + $0x38] sm:$0xff]  ;;  %v5285_v1 = vld [vmem:[#allocation12 + $0x30] sm:$0xff]  ;;  %s6185_s22 = smov 32   ;;  %s6186_s9 = smov 64  }
  0x81   : > { %784 = vmatpush.bf16.msra.mxu0 %v5286_v0  ;;  %v5284_v2 = vld [vmem:[#allocation12 + $0x28] sm:$0xff]  ;;  %v5283_v3 = vld [vmem:[#allocation12 + $0x20] sm:$0xff]  ;;  %v5282_v4 = vld [vmem:[#allocation12 + $0x18] sm:$0xff]  ;;  %s6187_s10 = smov 96   ;;  %v6188_v59 = vmov 1983009808  }
  0x82   : > { %v5281_v5 = vld [vmem:[#allocation12 + $0x10] sm:$0xff]  ;;  %v5280_v6 = vld [vmem:[#allocation12 + $0x8] sm:$0xff]  ;;  %v5279_v7 = vld [vmem:[#allocation12] sm:$0xff]  ;;  %v1203_v60 = vunpack.c.l.s4 %v6188_v59  ;;  %vm1212_vm0 = vcmask 1047556   ;;  %vm1896_vm1 = vcmask 261120   ;;  %vm1995_vm2 = vcmask 130048  }
  0x83   : > { %v714_v8 = vld [vmem:[%s6490_s14] sm:$0xff]  ;;  %v715_v9 = vld [vmem:[%s6490_s14 + $0x8] sm:$0xff]  ;;  %s7825_s4 = sld [smem:[#allocation47_spill]]  ;;  %s5375_s8 = sshll.u32 %s6292_s20, 4 }
  0x84   : > { %v5318_v10 = vld [vmem:[#allocation11 + $0x38] sm:$0xff]  ;;  %v716_v11 = vpack.c.bf16 %v715_v9, %v714_v8  ;;  %v5317_v13 = vld [vmem:[#allocation11 + $0x30] sm:$0xff]  ;;  %v5316_v15 = vld [vmem:[#allocation11 + $0x28] sm:$0xff]  ;;  %v6578_v63 = vunpack.c.0.s8 %v1203_v60  ;;  %s7826_s18 = sld [smem:[#allocation49_spill]]  ;;  %s710_s13 = scalar_lea.vmem [#allocation27], %s4853_s26 }
  0x85   : > { %785 = vmatpush.bf16.msra.mxu0 %v5285_v1  ;;  %v5294_v12 = vld [vmem:[#allocation14 + $0x38] sm:$0xff]  ;;  %v5293_v14 = vld [vmem:[#allocation14 + $0x30] sm:$0xff]  ;;  %v5292_v16 = vld [vmem:[#allocation14 + $0x28] sm:$0xff]  ;;  %v6189_v1 = vmov 1934713408   ;;  %s4629_s2 = sshll.u32 %s710_s13, 4  ;;  %s4630_s2 = int_to_ptr.vmem [resolvable:$true] %s4629_s2 }
  0x86   : > { %867 = vmatpush.bf16.msra.mxu1 %v5294_v12  ;;  %v5315_v17 = vld [vmem:[#allocation11 + $0x20] sm:$0xff]  ;;  %v5314_v19 = vld [vmem:[#allocation11 + $0x18] sm:$0xff]  ;;  %v5313_v21 = vld [vmem:[#allocation11 + $0x10] sm:$0xff]  ;;  %s4617_s20 = scalar_lea.sflag [#allocation8], %s6484_s25 }
  0x87   : > { %v5291_v18 = vld [vmem:[#allocation14 + $0x20] sm:$0xff]  ;;  %v5290_v20 = vld [vmem:[#allocation14 + $0x18] sm:$0xff]  ;;  %v5289_v22 = vld [vmem:[#allocation14 + $0x10] sm:$0xff] }
  0x88   : > { %v5312_v23 = vld [vmem:[#allocation11 + $0x8] sm:$0xff]  ;;  %v5311_v25 = vld [vmem:[#allocation11] sm:$0xff]  ;;  %v5310_v51 = vld [vmem:[#allocation20 + $0x38] sm:$0xff] }
  0x89   : > { %786 = vmatpush.bf16.msra.mxu0 %v5284_v2  ;;  %v5288_v24 = vld [vmem:[#allocation14 + $0x8] sm:$0xff]  ;;  %v5287_v26 = vld [vmem:[#allocation14] sm:$0xff]  ;;  %1039 = vmatpush.bf16.msra.mxu3 %v5310_v51  ;;  %v5309_v54 = vld [vmem:[#allocation20 + $0x30] sm:$0xff]  ;;  %v1217_v2 = vunpack.c.l.s4 %v6189_v1 }
  0x8a   : > { %868 = vmatpush.bf16.msra.mxu1 %v5293_v14  ;;  %v712_v27 = vld [vmem:[#allocation26] sm:$0xff]  ;;  %v5308_v55 = vld [vmem:[#allocation20 + $0x28] sm:$0xff]  ;;  %v5306_v58 = vld [vmem:[#allocation20 + $0x18] sm:$0xff]  ;;  %s4628_s6 = scalar_lea.hbm %s7826_s18, %s5375_s8 }
  0x8b   : > { %v735_v29 = vperm.slane %v712_v27, 1  ;;  %v1096_v35 = vperm.slane %v712_v27, 0  ;;  %v818_v46 = vperm.slane %v712_v27, 2  ;;  %v5307_v57 = vld [vmem:[#allocation20 + $0x20] sm:$0xff]  ;;  %v5305_v61 = vld [vmem:[#allocation20 + $0x10] sm:$0xff] }
  0x8d   : > { %787 = vmatpush.bf16.msra.mxu0 %v5283_v3  ;;  %1040 = vmatpush.bf16.msra.mxu3 %v5309_v54 }
  0x8e   : > { %869 = vmatpush.bf16.msra.mxu1 %v5292_v16 }
  0x91   : > { %788 = vmatpush.bf16.msra.mxu0 %v5282_v4  ;;  %1041 = vmatpush.bf16.msra.mxu3 %v5308_v55 }
  0x92   : > { %870 = vmatpush.bf16.msra.mxu1 %v5291_v18 }
  0x95   : > { %789 = vmatpush.bf16.msra.mxu0 %v5281_v5  ;;  %1042 = vmatpush.bf16.msra.mxu3 %v5307_v57 }
  0x96   : > { %871 = vmatpush.bf16.msra.mxu1 %v5290_v20  ;;  %v5303_v20 = vld [vmem:[#allocation20] sm:$0xff] }
  0x99   : > { %790 = vmatpush.bf16.msra.mxu0 %v5280_v6  ;;  %1043 = vmatpush.bf16.msra.mxu3 %v5306_v58 }
  0x9a   : > { %872 = vmatpush.bf16.msra.mxu1 %v5289_v22 }
  0x9d   : > { %791 = vmatpush.bf16.msra.mxu0 %v5279_v7  ;;  %1044 = vmatpush.bf16.msra.mxu3 %v5305_v61  ;;  %v5304_v7 = vld [vmem:[#allocation20 + $0x8] sm:$0xff] }
  0x9e   : > { %873 = vmatpush.bf16.msra.mxu1 %v5288_v24 }
  0xa0   : > { %792 = vmatmul.bf16.vlgmr.msra.gmra.mxu0 %v716_v11 }
  0xa1   : > { %1145 = vmatpush.bf16.msrb.mxu0 %v5318_v10  ;;  %1045 = vmatpush.bf16.msra.mxu3 %v5304_v7 }
  0xa2   : > { %874 = vmatpush.bf16.msra.mxu1 %v5287_v26 }
  0xa5   : > { %1146 = vmatpush.bf16.msrb.mxu0 %v5317_v13  ;;  %875 = vmatmul.bf16.vlgmr.msra.gmra.mxu1 %v716_v11  ;;  %v6583_v13 = vunpack.c.0.s8 %v1217_v2 }
  0xa6   : > { %1046 = vmatpush.bf16.msra.mxu3 %v5303_v20 }
  0xa9   : > { %1147 = vmatpush.bf16.msrb.mxu0 %v5316_v15 }
  0xad   : > { %1148 = vmatpush.bf16.msrb.mxu0 %v5315_v17 }
  0xb1   : > { %1149 = vmatpush.bf16.msrb.mxu0 %v5314_v19 }
  0xb5   : > { %1150 = vmatpush.bf16.msrb.mxu0 %v5313_v21 }
  0xb9   : > { %1151 = vmatpush.bf16.msrb.mxu0 %v5312_v23 }
  0xbd   : > { %1152 = vmatpush.bf16.msrb.mxu0 %v5311_v25 }
  0xc0   : > { %1153 = vmatmul.bf16.vlgmr.msrb.gmra.mxu0 %v716_v11 }
 0x11d   : > { %v793_v28 = vpop.f32.mrf.mxu0 }
 0x11e   : > { %v794_v30 = vadd.f32 %v793_v28, %v735_v29 }
 0x122   : > { %v876_v45 = vpop.f32.mrf.mxu1 }
 0x123   : > { %v877_v47 = vadd.f32 %v876_v45, %v818_v46 }
 0x125   : > { %v795_v31 = vpop.f32.mrf.mxu0 }
 0x126   : > { %v796_v32 = vadd.f32 %v795_v31, %v735_v29 }
 0x128   : > { %v5379_v33 = vpack.c.bf16 %v796_v32, %v794_v30 }
 0x12a   : > { %5380 = vst [vmem:[#allocation2] sm:$0xff] %v5379_v33   ;;  %v878_v48 = vpop.f32.mrf.mxu1 }
 0x12b   : > { %v879_v49 = vadd.f32 %v878_v48, %v818_v46 }
 0x12d   : > { %v5384_v50 = vpack.c.bf16 %v879_v49, %v877_v47 }
 0x12f   : > { %5385 = vst [vmem:[#allocation3] sm:$0xff] %v5384_v50  }
 0x131   : > { %v6530_v34 = vld [vmem:[#allocation2] sm:$0xf]  ;;  %v6538_v36 = vld [vmem:[#allocation2 + $0x4] sm:$0xf] }
 0x132   : > { %1416 = vrot.lane.b32.xlu2 %v6530_v34, %s6185_s22  ;;  %1412 = vrot.lane.b32.xlu1 %v6530_v34, %s6186_s9  ;;  %v1423_v9 = vshrl.u32 %v6530_v34, 16  ;;  %v1435_v23 = vshrl.u32 %v6538_v36, 16 }
 0x133   : > { %1408 = vrot.lane.b32.xlu0 %v6530_v34, %s6187_s10 }
 0x136   : > { %v6562_v52 = vld [vmem:[#allocation3 + $0x4] sm:$0xf]  ;;  %v6564_v53 = vld [vmem:[#allocation3] sm:$0xf] }
 0x13a   : > { %1418 = vrot.lane.b32.xlu2 %v6538_v36, %s6185_s22  ;;  %1414 = vrot.lane.b32.xlu1 %v6538_v36, %s6186_s9 }
 0x13b   : > { %1410 = vrot.lane.b32.xlu0 %v6538_v36, %s6187_s10 }
 0x13d   : > { %v1154_v37 = vpop.f32.mrf.mxu0 }
 0x13e   : > { %v1155_v38 = vadd.f32 %v1154_v37, %v1096_v35 }
 0x140   : > { %v1159_v39 = vmul.f32 0.17677669, %v1155_v38 }
 0x142   : > { %v6546_v40 = vpack.c.bf16 %v1159_v39, %v1159_v39 }
 0x144   : > { %1169 = vrot.lane.b32.xlu2 %v6546_v40, %s6186_s9  ;;  %1165 = vrot.lane.b32.xlu0 %v6546_v40, %s6187_s10  ;;  %v1180_v49 = vshrl.u32 %v6546_v40, 16 }
 0x145   : > { %v1156_v41 = vpop.f32.mrf.mxu0 }
 0x146   : > { %v1157_v42 = vadd.f32 %v1156_v41, %v1096_v35  ;;  %v6597_v35 = vld [vmem:[%s6498_s27] sm:$0xff]  ;;  %s6094_s27 = scalar_lea.hbm %s7826_s18, 32 }
 0x147   : > { %1047 = vmatmul.bf16.vlgmr.msra.gmra.mxu3 %v6597_v35 }
 0x148   : > { %v1160_v43 = vmul.f32 0.17677669, %v1157_v42 }
 0x14a   : > { %v6552_v44 = vpack.c.bf16 %v1160_v43, %v1160_v43 }
 0x14c   : > { %1167 = vrot.lane.b32.xlu1 %v6552_v44, %s6187_s10  ;;  %1175 = vrot.lane.b32.xlu2 %v6552_v44, %s6185_s22  ;;  %v1192_v50 = vshrl.u32 %v6552_v44, 16 }
 0x14d   : > { %1171 = vrot.lane.b32.xlu0 %v6552_v44, %s6186_s9 }
 0x154   : > { %1173 = vrot.lane.b32.xlu1 %v6546_v40, %s6185_s22  ;;  %1654 = vrot.lane.b32.xlu2 %v6564_v53, %s6186_s9 }
 0x155   : > { %1650 = vrot.lane.b32.xlu0 %v6564_v53, %s6187_s10 }
 0x15c   : > { %1652 = vrot.lane.b32.xlu1 %v6562_v52, %s6187_s10  ;;  %1660 = vrot.lane.b32.xlu2 %v6562_v52, %s6185_s22 }
 0x15d   : > { %1656 = vrot.lane.b32.xlu0 %v6562_v52, %s6186_s9 }
 0x164   : > { %1658 = vrot.lane.b32.xlu1 %v6564_v53, %s6185_s22 }
 0x18c   : > { %v1417_v56 = vpop.permute.xlu2 %1416 }
 0x18d   : > { %v1430_v3 = vshrl.u32 %v1417_v56, 16 }
 0x194   : > { %v1419_v62 = vpop.permute.xlu2 %1418 }
 0x195   : > { %v1442_v24 = vshrl.u32 %v1419_v62, 16 }
 0x19e   : > { %v6592_v29 = vpop.permute.xlu2 %1169 }
 0x1a4   : > { %v1413_v0 = vpop.permute.xlu1 %1412 }
 0x1a5   : > { %v1428_v4 = vpack.i.b16 %v1417_v56, %v1413_v0  ;;  %v1429_v5 = vshrl.u32 %v1413_v0, 16  ;;  %v1409_v6 = vpop.permute.xlu0 %1408  ;;  %v1186_v56 = vshrl.u32 %v6592_v29, 16 }
 0x1a6   : > { %v1422_v8 = vpack.i.b16 %v1409_v6, %v6530_v34  ;;  %v1424_v10 = vshrl.u32 %v1409_v6, 16 }
 0x1a7   : > { %v1431_v11 = vpack.i.b16 %v1430_v3, %v1429_v5  ;;  %v1453_v12 = vperm.slane %v1428_v4, %v6578_v63 }
 0x1a8   : > { %v1425_v14 = vpack.i.b16 %v1424_v10, %v1423_v9  ;;  %v1448_v15 = vperm.slane %v1422_v8, %v6578_v63 }
 0x1a9   : > { %v1454_v16 = vrot.slane %v1453_v12, 4  ;;  %v1479_v17 = vperm.slane %v1431_v11, %v6578_v63 }
 0x1aa   : > { %v1456_v18 = vrot.slane %v1448_v15, 4  ;;  %v1474_v19 = vperm.slane %v1425_v14, %v6578_v63 }
 0x1ab   : > { %v1480_v21 = vrot.slane %v1479_v17, 4  ;;  %v1455_v22 = vsel %vm1212_vm0, %v1454_v16, %v1448_v15  ;;  %v1176_v15 = vpop.permute.xlu2 %1175 }
 0x1ac   : > { %v1457_v25 = vsel %vm1212_vm0, %v1453_v12, %v1456_v18  ;;  %v1461_v26 = vperm.slane %v1455_v22, %v6583_v13  ;;  %v1482_v27 = vrot.slane %v1474_v19, 4  ;;  %v1415_v28 = vpop.permute.xlu1 %1414 }
 0x1ad   : > { %v1465_v30 = vperm.slane %v1457_v25, %v6583_v13  ;;  %v1481_v31 = vsel %vm1212_vm0, %v1480_v21, %v1474_v19  ;;  %v1440_v32 = vpack.i.b16 %v1419_v62, %v1415_v28  ;;  %v1441_v33 = vshrl.u32 %v1415_v28, 16  ;;  %v1411_v34 = vpop.permute.xlu0 %1410 }
 0x1ae   : > { %v1466_v37 = vrot.slane %v1461_v26, 4  ;;  %v1483_v38 = vsel %vm1212_vm0, %v1479_v17, %v1482_v27  ;;  %v1487_v39 = vperm.slane %v1481_v31, %v6583_v13  ;;  %v1434_v41 = vpack.i.b16 %v1411_v34, %v6538_v36 }
 0x1af   : > { %v1468_v42 = vrot.slane %v1465_v30, 4  ;;  %v1491_v43 = vperm.slane %v1483_v38, %v6583_v13  ;;  %v1443_v45 = vpack.i.b16 %v1442_v24, %v1441_v33  ;;  %v1505_v46 = vperm.slane %v1440_v32, %v6578_v63 }
 0x1b0   : > { %v1436_v47 = vshrl.u32 %v1411_v34, 16  ;;  %v1500_v48 = vperm.slane %v1434_v41, %v6578_v63  ;;  %v1492_v54 = vrot.slane %v1487_v39, 4  ;;  %v1467_v57 = vsel %vm1212_vm0, 0, %v1466_v37 }
 0x1b1   : > { %v1469_v51 = vsel %vm1212_vm0, 0, %v1468_v42  ;;  %v1494_v55 = vrot.slane %v1491_v43, 4  ;;  %v1506_v36 = vrot.slane %v1505_v46, 4  ;;  %v1531_v59 = vperm.slane %v1443_v45, %v6578_v63 }
 0x1b2   : > { %v1553_v58 = vrot.slane %v1469_v51, 4  ;;  %v1548_v61 = vsel %vm1212_vm0, %v1468_v42, %v1461_v26  ;;  %v1437_v62 = vpack.i.b16 %v1436_v47, %v1435_v23  ;;  %v1508_v4 = vrot.slane %v1500_v48, 4 }
 0x1b3   : > { %v1495_v60 = vsel %vm1212_vm0, 0, %v1494_v55  ;;  %v1507_v0 = vsel %vm1212_vm0, %v1506_v36, %v1500_v48  ;;  %v1532_v3 = vrot.slane %v1531_v59, 4  ;;  %v1493_v5 = vsel %vm1212_vm0, 0, %v1492_v54 }
 0x1b4   : > { %v1554_v1 = vsel %vm1212_vm0, %v1553_v58, %v1467_v57  ;;  %v1572_v2 = vrot.slane %v1495_v60, 4  ;;  %v1513_v6 = vperm.slane %v1507_v0, %v6583_v13  ;;  %v1526_v7 = vperm.slane %v1437_v62, %v6578_v63 }
 0x1b5   : > { %v1558_v9 = vperm.slane %v1554_v1, %v6578_v63  ;;  %v1509_v10 = vsel %vm1212_vm0, %v1505_v46, %v1508_v4  ;;  %v1567_v20 = vsel %vm1212_vm0, %v1494_v55, %v1487_v39  ;;  %v1199_v27 = vshrl.u32 %v1176_v15, 16 }
 0x1b6   : > { %v1166_v8 = vpop.permute.xlu0 %1165  ;;  %v1573_v14 = vsel %vm1212_vm0, %v1572_v2, %v1493_v5  ;;  %v1517_v16 = vperm.slane %v1509_v10, %v6583_v13  ;;  %v1518_v17 = vrot.slane %v1513_v6, 4  ;;  %v1533_v18 = vsel %vm1212_vm0, %v1532_v3, %v1526_v7 }
 0x1b7   : > { %v1179_v11 = vpack.i.b16 %v1166_v8, %v6546_v40  ;;  %v1181_v12 = vshrl.u32 %v1166_v8, 16  ;;  %v1534_v19 = vrot.slane %v1526_v7, 4  ;;  %v1539_v21 = vperm.slane %v1533_v18, %v6583_v13 }
 0x1b8   : > { %v1520_v24 = vrot.slane %v1517_v16, 4  ;;  %v1559_v25 = vrot.slane %v1558_v9, 4  ;;  %v1577_v26 = vperm.slane %v1573_v14, %v6578_v63  ;;  %v1552_v28 = vperm.slane %v1548_v61, %v6578_v63 }
 0x1b9   : > { %v1182_v22 = vpack.i.b16 %v1181_v12, %v1180_v49  ;;  %v6628_v23 = vperm.slane %v1179_v11, %v6578_v63  ;;  %v1535_v40 = vsel %vm1212_vm0, %v1531_v59, %v1534_v19  ;;  %v1544_v31 = vrot.slane %v1539_v21, 4 }
 0x1ba   : > { %v1543_v30 = vperm.slane %v1535_v40, %v6583_v13  ;;  %v1519_v32 = vsel %vm1212_vm0, 0, %v1518_v17  ;;  %v1521_v33 = vsel %vm1212_vm0, 0, %v1520_v24  ;;  %v1571_v38 = vperm.slane %v1567_v20, %v6578_v63 }
 0x1bb   : > { %v1214_v34 = vrot.slane %v6628_v23, 4  ;;  %v1586_v41 = vsel %vm1212_vm0, %v1520_v24, %v1513_v6  ;;  %v1591_v42 = vrot.slane %v1521_v33, 4  ;;  %v6640_v43 = vperm.slane %v1182_v22, %v6578_v63 }
 0x1bc   : > { %v1546_v39 = vrot.slane %v1543_v30, 4  ;;  %v1560_v48 = vsel %vm1212_vm0, %v1559_v25, %v1552_v28  ;;  %v1578_v49 = vrot.slane %v1577_v26, 4  ;;  %v1545_v51 = vsel %vm1212_vm0, 0, %v1544_v31 }
 0x1bd   : > { %v1592_v55 = vsel %vm1212_vm0, %v1591_v42, %v1519_v32  ;;  %v1590_v61 = vperm.slane %v1586_v41, %v6578_v63  ;;  %v6654_v4 = vperm.slane %v1560_v48, %v6583_v13 }
 0x1be   : > { %v1168_v37 = vpop.permute.xlu1 %1167  ;;  %v1547_v54 = vsel %vm1212_vm0, 0, %v1546_v39  ;;  %v1596_v0 = vperm.slane %v1592_v55, %v6578_v63  ;;  %v1579_v6 = vsel %vm1212_vm0, %v1578_v49, %v1571_v38 }
 0x1bf   : > { %v1191_v45 = vpack.i.b16 %v1168_v37, %v6552_v44  ;;  %v1193_v46 = vshrl.u32 %v1168_v37, 16  ;;  %v1172_v47 = vpop.permute.xlu0 %1171  ;;  %v1610_v57 = vrot.slane %v1547_v54, 4  ;;  %v1240_v44 = vrot.slane %v6640_v43, 4 }
 0x1c0   : > { %v1197_v36 = vpack.i.b16 %v1176_v15, %v1172_v47  ;;  %v1198_v60 = vshrl.u32 %v1172_v47, 16  ;;  %v1597_v12 = vrot.slane %v1596_v0, 4  ;;  %v6672_v28 = vperm.slane %v1579_v6, %v6583_v13 }
 0x1c1   : > { %v1194_v58 = vpack.i.b16 %v1193_v46, %v1192_v50  ;;  %v1258_v59 = vperm.slane %v1191_v45, %v6578_v63  ;;  %v1605_v50 = vsel %vm1212_vm0, %v1546_v39, %v1539_v21  ;;  %v1611_v7 = vsel %vm1212_vm0, %v1610_v57, %v1545_v51 }
 0x1c2   : > { %v1263_v62 = vperm.slane %v1197_v36, %v6578_v63  ;;  %v1200_v3 = vpack.i.b16 %v1199_v27, %v1198_v60  ;;  %v1615_v21 = vperm.slane %v1611_v7, %v6578_v63  ;;  %v1609_v25 = vperm.slane %v1605_v50, %v6578_v63 }
 0x1c3   : > { %v1266_v1 = vrot.slane %v1258_v59, 4  ;;  %v1284_v2 = vperm.slane %v1194_v58, %v6578_v63  ;;  %v1598_v30 = vsel %vm1212_vm0, %v1597_v12, %v1590_v61 }
 0x1c4   : > { %v1264_v5 = vrot.slane %v1263_v62, 4  ;;  %v1289_v10 = vperm.slane %v1200_v3, %v6578_v63  ;;  %v1616_v42 = vrot.slane %v1615_v21, 4 }
 0x1c5   : > { %v1292_v8 = vrot.slane %v1284_v2, 4  ;;  %v1267_v9 = vsel %vm1212_vm0, %v1263_v62, %v1266_v1 }
 0x1c6   : > { %v1174_v11 = vpop.permute.xlu1 %1173  ;;  %v1265_v14 = vsel %vm1212_vm0, %v1264_v5, %v1258_v59  ;;  %v1275_v15 = vperm.slane %v1267_v9, %v6583_v13  ;;  %v1290_v19 = vrot.slane %v1289_v10, 4  ;;  %v1617_v59 = vsel %vm1212_vm0, %v1616_v42, %v1609_v25 }
 0x1c7   : > { %v1185_v16 = vpack.i.b16 %v1174_v11, %v6592_v29  ;;  %v1187_v17 = vshrl.u32 %v1174_v11, 16  ;;  %v1271_v18 = vperm.slane %v1265_v14, %v6583_v13  ;;  %v1293_v20 = vsel %vm1212_vm0, %v1289_v10, %v1292_v8 }
 0x1c8   : > { %v1278_v22 = vrot.slane %v1275_v15, 4  ;;  %v1301_v24 = vperm.slane %v1293_v20, %v6583_v13  ;;  %v1291_v27 = vsel %vm1212_vm0, %v1290_v19, %v1284_v2  ;;  %v1621_v50 = vperm.slane %v1617_v59, %v6583_v13 }
 0x1c9   : > { %v1210_v40 = vperm.slane %v1185_v16, %v6578_v63  ;;  %v1276_v26 = vrot.slane %v1271_v18, 4  ;;  %v1297_v32 = vperm.slane %v1291_v27, %v6583_v13  ;;  %v1188_v37 = vpack.i.b16 %v1187_v17, %v1186_v56 }
 0x1ca   : > { %v1279_v31 = vsel %vm1212_vm0, 0, %v1278_v22  ;;  %v1304_v33 = vrot.slane %v1301_v24, 4  ;;  %v6682_v47 = vsel %vm1212_vm0, %v1278_v22, %v1271_v18  ;;  %v1602_v56 = vperm.slane %v1598_v30, %v6583_v13 }
 0x1cb   : > { %v1277_v38 = vsel %vm1212_vm0, 0, %v1276_v26  ;;  %v1349_v39 = vrot.slane %v1279_v31, 4  ;;  %v1211_v41 = vrot.slane %v1210_v40, 4  ;;  %v1302_v45 = vrot.slane %v1297_v32, 4 }
 0x1cc   : > { %v1305_v46 = vsel %vm1212_vm0, 0, %v1304_v33  ;;  %v1215_v48 = vsel %vm1212_vm0, %v1210_v40, %v1214_v34  ;;  %v1348_v34 = vperm.slane %v6682_v47, %v6578_v63  ;;  %v1237_v58 = vperm.slane %v1188_v37, %v6578_v63 }
 0x1cd   : > { %v1350_v49 = vsel %vm1212_vm0, %v1349_v39, %v1277_v38  ;;  %v1368_v51 = vrot.slane %v1305_v46, 4  ;;  %v1213_v29 = vsel %vm1212_vm0, %v1211_v41, %v6628_v23  ;;  %v1303_v54 = vsel %vm1212_vm0, 0, %v1302_v45 }
 0x1ce   : > { %v1354_v55 = vperm.slane %v1350_v49, %v6578_v63  ;;  %v1219_v36 = vperm.slane %v1213_v29, %v6583_v13  ;;  %v1223_v57 = vperm.slane %v1215_v48, %v6583_v13  ;;  %v1626_v23 = vpack.i.b16 %v6672_v28, %v6654_v4 }
 0x1cf   : > { %v6702_v60 = vsel %vm1212_vm0, %v1304_v33, %v1297_v32  ;;  %v6705_v61 = vsel %vm1212_vm0, %v1368_v51, %v1303_v54  ;;  %v1238_v2 = vrot.slane %v1237_v58, 4  ;;  %v1241_v3 = vsel %vm1212_vm0, %v1237_v58, %v1240_v44 }
 0x1d0   : > { %v1224_v62 = vrot.slane %v1219_v36, 4  ;;  %v1226_v0 = vrot.slane %v1223_v57, 4  ;;  %v1355_v1 = vrot.slane %v1354_v55, 4  ;;  %v1249_v7 = vperm.slane %v1241_v3, %v6583_v13 }
 0x1d1   : > { %v1239_v9 = vsel %vm1212_vm0, %v1238_v2, %v6640_v43  ;;  %v1638_v11 = vpack.i.b16 %v1621_v50, %v1602_v56  ;;  %v1893_v12 = vunpack.c.l.b16 %v1626_v23  ;;  %v1628_v16 = vshrl.u32 %v6672_v28, 16 }
 0x1d2   : > { %v1225_v5 = vsel %vm1212_vm0, 0, %v1224_v62  ;;  %v1227_v6 = vsel %vm1212_vm0, 0, %v1226_v0  ;;  %v1306_v8 = vsel %vm1212_vm0, %v1226_v0, %v1219_v36  ;;  %v1245_v14 = vperm.slane %v1239_v9, %v6583_v13 }
 0x1d3   : > { %v1311_v10 = vrot.slane %v1227_v6, 4  ;;  %v1252_v15 = vrot.slane %v1249_v7, 4  ;;  %v1310_v44 = vperm.slane %v1306_v8, %v6578_v63  ;;  %v1894_v18 = vunpack.c.l.b16 %v1638_v11 }
 0x1d4   : > { %v1627_v19 = vshrl.u32 %v6654_v4, 16  ;;  %v1640_v20 = vshrl.u32 %v1621_v50, 16  ;;  %v1250_v21 = vrot.slane %v1245_v14, 4  ;;  %v1639_v24 = vshrl.u32 %v1602_v56, 16 }
 0x1d5   : > { %v1312_v17 = vsel %vm1212_vm0, %v1311_v10, %v1225_v5  ;;  %v1253_v22 = vsel %vm1212_vm0, 0, %v1252_v15  ;;  %v1325_v40 = vsel %vm1212_vm0, %v1252_v15, %v1245_v14  ;;  %v1895_v26 = vpack.c.b16 %v1894_v18, %v1893_v12 }
 0x1d6   : > { %v1316_v43 = vperm.slane %v1312_v17, %v6578_v63  ;;  %v1330_v25 = vrot.slane %v1253_v22, 4  ;;  %v1629_v27 = vpack.i.b16 %v1628_v16, %v1627_v19  ;;  %v1251_v30 = vsel %vm1212_vm0, 0, %v1250_v21 }
 0x1d7   : > { %v1641_v32 = vpack.i.b16 %v1640_v20, %v1639_v24  ;;  %v1565_v33 = vrot.slane %v6654_v4, 4  ;;  %v1901_v38 = vsel %vm1896_vm1, %v1895_v26, 0  ;;  %v1584_v41 = vrot.slane %v6672_v28, 4 }
 0x1d8   : > { %v1317_v31 = vrot.slane %v1316_v43, 4  ;;  %v1331_v37 = vsel %vm1212_vm0, %v1330_v25, %v1251_v30  ;;  %v1920_v39 = vunpack.c.l.b16 %v1629_v27  ;;  %1910 = vmatpush.bf16.xpose.msrb.mxu1 %v1901_v38  ;;  %v1603_v48 = vrot.slane %v1602_v56, 4  ;;  %v5302_v30 = vld [vmem:[#allocation18 + $0x38] sm:$0xff] }
 0x1d9   : > { %v1335_v42 = vperm.slane %v1331_v37, %v6578_v63  ;;  %v1921_v45 = vunpack.c.l.b16 %v1641_v32  ;;  %v1566_v46 = vsel %vm1212_vm0, 0, %v1565_v33  ;;  %v1585_v49 = vsel %vm1212_vm0, 0, %v1584_v41  ;;  %956 = vmatpush.bf16.msra.mxu2 %v5302_v30 }
 0x1da   : > { %v1622_v51 = vrot.slane %v1621_v50, 4  ;;  %v1633_v29 = vshrl.u32 %v1566_v46, 16  ;;  %v1318_v4 = vsel %vm1212_vm0, %v1317_v31, %v1310_v44  ;;  %v1604_v55 = vsel %vm1212_vm0, 0, %v1603_v48 }
 0x1db   : > { %v1922_v54 = vpack.c.b16 %v1921_v45, %v1920_v39  ;;  %v1632_v36 = vpack.i.b16 %v1585_v49, %v1566_v46  ;;  %v1634_v57 = vshrl.u32 %v1585_v49, 16  ;;  %v1373_v28 = vperm.slane %v6705_v61, %v6578_v63 }
 0x1dc   : > { %v1329_v58 = vperm.slane %v1325_v40, %v6578_v63  ;;  %v1623_v59 = vsel %vm1212_vm0, 0, %v1622_v51  ;;  %v1336_v23 = vrot.slane %v1335_v42, 4  ;;  %v1645_v2 = vshrl.u32 %v1604_v55, 16 }
 0x1dd   : > { %v1927_v56 = vsel %vm1896_vm1, %v1922_v54, 0  ;;  %v1644_v62 = vpack.i.b16 %v1623_v59, %v1604_v55  ;;  %v1635_v0 = vpack.i.b16 %v1634_v57, %v1633_v29  ;;  %v1646_v3 = vshrl.u32 %v1623_v59, 16 }
 0x1de   : > { %1936 = vmatpush.bf16.xpose.msrb.mxu3 %v1927_v56  ;;  %v1322_v50 = vperm.slane %v1318_v4, %v6583_v13  ;;  %v1337_v5 = vsel %vm1212_vm0, %v1336_v23, %v1329_v58  ;;  %v1356_v61 = vsel %vm1212_vm0, %v1355_v1, %v1348_v34  ;;  %v1946_v6 = vunpack.c.l.b16 %v1632_v36  ;;  %v1655_v56 = vpop.permute.xlu2 %1654 }
 0x1df   : > { %v1947_v7 = vunpack.c.l.b16 %v1644_v62  ;;  %v1341_v8 = vperm.slane %v1337_v5, %v6583_v13  ;;  %v1367_v9 = vperm.slane %v6702_v60, %v6578_v63  ;;  %v1647_v10 = vpack.i.b16 %v1646_v3, %v1645_v2  ;;  %v5300_v2 = vld [vmem:[#allocation18 + $0x28] sm:$0xff]  ;;  %v1651_v5 = vpop.permute.xlu0 %1650 }
 0x1e0   : > { %v1374_v11 = vrot.slane %v1373_v28, 4  ;;  %v1972_v14 = vunpack.c.l.b16 %v1635_v0  ;;  %v1360_v15 = vperm.slane %v1356_v61, %v6583_v13  ;;  %v1385_v47 = vshrl.u32 %v1322_v50, 16  ;;  %v5301_v0 = vld [vmem:[#allocation18 + $0x30] sm:$0xff] }
 0x1e1   : > { %v1948_v12 = vpack.c.b16 %v1947_v7, %v1946_v6  ;;  %v1384_v44 = vpack.i.b16 %v1341_v8, %v1322_v50  ;;  %v1973_v16 = vunpack.c.l.b16 %v1647_v10  ;;  %v1386_v18 = vshrl.u32 %v1341_v8, 16  ;;  %957 = vmatpush.bf16.msra.mxu2 %v5301_v0  ;;  %v5299_v7 = vld [vmem:[#allocation18 + $0x20] sm:$0xff] }
 0x1e2   : > { %v1375_v17 = vsel %vm1212_vm0, %v1374_v11, %v1367_v9  ;;  %v1397_v22 = vshrl.u32 %v1360_v15, 16  ;;  %v1342_v40 = vrot.slane %v1341_v8, 4  ;;  %v1323_v31 = vrot.slane %v1322_v50, 4  ;;  %v1653_v50 = vpop.permute.xlu1 %1652 }
 0x1e3   : > { %v1953_v34 = vsel %vm1896_vm1, %v1948_v12, 0  ;;  %v1379_v1 = vperm.slane %v1375_v17, %v6583_v13  ;;  %v1974_v19 = vpack.c.b16 %v1973_v16, %v1972_v14  ;;  %v1387_v20 = vpack.i.b16 %v1386_v18, %v1385_v47 }
 0x1e4   : > { %v1890_v21 = vunpack.c.l.b16 %v1384_v44  ;;  %v1361_v38 = vrot.slane %v1360_v15, 4  ;;  %v1343_v39 = vsel %vm1212_vm0, 0, %v1342_v40  ;;  %v1324_v42 = vsel %vm1212_vm0, 0, %v1323_v31 }
 0x1e5   : > { %v1396_v60 = vpack.i.b16 %v1379_v1, %v1360_v15  ;;  %v1398_v43 = vshrl.u32 %v1379_v1, 16  ;;  %v1979_v24 = vsel %vm1896_vm1, %v1974_v19, 0  ;;  %v1917_v27 = vunpack.c.l.b16 %v1387_v20  ;;  %958 = vmatpush.bf16.msra.mxu2 %v5300_v2  ;;  %v5298_v15 = vld [vmem:[#allocation18 + $0x18] sm:$0xff] }
 0x1e6   : > { %1962 = vmatpush.bf16.xpose.msra.mxu3 %v1953_v34  ;;  %1988 = vmatpush.bf16.xpose.msra.mxu1 %v1979_v24  ;;  %v1380_v32 = vrot.slane %v1379_v1, 4  ;;  %v1392_v46 = vshrl.u32 %v1343_v39, 16  ;;  %v1362_v48 = vsel %vm1212_vm0, 0, %v1361_v38  ;;  %v1391_v49 = vshrl.u32 %v1324_v42, 16  ;;  %v1661_v14 = vpop.permute.xlu2 %1660 }
 0x1e7   : > { %v1891_v25 = vunpack.c.l.b16 %v1396_v60  ;;  %v1399_v26 = vpack.i.b16 %v1398_v43, %v1397_v22  ;;  %v1403_v4 = vshrl.u32 %v1362_v48, 16  ;;  %v1390_v55 = vpack.i.b16 %v1343_v39, %v1324_v42  ;;  %v1657_v1 = vpop.permute.xlu0 %1656 }
 0x1e8   : > { %v1381_v45 = vsel %vm1212_vm0, 0, %v1380_v32  ;;  %v1393_v29 = vpack.i.b16 %v1392_v46, %v1391_v49  ;;  %v1665_v3 = vshrl.u32 %v6564_v53, 16  ;;  %v1664_v61 = vpack.i.b16 %v1651_v5, %v6564_v53 }
 0x1e9   : > { %v1892_v33 = vpack.c.b16 %v1891_v25, %v1890_v21  ;;  %v1918_v37 = vunpack.c.l.b16 %v1399_v26  ;;  %v1404_v51 = vshrl.u32 %v1381_v45, 16  ;;  %v1402_v57 = vpack.i.b16 %v1381_v45, %v1362_v48  ;;  %959 = vmatpush.bf16.msra.mxu2 %v5299_v7  ;;  %v5297_v21 = vld [vmem:[#allocation18 + $0x10] sm:$0xff] }
 0x1ea   : > { %v1969_v36 = vunpack.c.l.b16 %v1393_v29  ;;  %v1943_v58 = vunpack.c.l.b16 %v1390_v55  ;;  %v1666_v6 = vshrl.u32 %v1651_v5, 16  ;;  %v1677_v8 = vshrl.u32 %v6562_v52, 16  ;;  %v1659_v34 = vpop.permute.xlu1 %1658 }
 0x1eb   : > { %5031 = vmatmul.msk.bf16.vlgmr.msrb.gmra.mxu1 %vm1896_vm1, %v1892_v33  ;;  %v1919_v41 = vpack.c.b16 %v1918_v37, %v1917_v27  ;;  %v1405_v54 = vpack.i.b16 %v1404_v51, %v1403_v4  ;;  %v1944_v23 = vunpack.c.l.b16 %v1402_v57  ;;  %v1676_v9 = vpack.i.b16 %v1653_v50, %v6562_v52  ;;  %v5296_v37 = vld [vmem:[#allocation18 + $0x8] sm:$0xff] }
 0x1ec   : > { %v1678_v10 = vshrl.u32 %v1653_v50, 16  ;;  %v1667_v11 = vpack.i.b16 %v1666_v6, %v1665_v3  ;;  %v1690_v12 = vperm.slane %v1664_v61, %v6578_v63  ;;  %v1671_v53 = vshrl.u32 %v1655_v56, 16 }
 0x1ed   : > { %5032 = vmatmul.msk.bf16.vlgmr.msrb.gmra.mxu3 %vm1896_vm1, %v1919_v41  ;;  %v1970_v28 = vunpack.c.l.b16 %v1405_v54  ;;  %v1945_v62 = vpack.c.b16 %v1944_v23, %v1943_v58  ;;  %v1742_v16 = vperm.slane %v1676_v9, %v6578_v63  ;;  %v1684_v47 = vshrl.u32 %v1661_v14, 16  ;;  %960 = vmatpush.bf16.msra.mxu2 %v5298_v15 }
 0x1ee   : > { %v1679_v44 = vpack.i.b16 %v1678_v10, %v1677_v8  ;;  %v1716_v17 = vperm.slane %v1667_v11, %v6578_v63  ;;  %v1698_v18 = vrot.slane %v1690_v12, 4  ;;  %v1670_v19 = vpack.i.b16 %v1659_v34, %v1655_v56 }
 0x1ef   : > { %v1971_v59 = vpack.c.b16 %v1970_v28, %v1969_v36  ;;  %v1672_v20 = vshrl.u32 %v1659_v34, 16  ;;  %v1682_v52 = vpack.i.b16 %v1661_v14, %v1657_v1  ;;  %v1683_v60 = vshrl.u32 %v1657_v1, 16  ;;  %v5295_v28 = vld [vmem:[#allocation18] sm:$0xff] }
 0x1f0   : > { %v1750_v22 = vrot.slane %v1742_v16, 4  ;;  %v1768_v43 = vperm.slane %v1679_v44, %v6578_v63  ;;  %v1724_v24 = vrot.slane %v1716_v17, 4  ;;  %v1695_v25 = vperm.slane %v1670_v19, %v6578_v63 }
 0x1f1   : > { %v1673_v40 = vpack.i.b16 %v1672_v20, %v1671_v53  ;;  %v1685_v26 = vpack.i.b16 %v1684_v47, %v1683_v60  ;;  %v1747_v27 = vperm.slane %v1682_v52, %v6578_v63  ;;  %961 = vmatpush.bf16.msra.mxu2 %v5297_v21 }
 0x1f2   : > { %v1696_v30 = vrot.slane %v1695_v25, 4  ;;  %v1699_v31 = vsel %vm1212_vm0, %v1695_v25, %v1698_v18  ;;  %v1776_v38 = vrot.slane %v1768_v43, 4 }
 0x1f3   : > { %v1721_v32 = vperm.slane %v1673_v40, %v6578_v63  ;;  %v1748_v33 = vrot.slane %v1747_v27, 4  ;;  %v1707_v39 = vperm.slane %v1699_v31, %v6583_v13  ;;  %v1751_v41 = vsel %vm1212_vm0, %v1747_v27, %v1750_v22 }
 0x1f4   : > { %v1773_v42 = vperm.slane %v1685_v26, %v6578_v63  ;;  %v1697_v45 = vsel %vm1212_vm0, %v1696_v30, %v1690_v12  ;;  %v1759_v36 = vperm.slane %v1751_v41, %v6583_v13 }
 0x1f5   : > { %v1722_v46 = vrot.slane %v1721_v32, 4  ;;  %v1725_v48 = vsel %vm1212_vm0, %v1721_v32, %v1724_v24  ;;  %v1749_v49 = vsel %vm1212_vm0, %v1748_v33, %v1742_v16  ;;  %v1703_v51 = vperm.slane %v1697_v45, %v6583_v13  ;;  %962 = vmatpush.bf16.msra.mxu2 %v5296_v37 }
 0x1f6   : > { %v1710_v29 = vrot.slane %v1707_v39, 4  ;;  %v1733_v4 = vperm.slane %v1725_v48, %v6583_v13  ;;  %v1755_v54 = vperm.slane %v1749_v49, %v6583_v13  ;;  %v1774_v57 = vrot.slane %v1773_v42, 4 }
 0x1f7   : > { %v1723_v55 = vsel %vm1212_vm0, %v1722_v46, %v1716_v17  ;;  %v1708_v58 = vrot.slane %v1703_v51, 4  ;;  %v1762_v2 = vrot.slane %v1759_v36, 4  ;;  %v1777_v3 = vsel %vm1212_vm0, %v1773_v42, %v1776_v38 }
 0x1f8   : > { %v1729_v23 = vperm.slane %v1723_v55, %v6583_v13  ;;  %v1736_v56 = vrot.slane %v1733_v4, 4  ;;  %v1760_v0 = vrot.slane %v1755_v54, 4  ;;  %v1775_v6 = vsel %vm1212_vm0, %v1774_v57, %v1768_v43 }
 0x1f9   : > { %v1709_v50 = vsel %vm1212_vm0, 0, %v1708_v58  ;;  %v1790_v7 = vsel %vm1212_vm0, %v1710_v29, %v1703_v51  ;;  %v1763_v9 = vsel %vm1212_vm0, 0, %v1762_v2  ;;  %v1781_v10 = vperm.slane %v1775_v6, %v6583_v13  ;;  %963 = vmatpush.bf16.msra.mxu2 %v5295_v28 }
 0x1fa   : > { %v1734_v5 = vrot.slane %v1729_v23, 4  ;;  %v1737_v61 = vsel %vm1212_vm0, 0, %v1736_v56  ;;  %v1761_v12 = vsel %vm1212_vm0, 0, %v1760_v0  ;;  %v1785_v14 = vperm.slane %v1777_v3, %v6583_v13 }
 0x1fb   : > { %5034 = vmatmul.msk.bf16.vlgmr.msra.gmra.mxu1 %vm1896_vm1, %v1971_v59  ;;  %v1711_v59 = vsel %vm1212_vm0, 0, %v1710_v29  ;;  %v1814_v8 = vrot.slane %v1737_v61, 4  ;;  %v1833_v15 = vrot.slane %v1763_v9, 4  ;;  %v1786_v44 = vrot.slane %v1781_v10, 4 }
 0x1fc   : > { %v1735_v11 = vsel %vm1212_vm0, 0, %v1734_v5  ;;  %v1828_v16 = vsel %vm1212_vm0, %v1762_v2, %v1755_v54  ;;  %v1809_v53 = vsel %vm1212_vm0, %v1736_v56, %v1729_v23  ;;  %v1788_v47 = vrot.slane %v1785_v14, 4  ;;  %964 = vmatmul.bf16.vlgmr.msra.gmra.mxu2 %v6597_v35 }
 0x1fd   : > { %5033 = vmatmul.msk.bf16.vlgmr.msra.gmra.mxu3 %vm1896_vm1, %v1945_v62  ;;  %v1795_v62 = vrot.slane %v1711_v59, 4  ;;  %v1794_v18 = vperm.slane %v1790_v7, %v6578_v63  ;;  %v1815_v1 = vsel %vm1212_vm0, %v1814_v8, %v1735_v11  ;;  %v1787_v19 = vsel %vm1212_vm0, 0, %v1786_v44 }
 0x1fe   : > { %v1813_v20 = vperm.slane %v1809_v53, %v6578_v63  ;;  %v1819_v52 = vperm.slane %v1815_v1, %v6578_v63  ;;  %v1834_v60 = vsel %vm1212_vm0, %v1833_v15, %v1761_v12  ;;  %v1789_v21 = vsel %vm1212_vm0, 0, %v1788_v47  ;;  %v6827_v1 = vld [vmem:[#allocation26] sm:$0xff] }
 0x1ff   : > { %v1796_v17 = vsel %vm1212_vm0, %v1795_v62, %v1709_v50  ;;  %v1832_v43 = vperm.slane %v1828_v16, %v6578_v63  ;;  %v1838_v24 = vperm.slane %v1834_v60, %v6578_v63  ;;  %v1852_v40 = vrot.slane %v1789_v21, 4 }
 0x200   : > { %v1800_v34 = vperm.slane %v1796_v17, %v6578_v63  ;;  %v1820_v25 = vrot.slane %v1819_v52, 4  ;;  %v1847_v26 = vsel %vm1212_vm0, %v1788_v47, %v1781_v10 }
 0x201   : > { %v1839_v27 = vrot.slane %v1838_v24, 4  ;;  %v1853_v32 = vsel %vm1212_vm0, %v1852_v40, %v1787_v19  ;;  %v1851_v38 = vperm.slane %v1847_v26, %v6578_v63  ;;  %v990_v19 = vperm.slane %v6827_v1, 6 }
 0x202   : > { %v1801_v22 = vrot.slane %v1800_v34, 4  ;;  %v1821_v31 = vsel %vm1212_vm0, %v1820_v25, %v1813_v20  ;;  %v1857_v39 = vperm.slane %v1853_v32, %v6578_v63  ;;  %v1048_v34 = vpop.f32.mrf.mxu3 }
 0x203   : > { %v1825_v33 = vperm.slane %v1821_v31, %v6583_v13  ;;  %v1840_v37 = vsel %vm1212_vm0, %v1839_v27, %v1832_v43  ;;  %v1049_v20 = vadd.f32 %v1048_v34, %v990_v19 }
 0x204   : > { %v1802_v35 = vsel %vm1212_vm0, %v1801_v22, %v1794_v18  ;;  %v1844_v41 = vperm.slane %v1840_v37, %v6583_v13  ;;  %v1858_v46 = vrot.slane %v1857_v39, 4 }
 0x205   : > { %v1806_v30 = vperm.slane %v1802_v35, %v6583_v13  ;;  %v1870_v48 = vshrl.u32 %v1825_v33, 16  ;;  %v1826_v49 = vrot.slane %v1825_v33, 4 }
 0x206   : > { %v1845_v4 = vrot.slane %v1844_v41, 4  ;;  %v1859_v54 = vsel %vm1212_vm0, %v1858_v46, %v1851_v38  ;;  %v1881_v55 = vshrl.u32 %v1844_v41, 16 }
 0x207   : > { %v1869_v42 = vshrl.u32 %v1806_v30, 16  ;;  %v1807_v45 = vrot.slane %v1806_v30, 4  ;;  %v1868_v51 = vpack.i.b16 %v1825_v33, %v1806_v30  ;;  %v1827_v36 = vsel %vm1212_vm0, 0, %v1826_v49 }
 0x208   : > { %v1863_v57 = vperm.slane %v1859_v54, %v6583_v13  ;;  %v1846_v58 = vsel %vm1212_vm0, 0, %v1845_v4  ;;  %v1876_v56 = vshrl.u32 %v1827_v36, 16 }
 0x209   : > { %v1808_v29 = vsel %vm1212_vm0, 0, %v1807_v45  ;;  %v1871_v28 = vpack.i.b16 %v1870_v48, %v1869_v42  ;;  %v2081_v0 = vunpack.c.l.b16 %v1868_v51  ;;  %v1887_v5 = vshrl.u32 %v1846_v58, 16 }
 0x20a   : > { %v1875_v59 = vshrl.u32 %v1808_v29, 16  ;;  %v1874_v23 = vpack.i.b16 %v1827_v36, %v1808_v29  ;;  %v1880_v62 = vpack.i.b16 %v1863_v57, %v1844_v41  ;;  %v1882_v2 = vshrl.u32 %v1863_v57, 16  ;;  %v1050_v52 = vpop.f32.mrf.mxu3 }
 0x20b   : > { %v1864_v3 = vrot.slane %v1863_v57, 4  ;;  %v2107_v7 = vunpack.c.l.b16 %v1871_v28  ;;  %v1051_v60 = vadd.f32 %v1050_v52, %v990_v19 }
 0x20c   : > { %v1877_v50 = vpack.i.b16 %v1876_v56, %v1875_v59  ;;  %v2082_v61 = vunpack.c.l.b16 %v1880_v62  ;;  %v1883_v6 = vpack.i.b16 %v1882_v2, %v1881_v55  ;;  %v2133_v10 = vunpack.c.l.b16 %v1874_v23 }
 0x20d   : > { %v1865_v8 = vsel %vm1212_vm0, 0, %v1864_v3  ;;  %v5394_v21 = vpack.c.bf16 %v1051_v60, %v1049_v20 }
 0x20e   : > { %v1886_v9 = vpack.i.b16 %v1865_v8, %v1846_v58  ;;  %v1888_v11 = vshrl.u32 %v1865_v8, 16  ;;  %v2083_v12 = vpack.c.b16 %v2082_v61, %v2081_v0  ;;  %v2108_v14 = vunpack.c.l.b16 %v1883_v6 }
 0x20f   : > { %v2159_v16 = vunpack.c.l.b16 %v1877_v50  ;;  %5395 = vst [vmem:[#allocation5] sm:$0xff] %v5394_v21  }
 0x210   : > { %v2134_v15 = vunpack.c.l.b16 %v1886_v9  ;;  %v1889_v44 = vpack.i.b16 %v1888_v11, %v1887_v5  ;;  %2095 = vmatpush.bf16.msrb.mxu2 %v2083_v12  ;;  %v2109_v17 = vpack.c.b16 %v2108_v14, %v2107_v7 }
 0x212   : > { %v2135_v53 = vpack.c.b16 %v2134_v15, %v2133_v10  ;;  %v2160_v47 = vunpack.c.l.b16 %v1889_v44  ;;  %2121 = vmatpush.bf16.msrb.mxu3 %v2109_v17 }
 0x214   : > { %2147 = vmatpush.bf16.msra.mxu0 %v2135_v53  ;;  %v2161_v18 = vpack.c.b16 %v2160_v47, %v2159_v16 }
 0x216   : > { %2173 = vmatpush.bf16.msrb.mxu1 %v2161_v18 }
 0x268   : > { %v1912_v22 = vpop.f32.mrf.mxu1 }
 0x269   : > { %v1996_v43 = vsel %vm1995_vm2, %v1912_v22, -inf }
 0x26a   : > { %1997 = vmax.xlane.f32.xlu0 %v1996_v43 }
 0x270   : > { %v1914_v24 = vpop.f32.mrf.mxu1  ;;  %v1938_v40 = vpop.f32.mrf.mxu3 }
 0x271   : > { %v2002_v25 = vsel %vm1995_vm2, %v1938_v40, -inf  ;;  %v1999_v26 = vsel %vm1995_vm2, %v1914_v24, -inf }
 0x272   : > { %2003 = vmax.xlane.f32.xlu2 %v2002_v25  ;;  %2000 = vmax.xlane.f32.xlu1 %v1999_v26 }
 0x278   : > { %v1940_v35 = vpop.f32.mrf.mxu3  ;;  %v1990_v30 = vpop.f32.mrf.mxu1 }
 0x279   : > { %v2005_v27 = vsel %vm1995_vm2, %v1940_v35, -inf  ;;  %v2014_v32 = vsel %vm1995_vm2, %v1990_v30, -inf }
 0x27a   : > { %2006 = vmax.xlane.f32.xlu2 %v2005_v27 }
 0x280   : > { %v1964_v31 = vpop.f32.mrf.mxu3  ;;  %v1992_v37 = vpop.f32.mrf.mxu1 }
 0x281   : > { %v2008_v33 = vsel %vm1995_vm2, %v1964_v31, -inf  ;;  %v2017_v39 = vsel %vm1995_vm2, %v1992_v37, -inf }
 0x282   : > { %2015 = vmax.xlane.f32.xlu2 %v2014_v32  ;;  %2009 = vmax.xlane.f32.xlu0 %v2008_v33 }
 0x288   : > { %v1966_v38 = vpop.f32.mrf.mxu3 }
 0x289   : > { %v2011_v41 = vsel %vm1995_vm2, %v1966_v38, -inf }
 0x28a   : > { %2018 = vmax.xlane.f32.xlu0 %v2017_v39  ;;  %2012 = vmax.xlane.f32.xlu1 %v2011_v41  ;;  %v965_v41 = vpop.f32.mrf.mxu2 }
 0x2dd   : > { %v1998_v42 = vpop.xlane.xlu0 %1997 }
 0x2de   : > { %v2020_v45 = vsub.f32 %v1912_v22, %v1998_v42  ;;  %v901_v42 = vperm.slane %v6827_v1, 5 }
 0x2e0   : > { %v2028_v46 = vmul.f32 1.442695, %v2020_v45  ;;  %v966_v45 = vadd.f32 %v965_v41, %v901_v42 }
 0x2e2   : > { %5600 = vpow2.f32 %v2028_v46  ;;  %v967_v46 = vpop.f32.mrf.mxu2 }
 0x2e5   : > { %v2004_v48 = vpop.xlane.xlu2 %2003  ;;  %v2001_v49 = vpop.xlane.xlu1 %2000 }
 0x2e6   : > { %v2022_v51 = vsub.f32 %v1938_v40, %v2004_v48  ;;  %v2021_v29 = vsub.f32 %v1914_v24, %v2001_v49  ;;  %v968_v48 = vadd.f32 %v967_v46, %v901_v42 }
 0x2e8   : > { %v5601_v4 = vpop.eup %5600  ;;  %v2030_v54 = vmul.f32 1.442695, %v2021_v29  ;;  %v2032_v36 = vmul.f32 1.442695, %v2022_v51  ;;  %v5389_v49 = vpack.c.bf16 %v968_v48, %v966_v45 }
 0x2e9   : > { %v2044_v55 = vsel %vm1995_vm2, %v5601_v4, 0.0  ;;  %v2068_v58 = vpack.c.bf16 %v5601_v4, %v5601_v4 }
 0x2ea   : > { %2045 = vadd.xlane.f32.xlu0 %v2044_v55  ;;  %5602 = vpow2.f32 %v2030_v54  ;;  %5390 = vst [vmem:[#allocation4] sm:$0xff] %v5389_v49  }
 0x2eb   : > { %5604 = vpow2.f32 %v2032_v36  ;;  %v2078_v2 = vunpack.c.l.b16 %v2068_v58 }
 0x2ed   : > { %v2007_v57 = vpop.xlane.xlu2 %2006 }
 0x2ee   : > { %v2023_v28 = vsub.f32 %v1940_v35, %v2007_v57 }
 0x2f0   : > { %v2034_v59 = vmul.f32 1.442695, %v2023_v28  ;;  %v5603_v23 = vpop.eup %5602 }
 0x2f1   : > { %v2069_v56 = vpack.c.bf16 %v5603_v23, %v5603_v23  ;;  %v2047_v62 = vsel %vm1995_vm2, %v5603_v23, 0.0  ;;  %v5605_v0 = vpop.eup %5604 }
 0x2f2   : > { %5606 = vpow2.f32 %v2034_v59  ;;  %2048 = vadd.xlane.f32.xlu1 %v2047_v62  ;;  %v2070_v8 = vpack.c.bf16 %v5605_v0, %v5605_v0  ;;  %v2050_v35 = vsel %vm1995_vm2, %v5605_v0, 0.0 }
 0x2f3   : > { %v2079_v3 = vunpack.c.l.b16 %v2069_v56 }
 0x2f4   : > { %v2104_v14 = vunpack.c.l.b16 %v2070_v8 }
 0x2f5   : > { %v2016_v50 = vpop.xlane.xlu2 %2015  ;;  %v2010_v5 = vpop.xlane.xlu0 %2009  ;;  %v2080_v7 = vpack.c.b16 %v2079_v3, %v2078_v2 }
 0x2f6   : > { %v2026_v61 = vsub.f32 %v1990_v30, %v2016_v50  ;;  %v2024_v6 = vsub.f32 %v1964_v31, %v2010_v5 }
 0x2f7   : > { %5035 = vmatmul.msk.bf16.vlgmr.msrb.gmra.mxu2 %vm1995_vm2, %v2080_v7 }
 0x2f8   : > { %v5607_v9 = vpop.eup %5606  ;;  %v2040_v10 = vmul.f32 1.442695, %v2026_v61  ;;  %v2036_v11 = vmul.f32 1.442695, %v2024_v6 }
 0x2f9   : > { %v2071_v12 = vpack.c.bf16 %v5607_v9, %v5607_v9  ;;  %v2053_v39 = vsel %vm1995_vm2, %v5607_v9, 0.0 }
 0x2fa   : > { %5608 = vpow2.f32 %v2040_v10 }
 0x2fb   : > { %v2105_v15 = vunpack.c.l.b16 %v2071_v12  ;;  %5610 = vpow2.f32 %v2036_v11 }
 0x2fd   : > { %v2106_v44 = vpack.c.b16 %v2105_v15, %v2104_v14  ;;  %v2019_v16 = vpop.xlane.xlu0 %2018  ;;  %v2013_v17 = vpop.xlane.xlu1 %2012 }
 0x2fe   : > { %v2027_v53 = vsub.f32 %v1992_v37, %v2019_v16  ;;  %v2025_v47 = vsub.f32 %v1966_v38, %v2013_v17 }
 0x2ff   : > { %5036 = vmatmul.msk.bf16.vlgmr.msrb.gmra.mxu3 %vm1995_vm2, %v2106_v44 }
 0x300   : > { %v5609_v18 = vpop.eup %5608  ;;  %v2042_v34 = vmul.f32 1.442695, %v2027_v53  ;;  %v2038_v19 = vmul.f32 1.442695, %v2025_v47 }
 0x301   : > { %v5611_v20 = vpop.eup %5610  ;;  %v2062_v52 = vsel %vm1995_vm2, %v5609_v18, 0.0  ;;  %v2074_v21 = vpack.c.bf16 %v5609_v18, %v5609_v18 }
 0x302   : > { %5612 = vpow2.f32 %v2042_v34  ;;  %2063 = vadd.xlane.f32.xlu2 %v2062_v52  ;;  %v2056_v60 = vsel %vm1995_vm2, %v5611_v20, 0.0  ;;  %v2072_v43 = vpack.c.bf16 %v5611_v20, %v5611_v20 }
 0x303   : > { %5614 = vpow2.f32 %v2038_v19  ;;  %2057 = vadd.xlane.f32.xlu1 %v2056_v60  ;;  %v2156_v30 = vunpack.c.l.b16 %v2074_v21 }
 0x304   : > { %v2130_v32 = vunpack.c.l.b16 %v2072_v43 }
 0x308   : > { %v5613_v22 = vpop.eup %5612 }
 0x309   : > { %v5615_v24 = vpop.eup %5614  ;;  %v2075_v40 = vpack.c.bf16 %v5613_v22, %v5613_v22  ;;  %v2065_v25 = vsel %vm1995_vm2, %v5613_v22, 0.0 }
 0x30a   : > { %v2073_v26 = vpack.c.bf16 %v5615_v24, %v5615_v24  ;;  %2066 = vadd.xlane.f32.xlu0 %v2065_v25  ;;  %v2059_v27 = vsel %vm1995_vm2, %v5615_v24, 0.0 }
 0x30b   : > { %v2157_v31 = vunpack.c.l.b16 %v2075_v40  ;;  %2051 = vadd.xlane.f32.xlu1 %v2050_v35  ;;  %2060 = vadd.xlane.f32.xlu2 %v2059_v27 }
 0x30c   : > { %v2131_v33 = vunpack.c.l.b16 %v2073_v26 }
 0x30d   : > { %v2158_v37 = vpack.c.b16 %v2157_v31, %v2156_v30 }
 0x30e   : > { %v2132_v38 = vpack.c.b16 %v2131_v33, %v2130_v32 }
 0x30f   : > { %5038 = vmatmul.msk.bf16.vlgmr.msrb.gmra.mxu1 %vm1995_vm2, %v2158_v37 }
 0x310   : > { %5037 = vmatmul.msk.bf16.vlgmr.msra.gmra.mxu0 %vm1995_vm2, %v2132_v38 }
 0x313   : > { %2054 = vadd.xlane.f32.xlu2 %v2053_v39 }
 0x35d   : > { %v2046_v51 = vpop.xlane.xlu0 %2045 }
 0x35e   : > { %5616 = vrcp.f32 %v2046_v51  ;;  %v2191_v0 = vand.u32 2147483648, %v2046_v51  ;;  %vm2185_vm4 = vweird.f32 %v2046_v51  ;;  %v2189_v2 = vand.u32 2147483647, %v2046_v51 }
 0x360   : > { %v2192_v5 = vor.u32 1.1754944e-38, %v2191_v0  ;;  %vm2190_vm7 = vcmp.eq.f32.partialorder %v2189_v2, 8.507059e+37 }
 0x364   : > { %v5617_v4 = vpop.eup %5616 }
 0x365   : > { %v2049_v29 = vpop.xlane.xlu1 %2048  ;;  %v2181_v54 = vmul.f32 %v5617_v4, %v2046_v51  ;;  %vm2186_vm3 = vweird.f32 %v5617_v4 }
 0x366   : > { %5618 = vrcp.f32 %v2049_v29  ;;  %vm2187_vm5 = vmor %vm2185_vm4, %vm2186_vm3  ;;  %vm2199_vm8 = vweird.f32 %v2049_v29  ;;  %v2203_v12 = vand.u32 2147483647, %v2049_v29  ;;  %v2205_v14 = vand.u32 2147483648, %v2049_v29 }
 0x367   : > { %v2182_v36 = vsub.f32 1.0, %v2181_v54 }
 0x368   : > { %v2206_v60 = vor.u32 1.1754944e-38, %v2205_v14  ;;  %vm2204_vm10 = vcmp.eq.f32.partialorder %v2203_v12, 8.507059e+37 }
 0x369   : > { %v2183_v58 = vmul.f32 %v5617_v4, %v2182_v36 }
 0x36b   : > { %v2184_v56 = vadd.f32 %v5617_v4, %v2183_v58 }
 0x36c   : > { %v5619_v55 = vpop.eup %5618 }
 0x36d   : > { %v2195_v57 = vmul.f32 %v5619_v55, %v2049_v29  ;;  %v2188_v3 = vsel %vm2187_vm5, %v5617_v4, %v2184_v56  ;;  %vm2200_vm6 = vweird.f32 %v5619_v55 }
 0x36e   : > { %v2193_v9 = vsel %vm2190_vm7, %v2192_v5, %v2188_v3  ;;  %vm6865_vm9 = vmor %vm2199_vm8, %vm2200_vm6 }
 0x36f   : > { %v2196_v28 = vsub.f32 1.0, %v2195_v57 }
 0x371   : > { %v2197_v62 = vmul.f32 %v5619_v55, %v2196_v28 }
 0x373   : > { %v2198_v50 = vadd.f32 %v5619_v55, %v2197_v62 }
 0x375   : > { %v6851_v59 = vpop.xlane.xlu2 %2063  ;;  %v2202_v17 = vsel %vm6865_vm9, %v5619_v55, %v2198_v50 }
 0x376   : > { %5620 = vrcp.f32 %v6851_v59  ;;  %v6854_v23 = vpop.xlane.xlu1 %2057  ;;  %v2273_v53 = vand.u32 2147483647, %v6851_v59  ;;  %v2275_v52 = vand.u32 2147483648, %v6851_v59  ;;  %vm2269_vm11 = vweird.f32 %v6851_v59 }
 0x377   : > { %5622 = vrcp.f32 %v6854_v23  ;;  %v2245_v18 = vand.u32 2147483647, %v6854_v23  ;;  %v2247_v34 = vand.u32 2147483648, %v6854_v23  ;;  %v2207_v43 = vsel %vm2204_vm10, %v2206_v60, %v2202_v17 }
 0x378   : > { %vm2241_vm12 = vweird.f32 %v6854_v23  ;;  %vm6890_vm13 = vcmp.eq.f32.partialorder %v2273_v53, 8.507059e+37  ;;  %v2276_v30 = vor.u32 1.1754944e-38, %v2275_v52 }
 0x379   : > { %v2248_v24 = vor.u32 1.1754944e-38, %v2247_v34  ;;  %vm6898_vm14 = vcmp.eq.f32.partialorder %v2245_v18, 8.507059e+37 }
 0x37a   : > { %v2097_v8 = vpop.f32.mrf.mxu2 }
 0x37b   : > { %v6882_v20 = vmul.f32 %v2193_v9, %v2097_v8 }
 0x37c   : > { %v6857_v61 = vpop.eup %5620 }
 0x37d   : > { %v6859_v6 = vpop.eup %5622  ;;  %v2265_v7 = vmul.f32 %v6857_v61, %v6851_v59  ;;  %v6863_v10 = vpop.xlane.xlu0 %2066  ;;  %v2303_v26 = vrot.slane %v6882_v20, 4  ;;  %vm2270_vm15 = vweird.f32 %v6857_v61 }
 0x37e   : > { %v2237_v15 = vmul.f32 %v6859_v6, %v6854_v23  ;;  %5624 = vrcp.f32 %v6863_v10  ;;  %v6872_v44 = vpop.xlane.xlu2 %2060  ;;  %v6874_v16 = vpop.xlane.xlu1 %2051  ;;  %vm2242_vm3 = vweird.f32 %v6859_v6  ;;  %v2287_v49 = vand.u32 2147483647, %v6863_v10  ;;  %vm6928_vm6 = vmor %vm2269_vm11, %vm2270_vm15 }
 0x37f   : > { %v2266_v47 = vsub.f32 1.0, %v2265_v7  ;;  %5626 = vrcp.f32 %v6872_v44  ;;  %v2217_v35 = vand.u32 2147483647, %v6874_v16  ;;  %v2219_v33 = vand.u32 2147483648, %v6874_v16  ;;  %vm6939_vm8 = vmor %vm2241_vm12, %vm2242_vm3 }
 0x380   : > { %v2238_v19 = vsub.f32 1.0, %v2237_v15  ;;  %5628 = vrcp.f32 %v6874_v16  ;;  %vm2213_vm4 = vweird.f32 %v6874_v16  ;;  %v2261_v45 = vand.u32 2147483648, %v6872_v44 }
 0x381   : > { %v2267_v21 = vmul.f32 %v6857_v61, %v2266_v47  ;;  %vm6920_vm5 = vcmp.eq.f32.partialorder %v2217_v35, 8.507059e+37  ;;  %vm2255_vm7 = vweird.f32 %v6872_v44  ;;  %v2259_v55 = vand.u32 2147483647, %v6872_v44 }
 0x382   : > { %v2239_v22 = vmul.f32 %v6859_v6, %v2238_v19  ;;  %v2099_v29 = vpop.f32.mrf.mxu2  ;;  %v2289_v36 = vand.u32 2147483648, %v6863_v10  ;;  %v2220_v28 = vor.u32 1.1754944e-38, %v2219_v33  ;;  %v2262_v2 = vor.u32 1.1754944e-38, %v2261_v45  ;;  %v2123_v11 = vpop.f32.mrf.mxu3 }
 0x383   : > { %v2268_v37 = vadd.f32 %v6857_v61, %v2267_v21  ;;  %vm2283_vm9 = vweird.f32 %v6863_v10  ;;  %v6952_v23 = vmul.f32 %v2207_v43, %v2099_v29  ;;  %vm6954_vm11 = vcmp.eq.f32.partialorder %v2287_v49, 8.507059e+37 }
 0x384   : > { %v6894_v25 = vpop.eup %5624  ;;  %v2240_v42 = vadd.f32 %v6859_v6, %v2239_v22  ;;  %vm6961_vm12 = vcmp.eq.f32.partialorder %v2259_v55, 8.507059e+37  ;;  %v2290_v8 = vor.u32 1.1754944e-38, %v2289_v36 }
 0x385   : > { %v6903_v31 = vpop.eup %5626  ;;  %v2279_v32 = vmul.f32 %v6894_v25, %v6863_v10  ;;  %v2272_v59 = vsel %vm6928_vm6, %v6857_v61, %v2268_v37  ;;  %vm2284_vm15 = vweird.f32 %v6894_v25  ;;  %v2359_v19 = vrot.slane %v6952_v23, 4 }
 0x386   : > { %v5629_v38 = vpop.eup %5628  ;;  %v2251_v39 = vmul.f32 %v6903_v31, %v6872_v44  ;;  %v6913_v41 = vpop.xlane.xlu2 %2054  ;;  %v2244_v62 = vsel %vm6939_vm8, %v6859_v6, %v2240_v42  ;;  %v2277_v7 = vsel %vm6890_vm13, %v2276_v30, %v2272_v59  ;;  %vm2256_vm3 = vweird.f32 %v6903_v31 }
 0x387   : > { %v2280_v46 = vsub.f32 1.0, %v2279_v32  ;;  %v2209_v48 = vmul.f32 %v5629_v38, %v6874_v16  ;;  %5630 = vrcp.f32 %v6913_v41  ;;  %vm2214_vm10 = vweird.f32 %v5629_v38 }
 0x388   : > { %v2252_v51 = vsub.f32 1.0, %v2251_v39  ;;  %v2231_v5 = vand.u32 2147483647, %v6913_v41  ;;  %v2249_v15 = vsel %vm6898_vm14, %v2248_v24, %v2244_v62  ;;  %vm2215_vm13 = vmor %vm2213_vm4, %vm2214_vm10  ;;  %v2233_v60 = vand.u32 2147483648, %v6913_v41 }
 0x389   : > { %v2210_v57 = vsub.f32 1.0, %v2209_v48  ;;  %v2281_v56 = vmul.f32 %v6894_v25, %v2280_v46  ;;  %vm6986_vm14 = vmor %vm2283_vm9, %vm2284_vm15  ;;  %vm2227_vm4 = vweird.f32 %v6913_v41  ;;  %vm2547_vm9 = vcmask 523264  }
 0x38a   : > { %v2253_v0 = vmul.f32 %v6903_v31, %v2252_v51  ;;  %vm6991_vm6 = vcmp.eq.f32.partialorder %v2231_v5, 8.507059e+37  ;;  %v2234_v45 = vor.u32 1.1754944e-38, %v2233_v60  ;;  %vm2550_vm10 = vcmask 785408  }
 0x38b   : > { %v2211_v3 = vmul.f32 %v5629_v38, %v2210_v57  ;;  %v2282_v53 = vadd.f32 %v6894_v25, %v2281_v56  ;;  %v2125_v57 = vpop.f32.mrf.mxu3 }
 0x38c   : > { %v2175_v61 = vpop.f32.mrf.mxu1  ;;  %v2254_v34 = vadd.f32 %v6903_v31, %v2253_v0 }
 0x38d   : > { %v5631_v9 = vpop.eup %5630  ;;  %v2212_v12 = vadd.f32 %v5629_v38, %v2211_v3  ;;  %v2149_v14 = vpop.f32.mrf.mxu0  ;;  %v2298_v17 = vmul.f32 %v2277_v7, %v2175_v61  ;;  %v2286_v10 = vsel %vm6986_vm14, %v6894_v25, %v2282_v53 }
 0x38e   : > { %v2223_v47 = vmul.f32 %v5631_v9, %v6913_v41  ;;  %v2296_v18 = vmul.f32 %v2249_v15, %v2149_v14  ;;  %vm2228_vm8 = vweird.f32 %v5631_v9  ;;  %v2291_v48 = vsel %vm6954_vm11, %v2290_v8, %v2286_v10 }
 0x38f   : > { %v2216_v52 = vsel %vm2215_vm13, %v5629_v38, %v2212_v12  ;;  %v2313_v21 = vrot.slane %v2298_v17, 4 }
 0x390   : > { %v2221_v22 = vsel %vm6920_vm5, %v2220_v28, %v2216_v52  ;;  %v2224_v43 = vsub.f32 1.0, %v2223_v47  ;;  %v2300_v24 = vrot.slane %v2296_v18, 4  ;;  %v2304_v16 = vsel %vm1212_vm0, %v2296_v18, %v2303_v26  ;;  %vm6997_vm5 = vmor %vm2255_vm7, %vm2256_vm3 }
 0x391   : > { %v2294_v35 = vmul.f32 %v2221_v22, %v2123_v11  ;;  %v2258_v33 = vsel %vm6997_vm5, %v6903_v31, %v2254_v34  ;;  %v2312_v38 = vperm.slane %v2304_v16, %v6578_v63  ;;  %vm2229_vm7 = vmor %vm2227_vm4, %vm2228_vm8 }
 0x392   : > { %v2225_v26 = vmul.f32 %v5631_v9, %v2224_v43  ;;  %v2302_v32 = vsel %vm1212_vm0, %v2300_v24, %v6882_v20  ;;  %v2263_v51 = vsel %vm6961_vm12, %v2262_v2, %v2258_v33 }
 0x393   : > { %v2315_v37 = vrot.slane %v2294_v35, 4  ;;  %v2308_v44 = vperm.slane %v2302_v32, %v6578_v63  ;;  %v2314_v39 = vsel %vm1212_vm0, %v2313_v21, %v2294_v35  ;;  %v2339_v58 = vrot.slane %v2312_v38, 4 }
 0x394   : > { %v2226_v42 = vadd.f32 %v5631_v9, %v2225_v26  ;;  %v2320_v25 = vperm.slane %v2314_v39, %v6578_v63  ;;  %v2177_v46 = vpop.f32.mrf.mxu1 }
 0x395   : > { %v2327_v20 = vrot.slane %v2308_v44, 4  ;;  %v2316_v31 = vsel %vm1212_vm0, %v2298_v17, %v2315_v37  ;;  %v2151_v49 = vpop.f32.mrf.mxu0  ;;  %v2299_v29 = vmul.f32 %v2291_v48, %v2177_v46 }
 0x396   : > { %v2230_v4 = vsel %vm2229_vm7, %v5631_v9, %v2226_v42  ;;  %v2324_v54 = vperm.slane %v2316_v31, %v6578_v63  ;;  %v2325_v55 = vrot.slane %v2320_v25, 4  ;;  %v2297_v36 = vmul.f32 %v2263_v51, %v2151_v49 }
 0x397   : > { %v2235_v28 = vsel %vm6991_vm6, %v2234_v45, %v2230_v4  ;;  %v2328_v41 = vsel %vm1212_vm0, %v2320_v25, %v2327_v20  ;;  %v2369_v59 = vrot.slane %v2299_v29, 4 }
 0x398   : > { %v2295_v56 = vmul.f32 %v2235_v28, %v2125_v57  ;;  %v2326_v62 = vsel %vm1212_vm0, %v2325_v55, %v2308_v44  ;;  %v2336_v0 = vperm.slane %v2328_v41, %v6583_v13  ;;  %v2337_v2 = vrot.slane %v2324_v54, 4 }
 0x399   : > { %v2332_v3 = vperm.slane %v2326_v62, %v6583_v13  ;;  %v2340_v50 = vsel %vm1212_vm0, %v2324_v54, %v2339_v58  ;;  %v2357_v5 = vrot.slane %v2297_v36, 4  ;;  %v2360_v61 = vsel %vm1212_vm0, %v2297_v36, %v2359_v19 }
 0x39a   : > { %v2371_v7 = vrot.slane %v2295_v56, 4  ;;  %v2338_v6 = vsel %vm1212_vm0, %v2337_v2, %v2312_v38  ;;  %v2348_v8 = vperm.slane %v2340_v50, %v6583_v13  ;;  %v2351_v9 = vrot.slane %v2336_v0, 4 }
 0x39b   : > { %v2344_v11 = vperm.slane %v2338_v6, %v6583_v13  ;;  %v2349_v12 = vrot.slane %v2332_v3, 4  ;;  %v2358_v14 = vsel %vm1212_vm0, %v2357_v5, %v6952_v23  ;;  %v2368_v15 = vperm.slane %v2360_v61, %v6578_v63 }
 0x39c   : > { %v2352_v17 = vsel %vm1212_vm0, 0.0, %v2351_v9  ;;  %v2355_v53 = vrot.slane %v2348_v8, 4  ;;  %v2413_v47 = vsel %vm1212_vm0, %v2351_v9, %v2332_v3  ;;  %v2364_v18 = vperm.slane %v2358_v14, %v6578_v63 }
 0x39d   : > { %v2350_v34 = vsel %vm1212_vm0, 0.0, %v2349_v12  ;;  %v2353_v19 = vrot.slane %v2344_v11, 4  ;;  %v2418_v52 = vrot.slane %v2352_v17, 4  ;;  %v2395_v60 = vrot.slane %v2368_v15, 4 }
 0x39e   : > { %v2356_v21 = vsel %vm1212_vm0, 0.0, %v2355_v53  ;;  %v2424_v22 = vsel %vm1212_vm0, %v2355_v53, %v2344_v11  ;;  %v2383_v43 = vrot.slane %v2364_v18, 4  ;;  %v2370_v23 = vsel %vm1212_vm0, %v2369_v59, %v2295_v56 }
 0x39f   : > { %v2354_v24 = vsel %vm1212_vm0, 0.0, %v2353_v19  ;;  %v2429_v16 = vrot.slane %v2356_v21, 4  ;;  %v2372_v40 = vsel %vm1212_vm0, %v2299_v29, %v2371_v7  ;;  %v2376_v35 = vperm.slane %v2370_v23, %v6578_v63 }
 0x3a0   : > { %v2380_v27 = vperm.slane %v2372_v40, %v6578_v63  ;;  %v2417_v30 = vperm.slane %v2413_v47, %v6578_v63  ;;  %v2419_v10 = vsel %vm1212_vm0, %v2418_v52, %v2350_v34  ;;  %v2428_v26 = vperm.slane %v2424_v22, %v6578_v63 }
 0x3a1   : > { %v2381_v32 = vrot.slane %v2376_v35, 4  ;;  %v2384_v33 = vsel %vm1212_vm0, %v2376_v35, %v2383_v43  ;;  %v2423_v37 = vperm.slane %v2419_v10, %v6578_v63  ;;  %v2430_v44 = vsel %vm1212_vm0, %v2429_v16, %v2354_v24 }
 0x3a2   : > { %v2392_v38 = vperm.slane %v2384_v33, %v6583_v13  ;;  %v2393_v39 = vrot.slane %v2380_v27, 4  ;;  %v2396_v42 = vsel %vm1212_vm0, %v2380_v27, %v2395_v60  ;;  %v2434_v45 = vperm.slane %v2430_v44, %v6578_v63 }
 0x3a3   : > { %v2382_v25 = vsel %vm1212_vm0, %v2381_v32, %v2364_v18  ;;  %v2404_v46 = vperm.slane %v2396_v42, %v6583_v13  ;;  %v2437_v48 = vrot.slane %v2417_v30, 4  ;;  %v2449_v20 = vrot.slane %v2428_v26, 4 }
 0x3a4   : > { %v2388_v31 = vperm.slane %v2382_v25, %v6583_v13  ;;  %v2394_v49 = vsel %vm1212_vm0, %v2393_v39, %v2368_v15  ;;  %v2407_v51 = vrot.slane %v2392_v38, 4  ;;  %v2435_v58 = vrot.slane %v2423_v37, 4 }
 0x3a5   : > { %v2400_v29 = vperm.slane %v2394_v49, %v6583_v13  ;;  %v2411_v4 = vrot.slane %v2404_v46, 4  ;;  %v2438_v54 = vsel %vm1212_vm0, %v2423_v37, %v2437_v48  ;;  %v2450_v55 = vsel %vm1212_vm0, %v2434_v45, %v2449_v20  ;;  %v5326_v49 = vld [vmem:[#allocation15 + $0x38] sm:$0xff] }
 0x3a6   : > { %v2405_v36 = vrot.slane %v2388_v31, 4  ;;  %v2408_v57 = vsel %vm1212_vm0, 0.0, %v2407_v51  ;;  %v2467_v28 = vsel %vm1212_vm0, %v2407_v51, %v2388_v31  ;;  %v2446_v3 = vperm.slane %v2438_v54, %v6583_v13  ;;  %2603 = vmatpush.bf16.msra.mxu2 %v5326_v49  ;;  %v5325_v51 = vld [vmem:[#allocation15 + $0x30] sm:$0xff]  ;;  %v5322_v54 = vld [vmem:[#allocation15 + $0x18] sm:$0xff] }
 0x3a7   : > { %v2409_v41 = vrot.slane %v2400_v29, 4  ;;  %v2412_v59 = vsel %vm1212_vm0, 0.0, %v2411_v4  ;;  %v2472_v56 = vrot.slane %v2408_v57, 4  ;;  %v2478_v62 = vsel %vm1212_vm0, %v2411_v4, %v2400_v29  ;;  %v5324_v29 = vld [vmem:[#allocation15 + $0x28] sm:$0xff]  ;;  %v5323_v4 = vld [vmem:[#allocation15 + $0x20] sm:$0xff] }
 0x3a8   : > { %v2406_v0 = vsel %vm1212_vm0, 0.0, %v2405_v36  ;;  %v2483_v2 = vrot.slane %v2412_v59, 4  ;;  %v2458_v50 = vperm.slane %v2450_v55, %v6583_v13  ;;  %v2471_v61 = vperm.slane %v2467_v28, %v6578_v63  ;;  %v5321_v55 = vld [vmem:[#allocation15 + $0x10] sm:$0xff]  ;;  %v5320_v36 = vld [vmem:[#allocation15 + $0x8] sm:$0xff]  ;;  %v5319_v57 = vld [vmem:[#allocation15] sm:$0xff] }
 0x3a9   : > { %v2410_v5 = vsel %vm1212_vm0, 0.0, %v2409_v41  ;;  %v2473_v7 = vsel %vm1212_vm0, %v2472_v56, %v2406_v0  ;;  %v2482_v6 = vperm.slane %v2478_v62, %v6578_v63  ;;  %v2436_v15 = vsel %vm1212_vm0, %v2435_v58, %v2417_v30 }
 0x3aa   : > { %v2477_v8 = vperm.slane %v2473_v7, %v6578_v63  ;;  %v2484_v9 = vsel %vm1212_vm0, %v2483_v2, %v2410_v5  ;;  %v2491_v12 = vrot.slane %v2471_v61, 4  ;;  %v2465_v17 = vrot.slane %v2446_v3, 4  ;;  %2604 = vmatpush.bf16.msra.mxu2 %v5325_v51  ;;  %v5329_v51 = vld [vmem:[#allocation17 + $0x10] sm:$0xff] }
 0x3ab   : > { %v2488_v11 = vperm.slane %v2484_v9, %v6578_v63  ;;  %v2503_v14 = vrot.slane %v2482_v6, 4  ;;  %v2442_v53 = vperm.slane %v2436_v15, %v6583_v13  ;;  %v2447_v47 = vrot.slane %v2434_v45, 4  ;;  %v5679_v15 = vld [vmem:[%s6490_s14] sm:$0xff] }
 0x3ac   : > { %v2489_v18 = vrot.slane %v2477_v8, 4  ;;  %v2492_v34 = vsel %vm1212_vm0, %v2477_v8, %v2491_v12  ;;  %v2463_v52 = vrot.slane %v2458_v50, 4  ;;  %v2466_v32 = vsel %vm1212_vm0, %v2458_v50, %v2465_v17 }
 0x3ad   : > { %v2504_v19 = vsel %vm1212_vm0, %v2488_v11, %v2503_v14  ;;  %v2501_v60 = vrot.slane %v2488_v11, 4  ;;  %v2500_v21 = vperm.slane %v2492_v34, %v6583_v13  ;;  %v2448_v43 = vsel %vm1212_vm0, %v2447_v47, %v2428_v26 }
 0x3ae   : > { %v2512_v22 = vperm.slane %v2504_v19, %v6583_v13  ;;  %v2454_v23 = vperm.slane %v2448_v43, %v6583_v13  ;;  %v2461_v24 = vrot.slane %v2442_v53, 4  ;;  %v2490_v16 = vsel %vm1212_vm0, %v2489_v18, %v2471_v61  ;;  %2605 = vmatpush.bf16.msra.mxu2 %v5324_v29  ;;  %v5680_v18 = vld [vmem:[%s6490_s14 + $0x8] sm:$0xff]  ;;  %v2672_v19 = vld [vmem:[#allocation4] sm:$0xf]  ;;  %s4631_s14 = sshll.u32 %s4628_s6, 4  ;;  %s4632_s14 = int_to_ptr.hbm [resolvable:$true] %s4631_s14 }
 0x3af   : > { %v2502_v40 = vsel %vm1212_vm0, %v2501_v60, %v2482_v6  ;;  %v2519_v35 = vrot.slane %v2500_v21, 4  ;;  %v2496_v30 = vperm.slane %v2490_v16, %v6583_v13  ;;  %v2464_v33 = vsel %vm1212_vm0, %v2463_v52, %v2446_v3  ;;  %s6088_s21 = sshra.s32 %s4632_s14, 4  ;;  %s6089_s21 = int_to_ptr.hbm [resolvable:$true] %s6088_s21 }
 0x3b0   : > { %v2517_v27 = vrot.slane %v2512_v22, 4  ;;  %v2508_v10 = vperm.slane %v2502_v40, %v6583_v13  ;;  %v2459_v37 = vrot.slane %v2454_v23, 4  ;;  %v2462_v46 = vsel %vm1212_vm0, %v2454_v23, %v2461_v24  ;;  %s6090_s17 = scalar_lea.hbm %s6089_s21, 16  ;;  %p6095_p7 = scmp.lt.s32.totalorder %s6089_s21, %s7826_s18 }
 0x3b1   : > { %v2520_v26 = vsel %vm1212_vm0, %v2512_v22, %v2519_v35  ;;  %v2515_v39 = vrot.slane %v2496_v30, 4  ;;  %v2554_v11 = vperm.slane %v6827_v1, 3  ;;  %v6190_v52 = vmov 128.0   ;;  %p6091_p1 = scmp.ne.s32.totalorder %s6089_s21, %s6090_s17  ;;  %p6096_p9 = scmp.lt.s32.totalorder %s6094_s27, %s6090_s17 }
 0x3b2   : > { %v2518_v44 = vsel %vm1212_vm0, %v2517_v27, %v2500_v21  ;;  %v2513_v38 = vrot.slane %v2508_v10, 4  ;;  %v5580_v42 = vpack.i.bf16 %v2520_v26, %v2466_v32  ;;  %v2460_v25 = vsel %vm1212_vm0, %v2459_v37, %v2442_v53  ;;  %2606 = vmatpush.bf16.msra.mxu2 %v5323_v4  ;;  %v5334_v37 = vld [vmem:[#allocation17 + $0x38] sm:$0xff]  ;;  %v5333_v26 = vld [vmem:[#allocation17 + $0x30] sm:$0xff] }
 0x3b3   : > { %v5575_v45 = vpack.i.bf16 %v2518_v44, %v2464_v33  ;;  %v2516_v48 = vsel %vm1212_vm0, %v2508_v10, %v2515_v39  ;;  %5632 = vrcp.f32 %v6190_v52  ;;  %v7123_v33 = vld [vmem:[#allocation4 + $0x4] sm:$0xf]  ;;  %2758 = vmatpush.bf16.msra.mxu3 %v5334_v37  ;;  %v5332_v44 = vld [vmem:[#allocation17 + $0x28] sm:$0xff]  ;;  %p6092_p3 = pnand %p6091_p1, %p6421_p0  ;;  %p6097_p5 = por %p6096_p9, %p6095_p7 }
 0x3b4   : > { %v2514_v20 = vsel %vm1212_vm0, %v2513_v38, %v2496_v30  ;;  %5581 = vrot.lane.b32.xlu2 %v5580_v42, %s6187_s10  ;;  %v5570_v31 = vpack.i.bf16 %v2516_v48, %v2462_v46  ;;  %v5331_v39 = vld [vmem:[#allocation17 + $0x20] sm:$0xff]  ;;  %v5330_v46 = vld [vmem:[#allocation17 + $0x18] sm:$0xff]  ;;  %v3035_v48 = vshrl.u32 %v2672_v19, 16 }
 0x3b5   : > { %5576 = vrot.lane.b32.xlu1 %v5575_v45, %s6186_s9  ;;  %p6093_p13 = pneg %p6092_p3 }
 0x3b6   : > { %5571 = vrot.lane.b32.xlu0 %v5570_v31, %s6185_s22  ;;  %2607 = vmatpush.bf16.msra.mxu2 %v5322_v54 }
 0x3b7   : > { %2759 = vmatpush.bf16.msra.mxu3 %v5333_v26  ;;  %p6098_p8 = pnand %p6097_p5, %p6093_p13 }
 0x3b9   : > { %v5633_v60 = vpop.eup %5632 }
 0x3ba   : > { %2608 = vmatpush.bf16.msra.mxu2 %v5321_v55  ;;  %v2624_v21 = vmul.f32 128.0, %v5633_v60  ;;  %vm2628_vm11 = vweird.f32 %v5633_v60 }
 0x3bb   : > { %2760 = vmatpush.bf16.msra.mxu3 %v5332_v44 }
 0x3bc   : > { %v2625_v1 = vsub.f32 1.0, %v2624_v21 }
 0x3be   : > { %2609 = vmatpush.bf16.msra.mxu2 %v5320_v36  ;;  %v2626_v22 = vmul.f32 %v5633_v60, %v2625_v1 }
 0x3bf   : > { %2761 = vmatpush.bf16.msra.mxu3 %v5331_v39 }
 0x3c0   : > { %v2627_v43 = vadd.f32 %v5633_v60, %v2626_v22 }
 0x3c2   : > { %2610 = vmatpush.bf16.msra.mxu2 %v5319_v57  ;;  %v7110_v23 = vsel %vm2628_vm11, %v5633_v60, %v2627_v43 }
 0x3c3   : > { %2762 = vmatpush.bf16.msra.mxu3 %v5330_v46 }
 0x3c7   : > { %2763 = vmatpush.bf16.msra.mxu3 %v5329_v51 }
 0x40e   : > { %v5582_v58 = vpop.permute.xlu2 %5581 }
 0x40f   : > { %v5584_v2 = vunpack.i.h.bf16 %v5582_v58  ;;  %v5583_v3 = vunpack.i.l.bf16 %v5582_v58 }
 0x427   : > { %v5577_v28 = vpop.permute.xlu1 %5576 }
 0x428   : > { %v5572_v41 = vpop.permute.xlu0 %5571  ;;  %v5579_v62 = vunpack.i.h.bf16 %v5577_v28  ;;  %v5578_v0 = vunpack.i.l.bf16 %v5577_v28 }
 0x429   : > { %v5574_v59 = vunpack.i.h.bf16 %v5572_v41  ;;  %v5573_v56 = vunpack.i.l.bf16 %v5572_v41 }
 0x42b   : > { %v2546_v50 = vsel %vm1896_vm1, %v2514_v20, %v5574_v59  ;;  %v2545_v5 = vsel %vm1896_vm1, %v2460_v25, %v5573_v56  ;;  %v5328_v59 = vld [vmem:[#allocation17 + $0x8] sm:$0xff] }
 0x42c   : > { %v2549_v61 = vsel %vm2547_vm9, %v2546_v50, %v5579_v62  ;;  %v2548_v7 = vsel %vm2547_vm9, %v2545_v5, %v5578_v0  ;;  %2764 = vmatpush.bf16.msra.mxu3 %v5328_v59 }
 0x42d   : > { %v2551_v6 = vsel %vm2550_vm10, %v2548_v7, %v5583_v3  ;;  %v2552_v8 = vsel %vm2550_vm10, %v2549_v61, %v5584_v2 }
 0x42e   : > { %v2553_v9 = vpack.c.bf16 %v2552_v8, %v2551_v6 }
 0x430   : > { %2611 = vmatmul.bf16.vlgmr.msra.gmra.mxu2 %v2553_v9 }
 0x4b3   : > { %v2612_v12 = vpop.f32.mrf.mxu2 }
 0x4b4   : > { %v2613_v14 = vadd.f32 %v2612_v12, %v2554_v11  ;;  %v5327_v12 = vld [vmem:[#allocation17] sm:$0xff] }
 0x4b5   : > { %2765 = vmatpush.bf16.msra.mxu3 %v5327_v12 }
 0x4b6   : > { %v2617_v17 = vadd.f32 %v5679_v15, %v2613_v14 }
 0x4b8   : > { %2619 = vadd.xlane.f32.xlu0 %v2617_v17 }
 0x4bb   : > { %v2614_v53 = vpop.f32.mrf.mxu2 }
 0x4bc   : > { %v2615_v47 = vadd.f32 %v2614_v53, %v2554_v11 }
 0x4be   : > { %v2618_v34 = vadd.f32 %v5680_v18, %v2615_v47 }
 0x4c0   : > { %2621 = vadd.xlane.f32.xlu1 %v2618_v34 }
 0x4d9   : > { %3020 = vrot.lane.b32.xlu1 %v2672_v19, %s6187_s10 }
 0x4e1   : > { %3028 = vrot.lane.b32.xlu1 %v2672_v19, %s6185_s22 }
 0x52b   : > { %v2620_v24 = vpop.xlane.xlu0 %2619 }
 0x52c   : > { %v2630_v16 = vmul.f32 %v7110_v23, %v2620_v24 }
 0x52e   : > { %v7113_v40 = vsub.f32 %v2617_v17, %v2630_v16 }
 0x530   : > { %v2634_v35 = vmul.f32 %v7113_v40, %v7113_v40 }
 0x532   : > { %2636 = vadd.xlane.f32.xlu2 %v2634_v35  ;;  %v713_v35 = vld [vmem:[#allocation26 + $0x8] sm:$0xff] }
 0x533   : > { %v2622_v27 = vpop.xlane.xlu1 %2621  ;;  %v2666_v39 = vperm.slane %v713_v35, 1 }
 0x534   : > { %v2631_v30 = vmul.f32 %v7110_v23, %v2622_v27 }
 0x536   : > { %v7118_v10 = vsub.f32 %v2618_v34, %v2631_v30 }
 0x538   : > { %v2635_v32 = vmul.f32 %v7118_v10, %v7118_v10 }
 0x53a   : > { %2638 = vadd.xlane.f32.xlu0 %v2635_v32 }
 0x54a   : > { %3024 = vrot.lane.b32.xlu2 %v2672_v19, %s6186_s9 }
 0x54b   : > { %v3021_v38 = vpop.permute.xlu1 %3020 }
 0x54c   : > { %v3036_v42 = vshrl.u32 %v3021_v38, 16  ;;  %v3034_v31 = vpack.i.b16 %v3021_v38, %v2672_v19 }
 0x54e   : > { %3022 = vrot.lane.b32.xlu0 %v7123_v33, %s6187_s10  ;;  %v3037_v49 = vpack.i.b16 %v3036_v42, %v3035_v48  ;;  %v3060_v4 = vperm.slane %v3034_v31, %v6578_v63  ;;  %v3047_v31 = vshrl.u32 %v7123_v33, 16 }
 0x550   : > { %v3086_v54 = vperm.slane %v3037_v49, %v6578_v63  ;;  %v3068_v3 = vrot.slane %v3060_v4, 4 }
 0x552   : > { %3030 = vrot.lane.b32.xlu2 %v7123_v33, %s6185_s22  ;;  %v3094_v5 = vrot.slane %v3086_v54, 4 }
 0x553   : > { %v3029_v29 = vpop.permute.xlu1 %3028 }
 0x554   : > { %v3042_v57 = vshrl.u32 %v3029_v29, 16 }
 0x556   : > { %3026 = vrot.lane.b32.xlu0 %v7123_v33, %s6186_s9 }
 0x5a5   : > { %v2637_v45 = vpop.xlane.xlu2 %2636 }
 0x5a6   : > { %v2640_v25 = vmul.f32 %v2637_v45, %v7110_v23 }
 0x5a8   : > { %v2642_v20 = vadd.f32 1e-05, %v2640_v25 }
 0x5aa   : > { %5634 = vrsqrt.f32 %v2642_v20  ;;  %vm2650_vm15 = vweird.f32 %v2642_v20 }
 0x5ad   : > { %v3025_v55 = vpop.permute.xlu2 %3024  ;;  %v2639_v36 = vpop.xlane.xlu0 %2638 }
 0x5ae   : > { %v3040_v28 = vpack.i.b16 %v3029_v29, %v3025_v55  ;;  %v3041_v58 = vshrl.u32 %v3025_v55, 16  ;;  %v2641_v41 = vmul.f32 %v2639_v36, %v7110_v23  ;;  %v2669_v29 = vperm.slane %v713_v35, 2 }
 0x5b0   : > { %v5635_v56 = vpop.eup %5634  ;;  %v3043_v62 = vpack.i.b16 %v3042_v57, %v3041_v58  ;;  %v3065_v0 = vperm.slane %v3040_v28, %v6578_v63  ;;  %v2643_v2 = vadd.f32 1e-05, %v2641_v41 }
 0x5b1   : > { %v2645_v50 = vmul.f32 %v5635_v56, %v2642_v20  ;;  %vm2651_vm12 = vweird.f32 %v5635_v56 }
 0x5b2   : > { %v3066_v61 = vrot.slane %v3065_v0, 4  ;;  %v3091_v7 = vperm.slane %v3043_v62, %v6578_v63  ;;  %5636 = vrsqrt.f32 %v2643_v2  ;;  %v3069_v8 = vsel %vm1212_vm0, %v3065_v0, %v3068_v3  ;;  %vm2652_vm13 = vmor %vm2650_vm15, %vm2651_vm12 }
 0x5b3   : > { %v2646_v6 = vmul.f32 %v5635_v56, %v2645_v50  ;;  %v3077_v17 = vperm.slane %v3069_v8, %v6583_v13  ;;  %vm2660_vm14 = vweird.f32 %v2643_v2 }
 0x5b4   : > { %v3092_v9 = vrot.slane %v3091_v7, 4  ;;  %v3095_v11 = vsel %vm1212_vm0, %v3091_v7, %v3094_v5  ;;  %v3067_v15 = vsel %vm1212_vm0, %v3066_v61, %v3060_v4 }
 0x5b5   : > { %v2647_v14 = vmul.f32 0.5, %v2646_v6  ;;  %v3103_v53 = vperm.slane %v3095_v11, %v6583_v13  ;;  %v3073_v52 = vperm.slane %v3067_v15, %v6583_v13  ;;  %v3080_v60 = vrot.slane %v3077_v17, 4  ;;  %v3031_v36 = vpop.permute.xlu2 %3030 }
 0x5b6   : > { %v3093_v18 = vsel %vm1212_vm0, %v3092_v9, %v3086_v54  ;;  %v3054_v59 = vshrl.u32 %v3031_v36, 16 }
 0x5b7   : > { %v2648_v47 = vsub.f32 1.5, %v2647_v14  ;;  %v3099_v21 = vperm.slane %v3093_v18, %v6583_v13  ;;  %v3106_v1 = vrot.slane %v3103_v53, 4  ;;  %v3078_v16 = vrot.slane %v3073_v52, 4 }
 0x5b8   : > { %v5637_v34 = vpop.eup %5636  ;;  %v3081_v27 = vsel %vm1212_vm0, 0, %v3080_v60  ;;  %v3160_v8 = vsel %vm1212_vm0, %v3080_v60, %v3073_v52 }
 0x5b9   : > { %v2649_v19 = vmul.f32 %v5635_v56, %v2648_v47  ;;  %v2655_v22 = vmul.f32 %v5637_v34, %v2643_v2  ;;  %v3104_v30 = vrot.slane %v3099_v21, 4  ;;  %v3107_v32 = vsel %vm1212_vm0, 0, %v3106_v1 }
 0x5ba   : > { %vm2661_vm3 = vweird.f32 %v5637_v34  ;;  %v3165_v42 = vrot.slane %v3081_v27, 4  ;;  %v3184_v45 = vrot.slane %v3107_v32, 4  ;;  %v3079_v46 = vsel %vm1212_vm0, 0, %v3078_v16 }
 0x5bb   : > { %v2656_v43 = vmul.f32 %v5637_v34, %v2655_v22  ;;  %v2653_v24 = vsel %vm2652_vm13, %v5635_v56, %v2649_v19  ;;  %v3105_v48 = vsel %vm1212_vm0, 0, %v3104_v30  ;;  %vm2662_vm4 = vmor %vm2660_vm14, %vm2661_vm3  ;;  %v3164_v18 = vperm.slane %v3160_v8, %v6578_v63 }
 0x5bc   : > { %v2664_v26 = vmul.f32 %v2653_v24, %v7113_v40  ;;  %v3166_v4 = vsel %vm1212_vm0, %v3165_v42, %v3079_v46  ;;  %v3185_v54 = vsel %vm1212_vm0, %v3184_v45, %v3105_v48 }
 0x5bd   : > { %v2657_v37 = vmul.f32 0.5, %v2656_v43  ;;  %v3170_v41 = vperm.slane %v3166_v4, %v6578_v63 }
 0x5be   : > { %v2667_v40 = vmul.f32 %v2666_v39, %v2664_v26 }
 0x5bf   : > { %v2658_v44 = vsub.f32 1.5, %v2657_v37  ;;  %v3171_v9 = vrot.slane %v3170_v41, 4 }
 0x5c0   : > { %v3023_v38 = vpop.permute.xlu0 %3022  ;;  %v7157_v62 = vadd.f32 %v2669_v29, %v2667_v40 }
 0x5c1   : > { %v3048_v25 = vshrl.u32 %v3023_v38, 16  ;;  %v2659_v20 = vmul.f32 %v5637_v34, %v2658_v44  ;;  %v3046_v49 = vpack.i.b16 %v3023_v38, %v7123_v33  ;;  %v3189_v33 = vperm.slane %v3185_v54, %v6578_v63 }
 0x5c2   : > { %v3172_v24 = vsel %vm1212_vm0, %v3171_v9, %v3164_v18 }
 0x5c3   : > { %v2663_v51 = vsel %vm2662_vm4, %v5637_v34, %v2659_v20  ;;  %v3049_v57 = vpack.i.b16 %v3048_v25, %v3047_v31  ;;  %v3112_v28 = vperm.slane %v3046_v49, %v6578_v63  ;;  %v3190_v11 = vrot.slane %v3189_v33, 4 }
 0x5c4   : > { %v2665_v55 = vmul.f32 %v2663_v51, %v7118_v10  ;;  %v3179_v10 = vsel %vm1212_vm0, %v3106_v1, %v3099_v21  ;;  %v3176_v25 = vperm.slane %v3172_v24, %v6583_v13 }
 0x5c5   : > { %v3138_v0 = vperm.slane %v3049_v57, %v6578_v63  ;;  %v3120_v5 = vrot.slane %v3112_v28, 4  ;;  %v3183_v53 = vperm.slane %v3179_v10, %v6578_v63 }
 0x5c6   : > { %v2668_v58 = vmul.f32 %v2666_v39, %v2665_v55  ;;  %v3177_v4 = vrot.slane %v3176_v25, 4 }
 0x5c7   : > { %v3146_v12 = vrot.slane %v3138_v0, 4  ;;  %v3191_v22 = vsel %vm1212_vm0, %v3190_v11, %v3183_v53 }
 0x5c8   : > { %v3027_v56 = vpop.permute.xlu0 %3026  ;;  %v7161_v50 = vadd.f32 %v2669_v29, %v2668_v58  ;;  %v3195_v37 = vperm.slane %v3191_v22, %v6583_v13 }
 0x5c9   : > { %v3052_v2 = vpack.i.b16 %v3031_v36, %v3027_v56  ;;  %v3053_v3 = vshrl.u32 %v3027_v56, 16 }
 0x5ca   : > { %v2708_v6 = vpack.c.bf16 %v7161_v50, %v7157_v62  ;;  %v3196_v49 = vrot.slane %v3195_v37, 4  ;;  %v3240_v57 = vshrl.u32 %v3195_v37, 16  ;;  %v3238_v33 = vpack.i.b16 %v3195_v37, %v3176_v25 }
 0x5cb   : > { %v3055_v61 = vpack.i.b16 %v3054_v59, %v3053_v3  ;;  %v3117_v7 = vperm.slane %v3052_v2, %v6578_v63  ;;  %v3239_v59 = vshrl.u32 %v3176_v25, 16 }
 0x5cc   : > { %2766 = vmatmul.bf16.vlgmr.msra.gmra.mxu3 %v2708_v6  ;;  %v3197_v58 = vsel %vm1212_vm0, 0, %v3196_v49  ;;  %v7212_v49 = vld [vmem:[#allocation5] sm:$0xf] }
 0x5cd   : > { %v3118_v14 = vrot.slane %v3117_v7, 4  ;;  %v3121_v15 = vsel %vm1212_vm0, %v3117_v7, %v3120_v5  ;;  %v3143_v17 = vperm.slane %v3055_v61, %v6578_v63  ;;  %v3241_v3 = vpack.i.b16 %v3240_v57, %v3239_v59 }
 0x5ce   : > { %v3129_v47 = vperm.slane %v3121_v15, %v6583_v13  ;;  %v3246_v5 = vshrl.u32 %v3197_v58, 16 }
 0x5cf   : > { %v3119_v34 = vsel %vm1212_vm0, %v3118_v14, %v3112_v28  ;;  %v3144_v19 = vrot.slane %v3143_v17, 4  ;;  %v3147_v52 = vsel %vm1212_vm0, %v3143_v17, %v3146_v12  ;;  %v3505_v12 = vunpack.c.l.b16 %v3238_v33 }
 0x5d0   : > { %v3125_v60 = vperm.slane %v3119_v34, %v6583_v13  ;;  %v3132_v21 = vrot.slane %v3129_v47, 4  ;;  %v3155_v1 = vperm.slane %v3147_v52, %v6583_v13  ;;  %v3531_v52 = vunpack.c.l.b16 %v3241_v3 }
 0x5d1   : > { %v3145_v43 = vsel %vm1212_vm0, %v3144_v19, %v3138_v0  ;;  %v3178_v0 = vsel %vm1212_vm0, 0, %v3177_v4 }
 0x5d2   : > { %v3130_v16 = vrot.slane %v3125_v60, 4  ;;  %v3133_v35 = vsel %vm1212_vm0, 0, %v3132_v21  ;;  %v3151_v27 = vperm.slane %v3145_v43, %v6583_v13  ;;  %v3158_v30 = vrot.slane %v3155_v1, 4 }
 0x5d3   : > { %v3203_v32 = vrot.slane %v3133_v35, 4  ;;  %v3198_v39 = vsel %vm1212_vm0, %v3132_v21, %v3125_v60  ;;  %v3244_v9 = vpack.i.b16 %v3197_v58, %v3178_v0  ;;  %v3245_v11 = vshrl.u32 %v3178_v0, 16 }
 0x5d4   : > { %v3131_v26 = vsel %vm1212_vm0, 0, %v3130_v16  ;;  %v3156_v44 = vrot.slane %v3151_v27, 4  ;;  %v3159_v38 = vsel %vm1212_vm0, 0, %v3158_v30  ;;  %v3217_v20 = vsel %vm1212_vm0, %v3158_v30, %v3151_v27 }
 0x5d5   : > { %v3204_v42 = vsel %vm1212_vm0, %v3203_v32, %v3131_v26  ;;  %v3222_v45 = vrot.slane %v3159_v38, 4  ;;  %v3202_v51 = vperm.slane %v3198_v39, %v6578_v63  ;;  %v3221_v54 = vperm.slane %v3217_v20, %v6578_v63 }
 0x5d6   : > { %v3157_v46 = vsel %vm1212_vm0, 0, %v3156_v44  ;;  %v3208_v48 = vperm.slane %v3204_v42, %v6578_v63  ;;  %v3247_v47 = vpack.i.b16 %v3246_v5, %v3245_v11  ;;  %v3557_v21 = vunpack.c.l.b16 %v3244_v9  ;;  %v5681_v44 = vld [vmem:[#allocation26] sm:$0xff] }
 0x5d7   : > { %v3223_v31 = vsel %vm1212_vm0, %v3222_v45, %v3157_v46  ;;  %v2709_v38 = vperm.slane %v5681_v44, 4  ;;  %v3277_v11 = vshrl.u32 %v7212_v49, 16 }
 0x5d8   : > { %v3209_v40 = vrot.slane %v3208_v48, 4  ;;  %v3227_v29 = vperm.slane %v3223_v31, %v6578_v63  ;;  %v3583_v35 = vunpack.c.l.b16 %v3247_v47 }
 0x5da   : > { %v3210_v55 = vsel %vm1212_vm0, %v3209_v40, %v3202_v51  ;;  %v3228_v36 = vrot.slane %v3227_v29, 4  ;;  %v7219_v51 = vld [vmem:[#allocation5 + $0x4] sm:$0xf] }
 0x5db   : > { %v3214_v28 = vperm.slane %v3210_v55, %v6583_v13 }
 0x5dc   : > { %v3229_v41 = vsel %vm1212_vm0, %v3228_v36, %v3221_v54 }
 0x5dd   : > { %v3233_v56 = vperm.slane %v3229_v41, %v6583_v13  ;;  %v3215_v2 = vrot.slane %v3214_v28, 4  ;;  %v3251_v10 = vshrl.u32 %v3214_v28, 16 }
 0x5df   : > { %v3250_v61 = vpack.i.b16 %v3233_v56, %v3214_v28  ;;  %v3252_v7 = vshrl.u32 %v3233_v56, 16  ;;  %v3216_v6 = vsel %vm1212_vm0, 0, %v3215_v2  ;;  %v3234_v8 = vrot.slane %v3233_v56, 4 }
 0x5e0   : > { %v3257_v18 = vshrl.u32 %v3216_v6, 16 }
 0x5e1   : > { %v3506_v14 = vunpack.c.l.b16 %v3250_v61  ;;  %v3253_v15 = vpack.i.b16 %v3252_v7, %v3251_v10  ;;  %v3235_v17 = vsel %vm1212_vm0, 0, %v3234_v8 }
 0x5e2   : > { %v3256_v53 = vpack.i.b16 %v3235_v17, %v3216_v6  ;;  %v3258_v34 = vshrl.u32 %v3235_v17, 16 }
 0x5e3   : > { %v3507_v19 = vpack.c.b16 %v3506_v14, %v3505_v12  ;;  %v3532_v60 = vunpack.c.l.b16 %v3253_v15  ;;  %v3289_v12 = vshrl.u32 %v7219_v51, 16 }
 0x5e4   : > { %v3558_v1 = vunpack.c.l.b16 %v3256_v53  ;;  %v3259_v22 = vpack.i.b16 %v3258_v34, %v3257_v18 }
 0x5e5   : > { %v3512_v43 = vsel %vm1896_vm1, %v3507_v19, 0  ;;  %v3533_v24 = vpack.c.b16 %v3532_v60, %v3531_v52 }
 0x5e6   : > { %3521 = vmatpush.bf16.xpose.msrb.mxu0 %v3512_v43  ;;  %v3559_v16 = vpack.c.b16 %v3558_v1, %v3557_v21  ;;  %v3584_v27 = vunpack.c.l.b16 %v3259_v22 }
 0x5e7   : > { %v3538_v30 = vsel %vm1896_vm1, %v3533_v24, 0 }
 0x5e8   : > { %3547 = vmatpush.bf16.xpose.msra.mxu1 %v3538_v30  ;;  %v3564_v32 = vsel %vm1896_vm1, %v3559_v16, 0  ;;  %v3585_v37 = vpack.c.b16 %v3584_v27, %v3583_v35 }
 0x5ea   : > { %v3590_v26 = vsel %vm1896_vm1, %v3585_v37, 0 }
 0x5ee   : > { %3573 = vmatpush.bf16.xpose.msra.mxu0 %v3564_v32 }
 0x5f0   : > { %3599 = vmatpush.bf16.xpose.msrb.mxu1 %v3590_v26 }
 0x64f   : > { %v2767_v39 = vpop.f32.mrf.mxu3 }
 0x650   : > { %v2768_v42 = vadd.f32 %v2767_v39, %v2709_v38 }
 0x652   : > { %v2772_v45 = vmul.f32 0.17677669, %v2768_v42 }
 0x654   : > { %v2774_v25 = vpack.c.bf16 %v2772_v45, %v2772_v45 }
 0x656   : > { %2782 = vrot.lane.b32.xlu2 %v2774_v25, %s6186_s9  ;;  %2778 = vrot.lane.b32.xlu0 %v2774_v25, %s6187_s10  ;;  %v2793_v57 = vshrl.u32 %v2774_v25, 16 }
 0x657   : > { %v2769_v46 = vpop.f32.mrf.mxu3 }
 0x658   : > { %v2770_v48 = vadd.f32 %v2769_v46, %v2709_v38 }
 0x65a   : > { %v2773_v20 = vmul.f32 0.17677669, %v2770_v48 }
 0x65c   : > { %v2775_v31 = vpack.c.bf16 %v2773_v20, %v2773_v20 }
 0x65e   : > { %2780 = vrot.lane.b32.xlu1 %v2775_v31, %s6187_s10  ;;  %2788 = vrot.lane.b32.xlu2 %v2775_v31, %s6185_s22  ;;  %v2805_v58 = vshrl.u32 %v2775_v31, 16 }
 0x65f   : > { %2784 = vrot.lane.b32.xlu0 %v2775_v31, %s6186_s9 }
 0x666   : > { %2786 = vrot.lane.b32.xlu1 %v2774_v25, %s6185_s22  ;;  %3266 = vrot.lane.b32.xlu2 %v7212_v49, %s6186_s9 }
 0x667   : > { %3262 = vrot.lane.b32.xlu0 %v7212_v49, %s6187_s10 }
 0x66e   : > { %3264 = vrot.lane.b32.xlu1 %v7219_v51, %s6187_s10  ;;  %3272 = vrot.lane.b32.xlu2 %v7219_v51, %s6185_s22 }
 0x66f   : > { %3268 = vrot.lane.b32.xlu0 %v7219_v51, %s6186_s9 }
 0x676   : > { %3270 = vrot.lane.b32.xlu1 %v7212_v49, %s6185_s22 }
 0x6b0   : > { %v2783_v40 = vpop.permute.xlu2 %2782 }
 0x6b1   : > { %v2799_v14 = vshrl.u32 %v2783_v40, 16 }
 0x6b8   : > { %v2789_v29 = vpop.permute.xlu2 %2788 }
 0x6b9   : > { %v2812_v56 = vshrl.u32 %v2789_v29, 16 }
 0x6c0   : > { %v7229_v54 = vpop.permute.xlu2 %3266 }
 0x6c1   : > { %v3283_v47 = vshrl.u32 %v7229_v54, 16 }
 0x6c8   : > { %v2779_v4 = vpop.permute.xlu0 %2778  ;;  %v7233_v6 = vpop.permute.xlu2 %3272 }
 0x6c9   : > { %v2794_v55 = vshrl.u32 %v2779_v4, 16  ;;  %v2792_v33 = vpack.i.b16 %v2779_v4, %v2774_v25  ;;  %v3296_v52 = vshrl.u32 %v7233_v6, 16 }
 0x6cb   : > { %v2795_v3 = vpack.i.b16 %v2794_v55, %v2793_v57  ;;  %v2818_v15 = vperm.slane %v2792_v33, %v6578_v63 }
 0x6cd   : > { %v2844_v18 = vperm.slane %v2795_v3, %v6578_v63  ;;  %v2826_v30 = vrot.slane %v2818_v15, 4 }
 0x6cf   : > { %v2852_v44 = vrot.slane %v2844_v18, 4 }
 0x6d0   : > { %v2781_v36 = vpop.permute.xlu1 %2780 }
 0x6d1   : > { %v2804_v28 = vpack.i.b16 %v2781_v36, %v2775_v31  ;;  %v2806_v41 = vshrl.u32 %v2781_v36, 16  ;;  %v2785_v59 = vpop.permute.xlu0 %2784 }
 0x6d2   : > { %v2810_v0 = vpack.i.b16 %v2789_v29, %v2785_v59  ;;  %v2811_v2 = vshrl.u32 %v2785_v59, 16 }
 0x6d3   : > { %v2807_v10 = vpack.i.b16 %v2806_v41, %v2805_v58  ;;  %v2870_v5 = vperm.slane %v2804_v28, %v6578_v63 }
 0x6d4   : > { %v2813_v61 = vpack.i.b16 %v2812_v56, %v2811_v2  ;;  %v2875_v7 = vperm.slane %v2810_v0, %v6578_v63 }
 0x6d5   : > { %v2878_v8 = vrot.slane %v2870_v5, 4  ;;  %v2896_v9 = vperm.slane %v2807_v10, %v6578_v63 }
 0x6d6   : > { %v2876_v17 = vrot.slane %v2875_v7, 4  ;;  %v2901_v53 = vperm.slane %v2813_v61, %v6578_v63 }
 0x6d7   : > { %v2904_v34 = vrot.slane %v2896_v9, 4  ;;  %v2879_v19 = vsel %vm1212_vm0, %v2875_v7, %v2878_v8 }
 0x6d8   : > { %v2877_v60 = vsel %vm1212_vm0, %v2876_v17, %v2870_v5  ;;  %v2887_v21 = vperm.slane %v2879_v19, %v6583_v13  ;;  %v2902_v1 = vrot.slane %v2901_v53, 4  ;;  %v2787_v22 = vpop.permute.xlu1 %2786 }
 0x6d9   : > { %v2883_v43 = vperm.slane %v2877_v60, %v6583_v13  ;;  %v2905_v24 = vsel %vm1212_vm0, %v2901_v53, %v2904_v34  ;;  %v2798_v16 = vpack.i.b16 %v2787_v22, %v2783_v40  ;;  %v2800_v35 = vshrl.u32 %v2787_v22, 16  ;;  %v3263_v27 = vpop.permute.xlu0 %3262 }
 0x6da   : > { %v2890_v32 = vrot.slane %v2887_v21, 4  ;;  %v2903_v37 = vsel %vm1212_vm0, %v2902_v1, %v2896_v9  ;;  %v2913_v26 = vperm.slane %v2905_v24, %v6583_v13  ;;  %v3276_v48 = vpack.i.b16 %v3263_v27, %v7212_v49 }
 0x6db   : > { %v2888_v38 = vrot.slane %v2883_v43, 4  ;;  %v2909_v39 = vperm.slane %v2903_v37, %v6583_v13  ;;  %v2823_v42 = vperm.slane %v2798_v16, %v6578_v63  ;;  %v2801_v46 = vpack.i.b16 %v2800_v35, %v2799_v14 }
 0x6dc   : > { %v2891_v45 = vsel %vm1212_vm0, 0, %v2890_v32  ;;  %v2916_v25 = vrot.slane %v2913_v26, 4  ;;  %v2956_v31 = vsel %vm1212_vm0, %v2890_v32, %v2883_v43  ;;  %v3278_v29 = vshrl.u32 %v3263_v27, 16 }
 0x6dd   : > { %v2914_v20 = vrot.slane %v2909_v39, 4  ;;  %v2961_v40 = vrot.slane %v2891_v45, 4  ;;  %v2889_v4 = vsel %vm1212_vm0, 0, %v2888_v38  ;;  %v2824_v36 = vrot.slane %v2823_v42, 4 }
 0x6de   : > { %v2917_v55 = vsel %vm1212_vm0, 0, %v2916_v25  ;;  %v2827_v57 = vsel %vm1212_vm0, %v2823_v42, %v2826_v30  ;;  %v7261_v41 = vsel %vm1212_vm0, %v2916_v25, %v2909_v39  ;;  %v2849_v0 = vperm.slane %v2801_v46, %v6578_v63 }
 0x6df   : > { %v2915_v28 = vsel %vm1212_vm0, 0, %v2914_v20  ;;  %v2962_v58 = vsel %vm1212_vm0, %v2961_v40, %v2889_v4  ;;  %v2980_v49 = vrot.slane %v2917_v55, 4  ;;  %v2825_v56 = vsel %vm1212_vm0, %v2824_v36, %v2818_v15 }
 0x6e0   : > { %v2966_v59 = vperm.slane %v2962_v58, %v6578_v63  ;;  %v2835_v33 = vperm.slane %v2827_v57, %v6583_v13  ;;  %v3265_v2 = vpop.permute.xlu1 %3264  ;;  %v2831_v10 = vperm.slane %v2825_v56, %v6583_v13  ;;  %v3279_v5 = vpack.i.b16 %v3278_v29, %v3277_v11 }
 0x6e1   : > { %v2981_v3 = vsel %vm1212_vm0, %v2980_v49, %v2915_v28  ;;  %v7270_v61 = vperm.slane %v3276_v48, %v6578_v63  ;;  %v2850_v14 = vrot.slane %v2849_v0, 4  ;;  %v2960_v15 = vperm.slane %v2956_v31, %v6578_v63  ;;  %v3269_v1 = vpop.permute.xlu0 %3268 }
 0x6e2   : > { %v2967_v7 = vrot.slane %v2966_v59, 4  ;;  %v2985_v8 = vperm.slane %v2981_v3, %v6578_v63  ;;  %v2838_v9 = vrot.slane %v2835_v33, 4  ;;  %v2979_v17 = vperm.slane %v7261_v41, %v6578_v63 }
 0x6e3   : > { %v2836_v53 = vrot.slane %v2831_v10, 4  ;;  %v2853_v34 = vsel %vm1212_vm0, %v2849_v0, %v2852_v44  ;;  %v2851_v11 = vsel %vm1212_vm0, %v2850_v14, %v2844_v18  ;;  %v3310_v60 = vrot.slane %v7270_v61, 4 }
 0x6e4   : > { %v2839_v19 = vsel %vm1212_vm0, 0, %v2838_v9  ;;  %v7281_v21 = vperm.slane %v3279_v5, %v6578_v63  ;;  %v2857_v43 = vperm.slane %v2851_v11, %v6583_v13  ;;  %v2861_v24 = vperm.slane %v2853_v34, %v6583_v13 }
 0x6e5   : > { %v2837_v22 = vsel %vm1212_vm0, 0, %v2836_v53  ;;  %v2918_v16 = vsel %vm1212_vm0, %v2838_v9, %v2831_v10  ;;  %v2968_v35 = vsel %vm1212_vm0, %v2967_v7, %v2960_v15  ;;  %v2986_v27 = vrot.slane %v2985_v8, 4 }
 0x6e6   : > { %v2923_v30 = vrot.slane %v2839_v19, 4  ;;  %v3288_v18 = vpack.i.b16 %v3265_v2, %v7219_v51  ;;  %v2862_v32 = vrot.slane %v2857_v43, 4  ;;  %v2864_v37 = vrot.slane %v2861_v24, 4 }
 0x6e7   : > { %v3290_v26 = vshrl.u32 %v3265_v2, 16  ;;  %v3294_v44 = vpack.i.b16 %v7233_v6, %v3269_v1  ;;  %v2922_v38 = vperm.slane %v2918_v16, %v6578_v63  ;;  %v3295_v45 = vshrl.u32 %v3269_v1, 16 }
 0x6e8   : > { %v2924_v39 = vsel %vm1212_vm0, %v2923_v30, %v2837_v22  ;;  %v3354_v42 = vperm.slane %v3288_v18, %v6578_v63  ;;  %v3271_v25 = vpop.permute.xlu1 %3270  ;;  %v2863_v46 = vsel %vm1212_vm0, 0, %v2862_v32  ;;  %v2865_v48 = vsel %vm1212_vm0, 0, %v2864_v37 }
 0x6e9   : > { %v2928_v20 = vperm.slane %v2924_v39, %v6578_v63  ;;  %v3336_v31 = vrot.slane %v7281_v21, 4  ;;  %v7298_v40 = vsel %vm1212_vm0, %v2864_v37, %v2857_v43  ;;  %v2942_v29 = vrot.slane %v2865_v48, 4 }
 0x6ea   : > { %v3291_v4 = vpack.i.b16 %v3290_v26, %v3289_v12  ;;  %v3362_v55 = vrot.slane %v3354_v42, 4  ;;  %v3297_v57 = vpack.i.b16 %v3296_v52, %v3295_v45  ;;  %v3359_v28 = vperm.slane %v3294_v44, %v6578_v63 }
 0x6eb   : > { %v2929_v36 = vrot.slane %v2928_v20, 4  ;;  %v3282_v58 = vpack.i.b16 %v3271_v25, %v7229_v54  ;;  %v2943_v41 = vsel %vm1212_vm0, %v2942_v29, %v2863_v46  ;;  %v3284_v59 = vshrl.u32 %v3271_v25, 16 }
 0x6ec   : > { %v3380_v49 = vperm.slane %v3291_v4, %v6578_v63  ;;  %v7309_v56 = vperm.slane %v2968_v35, %v6583_v13  ;;  %v2941_v51 = vperm.slane %v7298_v40, %v6578_v63  ;;  %v2947_v12 = vperm.slane %v2943_v41, %v6578_v63 }
 0x6ed   : > { %v3360_v33 = vrot.slane %v3359_v28, 4  ;;  %v3363_v6 = vsel %vm1212_vm0, %v3359_v28, %v3362_v55  ;;  %v3385_v2 = vperm.slane %v3297_v57, %v6578_v63  ;;  %v3285_v3 = vpack.i.b16 %v3284_v59, %v3283_v47 }
 0x6ee   : > { %v3388_v52 = vrot.slane %v3380_v49, 4  ;;  %v3371_v0 = vperm.slane %v3363_v6, %v6583_v13  ;;  %v2930_v10 = vsel %vm1212_vm0, %v2929_v36, %v2922_v38  ;;  %v3307_v7 = vperm.slane %v3282_v58, %v6578_v63 }
 0x6ef   : > { %v3361_v5 = vsel %vm1212_vm0, %v3360_v33, %v3354_v42  ;;  %v2987_v8 = vsel %vm1212_vm0, %v2986_v27, %v2979_v17  ;;  %v3386_v15 = vrot.slane %v3385_v2, 4  ;;  %v3333_v47 = vperm.slane %v3285_v3, %v6578_v63 }
 0x6f0   : > { %v3367_v9 = vperm.slane %v3361_v5, %v6583_v13  ;;  %v3374_v14 = vrot.slane %v3371_v0, 4  ;;  %v3389_v53 = vsel %vm1212_vm0, %v3385_v2, %v3388_v52  ;;  %v3308_v19 = vrot.slane %v3307_v7, 4 }
 0x6f1   : > { %v3397_v34 = vperm.slane %v3389_v53, %v6583_v13  ;;  %v3311_v54 = vsel %vm1212_vm0, %v3307_v7, %v3310_v60  ;;  %v2948_v11 = vrot.slane %v2947_v12, 4  ;;  %v3387_v43 = vsel %vm1212_vm0, %v3386_v15, %v3380_v49 }
 0x6f2   : > { %v3372_v1 = vrot.slane %v3367_v9, 4  ;;  %v3375_v22 = vsel %vm1212_vm0, 0, %v3374_v14  ;;  %v3393_v17 = vperm.slane %v3387_v43, %v6583_v13  ;;  %v7332_v16 = vsel %vm1212_vm0, %v3374_v14, %v3367_v9 }
 0x6f3   : > { %v3400_v24 = vrot.slane %v3397_v34, 4  ;;  %v3445_v35 = vrot.slane %v3375_v22, 4  ;;  %v3309_v60 = vsel %vm1212_vm0, %v3308_v19, %v7270_v61  ;;  %v3319_v30 = vperm.slane %v3311_v54, %v6583_v13 }
 0x6f4   : > { %v3373_v27 = vsel %vm1212_vm0, 0, %v3372_v1  ;;  %v3334_v18 = vrot.slane %v3333_v47, 4  ;;  %v3398_v32 = vrot.slane %v3393_v17, 4  ;;  %v2934_v44 = vperm.slane %v2930_v10, %v6583_v13 }
 0x6f5   : > { %v3401_v37 = vsel %vm1212_vm0, 0, %v3400_v24  ;;  %v3446_v26 = vsel %vm1212_vm0, %v3445_v35, %v3373_v27  ;;  %v3444_v38 = vperm.slane %v7332_v16, %v6578_v63  ;;  %v3315_v45 = vperm.slane %v3309_v60, %v6583_v13 }
 0x6f6   : > { %v3450_v39 = vperm.slane %v3446_v26, %v6578_v63  ;;  %v3464_v42 = vrot.slane %v3401_v37, 4  ;;  %v3399_v61 = vsel %vm1212_vm0, 0, %v3398_v32  ;;  %v3322_v25 = vrot.slane %v3319_v30, 4 }
 0x6f7   : > { %v3335_v46 = vsel %vm1212_vm0, %v3334_v18, %v7281_v21  ;;  %v3337_v48 = vsel %vm1212_vm0, %v3333_v47, %v3336_v31  ;;  %v7350_v20 = vsel %vm1212_vm0, %v3400_v24, %v3393_v17  ;;  %v3320_v29 = vrot.slane %v3315_v45, 4 }
 0x6f8   : > { %v3465_v40 = vsel %vm1212_vm0, %v3464_v42, %v3399_v61  ;;  %v3341_v4 = vperm.slane %v3335_v46, %v6583_v13  ;;  %v3451_v55 = vrot.slane %v3450_v39, 4  ;;  %v3323_v36 = vsel %vm1212_vm0, 0, %v3322_v25 }
 0x6f9   : > { %v3345_v57 = vperm.slane %v3337_v48, %v6583_v13  ;;  %v3402_v28 = vsel %vm1212_vm0, %v3322_v25, %v3315_v45  ;;  %v3469_v58 = vperm.slane %v3465_v40, %v6578_v63  ;;  %v3321_v21 = vsel %vm1212_vm0, 0, %v3320_v29 }
 0x6fa   : > { %v3346_v31 = vrot.slane %v3341_v4, 4  ;;  %v3407_v41 = vrot.slane %v3323_v36, 4  ;;  %v3406_v59 = vperm.slane %v3402_v28, %v6578_v63  ;;  %v2949_v12 = vsel %vm1212_vm0, %v2948_v11, %v2941_v51 }
 0x6fb   : > { %v3348_v49 = vrot.slane %v3345_v57, 4  ;;  %v2991_v33 = vperm.slane %v2987_v8, %v6583_v13  ;;  %v2953_v0 = vperm.slane %v2949_v12, %v6583_v13  ;;  %v2997_v2 = vshrl.u32 %v2934_v44, 16 }
 0x6fc   : > { %v3347_v6 = vsel %vm1212_vm0, 0, %v3346_v31  ;;  %v3408_v52 = vsel %vm1212_vm0, %v3407_v41, %v3321_v21  ;;  %v3009_v7 = vshrl.u32 %v7309_v56, 16  ;;  %v2935_v19 = vrot.slane %v2934_v44, 4 }
 0x6fd   : > { %v3349_v3 = vsel %vm1212_vm0, 0, %v3348_v49  ;;  %v3412_v10 = vperm.slane %v3408_v52, %v6578_v63  ;;  %v3008_v5 = vpack.i.b16 %v2991_v33, %v7309_v56  ;;  %v3421_v9 = vsel %vm1212_vm0, %v3348_v49, %v3341_v4 }
 0x6fe   : > { %v3426_v51 = vrot.slane %v3349_v3, 4  ;;  %v2996_v14 = vpack.i.b16 %v2953_v0, %v2934_v44  ;;  %v2998_v8 = vshrl.u32 %v2953_v0, 16  ;;  %v3010_v34 = vshrl.u32 %v2991_v33, 16 }
 0x6ff   : > { %v3413_v15 = vrot.slane %v3412_v10, 4  ;;  %v3503_v53 = vunpack.c.l.b16 %v3008_v5  ;;  %v2954_v1 = vrot.slane %v2953_v0, 4  ;;  %v3425_v22 = vperm.slane %v3421_v9, %v6578_v63 }
 0x700   : > { %v3427_v54 = vsel %vm1212_vm0, %v3426_v51, %v3347_v6  ;;  %v3502_v47 = vunpack.c.l.b16 %v2996_v14  ;;  %v2999_v11 = vpack.i.b16 %v2998_v8, %v2997_v2  ;;  %v3011_v17 = vpack.i.b16 %v3010_v34, %v3009_v7 }
 0x701   : > { %v3431_v43 = vperm.slane %v3427_v54, %v6578_v63  ;;  %v2973_v24 = vrot.slane %v7309_v56, 4  ;;  %v2955_v27 = vsel %vm1212_vm0, 0, %v2954_v1  ;;  %v2992_v60 = vrot.slane %v2991_v33, 4 }
 0x702   : > { %v3504_v16 = vpack.c.b16 %v3503_v53, %v3502_v47  ;;  %v3528_v35 = vunpack.c.l.b16 %v2999_v11  ;;  %v3529_v30 = vunpack.c.l.b16 %v3011_v17  ;;  %v2936_v18 = vsel %vm1212_vm0, 0, %v2935_v19 }
 0x703   : > { %v2974_v32 = vsel %vm1212_vm0, 0, %v2973_v24  ;;  %v3414_v37 = vsel %vm1212_vm0, %v3413_v15, %v3406_v59  ;;  %v2993_v26 = vsel %vm1212_vm0, 0, %v2992_v60  ;;  %v3002_v44 = vpack.i.b16 %v2955_v27, %v2936_v18 }
 0x704   : > { %5103 = vmatmul.msk.bf16.vlgmr.msrb.gmra.mxu0 %vm1896_vm1, %v3504_v16  ;;  %v3432_v39 = vrot.slane %v3431_v43, 4  ;;  %v3452_v56 = vsel %vm1212_vm0, %v3451_v55, %v3444_v38  ;;  %v3463_v42 = vperm.slane %v7350_v20, %v6578_v63  ;;  %v3530_v45 = vpack.c.b16 %v3529_v30, %v3528_v35 }
 0x705   : > { %v3014_v61 = vpack.i.b16 %v2993_v26, %v2974_v32  ;;  %v3418_v25 = vperm.slane %v3414_v37, %v6583_v13  ;;  %v3470_v48 = vrot.slane %v3469_v58, 4  ;;  %v3004_v40 = vshrl.u32 %v2955_v27, 16 }
 0x706   : > { %v3433_v46 = vsel %vm1212_vm0, %v3432_v39, %v3425_v22  ;;  %5104 = vmatmul.msk.bf16.vlgmr.msra.gmra.mxu1 %vm1896_vm1, %v3530_v45  ;;  %v3456_v4 = vperm.slane %v3452_v56, %v6583_v13  ;;  %v3003_v36 = vshrl.u32 %v2936_v18, 16  ;;  %v3554_v57 = vunpack.c.l.b16 %v3002_v44 }
 0x707   : > { %v3437_v29 = vperm.slane %v3433_v46, %v6583_v13  ;;  %v3555_v38 = vunpack.c.l.b16 %v3014_v61  ;;  %v3471_v55 = vsel %vm1212_vm0, %v3470_v48, %v3463_v42  ;;  %v3015_v20 = vshrl.u32 %v2974_v32, 16 }
 0x708   : > { %v3475_v28 = vperm.slane %v3471_v55, %v6583_v13  ;;  %v3005_v31 = vpack.i.b16 %v3004_v40, %v3003_v36  ;;  %v3016_v41 = vshrl.u32 %v2993_v26, 16  ;;  %v3481_v49 = vshrl.u32 %v3418_v25, 16 }
 0x709   : > { %v3480_v21 = vpack.i.b16 %v3437_v29, %v3418_v25  ;;  %v3482_v58 = vshrl.u32 %v3437_v29, 16  ;;  %v3419_v59 = vrot.slane %v3418_v25, 4  ;;  %v3438_v12 = vrot.slane %v3437_v29, 4 }
 0x70a   : > { %v3492_v33 = vpack.i.b16 %v3475_v28, %v3456_v4  ;;  %v3493_v52 = vshrl.u32 %v3456_v4, 16  ;;  %v3494_v0 = vshrl.u32 %v3475_v28, 16  ;;  %v3457_v5 = vrot.slane %v3456_v4, 4 }
 0x70b   : > { %v3691_v6 = vunpack.c.l.b16 %v3480_v21  ;;  %v3483_v2 = vpack.i.b16 %v3482_v58, %v3481_v49  ;;  %v3420_v3 = vsel %vm1212_vm0, 0, %v3419_v59  ;;  %v3439_v10 = vsel %vm1212_vm0, 0, %v3438_v12 }
 0x70c   : > { %v3692_v7 = vunpack.c.l.b16 %v3492_v33  ;;  %v3017_v9 = vpack.i.b16 %v3016_v41, %v3015_v20  ;;  %v3495_v51 = vpack.i.b16 %v3494_v0, %v3493_v52  ;;  %v3476_v14 = vrot.slane %v3475_v28, 4 }
 0x70d   : > { %v3717_v8 = vunpack.c.l.b16 %v3483_v2  ;;  %v3458_v15 = vsel %vm1212_vm0, 0, %v3457_v5  ;;  %v3486_v53 = vpack.i.b16 %v3439_v10, %v3420_v3  ;;  %v3487_v34 = vshrl.u32 %v3420_v3, 16 }
 0x70e   : > { %v3693_v19 = vpack.c.b16 %v3692_v7, %v3691_v6  ;;  %v3718_v54 = vunpack.c.l.b16 %v3495_v51  ;;  %v3477_v47 = vsel %vm1212_vm0, 0, %v3476_v14  ;;  %v3488_v11 = vshrl.u32 %v3439_v10, 16 }
 0x70f   : > { %v3498_v1 = vpack.i.b16 %v3477_v47, %v3458_v15  ;;  %v3743_v22 = vunpack.c.l.b16 %v3486_v53  ;;  %v3499_v43 = vshrl.u32 %v3458_v15, 16  ;;  %v3500_v17 = vshrl.u32 %v3477_v47, 16 }
 0x710   : > { %3705 = vmatpush.bf16.msrb.mxu2 %v3693_v19  ;;  %v3580_v24 = vunpack.c.l.b16 %v3005_v31  ;;  %v3719_v16 = vpack.c.b16 %v3718_v54, %v3717_v8  ;;  %v3489_v35 = vpack.i.b16 %v3488_v11, %v3487_v34  ;;  %v3556_v27 = vpack.c.b16 %v3555_v38, %v3554_v57 }
 0x711   : > { %v3744_v60 = vunpack.c.l.b16 %v3498_v1  ;;  %v3501_v30 = vpack.i.b16 %v3500_v17, %v3499_v43  ;;  %v3581_v18 = vunpack.c.l.b16 %v3017_v9 }
 0x712   : > { %3731 = vmatpush.bf16.msrb.mxu3 %v3719_v16  ;;  %v3769_v32 = vunpack.c.l.b16 %v3489_v35 }
 0x713   : > { %v3745_v37 = vpack.c.b16 %v3744_v60, %v3743_v22  ;;  %v3770_v26 = vunpack.c.l.b16 %v3501_v30  ;;  %v3582_v44 = vpack.c.b16 %v3581_v18, %v3580_v24 }
 0x714   : > { %5105 = vmatmul.msk.bf16.vlgmr.msra.gmra.mxu0 %vm1896_vm1, %v3556_v27 }
 0x715   : > { %3757 = vmatpush.bf16.msrb.mxu0 %v3745_v37  ;;  %v3771_v39 = vpack.c.b16 %v3770_v26, %v3769_v32 }
 0x716   : > { %5106 = vmatmul.msk.bf16.vlgmr.msrb.gmra.mxu1 %vm1896_vm1, %v3582_v44 }
 0x717   : > { %3783 = vmatpush.bf16.msra.mxu1 %v3771_v39 }
 0x781   : > { %v3523_v56 = vpop.f32.mrf.mxu0 }
 0x782   : > { %v3606_v42 = vsel %vm1995_vm2, %v3523_v56, -inf }
 0x783   : > { %3607 = vmax.xlane.f32.xlu0 %v3606_v42  ;;  %v3549_v45 = vpop.f32.mrf.mxu1 }
 0x784   : > { %v3612_v61 = vsel %vm1995_vm2, %v3549_v45, -inf }
 0x785   : > { %3613 = vmax.xlane.f32.xlu2 %v3612_v61 }
 0x789   : > { %v3525_v25 = vpop.f32.mrf.mxu0 }
 0x78a   : > { %v3609_v46 = vsel %vm1995_vm2, %v3525_v25, -inf }
 0x78b   : > { %3610 = vmax.xlane.f32.xlu1 %v3609_v46  ;;  %v3551_v48 = vpop.f32.mrf.mxu1 }
 0x78c   : > { %v3615_v40 = vsel %vm1995_vm2, %v3551_v48, -inf }
 0x78d   : > { %3616 = vmax.xlane.f32.xlu0 %v3615_v40 }
 0x791   : > { %v3575_v29 = vpop.f32.mrf.mxu0 }
 0x792   : > { %v3618_v4 = vsel %vm1995_vm2, %v3575_v29, -inf }
 0x793   : > { %3619 = vmax.xlane.f32.xlu1 %v3618_v4  ;;  %v3601_v36 = vpop.f32.mrf.mxu1 }
 0x794   : > { %v3624_v57 = vsel %vm1995_vm2, %v3601_v36, -inf }
 0x795   : > { %3625 = vmax.xlane.f32.xlu0 %v3624_v57 }
 0x799   : > { %v3577_v38 = vpop.f32.mrf.mxu0 }
 0x79a   : > { %v3621_v55 = vsel %vm1995_vm2, %v3577_v38, -inf }
 0x79b   : > { %3622 = vmax.xlane.f32.xlu2 %v3621_v55  ;;  %v3603_v20 = vpop.f32.mrf.mxu1 }
 0x79c   : > { %v3627_v28 = vsel %vm1995_vm2, %v3603_v20, -inf }
 0x79d   : > { %3628 = vmax.xlane.f32.xlu1 %v3627_v28 }
 0x7f6   : > { %v3608_v21 = vpop.xlane.xlu0 %3607 }
 0x7f7   : > { %v3630_v31 = vsub.f32 %v3523_v56, %v3608_v21 }
 0x7f8   : > { %v3614_v49 = vpop.xlane.xlu2 %3613 }
 0x7f9   : > { %v3638_v41 = vmul.f32 1.442695, %v3630_v31  ;;  %v3632_v58 = vsub.f32 %v3549_v45, %v3614_v49 }
 0x7fb   : > { %5638 = vpow2.f32 %v3638_v41  ;;  %v3642_v59 = vmul.f32 1.442695, %v3632_v58 }
 0x7fd   : > { %5640 = vpow2.f32 %v3642_v59 }
 0x7fe   : > { %v3611_v12 = vpop.xlane.xlu1 %3610 }
 0x7ff   : > { %v3631_v33 = vsub.f32 %v3525_v25, %v3611_v12 }
 0x800   : > { %v3617_v0 = vpop.xlane.xlu0 %3616 }
 0x801   : > { %v5639_v6 = vpop.eup %5638  ;;  %v3640_v52 = vmul.f32 1.442695, %v3631_v33  ;;  %v3633_v2 = vsub.f32 %v3551_v48, %v3617_v0 }
 0x802   : > { %v3654_v3 = vsel %vm1995_vm2, %v5639_v6, 0.0  ;;  %v3678_v51 = vpack.c.bf16 %v5639_v6, %v5639_v6 }
 0x803   : > { %5642 = vpow2.f32 %v3640_v52  ;;  %3655 = vadd.xlane.f32.xlu1 %v3654_v3  ;;  %v3644_v10 = vmul.f32 1.442695, %v3633_v2  ;;  %v5641_v9 = vpop.eup %5640 }
 0x804   : > { %v3680_v54 = vpack.c.bf16 %v5641_v9, %v5641_v9  ;;  %v3688_v11 = vunpack.c.l.b16 %v3678_v51  ;;  %v3660_v25 = vsel %vm1995_vm2, %v5641_v9, 0.0 }
 0x805   : > { %5644 = vpow2.f32 %v3644_v10 }
 0x806   : > { %v3620_v5 = vpop.xlane.xlu1 %3619  ;;  %v3714_v16 = vunpack.c.l.b16 %v3680_v54 }
 0x807   : > { %v3634_v7 = vsub.f32 %v3575_v29, %v3620_v5 }
 0x808   : > { %v3626_v15 = vpop.xlane.xlu0 %3625 }
 0x809   : > { %v5643_v14 = vpop.eup %5642  ;;  %v3646_v8 = vmul.f32 1.442695, %v3634_v7  ;;  %v3636_v34 = vsub.f32 %v3601_v36, %v3626_v15 }
 0x80a   : > { %v3679_v53 = vpack.c.bf16 %v5643_v14, %v5643_v14  ;;  %v3657_v19 = vsel %vm1995_vm2, %v5643_v14, 0.0 }
 0x80b   : > { %5646 = vpow2.f32 %v3646_v8  ;;  %3658 = vadd.xlane.f32.xlu2 %v3657_v19  ;;  %v5645_v47 = vpop.eup %5644  ;;  %v3650_v22 = vmul.f32 1.442695, %v3636_v34 }
 0x80c   : > { %v3689_v1 = vunpack.c.l.b16 %v3679_v53  ;;  %v3681_v43 = vpack.c.bf16 %v5645_v47, %v5645_v47  ;;  %v3663_v21 = vsel %vm1995_vm2, %v5645_v47, 0.0 }
 0x80d   : > { %5648 = vpow2.f32 %v3650_v22 }
 0x80e   : > { %v3690_v17 = vpack.c.b16 %v3689_v1, %v3688_v11  ;;  %v3623_v24 = vpop.xlane.xlu2 %3622  ;;  %v3715_v35 = vunpack.c.l.b16 %v3681_v43 }
 0x80f   : > { %v3635_v27 = vsub.f32 %v3577_v38, %v3623_v24 }
 0x810   : > { %5107 = vmatmul.msk.bf16.vlgmr.msrb.gmra.mxu2 %vm1995_vm2, %v3690_v17  ;;  %v3716_v30 = vpack.c.b16 %v3715_v35, %v3714_v16  ;;  %v3629_v32 = vpop.xlane.xlu1 %3628 }
 0x811   : > { %v5647_v60 = vpop.eup %5646  ;;  %v3648_v18 = vmul.f32 1.442695, %v3635_v27  ;;  %v3637_v37 = vsub.f32 %v3603_v20, %v3629_v32 }
 0x812   : > { %v3666_v26 = vsel %vm1995_vm2, %v5647_v60, 0.0  ;;  %5108 = vmatmul.msk.bf16.vlgmr.msrb.gmra.mxu3 %vm1995_vm2, %v3716_v30  ;;  %v3682_v42 = vpack.c.bf16 %v5647_v60, %v5647_v60 }
 0x813   : > { %5650 = vpow2.f32 %v3648_v18  ;;  %3667 = vadd.xlane.f32.xlu2 %v3666_v26  ;;  %v5649_v44 = vpop.eup %5648  ;;  %v3652_v39 = vmul.f32 1.442695, %v3637_v37 }
 0x814   : > { %v3672_v56 = vsel %vm1995_vm2, %v5649_v44, 0.0  ;;  %v3684_v46 = vpack.c.bf16 %v5649_v44, %v5649_v44  ;;  %v3740_v40 = vunpack.c.l.b16 %v3682_v42 }
 0x815   : > { %5652 = vpow2.f32 %v3652_v39  ;;  %3673 = vadd.xlane.f32.xlu0 %v3672_v56 }
 0x816   : > { %v3766_v55 = vunpack.c.l.b16 %v3684_v46 }
 0x819   : > { %v5651_v45 = vpop.eup %5650 }
 0x81a   : > { %v3683_v61 = vpack.c.bf16 %v5651_v45, %v5651_v45  ;;  %v3669_v57 = vsel %vm1995_vm2, %v5651_v45, 0.0 }
 0x81b   : > { %3661 = vadd.xlane.f32.xlu2 %v3660_v25  ;;  %v5653_v48 = vpop.eup %5652 }
 0x81c   : > { %v3741_v29 = vunpack.c.l.b16 %v3683_v61  ;;  %v3685_v4 = vpack.c.bf16 %v5653_v48, %v5653_v48  ;;  %v3675_v36 = vsel %vm1995_vm2, %v5653_v48, 0.0 }
 0x81d   : > { %3676 = vadd.xlane.f32.xlu1 %v3675_v36  ;;  %3670 = vadd.xlane.f32.xlu0 %v3669_v57 }
 0x81e   : > { %v3742_v38 = vpack.c.b16 %v3741_v29, %v3740_v40  ;;  %v3767_v20 = vunpack.c.l.b16 %v3685_v4 }
 0x820   : > { %5109 = vmatmul.msk.bf16.vlgmr.msrb.gmra.mxu0 %vm1995_vm2, %v3742_v38  ;;  %v3768_v28 = vpack.c.b16 %v3767_v20, %v3766_v55 }
 0x822   : > { %5110 = vmatmul.msk.bf16.vlgmr.msra.gmra.mxu1 %vm1995_vm2, %v3768_v28 }
 0x825   : > { %3664 = vadd.xlane.f32.xlu0 %v3663_v21 }
 0x876   : > { %v3656_v31 = vpop.xlane.xlu1 %3655 }
 0x877   : > { %5654 = vrcp.f32 %v3656_v31  ;;  %v3799_v3 = vand.u32 2147483647, %v3656_v31  ;;  %v3801_v5 = vand.u32 2147483648, %v3656_v31  ;;  %vm3795_vm6 = vweird.f32 %v3656_v31 }
 0x879   : > { %vm3800_vm8 = vcmp.eq.f32.partialorder %v3799_v3, 8.507059e+37  ;;  %v3802_v19 = vor.u32 1.1754944e-38, %v3801_v5 }
 0x87d   : > { %v5655_v41 = vpop.eup %5654 }
 0x87e   : > { %v3791_v49 = vmul.f32 %v5655_v41, %v3656_v31  ;;  %v3659_v58 = vpop.xlane.xlu2 %3658  ;;  %vm3796_vm2 = vweird.f32 %v5655_v41 }
 0x87f   : > { %5656 = vrcp.f32 %v3659_v58  ;;  %v3813_v9 = vand.u32 2147483647, %v3659_v58  ;;  %vm7424_vm5 = vmor %vm3795_vm6, %vm3796_vm2  ;;  %v3815_v8 = vand.u32 2147483648, %v3659_v58  ;;  %vm3809_vm7 = vweird.f32 %v3659_v58 }
 0x880   : > { %v3792_v59 = vsub.f32 1.0, %v3791_v49 }
 0x881   : > { %vm7437_vm12 = vcmp.eq.f32.partialorder %v3813_v9, 8.507059e+37  ;;  %v3816_v27 = vor.u32 1.1754944e-38, %v3815_v8 }
 0x882   : > { %v3793_v52 = vmul.f32 %v5655_v41, %v3792_v59 }
 0x884   : > { %v3794_v10 = vadd.f32 %v5655_v41, %v3793_v52 }
 0x885   : > { %v5657_v12 = vpop.eup %5656 }
 0x886   : > { %v3805_v33 = vmul.f32 %v5657_v12, %v3659_v58  ;;  %v7416_v6 = vpop.xlane.xlu2 %3667  ;;  %v3798_v34 = vsel %vm7424_vm5, %v5655_v41, %v3794_v10  ;;  %vm3810_vm11 = vweird.f32 %v5657_v12 }
 0x887   : > { %5658 = vrcp.f32 %v7416_v6  ;;  %v3855_v22 = vand.u32 2147483647, %v7416_v6  ;;  %v3857_v43 = vand.u32 2147483648, %v7416_v6  ;;  %v3803_v35 = vsel %vm3800_vm8, %v3802_v19, %v3798_v34  ;;  %vm7453_vm15 = vmor %vm3809_vm7, %vm3810_vm11 }
 0x888   : > { %v3806_v0 = vsub.f32 1.0, %v3805_v33  ;;  %v7419_v2 = vpop.xlane.xlu0 %3673  ;;  %vm3851_vm13 = vweird.f32 %v7416_v6 }
 0x889   : > { %5660 = vrcp.f32 %v7419_v2  ;;  %v3885_v60 = vand.u32 2147483648, %v7419_v2  ;;  %v3883_v37 = vand.u32 2147483647, %v7419_v2  ;;  %vm7464_vm3 = vcmp.eq.f32.partialorder %v3855_v22, 8.507059e+37 }
 0x88a   : > { %v3807_v7 = vmul.f32 %v5657_v12, %v3806_v0  ;;  %v3858_v45 = vor.u32 1.1754944e-38, %v3857_v43  ;;  %vm3879_vm14 = vweird.f32 %v7419_v2 }
 0x88b   : > { %v3886_v48 = vor.u32 1.1754944e-38, %v3885_v60  ;;  %vm7480_vm5 = vcmp.eq.f32.partialorder %v3883_v37, 8.507059e+37 }
 0x88c   : > { %v3808_v54 = vadd.f32 %v5657_v12, %v3807_v7 }
 0x88d   : > { %v7422_v51 = vpop.eup %5658 }
 0x88e   : > { %v3847_v15 = vmul.f32 %v7422_v51, %v7416_v6  ;;  %v7430_v53 = vpop.xlane.xlu2 %3661  ;;  %v3812_v39 = vsel %vm7453_vm15, %v5657_v12, %v3808_v54  ;;  %vm3852_vm4 = vweird.f32 %v7422_v51 }
 0x88f   : > { %5662 = vrcp.f32 %v7430_v53  ;;  %v7435_v47 = vpop.eup %5660  ;;  %v3827_v30 = vand.u32 2147483647, %v7430_v53  ;;  %v3829_v44 = vand.u32 2147483648, %v7430_v53  ;;  %vm3823_vm2 = vweird.f32 %v7430_v53  ;;  %vm7490_vm8 = vmor %vm3851_vm13, %vm3852_vm4 }
 0x890   : > { %v3848_v11 = vsub.f32 1.0, %v3847_v15  ;;  %v3875_v17 = vmul.f32 %v7435_v47, %v7419_v2  ;;  %v7445_v24 = vpop.xlane.xlu1 %3676  ;;  %v7447_v16 = vpop.xlane.xlu0 %3670  ;;  %v3817_v4 = vsel %vm7437_vm12, %v3816_v27, %v3812_v39  ;;  %vm3880_vm7 = vweird.f32 %v7435_v47 }
 0x891   : > { %5664 = vrcp.f32 %v7445_v24  ;;  %vm7474_vm6 = vcmp.eq.f32.partialorder %v3827_v30, 8.507059e+37  ;;  %v3830_v38 = vor.u32 1.1754944e-38, %v3829_v44  ;;  %v3869_v55 = vand.u32 2147483647, %v7447_v16  ;;  %vm7513_vm13 = vmor %vm3879_vm14, %vm3880_vm7 }
 0x892   : > { %v3849_v32 = vmul.f32 %v7422_v51, %v3848_v11  ;;  %v3876_v26 = vsub.f32 1.0, %v3875_v17  ;;  %5666 = vrcp.f32 %v7447_v16  ;;  %v3871_v20 = vand.u32 2147483648, %v7447_v16 }
 0x893   : > { %v3707_v56 = vpop.f32.mrf.mxu2  ;;  %vm3865_vm11 = vweird.f32 %v7447_v16  ;;  %v3897_v33 = vand.u32 2147483647, %v7445_v24  ;;  %v3899_v6 = vand.u32 2147483648, %v7445_v24  ;;  %vm3893_vm15 = vweird.f32 %v7445_v24 }
 0x894   : > { %v3850_v25 = vadd.f32 %v7422_v51, %v3849_v32  ;;  %v3877_v46 = vmul.f32 %v7435_v47, %v3876_v26  ;;  %v3902_v57 = vmul.f32 %v3803_v35, %v3707_v56  ;;  %vm7517_vm4 = vcmp.eq.f32.partialorder %v3869_v55, 8.507059e+37 }
 0x895   : > { %v5663_v61 = vpop.eup %5662  ;;  %v3872_v9 = vor.u32 1.1754944e-38, %v3871_v20  ;;  %v3900_v54 = vor.u32 1.1754944e-38, %v3899_v6  ;;  %vm7531_vm7 = vcmp.eq.f32.partialorder %v3897_v33, 8.507059e+37 }
 0x896   : > { %v3819_v40 = vmul.f32 %v5663_v61, %v7430_v53  ;;  %v3878_v41 = vadd.f32 %v7435_v47, %v3877_v46  ;;  %v3854_v12 = vsel %vm7490_vm8, %v7422_v51, %v3850_v25  ;;  %vm3824_vm12 = vweird.f32 %v5663_v61 }
 0x897   : > { %v7486_v28 = vpop.eup %5664  ;;  %v3912_v10 = vrot.slane %v3902_v57, 4  ;;  %v3859_v8 = vsel %vm7464_vm3, %v3858_v45, %v3854_v12  ;;  %vm3825_vm14 = vmor %vm3823_vm2, %vm3824_vm12 }
 0x898   : > { %v3820_v21 = vsub.f32 1.0, %v3819_v40  ;;  %v5667_v49 = vpop.eup %5666  ;;  %v3889_v58 = vmul.f32 %v7486_v28, %v7445_v24  ;;  %v7499_v59 = vpop.xlane.xlu0 %3664  ;;  %v3882_v15 = vsel %vm7513_vm13, %v7435_v47, %v3878_v41  ;;  %vm3894_vm8 = vweird.f32 %v7486_v28 }
 0x899   : > { %v3861_v52 = vmul.f32 %v5667_v49, %v7447_v16  ;;  %5668 = vrcp.f32 %v7499_v59  ;;  %v3841_v2 = vand.u32 2147483647, %v7499_v59  ;;  %vm3866_vm3 = vweird.f32 %v5667_v49  ;;  %v3733_v47 = vpop.f32.mrf.mxu3  ;;  %vm7558_vm13 = vmor %vm3893_vm15, %vm3894_vm8 }
 0x89a   : > { %v3821_v0 = vmul.f32 %v5663_v61, %v3820_v21  ;;  %v3890_v3 = vsub.f32 1.0, %v3889_v58  ;;  %vm3837_vm2 = vweird.f32 %v7499_v59  ;;  %v3843_v35 = vand.u32 2147483648, %v7499_v59 }
 0x89b   : > { %v3862_v51 = vsub.f32 1.0, %v3861_v52  ;;  %v3709_v1 = vpop.f32.mrf.mxu2  ;;  %v3887_v27 = vsel %vm7480_vm5, %v3886_v48, %v3882_v15  ;;  %vm7548_vm5 = vcmp.eq.f32.partialorder %v3841_v2, 8.507059e+37 }
 0x89c   : > { %v3822_v14 = vadd.f32 %v5663_v61, %v3821_v0  ;;  %v3891_v19 = vmul.f32 %v7486_v28, %v3890_v3  ;;  %v3903_v56 = vmul.f32 %v3817_v4, %v3709_v1  ;;  %v3844_v58 = vor.u32 1.1754944e-38, %v3843_v35 }
 0x89d   : > { %v3759_v34 = vpop.f32.mrf.mxu0  ;;  %v3863_v43 = vmul.f32 %v5667_v49, %v3862_v51 }
 0x89e   : > { %v3826_v11 = vsel %vm3825_vm14, %v5663_v61, %v3822_v14  ;;  %v3906_v22 = vmul.f32 %v3859_v8, %v3759_v34  ;;  %v3892_v60 = vadd.f32 %v7486_v28, %v3891_v19 }
 0x89f   : > { %v3831_v53 = vsel %vm7474_vm6, %v3830_v38, %v3826_v11  ;;  %v5669_v30 = vpop.eup %5668  ;;  %v3785_v26 = vpop.f32.mrf.mxu1  ;;  %v3864_v44 = vadd.f32 %v5667_v49, %v3863_v43  ;;  %vm3867_vm6 = vmor %vm3865_vm11, %vm3866_vm3 }
 0x8a0   : > { %v3904_v18 = vmul.f32 %v3831_v53, %v3733_v47  ;;  %v3910_v32 = vrot.slane %v3906_v22, 4  ;;  %v3913_v37 = vsel %vm1212_vm0, %v3906_v22, %v3912_v10  ;;  %v3833_v39 = vmul.f32 %v5669_v30, %v7499_v59 }
 0x8a1   : > { %v3921_v42 = vperm.slane %v3913_v37, %v6578_v63  ;;  %v3908_v45 = vmul.f32 %v3887_v27, %v3785_v26  ;;  %v3868_v48 = vsel %vm3867_vm6, %v5667_v49, %v3864_v44  ;;  %vm3838_vm12 = vweird.f32 %v5669_v30  ;;  %v3735_v15 = vpop.f32.mrf.mxu3 }
 0x8a2   : > { %v3924_v61 = vrot.slane %v3904_v18, 4  ;;  %v3911_v46 = vsel %vm1212_vm0, %v3910_v32, %v3902_v57  ;;  %v3834_v40 = vsub.f32 1.0, %v3833_v39  ;;  %v3873_v57 = vsel %vm7517_vm4, %v3872_v9, %v3868_v48  ;;  %vm3839_vm11 = vmor %vm3837_vm2, %vm3838_vm12 }
 0x8a3   : > { %v3917_v29 = vperm.slane %v3911_v46, %v6578_v63  ;;  %v3922_v4 = vrot.slane %v3908_v45, 4  ;;  %v3948_v36 = vrot.slane %v3921_v42, 4  ;;  %v3896_v55 = vsel %vm7558_vm13, %v7486_v28, %v3892_v60 }
 0x8a4   : > { %v3925_v38 = vsel %vm1212_vm0, %v3908_v45, %v3924_v61  ;;  %v3835_v20 = vmul.f32 %v5669_v30, %v3834_v40  ;;  %v3968_v49 = vrot.slane %v3903_v56, 4  ;;  %v3901_v3 = vsel %vm7531_vm7, %v3900_v54, %v3896_v55 }
 0x8a5   : > { %v3936_v21 = vrot.slane %v3917_v29, 4  ;;  %v3923_v31 = vsel %vm1212_vm0, %v3922_v4, %v3904_v18  ;;  %v3933_v24 = vperm.slane %v3925_v38, %v6578_v63  ;;  %v3761_v41 = vpop.f32.mrf.mxu0 }
 0x8a6   : > { %v3929_v12 = vperm.slane %v3923_v31, %v6578_v63  ;;  %v3907_v33 = vmul.f32 %v3873_v57, %v3761_v41  ;;  %v3836_v6 = vadd.f32 %v5669_v30, %v3835_v20 }
 0x8a7   : > { %v3946_v52 = vrot.slane %v3933_v24, 4  ;;  %v3949_v0 = vsel %vm1212_vm0, %v3933_v24, %v3948_v36  ;;  %v3787_v35 = vpop.f32.mrf.mxu1 }
 0x8a8   : > { %v3934_v28 = vrot.slane %v3929_v12, 4  ;;  %v3937_v10 = vsel %vm1212_vm0, %v3929_v12, %v3936_v21  ;;  %v3957_v5 = vperm.slane %v3949_v0, %v6583_v13  ;;  %v3966_v7 = vrot.slane %v3907_v33, 4 }
 0x8a9   : > { %v3840_v9 = vsel %vm3839_vm11, %v5669_v30, %v3836_v6  ;;  %v3945_v51 = vperm.slane %v3937_v10, %v6583_v13  ;;  %v3947_v14 = vsel %vm1212_vm0, %v3946_v52, %v3921_v42  ;;  %v3969_v8 = vsel %vm1212_vm0, %v3907_v33, %v3968_v49 }
 0x8aa   : > { %v3845_v2 = vsel %vm7548_vm5, %v3844_v58, %v3840_v9  ;;  %v3935_v59 = vsel %vm1212_vm0, %v3934_v28, %v3917_v29  ;;  %v3953_v34 = vperm.slane %v3947_v14, %v6583_v13  ;;  %v3964_v19 = vrot.slane %v3957_v5, 4 }
 0x8ab   : > { %v3905_v54 = vmul.f32 %v3845_v2, %v3735_v15  ;;  %v3941_v11 = vperm.slane %v3935_v59, %v6583_v13  ;;  %v3960_v1 = vrot.slane %v3945_v51, 4  ;;  %v3967_v22 = vsel %vm1212_vm0, %v3966_v7, %v3903_v56 }
 0x8ac   : > { %v3962_v43 = vrot.slane %v3953_v34, 4  ;;  %v3965_v17 = vsel %vm1212_vm0, 0.0, %v3964_v19  ;;  %v4033_v47 = vsel %vm1212_vm0, %v3964_v19, %v3953_v34  ;;  %v3973_v53 = vperm.slane %v3967_v22, %v6578_v63 }
 0x8ad   : > { %v3980_v27 = vrot.slane %v3905_v54, 4  ;;  %v3958_v60 = vrot.slane %v3941_v11, 4  ;;  %v3961_v30 = vsel %vm1212_vm0, 0.0, %v3960_v1  ;;  %v4022_v18 = vsel %vm1212_vm0, %v3960_v1, %v3941_v11 }
 0x8ae   : > { %v3963_v32 = vsel %vm1212_vm0, 0.0, %v3962_v43  ;;  %v4027_v37 = vrot.slane %v3961_v30, 4  ;;  %v4038_v26 = vrot.slane %v3965_v17, 4  ;;  %v3977_v44 = vperm.slane %v3969_v8, %v6578_v63 }
 0x8af   : > { %v3959_v39 = vsel %vm1212_vm0, 0.0, %v3958_v60  ;;  %v3909_v56 = vmul.f32 %v3901_v3, %v3787_v35  ;;  %v4026_v42 = vperm.slane %v4022_v18, %v6578_v63  ;;  %v4037_v61 = vperm.slane %v4033_v47, %v6578_v63 }
 0x8b0   : > { %v4028_v45 = vsel %vm1212_vm0, %v4027_v37, %v3959_v39  ;;  %v4039_v25 = vsel %vm1212_vm0, %v4038_v26, %v3963_v32  ;;  %v3992_v46 = vrot.slane %v3973_v53, 4  ;;  %v4004_v4 = vrot.slane %v3977_v44, 4 }
 0x8b1   : > { %v3978_v48 = vrot.slane %v3909_v56, 4  ;;  %v3981_v40 = vsel %vm1212_vm0, %v3909_v56, %v3980_v27  ;;  %v4032_v29 = vperm.slane %v4028_v45, %v6578_v63  ;;  %v4043_v36 = vperm.slane %v4039_v25, %v6578_v63 }
 0x8b2   : > { %v3989_v16 = vperm.slane %v3981_v40, %v6578_v63  ;;  %v4046_v38 = vrot.slane %v4026_v42, 4  ;;  %v4058_v55 = vrot.slane %v4037_v61, 4 }
 0x8b3   : > { %v3979_v57 = vsel %vm1212_vm0, %v3978_v48, %v3905_v54  ;;  %v4056_v33 = vrot.slane %v4043_v36, 4  ;;  %v4044_v5 = vrot.slane %v4032_v29, 4 }
 0x8b4   : > { %v3985_v20 = vperm.slane %v3979_v57, %v6578_v63  ;;  %v4002_v21 = vrot.slane %v3989_v16, 4  ;;  %v4005_v31 = vsel %vm1212_vm0, %v3989_v16, %v4004_v4  ;;  %v4047_v41 = vsel %vm1212_vm0, %v4032_v29, %v4046_v38 }
 0x8b5   : > { %v4013_v24 = vperm.slane %v4005_v31, %v6583_v13  ;;  %v4059_v3 = vsel %vm1212_vm0, %v4043_v36, %v4058_v55  ;;  %v4055_v10 = vperm.slane %v4047_v41, %v6583_v13  ;;  %v4057_v59 = vsel %vm1212_vm0, %v4056_v33, %v4037_v61 }
 0x8b6   : > { %v3990_v49 = vrot.slane %v3985_v20, 4  ;;  %v3993_v58 = vsel %vm1212_vm0, %v3985_v20, %v3992_v46  ;;  %v4003_v12 = vsel %vm1212_vm0, %v4002_v21, %v3977_v44  ;;  %v4067_v2 = vperm.slane %v4059_v3, %v6583_v13  ;;  %v5339_v3 = vld [vmem:[#allocation21 + $0x20] sm:$0xff] }
 0x8b7   : > { %v4001_v6 = vperm.slane %v3993_v58, %v6583_v13  ;;  %v4009_v52 = vperm.slane %v4003_v12, %v6583_v13  ;;  %v4020_v0 = vrot.slane %v4013_v24, 4  ;;  %v4045_v35 = vsel %vm1212_vm0, %v4044_v5, %v4026_v42  ;;  %v5336_v5 = vld [vmem:[#allocation21 + $0x8] sm:$0xff] }
 0x8b8   : > { %v3991_v28 = vsel %vm1212_vm0, %v3990_v49, %v3973_v53  ;;  %v4063_v27 = vperm.slane %v4057_v59, %v6583_v13  ;;  %v4074_v44 = vrot.slane %v4055_v10, 4  ;;  %v4072_v56 = vrot.slane %v4067_v2, 4 }
 0x8b9   : > { %v3997_v7 = vperm.slane %v3991_v28, %v6583_v13  ;;  %v4016_v9 = vrot.slane %v4001_v6, 4  ;;  %v4018_v51 = vrot.slane %v4009_v52, 4  ;;  %v4021_v14 = vsel %vm1212_vm0, 0.0, %v4020_v0  ;;  %v5342_v6 = vld [vmem:[#allocation21 + $0x38] sm:$0xff] }
 0x8ba   : > { %v4087_v8 = vsel %vm1212_vm0, %v4020_v0, %v4009_v52  ;;  %v4092_v15 = vrot.slane %v4021_v14, 4  ;;  %v4068_v37 = vrot.slane %v4063_v27, 4  ;;  %v4051_v45 = vperm.slane %v4045_v35, %v6583_v13  ;;  %4210 = vmatpush.bf16.msra.mxu2 %v5342_v6  ;;  %v5341_v52 = vld [vmem:[#allocation21 + $0x30] sm:$0xff]  ;;  %v5340_v0 = vld [vmem:[#allocation21 + $0x28] sm:$0xff]  ;;  %v5338_v28 = vld [vmem:[#allocation21 + $0x18] sm:$0xff] }
 0x8bb   : > { %v4014_v34 = vrot.slane %v3997_v7, 4  ;;  %v4017_v19 = vsel %vm1212_vm0, 0.0, %v4016_v9  ;;  %v4019_v54 = vsel %vm1212_vm0, 0.0, %v4018_v51  ;;  %v4076_v11 = vsel %vm1212_vm0, %v4016_v9, %v3997_v7  ;;  %v5335_v7 = vld [vmem:[#allocation21] sm:$0xff] }
 0x8bc   : > { %v4081_v1 = vrot.slane %v4017_v19, 4  ;;  %v4080_v22 = vperm.slane %v4076_v11, %v6578_v63  ;;  %v4091_v43 = vperm.slane %v4087_v8, %v6578_v63  ;;  %v4093_v17 = vsel %vm1212_vm0, %v4092_v15, %v4019_v54 }
 0x8bd   : > { %v4015_v47 = vsel %vm1212_vm0, 0.0, %v4014_v34  ;;  %v4097_v53 = vperm.slane %v4093_v17, %v6578_v63  ;;  %v4070_v36 = vrot.slane %v4051_v45, 4  ;;  %v4075_v55 = vsel %vm1212_vm0, %v4067_v2, %v4074_v44 }
 0x8be   : > { %v4082_v60 = vsel %vm1212_vm0, %v4081_v1, %v4015_v47  ;;  %v4100_v30 = vrot.slane %v4080_v22, 4  ;;  %v4112_v18 = vrot.slane %v4091_v43, 4  ;;  %v4073_v20 = vsel %vm1212_vm0, %v4072_v56, %v4055_v10  ;;  %4211 = vmatpush.bf16.msra.mxu2 %v5341_v52  ;;  %v5337_v10 = vld [vmem:[#allocation21 + $0x10] sm:$0xff] }
 0x8bf   : > { %v4086_v32 = vperm.slane %v4082_v60, %v6578_v63  ;;  %v4110_v26 = vrot.slane %v4097_v53, 4  ;;  %v4069_v63 = vsel %vm1212_vm0, %v4068_v37, %v4051_v45  ;;  %v4071_v12 = vsel %vm1212_vm0, %v4063_v27, %v4070_v36  ;;  %v5169_v52 = vld [vmem:[#allocation23 + $0x30] sm:$0xf] }
 0x8c0   : > { %v4113_v39 = vsel %vm1212_vm0, %v4097_v53, %v4112_v18  ;;  %v5682_v53 = vld [vmem:[#allocation26] sm:$0xff] }
 0x8c1   : > { %v4101_v61 = vsel %vm1212_vm0, %v4086_v32, %v4100_v30  ;;  %v4121_v42 = vperm.slane %v4113_v39, %v6583_v13  ;;  %v4098_v25 = vrot.slane %v4086_v32, 4  ;;  %v4111_v46 = vsel %vm1212_vm0, %v4110_v26, %v4091_v43 }
 0x8c2   : > { %v4109_v48 = vperm.slane %v4101_v61, %v6583_v13  ;;  %v4117_v40 = vperm.slane %v4111_v46, %v6583_v13  ;;  %4212 = vmatpush.bf16.msra.mxu2 %v5340_v0  ;;  %v4161_v35 = vperm.slane %v5682_v53, 7  ;;  %v5357_v46 = vld [vmem:[#allocation23 + $0x74] sm:$0xf]  ;;  %v5350_v0 = vld [vmem:[#allocation23 + $0x34] sm:$0xf0] }
 0x8c3   : > { %v4126_v29 = vrot.slane %v4121_v42, 4  ;;  %v4099_v4 = vsel %vm1212_vm0, %v4098_v25, %v4080_v22  ;;  %v5358_v25 = vld [vmem:[#allocation23 + $0x74] sm:$0xf0]  ;;  %v5343_v53 = vld [vmem:[#allocation23 + $0x4] sm:$0xf] }
 0x8c4   : > { %v4128_v16 = vrot.slane %v4109_v48, 4  ;;  %v4105_v38 = vperm.slane %v4099_v4, %v6583_v13  ;;  %v4122_v57 = vrot.slane %v4117_v40, 4  ;;  %v5356_v4 = vld [vmem:[#allocation23 + $0x64] sm:$0xf0] }
 0x8c5   : > { %v4127_v21 = vsel %vm1212_vm0, %v4126_v29, %v4109_v48  ;;  %v5193_v29 = vld [vmem:[#allocation23 + $0x60] sm:$0xf] }
 0x8c6   : > { %v4129_v31 = vsel %vm1212_vm0, %v4121_v42, %v4128_v16  ;;  %v5590_v24 = vpack.i.bf16 %v4127_v21, %v4073_v20  ;;  %v4124_v41 = vrot.slane %v4105_v38, 4  ;;  %v4123_v49 = vsel %vm1212_vm0, %v4122_v57, %v4105_v38  ;;  %4213 = vmatpush.bf16.msra.mxu2 %v5339_v3  ;;  %v5355_v16 = vld [vmem:[#allocation23 + $0x64] sm:$0xf]  ;;  %v5195_v38 = vld [vmem:[#allocation23 + $0x68] sm:$0xf0] }
 0x8c7   : > { %v5595_v58 = vpack.i.bf16 %v4129_v31, %v4075_v55  ;;  %v5194_v36 = vor.u32 %v5356_v4, %v5193_v29  ;;  %v5198_v57 = vor.u32 %v5355_v16, %v5195_v38  ;;  %v5185_v55 = vld [vmem:[#allocation23 + $0x50] sm:$0xf]  ;;  %v5354_v20 = vld [vmem:[#allocation23 + $0x54] sm:$0xf0]  ;;  %v5353_v21 = vld [vmem:[#allocation23 + $0x54] sm:$0xf] }
 0x8c8   : > { %5591 = vrot.lane.b32.xlu2 %v5590_v24, %s6186_s9  ;;  %v4125_v13 = vsel %vm1212_vm0, %v4117_v40, %v4124_v41  ;;  %v5203_v40 = vld [vmem:[#allocation23 + $0x78] sm:$0xf0]  ;;  %v5186_v31 = vor.u32 %v5354_v20, %v5185_v55  ;;  %v5349_v3 = vld [vmem:[#allocation23 + $0x34] sm:$0xf]  ;;  %v7674_v20 = vld [vmem:[#allocation26 + $0x8] sm:$0xff] }
 0x8c9   : > { %5596 = vrot.lane.b32.xlu0 %v5595_v58, %s6187_s10  ;;  %v5585_v33 = vpack.i.bf16 %v4125_v13, %v4071_v12  ;;  %v5187_v24 = vld [vmem:[#allocation23 + $0x58] sm:$0xf0]  ;;  %v5352_v58 = vld [vmem:[#allocation23 + $0x44] sm:$0xf0]  ;;  %v5351_v12 = vld [vmem:[#allocation23 + $0x44] sm:$0xf] }
 0x8ca   : > { %4214 = vmatpush.bf16.msra.mxu2 %v5338_v28  ;;  %v5190_v41 = vor.u32 %v5353_v21, %v5187_v24  ;;  %v5170_v28 = vor.u32 %v5350_v0, %v5169_v52  ;;  %v4266_v21 = vperm.slane %v7674_v20, 3  ;;  %v5363_v52 = vld [vmem:[#allocation24 + $0x20] sm:$0xff]  ;;  %v5369_v0 = vld [vmem:[#allocation24 + $0x50] sm:$0xff] }
 0x8cb   : > { %5586 = vrot.lane.b32.xlu1 %v5585_v33, %s6185_s22  ;;  %v5179_v33 = vld [vmem:[#allocation23 + $0x48] sm:$0xf0] }
 0x8cc   : > { %v5182_v6 = vor.u32 %v5351_v12, %v5179_v33 }
 0x8ce   : > { %4215 = vmatpush.bf16.msra.mxu2 %v5337_v10  ;;  %v5171_v10 = vld [vmem:[#allocation23 + $0x38] sm:$0xf0] }
 0x8d2   : > { %4216 = vmatpush.bf16.msra.mxu2 %v5336_v5  ;;  %v5174_v5 = vor.u32 %v5349_v3, %v5171_v10  ;;  %v5362_v3 = vld [vmem:[#allocation24 + $0x18] sm:$0xff]  ;;  %v5361_v10 = vld [vmem:[#allocation24 + $0x10] sm:$0xff] }
 0x8d6   : > { %4217 = vmatpush.bf16.msra.mxu2 %v5335_v7  ;;  %v5161_v7 = vld [vmem:[#allocation23 + $0x20] sm:$0xf] }
 0x922   : > { %v5592_v9 = vpop.permute.xlu2 %5591 }
 0x923   : > { %v5594_v2 = vunpack.i.h.bf16 %v5592_v9  ;;  %v5593_v59 = vunpack.i.l.bf16 %v5592_v9  ;;  %v5348_v9 = vld [vmem:[#allocation23 + $0x24] sm:$0xf0] }
 0x93b   : > { %v5597_v51 = vpop.permute.xlu0 %5596 }
 0x93c   : > { %v5599_v34 = vunpack.i.h.bf16 %v5597_v51  ;;  %v5598_v19 = vunpack.i.l.bf16 %v5597_v51  ;;  %v5347_v51 = vld [vmem:[#allocation23 + $0x24] sm:$0xf] }
 0x93d   : > { %v5587_v14 = vpop.permute.xlu1 %5586 }
 0x93e   : > { %v5589_v8 = vunpack.i.h.bf16 %v5587_v14  ;;  %v5588_v15 = vunpack.i.l.bf16 %v5587_v14 }
 0x940   : > { %v4154_v54 = vsel %vm1896_vm1, %v4069_v63, %v5588_v15  ;;  %v4155_v11 = vsel %vm1896_vm1, %v4123_v49, %v5589_v8  ;;  %v5206_v63 = vor.u32 %v5357_v46, %v5203_v40  ;;  %v5177_v49 = vld [vmem:[#allocation23 + $0x40] sm:$0xf]  ;;  %v5162_v8 = vor.u32 %v5348_v9, %v5161_v7  ;;  %v5163_v15 = vld [vmem:[#allocation23 + $0x28] sm:$0xf0]  ;;  %v4289_v9 = vld [vmem:[%s7825_s4] sm:$0x3] }
 0x941   : > { %v4156_v1 = vsel %vm2547_vm9, %v4154_v54, %v5593_v59  ;;  %v4157_v22 = vsel %vm2547_vm9, %v4155_v11, %v5594_v2  ;;  %v5178_v13 = vor.u32 %v5352_v58, %v5177_v49  ;;  %v5153_v2 = vld [vmem:[#allocation23 + $0x10] sm:$0xf]  ;;  %v5346_v59 = vld [vmem:[#allocation23 + $0x14] sm:$0xf0]  ;;  %v5345_v54 = vld [vmem:[#allocation23 + $0x14] sm:$0xf] }
 0x942   : > { %v4158_v43 = vsel %vm2550_vm10, %v4156_v1, %v5598_v19  ;;  %v4159_v17 = vsel %vm2550_vm10, %v4157_v22, %v5599_v34  ;;  %4389 = vmatpush.bf16.msra.mxu0 %v5206_v63  ;;  %v5166_v19 = vor.u32 %v5347_v51, %v5163_v15  ;;  %v5155_v11 = vld [vmem:[#allocation23 + $0x18] sm:$0xf0]  ;;  %v5154_v22 = vor.u32 %v5346_v59, %v5153_v2  ;;  %v5359_v7 = vld [vmem:[#allocation24] sm:$0xff] }
 0x943   : > { %v4160_v47 = vpack.c.bf16 %v4159_v17, %v4158_v43  ;;  %v5158_v43 = vor.u32 %v5345_v54, %v5155_v11  ;;  %v5145_v17 = vld [vmem:[#allocation23] sm:$0xf]  ;;  %v4269_v58 = vperm.slane %v7674_v20, 4  ;;  %v4291_v59 = vperm.slane %v4289_v9, 0 }
 0x945   : > { %4218 = vmatmul.bf16.vlgmr.msra.gmra.mxu2 %v4160_v47  ;;  %v5344_v47 = vld [vmem:[#allocation23 + $0x4] sm:$0xf0] }
 0x946   : > { %4390 = vmatpush.bf16.msra.mxu0 %v5198_v57 }
 0x94a   : > { %4391 = vmatpush.bf16.msra.mxu0 %v5190_v41 }
 0x94e   : > { %4392 = vmatpush.bf16.msra.mxu0 %v5182_v6 }
 0x952   : > { %4393 = vmatpush.bf16.msra.mxu0 %v5174_v5  ;;  %v5360_v5 = vld [vmem:[#allocation24 + $0x8] sm:$0xff] }
 0x956   : > { %4394 = vmatpush.bf16.msra.mxu0 %v5166_v19 }
 0x95a   : > { %4395 = vmatpush.bf16.msra.mxu0 %v5158_v43 }
 0x9c8   : > { %v4219_v27 = vpop.f32.mrf.mxu2 }
 0x9c9   : > { %v4220_v60 = vadd.f32 %v4219_v27, %v4161_v35  ;;  %v5146_v27 = vor.u32 %v5344_v47, %v5145_v17 }
 0x9cb   : > { %v4224_v30 = vadd.f32 %v4220_v60, %v7157_v62  ;;  %v5374_v60 = vld [vmem:[#allocation24 + $0x78] sm:$0xff] }
 0x9cc   : > { %4552 = vmatpush.bf16.msrb.mxu2 %v5374_v60 }
 0x9cd   : > { %4226 = vadd.xlane.f32.xlu1 %v4224_v30 }
 0x9d0   : > { %v4221_v18 = vpop.f32.mrf.mxu2 }
 0x9d1   : > { %v4222_v32 = vadd.f32 %v4221_v18, %v4161_v35  ;;  %v5147_v35 = vld [vmem:[#allocation23 + $0x8] sm:$0xf0] }
 0x9d3   : > { %v4225_v37 = vadd.f32 %v4222_v32, %v7161_v50  ;;  %v5201_v50 = vld [vmem:[#allocation23 + $0x70] sm:$0xf]  ;;  %v5150_v32 = vor.u32 %v5343_v53, %v5147_v35  ;;  %v4441_v35 = vperm.slane %v7674_v20, 0 }
 0x9d4   : > { %v5202_v48 = vor.u32 %v5358_v25, %v5201_v50  ;;  %v5364_v50 = vld [vmem:[#allocation24 + $0x28] sm:$0xff] }
 0x9d5   : > { %4228 = vadd.xlane.f32.xlu0 %v4225_v37  ;;  %4396 = vmatpush.bf16.msra.mxu0 %v5150_v32 }
 0x9d6   : > { %4375 = vmatpush.bf16.msra.mxu3 %v5202_v48  ;;  %v5371_v48 = vld [vmem:[#allocation24 + $0x60] sm:$0xff] }
 0x9da   : > { %4376 = vmatpush.bf16.msra.mxu3 %v5194_v36 }
 0x9de   : > { %4377 = vmatpush.bf16.msra.mxu3 %v5186_v31 }
 0x9e2   : > { %4378 = vmatpush.bf16.msra.mxu3 %v5178_v13 }
 0x9e6   : > { %4379 = vmatpush.bf16.msra.mxu3 %v5170_v28  ;;  %v5368_v28 = vld [vmem:[#allocation24 + $0x48] sm:$0xff] }
 0x9ea   : > { %4380 = vmatpush.bf16.msra.mxu3 %v5162_v8 }
 0x9ee   : > { %4381 = vmatpush.bf16.msra.mxu3 %v5154_v22 }
 0x9f2   : > { %4382 = vmatpush.bf16.msra.mxu3 %v5146_v27 }
 0xa40   : > { %v4227_v26 = vpop.xlane.xlu1 %4226 }
 0xa41   : > { %v4230_v44 = vmul.f32 %v4227_v26, %v7110_v23  ;;  %v5373_v26 = vld [vmem:[#allocation24 + $0x70] sm:$0xff] }
 0xa42   : > { %4553 = vmatpush.bf16.msrb.mxu2 %v5373_v26 }
 0xa43   : > { %v7662_v39 = vsub.f32 %v4224_v30, %v4230_v44  ;;  %v5366_v30 = vld [vmem:[#allocation24 + $0x38] sm:$0xff]  ;;  %v5365_v44 = vld [vmem:[#allocation24 + $0x30] sm:$0xff] }
 0xa44   : > { %4538 = vmatpush.bf16.msrb.mxu1 %v5366_v30 }
 0xa45   : > { %v4234_v56 = vmul.f32 %v7662_v39, %v7662_v39 }
 0xa47   : > { %4236 = vadd.xlane.f32.xlu2 %v4234_v56 }
 0xa48   : > { %v4229_v45 = vpop.xlane.xlu0 %4228  ;;  %4539 = vmatpush.bf16.msrb.mxu1 %v5365_v44 }
 0xa49   : > { %v4231_v61 = vmul.f32 %v4229_v45, %v7110_v23 }
 0xa4b   : > { %v7667_v42 = vsub.f32 %v4225_v37, %v4231_v61 }
 0xa4c   : > { %4540 = vmatpush.bf16.msrb.mxu1 %v5364_v50 }
 0xa4d   : > { %v4235_v62 = vmul.f32 %v7667_v42, %v7667_v42 }
 0xa4f   : > { %4238 = vadd.xlane.f32.xlu1 %v4235_v62  ;;  %v5372_v62 = vld [vmem:[#allocation24 + $0x68] sm:$0xff] }
 0xa50   : > { %4554 = vmatpush.bf16.msrb.mxu2 %v5372_v62  ;;  %4541 = vmatpush.bf16.msrb.mxu1 %v5363_v52 }
 0xa54   : > { %4555 = vmatpush.bf16.msrb.mxu2 %v5371_v48  ;;  %4542 = vmatpush.bf16.msrb.mxu1 %v5362_v3 }
 0xa58   : > { %4543 = vmatpush.bf16.msrb.mxu1 %v5361_v10 }
 0xa5c   : > { %4544 = vmatpush.bf16.msrb.mxu1 %v5360_v5 }
 0xa60   : > { %4545 = vmatpush.bf16.msrb.mxu1 %v5359_v7 }
 0xaba   : > { %v4237_v14 = vpop.xlane.xlu2 %4236 }
 0xabb   : > { %v4240_v34 = vmul.f32 %v4237_v14, %v7110_v23  ;;  %v4292_v14 = vperm.slane %v4289_v9, 1 }
 0xabd   : > { %v4242_v1 = vadd.f32 1e-05, %v4240_v34 }
 0xabf   : > { %5670 = vrsqrt.f32 %v4242_v1  ;;  %vm4250_vm1 = vweird.f32 %v4242_v1 }
 0xac2   : > { %v4239_v18 = vpop.xlane.xlu1 %4238 }
 0xac3   : > { %v4241_v37 = vmul.f32 %v4239_v18, %v7110_v23 }
 0xac5   : > { %v5671_v56 = vpop.eup %5670  ;;  %v4243_v45 = vadd.f32 1e-05, %v4241_v37 }
 0xac6   : > { %v4245_v61 = vmul.f32 %v5671_v56, %v4242_v1  ;;  %vm4251_vm0 = vweird.f32 %v5671_v56 }
 0xac7   : > { %5672 = vrsqrt.f32 %v4243_v45  ;;  %vm4252_vm9 = vmor %vm4250_vm1, %vm4251_vm0  ;;  %vm4260_vm15 = vweird.f32 %v4243_v45 }
 0xac8   : > { %v4246_v25 = vmul.f32 %v5671_v56, %v4245_v61 }
 0xaca   : > { %v4247_v46 = vmul.f32 0.5, %v4246_v25 }
 0xacc   : > { %v4248_v40 = vsub.f32 1.5, %v4247_v46 }
 0xacd   : > { %v5673_v63 = vpop.eup %5672 }
 0xace   : > { %v4249_v29 = vmul.f32 %v5671_v56, %v4248_v40  ;;  %v4255_v4 = vmul.f32 %v5673_v63, %v4243_v45  ;;  %vm4261_vm10 = vweird.f32 %v5673_v63 }
 0xacf   : > { %vm4262_vm4 = vmor %vm4260_vm15, %vm4261_vm10 }
 0xad0   : > { %v4256_v16 = vmul.f32 %v5673_v63, %v4255_v4  ;;  %v4253_v36 = vsel %vm4252_vm9, %v5671_v56, %v4249_v29 }
 0xad1   : > { %v4264_v55 = vmul.f32 %v4253_v36, %v7662_v39  ;;  %v5370_v39 = vld [vmem:[#allocation24 + $0x58] sm:$0xff] }
 0xad2   : > { %v4257_v38 = vmul.f32 0.5, %v4256_v16  ;;  %4556 = vmatpush.bf16.msrb.mxu2 %v5370_v39 }
 0xad3   : > { %v4267_v49 = vmul.f32 %v4266_v21, %v4264_v55 }
 0xad4   : > { %v4258_v57 = vsub.f32 1.5, %v4257_v38 }
 0xad5   : > { %v4270_v13 = vadd.f32 %v4269_v58, %v4267_v49 }
 0xad6   : > { %v4259_v31 = vmul.f32 %v5673_v63, %v4258_v57  ;;  %4557 = vmatpush.bf16.msrb.mxu2 %v5369_v0 }
 0xad8   : > { %v4263_v24 = vsel %vm4262_vm4, %v5673_v63, %v4259_v31 }
 0xad9   : > { %v4265_v41 = vmul.f32 %v4263_v24, %v7667_v42  ;;  %v5367_v42 = vld [vmem:[#allocation24 + $0x40] sm:$0xff] }
 0xada   : > { %4558 = vmatpush.bf16.msrb.mxu2 %v5368_v28 }
 0xadb   : > { %v4268_v12 = vmul.f32 %v4266_v21, %v4265_v41 }
 0xadd   : > { %v4271_v33 = vadd.f32 %v4269_v58, %v4268_v12 }
 0xade   : > { %4559 = vmatpush.bf16.msrb.mxu2 %v5367_v42 }
 0xadf   : > { %v4272_v6 = vpack.c.bf16 %v4271_v33, %v4270_v13 }
 0xae1   : > { %4383 = vmatmul.bf16.vlgmr.msra.gmra.mxu3 %v4272_v6  ;;  %4397 = vmatmul.bf16.vlgmr.msra.gmra.mxu0 %v4272_v6 }
 0xb5e   : > { %v4398_v51 = vpop.f32.mrf.mxu0 }
 0xb5f   : > { %v4399_v15 = vadd.f32 %v4398_v51, %v4292_v14 }
 0xb61   : > { %v4404_v19 = vmax.f32 %v4399_v15, 0.0 }
 0xb64   : > { %v4384_v8 = vpop.f32.mrf.mxu3 }
 0xb65   : > { %v4385_v11 = vadd.f32 %v4384_v8, %v4291_v59 }
 0xb66   : > { %v4400_v2 = vpop.f32.mrf.mxu0 }
 0xb67   : > { %v4401_v34 = vadd.f32 %v4400_v2, %v4292_v14  ;;  %v4403_v17 = vmax.f32 %v4385_v11, 0.0 }
 0xb69   : > { %v4406_v54 = vmax.f32 %v4401_v34, 0.0 }
 0xb6b   : > { %v4408_v1 = vpack.c.bf16 %v4406_v54, %v4404_v19 }
 0xb6c   : > { %v4386_v22 = vpop.f32.mrf.mxu3 }
 0xb6d   : > { %v4387_v43 = vadd.f32 %v4386_v22, %v4291_v59  ;;  %4560 = vmatmul.bf16.vlgmr.msrb.gmra.mxu2 %v4408_v1 }
 0xb6f   : > { %v4405_v47 = vmax.f32 %v4387_v43, 0.0 }
 0xb71   : > { %v4407_v53 = vpack.c.bf16 %v4405_v47, %v4403_v17 }
 0xb73   : > { %4546 = vmatmul.bf16.vlgmr.msrb.gmra.mxu1 %v4407_v53 }
 0xbf0   : > { %v4547_v27 = vpop.f32.mrf.mxu1  ;;  %v4561_v60 = vpop.f32.mrf.mxu2 }
 0xbf1   : > { %v4548_v30 = vadd.f32 %v4547_v27, %v4441_v35 }
 0xbf3   : > { %v4562_v18 = vadd.f32 %v4561_v60, %v4548_v30 }
 0xbf5   : > { %v4566_v32 = vadd.f32 %v4562_v18, %v4270_v13  ;;  %v4608_v13 = vperm.slane %v7674_v20, 5 }
 0xbf7   : > { %4568 = vadd.xlane.f32.xlu0 %v4566_v32 }
 0xbf8   : > { %v4549_v37 = vpop.f32.mrf.mxu1  ;;  %v4563_v44 = vpop.f32.mrf.mxu2 }
 0xbf9   : > { %v4550_v26 = vadd.f32 %v4549_v37, %v4441_v35 }
 0xbfb   : > { %v4564_v56 = vadd.f32 %v4563_v44, %v4550_v26 }
 0xbfd   : > { %v4567_v45 = vadd.f32 %v4564_v56, %v4271_v33 }
 0xbff   : > { %4570 = vadd.xlane.f32.xlu2 %v4567_v45 }
 0xc6a   : > { %v4569_v61 = vpop.xlane.xlu0 %4568 }
 0xc6b   : > { %v4572_v62 = vmul.f32 %v4569_v61, %v7110_v23 }
 0xc6d   : > { %v4574_v50 = vsub.f32 %v4566_v32, %v4572_v62 }
 0xc6f   : > { %v4576_v25 = vmul.f32 %v4574_v50, %v4574_v50 }
 0xc71   : > { %4578 = vadd.xlane.f32.xlu1 %v4576_v25 }
 0xc72   : > { %v4571_v46 = vpop.xlane.xlu2 %4570 }
 0xc73   : > { %v4573_v48 = vmul.f32 %v4571_v46, %v7110_v23 }
 0xc75   : > { %v4575_v40 = vsub.f32 %v4567_v45, %v4573_v48 }
 0xc77   : > { %v4577_v63 = vmul.f32 %v4575_v40, %v4575_v40 }
 0xc79   : > { %4580 = vadd.xlane.f32.xlu0 %v4577_v63 }
 0xce4   : > { %v4579_v29 = vpop.xlane.xlu1 %4578 }
 0xce5   : > { %v4582_v4 = vmul.f32 %v4579_v29, %v7110_v23 }
 0xce7   : > { %v4584_v16 = vadd.f32 1e-05, %v4582_v4 }
 0xce9   : > { %5674 = vrsqrt.f32 %v4584_v16  ;;  %vm4592_vm8 = vweird.f32 %v4584_v16 }
 0xcec   : > { %v4581_v36 = vpop.xlane.xlu0 %4580 }
 0xced   : > { %v4583_v38 = vmul.f32 %v4581_v36, %v7110_v23  ;;  %v4611_v23 = vperm.slane %v7674_v20, 6 }
 0xcef   : > { %v5675_v57 = vpop.eup %5674  ;;  %v4585_v55 = vadd.f32 1e-05, %v4583_v38 }
 0xcf0   : > { %v4587_v21 = vmul.f32 %v5675_v57, %v4584_v16  ;;  %vm4593_vm14 = vweird.f32 %v5675_v57 }
 0xcf1   : > { %5676 = vrsqrt.f32 %v4585_v55  ;;  %vm4594_vm3 = vmor %vm4592_vm8, %vm4593_vm14  ;;  %vm4602_vm2 = vweird.f32 %v4585_v55 }
 0xcf2   : > { %v4588_v31 = vmul.f32 %v5675_v57, %v4587_v21 }
 0xcf4   : > { %v4589_v24 = vmul.f32 0.5, %v4588_v31 }
 0xcf6   : > { %v4590_v41 = vsub.f32 1.5, %v4589_v24 }
 0xcf7   : > { %v5677_v49 = vpop.eup %5676 }
 0xcf8   : > { %v4591_v58 = vmul.f32 %v5675_v57, %v4590_v41  ;;  %v4597_v12 = vmul.f32 %v5677_v49, %v4585_v55  ;;  %vm4603_vm7 = vweird.f32 %v5677_v49 }
 0xcf9   : > { %vm4604_vm6 = vmor %vm4602_vm2, %vm4603_vm7 }
 0xcfa   : > { %v4595_v33 = vsel %vm4594_vm3, %v5675_v57, %v4591_v58  ;;  %v4598_v6 = vmul.f32 %v5677_v49, %v4597_v12 }
 0xcfb   : > { %v4606_v39 = vmul.f32 %v4595_v33, %v4574_v50 }
 0xcfc   : > { %v4599_v52 = vmul.f32 0.5, %v4598_v6 }
 0xcfd   : > { %v4609_v0 = vmul.f32 %v4608_v13, %v4606_v39 }
 0xcfe   : > { %v4600_v3 = vsub.f32 1.5, %v4599_v52 }
 0xcff   : > { %v4612_v28 = vadd.f32 %v4611_v23, %v4609_v0 }
 0xd00   : > { %v4601_v10 = vmul.f32 %v5677_v49, %v4600_v3 }
 0xd01   : > { %4614 = vst [vmem:[%s710_s13] sm:$0xff] %v4612_v28 }
 0xd02   : > { %v4605_v20 = vsel %vm4604_vm6, %v5677_v49, %v4601_v10 }
 0xd03   : > { %v4607_v42 = vmul.f32 %v4605_v20, %v4575_v40 }
 0xd05   : > { %v4610_v5 = vmul.f32 %v4608_v13, %v4607_v42 }
 0xd07   : > { %v4613_v7 = vadd.f32 %v4611_v23, %v4610_v5 }
 0xd09   : > { %4615 = vst [vmem:[%s710_s13 + $0x8] sm:$0xff] %v4613_v7 }
 0xd0a   : > { %6101 = shalt.err (!%p6098_p8)
}
 0xd0b   : > { %s6191_s25 = smov 128   ;;  %s6192_s10 = smov 8  }
 0xd0c   : > { %5444 = dma.vmem_to_hbm [thread:$0]  (%p6421_p0), %s4630_s2, 256, %s4632_s14, %s4617_s20, %s6191_s25, %s6191_s25, %s6192_s10  }
 0xd0d PF: > { %s4646_s3 = sand.u32 1, %s6156_s29   ;;  %p7827_p10 = scmp.ge.s32.totalorder %s6168_s16, 2 }
 0xd0e   : > { %s4647_s23 = scalar_lea.sflag [#allocation8], %s4646_s3 }
 0xd0f   : > { %p5488_p11 = pnand %p7827_p10, %p6429_p6 }
 0xd11   : > { %p5489_p12 = pneg %p5488_p11 }
 0xd13   : > { %6151 = dma.done.wait (%p5489_p12), %s4647_s23, 256  }
 0xd14   : > { %6153 = vsyncadd (%p5489_p12), %s4647_s23, 4294967040  ;;  %p35_p2 = scmp.ge.s32.totalorder %s6397_s28, 4   ;;  %s7828_s29 = smov %s6160_s30 }
 0xd15   : > { %s7829_s30 = smov %s6164_s15  ;;  %s7830_s15 = smov %s6409_s24 }
 0xd16   : > { %s7831_s16 = smov %s6397_s28  ;;  %37 = sbr.rel (!%p35_p2) target bundleno = 26 (0x1a), region = 178 }
 0xd1b   :  { %4653 = vsyncpa [#allocation7], 1 }
 0xd1c   :  { %4655 = vsyncpa [#allocation7 + $0x1], 1 }
 0xd1d   :  { %4656 = vsyncpa [#allocation10], 1 }
 0xd1e   :  { %4658 = vsyncpa [#allocation10 + $0x1], 1 }
 0xd1f   :  { %4659 = vsyncpa [#allocation13], 1 }
 0xd20   :  { %4660 = vsyncpa [#allocation16], 1 }
 0xd21   :  { %4661 = vsyncpa [#allocation19], 1 }
 0xd22   :  { %4662 = vsyncpa [#allocation22], 1 }
 0xd23   :  { %4663 = vsyncpa [#allocation25], 1 }
 0xd24   :  { %4664 = vsyncpa [#allocation8], 1 }
 0xd25   :  { %4666 = vsyncpa [#allocation8 + $0x1], 1 }

// kernel: tpu_custom_call.1
= control target key start
LH: loop header
LB: loop body
LE: loop exit
PB: predicated region body
PF: predicated region fallthrough
CT: control target
= control target key end

     0   :  { %s7724_s0 = inlined_call_operand.hbm [shape: f32[2,16,128], index: 0, kind: input, shape index: {}]   ;;  %s7725_s1 = inlined_call_operand.hbm [shape: bf16[2,16,128], index: 1, kind: input, shape index: {}]   ;;  %s7726_s2 = inlined_call_operand.hbm [shape: bf16[128,128], index: 2, kind: input, shape index: {}]   ;;  %s7727_s3 = inlined_call_operand.hbm [shape: bf16[128,128], index: 3, kind: input, shape index: {}]   ;;  %s7728_s4 = inlined_call_operand.hbm [shape: bf16[128,128], index: 4, kind: input, shape index: {}]   ;;  %s7729_s5 = inlined_call_operand.hbm [shape: bf16[128,128], index: 5, kind: input, shape index: {}]   ;;  %s7730_s6 = inlined_call_operand.hbm [shape: bf16[128,128], index: 6, kind: input, shape index: {}]   ;;  %s7731_s7 = inlined_call_operand.hbm [shape: bf16[128,128], index: 7, kind: input, shape index: {}]   ;;  %s7732_s8 = inlined_call_operand.hbm [shape: bf16[128,128], index: 8, kind: input, shape index: {}]   ;;  %s7733_s9 = inlined_call_operand.hbm [shape: bf16[128,128], index: 9, kind: input, shape index: {}]   ;;  %s7734_s10 = inlined_call_operand.hbm [shape: bf16[128,256], index: 10, kind: input, shape index: {}]   ;;  %s7735_s11 = inlined_call_operand.hbm [shape: bf16[256,128], index: 11, kind: input, shape index: {}]   ;;  %s7736_s12 = inlined_call_operand.vmem [shape: f32[1,256], index: 12, kind: input, shape index: {}]   ;;  %s7737_s13 = inlined_call_operand.hbm [shape: f32[16,128], index: 13, kind: input, shape index: {}]   ;;  %s7738_s14 = inlined_call_operand.hbm [shape: f32[2,16,128], index: 14, kind: output, shape index: {}]  }
   0x1   :  { %7744 = sst [smem:[#allocation37_spill]] %s7726_s2 }
   0x2   :  { %7745 = sst [smem:[#allocation38_spill]] %s7727_s3 }
   0x3   :  { %7746 = sst [smem:[#allocation39_spill]] %s7728_s4 }
   0x4   :  { %7747 = sst [smem:[#allocation40_spill]] %s7729_s5 }
   0x5   :  { %7748 = sst [smem:[#allocation41_spill]] %s7730_s6 }
   0x6   :  { %7749 = sst [smem:[#allocation42_spill]] %s7731_s7 }
   0x7   :  { %7750 = sst [smem:[#allocation43_spill]] %s7732_s8 }
   0x8   :  { %7751 = sst [smem:[#allocation44_spill]] %s7733_s9 }
   0x9   :  { %7752 = sst [smem:[#allocation45_spill]] %s7734_s10 }
   0xa   :  { %7753 = sst [smem:[#allocation46_spill]] %s7735_s11 }
   0xb   :  { %7754 = sst [smem:[#allocation47_spill]] %s7736_s12 }
   0xc   :  { %7755 = sst [smem:[#allocation48_spill]] %s7737_s13 }
   0xd   :  { %7756 = sst [smem:[#allocation49_spill]] %s7738_s14 }
   0xe   :  { %19 = vsyncpa [#allocation7], 0 }
   0xf   :  { %21 = vsyncpa [#allocation7 + $0x1], 0 }
  0x10   :  { %22 = vsyncpa [#allocation10], 0 }
  0x11   :  { %24 = vsyncpa [#allocation10 + $0x1], 0 }
  0x12   :  { %25 = vsyncpa [#allocation13], 0 }
  0x13   :  { %26 = vsyncpa [#allocation16], 0 }
  0x14   :  { %27 = vsyncpa [#allocation19], 0 }
  0x15   :  { %28 = vsyncpa [#allocation22], 0 }
  0x16   :  { %29 = vsyncpa [#allocation25], 0 }
  0x17   :  { %30 = vsyncpa [#allocation8], 0 }
  0x18   :  { %32 = vsyncpa [#allocation8 + $0x1], 0  ;;  %s6268_s29 = smov 0   ;;  %s6270_s30 = smov 0  }
  0x19   :  { %s6272_s15 = smov 0   ;;  %s6274_s16 = smov 0  }
  0x1a LB: > { %s7757_s2 = sld [smem:[#allocation37_spill]]  ;;  %s6292_s20 = sadd.s32 4294967295, %s6168_s16   ;;  %s6168_s16 = sphi %s6274_s16, %s7831_s16   ;;  %s6164_s15 = sphi %s6272_s15, %s7830_s15   ;;  %s6160_s30 = sphi %s6270_s30, %s7829_s30   ;;  %s6156_s29 = sphi %s6268_s29, %s7828_s29  }
  0x1b   : > { %p4833_p0 = scmp.ge.s32.totalorder %s6168_s16, 1  ;;  %p59_p1 = scmp.eq.s32.totalorder %s6292_s20, 0 }
  0x1c   : > { %p373_p2 = scmp.lt.s32.totalorder %s6168_s16, 3  ;;  %s6170_s22 = smov [#allocation11]  }
  0x1d   : > { %s386_s23 = sshll.u32 %s6170_s22, 4  ;;  %s7759_s3 = sld [smem:[#allocation38_spill]]  ;;  %s387_s23 = int_to_ptr.vmem [resolvable:$true] %s386_s23 }
  0x1e   : > { %p6297_p3 = pnand %p4833_p0, %p373_p2  ;;  %s7761_s5 = sld [smem:[#allocation40_spill]] }
  0x1f   : > { %s6171_s22 = smov [#allocation12]   ;;  %s7740_s14 = smov 64  }
  0x20   : > { %s384_s19 = sshll.u32 %s7757_s2, 4  ;;  %p5446_p4 = pneg %p6297_p3  ;;  %s385_s19 = int_to_ptr.hbm [resolvable:$true] %s384_s19 }
  0x21   : > { %s400_s2 = sshll.u32 %s6171_s22, 4  ;;  %s7741_s12 = smov 4   ;;  %s401_s2 = int_to_ptr.vmem [resolvable:$true] %s400_s2 }
  0x22   : > { %p6309_p6 = pnand %p5446_p4, %p59_p1  ;;  %s7762_s7 = sld [smem:[#allocation42_spill]] }
  0x23   : > { %s398_s26 = sshll.u32 %s7759_s3, 4  ;;  %s6174_s17 = smov [#allocation15]   ;;  %s399_s26 = int_to_ptr.hbm [resolvable:$true] %s398_s26 }
  0x24   : > { %s426_s18 = sshll.u32 %s7761_s5, 4  ;;  %s428_s22 = sshll.u32 %s6174_s17, 4  ;;  %s427_s18 = int_to_ptr.hbm [resolvable:$true] %s426_s18  ;;  %s429_s22 = int_to_ptr.vmem [resolvable:$true] %s428_s22 }
  0x25   : > { %5449 = dma.hbm_to_vmem [thread:$0]  (!%p6309_p6), %s385_s19, 1024, %s387_s23, [#allocation10], %s7740_s14, %s7740_s14, %s7741_s12  }
  0x26   : > { %5452 = dma.hbm_to_vmem [thread:$0]  (!%p6309_p6), %s399_s26, 1024, %s401_s2, [#allocation13], %s7740_s14, %s7740_s14, %s7741_s12  }
  0x27   : > { %5458 = dma.hbm_to_vmem [thread:$0]  (!%p6309_p6), %s427_s18, 1024, %s429_s22, [#allocation16], %s7740_s14, %s7740_s14, %s7741_s12  }
  0x28   : > { %s454_s28 = sshll.u32 %s7762_s7, 4  ;;  %s6175_s19 = smov [#allocation18]   ;;  %s455_s28 = int_to_ptr.hbm [resolvable:$true] %s454_s28 }
  0x29   : > { %s456_s23 = sshll.u32 %s6175_s19, 4  ;;  %s7763_s9 = sld [smem:[#allocation44_spill]]  ;;  %s457_s23 = int_to_ptr.vmem [resolvable:$true] %s456_s23 }
  0x2a   : > { %5464 = dma.hbm_to_vmem [thread:$0]  (!%p6309_p6), %s455_s28, 1024, %s457_s23, [#allocation19], %s7740_s14, %s7740_s14, %s7741_s12  }
  0x2b   : > { %s7764_s11 = sld [smem:[#allocation46_spill]]  ;;  %s6176_s17 = smov [#allocation21]  }
  0x2c   : > { %s484_s18 = sshll.u32 %s6176_s17, 4  ;;  %s6177_s3 = smov [#allocation24]   ;;  %s485_s18 = int_to_ptr.vmem [resolvable:$true] %s484_s18 }
  0x2d   : > { %s512_s5 = sshll.u32 %s6177_s3, 4  ;;  %s7765_s4 = sld [smem:[#allocation39_spill]]  ;;  %s513_s5 = int_to_ptr.vmem [resolvable:$true] %s512_s5 }
  0x2e   : > { %s7766_s6 = sld [smem:[#allocation41_spill]]  ;;  %s6178_s17 = smov [#allocation14]  }
  0x2f   : > { %s482_s2 = sshll.u32 %s7763_s9, 4  ;;  %s7767_s8 = sld [smem:[#allocation43_spill]]  ;;  %s483_s2 = int_to_ptr.hbm [resolvable:$true] %s482_s2 }
  0x30   : > { %5470 = dma.hbm_to_vmem [thread:$0]  (!%p6309_p6), %s483_s2, 1024, %s485_s18, [#allocation22], %s7740_s14, %s7740_s14, %s7741_s12  }
  0x31   : > { %s510_s25 = sshll.u32 %s7764_s11, 4  ;;  %s414_s2 = sshll.u32 %s6178_s17, 4  ;;  %s511_s25 = int_to_ptr.hbm [resolvable:$true] %s510_s25  ;;  %s415_s2 = int_to_ptr.vmem [resolvable:$true] %s414_s2 }
  0x32   : > { %5476 = dma.hbm_to_vmem [thread:$0]  (!%p6309_p6), %s511_s25, 2048, %s513_s5, [#allocation25], %s7740_s14, %s7740_s14, %s7741_s12  }
  0x33   : > { %s412_s28 = sshll.u32 %s7765_s4, 4  ;;  %s6179_s18 = smov [#allocation17]   ;;  %s413_s28 = int_to_ptr.hbm [resolvable:$true] %s412_s28 }
  0x34   : > { %s440_s24 = sshll.u32 %s7766_s6, 4  ;;  %s442_s3 = sshll.u32 %s6179_s18, 4  ;;  %s441_s24 = int_to_ptr.hbm [resolvable:$true] %s440_s24  ;;  %s443_s3 = int_to_ptr.vmem [resolvable:$true] %s442_s3 }
  0x35   : > { %5455 = dma.hbm_to_vmem [thread:$0]  (!%p6309_p6), %s413_s28, 1024, %s415_s2, [#allocation13], %s7740_s14, %s7740_s14, %s7741_s12  }
  0x36   : > { %s468_s25 = sshll.u32 %s7767_s8, 4  ;;  %s7768_s10 = sld [smem:[#allocation45_spill]]  ;;  %s469_s25 = int_to_ptr.hbm [resolvable:$true] %s468_s25 }
  0x37   : > { %5461 = dma.hbm_to_vmem [thread:$0]  (!%p6309_p6), %s441_s24, 1024, %s443_s3, [#allocation16], %s7740_s14, %s7740_s14, %s7741_s12  }
  0x38   : > { %s6180_s17 = smov [#allocation20]   ;;  %s6181_s2 = smov [#allocation23]  }
  0x39   : > { %s470_s28 = sshll.u32 %s6180_s17, 4  ;;  %s498_s24 = sshll.u32 %s6181_s2, 4  ;;  %s471_s28 = int_to_ptr.vmem [resolvable:$true] %s470_s28  ;;  %s499_s24 = int_to_ptr.vmem [resolvable:$true] %s498_s24 }
  0x3a   : > { %5467 = dma.hbm_to_vmem [thread:$0]  (!%p6309_p6), %s469_s25, 1024, %s471_s28, [#allocation19], %s7740_s14, %s7740_s14, %s7741_s12  }
  0x3b   : > { %s7742_s18 = smov 128   ;;  %s7743_s3 = smov 8  }
  0x3c   : > { %s496_s26 = sshll.u32 %s7768_s10, 4  ;;  %s7769_s13 = sld [smem:[#allocation48_spill]]  ;;  %s497_s26 = int_to_ptr.hbm [resolvable:$true] %s496_s26 }
  0x3d   : > { %5473 = dma.hbm_to_vmem [thread:$0]  (!%p6309_p6), %s497_s26, 2048, %s499_s24, [#allocation22], %s7742_s18, %s7742_s18, %s7743_s3  }
  0x3e   : > { %s6184_s5 = smov [#allocation26]   ;;  %s4832_s17 = sadd.s32 4294967294, %s6168_s16  }
  0x3f   : > { %s529_s23 = sshll.u32 %s6184_s5, 4  ;;  %s6397_s28 = sadd.s32 1, %s6168_s16   ;;  %s530_s23 = int_to_ptr.vmem [resolvable:$true] %s529_s23 }
  0x40   : > { %s45_s26 = sadd.s32 1, %s6164_s15  ;;  %s42_s2 = ssub.s32 %s6168_s16, %s6397_s28 }
  0x41   : > { %p52_p7 = scmp.ne.s32.totalorder %s6164_s15, %s6160_s30  ;;  %p43_p8 = scmp.eq.s32.totalorder %s42_s2, 0 }
  0x42   : > { %s527_s25 = sshll.u32 %s7769_s13, 4  ;;  %p53_p9 = scmp.eq.s32.totalorder %s6168_s16, 0  ;;  %s528_s25 = int_to_ptr.hbm [resolvable:$true] %s527_s25 }
  0x43   : > { %5479 = dma.hbm_to_vmem [thread:$0]  (!%p6309_p6), %s528_s25, 256, %s530_s23, [#allocation25], %s7742_s18, %s7742_s18, %s7743_s3  }
  0x44   : > { %p58_p10 = scmp.ne.s32.totalorder %s6160_s30, %s6156_s29  ;;  %p360_p11 = scmp.eq.s32.totalorder %s6292_s20, 1 }
  0x45   : > { %s6409_s24 = scalar_select %p43_p8, %s6164_s15, %s45_s26  }
  0x46   : > { %p6411_p12 = por %p53_p9, %p52_p7  ;;  %p6417_p13 = por %p59_p1, %p58_p10 }
  0x47   : > { %p6421_p0 = por %p360_p11, %p52_p7  ;;  %p366_p2 = scmp.eq.s32.totalorder %s4832_s17, 1 }
  0x48   : > { %p5502_p4 = scmp.lt.s32.totalorder %s6168_s16, 2  ;;  %s6427_s25 = sand.u32 1, %s6164_s15  }
  0x49   : > { %p6429_p6 = por %p366_p2, %p58_p10  ;;  %s4846_s23 = sshll.u32 %s6427_s25, 4 }
  0x4a   : > { %s5276_s26 = sshll.u32 %s6168_s16, 4  ;;  %s547_s3 = scalar_lea.vmem [#allocation6], %s4846_s23 }
  0x4b   : > { %s552_s12 = scalar_lea.hbm %s7724_s0, %s5276_s26  ;;  %s555_s4 = sshll.u32 %s547_s3, 4  ;;  %s556_s4 = int_to_ptr.vmem [resolvable:$true] %s555_s4 }
  0x4c   : > { %s553_s18 = sshll.u32 %s552_s12, 4  ;;  %p6440_p7 = pnand %p5502_p4, %p6411_p12  ;;  %s554_s18 = int_to_ptr.hbm [resolvable:$true] %s553_s18 }
  0x4d   : > { %s565_s6 = sand.u32 1, %s6168_s16   ;;  %s4849_s7 = sshll.u32 %s6427_s25, 3 }
  0x4e   : > { %s544_s8 = scalar_lea.sflag [#allocation7], %s6427_s25  ;;  %s6014_s9 = sshra.s32 %s554_s18, 4  ;;  %s6015_s9 = int_to_ptr.hbm [resolvable:$true] %s6014_s9 }
  0x4f   : > { %s6016_s10 = scalar_lea.hbm %s6015_s9, 16  ;;  %p6018_p9 = pneg %p6440_p7 }
  0x50   : > { %p6017_p8 = scmp.ne.s32.totalorder %s6015_s9, %s6016_s10  ;;  %s6021_s3 = scalar_lea.hbm %s7724_s0, 32 }
  0x51   : > { %p6022_p12 = scmp.lt.s32.totalorder %s6015_s9, %s7724_s0  ;;  %p6023_p2 = scmp.lt.s32.totalorder %s6021_s3, %s6016_s10 }
  0x52   : > { %p6019_p10 = pnand %p6018_p9, %p6017_p8 }
  0x53   : > { %p6024_p4 = por %p6023_p2, %p6022_p12 }
  0x54   : > { %p6020_p11 = pneg %p6019_p10 }
  0x56   : > { %p6025_p5 = pnand %p6024_p4, %p6020_p11 }
  0x58   : > { %6028 = shalt.err (!%p6025_p5)
}
  0x59   : > { %s7775_s25 = smov 8   ;;  %s7776_s26 = smov 128  }
  0x5a   : > { %5483 = dma.hbm_to_vmem [thread:$0]  (!%p6440_p7), %s554_s18, 256, %s556_s4, %s544_s8, %s7776_s26, %s7776_s26, %s7775_s25  }
  0x5b   : > { %s5277_s2 = sshll.u32 %s6168_s16, 3  ;;  %s569_s11 = scalar_lea.vmem [#allocation9], %s4849_s7 }
  0x5c   : > { %s577_s12 = sshll.u32 %s569_s11, 4  ;;  %s574_s27 = scalar_lea.hbm %s7725_s1, %s5277_s2  ;;  %s578_s12 = int_to_ptr.vmem [resolvable:$true] %s577_s12 }
  0x5d   : > { %s575_s9 = sshll.u32 %s574_s27, 4  ;;  %s566_s10 = scalar_lea.sflag [#allocation10], %s565_s6  ;;  %s576_s9 = int_to_ptr.hbm [resolvable:$true] %s575_s9 }
  0x5e   : > { %s6044_s3 = sshra.s32 %s576_s9, 4  ;;  %s6051_s7 = scalar_lea.hbm %s7725_s1, 16  ;;  %s6045_s3 = int_to_ptr.hbm [resolvable:$true] %s6044_s3 }
  0x5f   : > { %s6046_s23 = scalar_lea.hbm %s6045_s3, 8  ;;  %p6052_p11 = scmp.lt.s32.totalorder %s6045_s3, %s7725_s1 }
  0x60   : > { %p6047_p5 = scmp.ne.s32.totalorder %s6045_s3, %s6046_s23  ;;  %p6053_p12 = scmp.lt.s32.totalorder %s6051_s7, %s6046_s23 }
  0x62   : > { %p6049_p8 = pnand %p6047_p5, %p6018_p9  ;;  %p6054_p2 = por %p6053_p12, %p6052_p11 }
  0x64   : > { %p6050_p10 = pneg %p6049_p8 }
  0x66   : > { %p6055_p4 = pnand %p6054_p2, %p6050_p10 }
  0x68   : > { %6058 = shalt.err (!%p6055_p4)
}
  0x69   : > { %s7777_s6 = smov 4   ;;  %s7778_s13 = smov 64  }
  0x6a   : > { %5486 = dma.hbm_to_vmem [thread:$0]  (!%p6440_p7), %s576_s9, 128, %s578_s12, %s566_s10, %s7778_s13, %s7778_s13, %s7777_s6  }
  0x6b   : > { %589 = sbr.rel (%p6297_p3) target bundleno = 3341 (0xd0d), region = 76  ;;  %s6484_s25 = sand.u32 (!%p6297_p3), 1, %s6160_s30  }
  0x6c   : > { %s4853_s26 = sshll.u32 (!%p6297_p3), %s6484_s25, 4  ;;  %s592_s2 = scalar_lea.sflag (!%p6297_p3), [#allocation7], %s6484_s25 }
  0x6d   : > { %s6490_s14 = scalar_lea.vmem (!%p6297_p3), [#allocation6], %s4853_s26 }
  0x70   : > { %6119 = dma.done.wait (%p6417_p13), %s592_s2, 256  }
  0x71   : > { %6121 = vsyncadd (%p6417_p13), %s592_s2, 4294967040  ;;  %s601_s21 = sand.u32 1, %s6292_s20   ;;  %s4854_s17 = sshll.u32 %s6484_s25, 3 }
  0x72   : > { %s602_s12 = scalar_lea.sflag [#allocation10], %s601_s21  ;;  %s6498_s27 = scalar_lea.vmem [#allocation9], %s4854_s17 }
  0x73   : > { %6123 = dma.done.wait (%p6417_p13), %s602_s12, 128  }
  0x74   : > { %6125 = vsyncadd (%p6417_p13), %s602_s12, 4294967168 }
  0x75   : > { %6127 = dma.done.wait (%p59_p1), [#allocation10], 1024  }
  0x76   : > { %6129 = vsyncadd (%p59_p1), [#allocation10], 4294966272 }
  0x77   : > { %6131 = dma.done.wait (%p59_p1), [#allocation13], 2048  }
  0x78   : > { %6133 = vsyncadd (%p59_p1), [#allocation13], 4294965248 }
  0x79   : > { %6135 = dma.done.wait (%p59_p1), [#allocation16], 2048  }
  0x7a   : > { %6137 = vsyncadd (%p59_p1), [#allocation16], 4294965248 }
  0x7b   : > { %6139 = dma.done.wait (%p59_p1), [#allocation19], 2048  }
  0x7c   : > { %6141 = vsyncadd (%p59_p1), [#allocation19], 4294965248 }
  0x7d   : > { %6143 = dma.done.wait (%p59_p1), [#allocation22], 3072  }
  0x7e   : > { %6145 = vsyncadd (%p59_p1), [#allocation22], 4294964224 }
  0x7f   : > { %6147 = dma.done.wait (%p59_p1), [#allocation25], 2304  }
  0x80   : > { %6149 = vsyncadd (%p59_p1), [#allocation25], 4294964992  ;;  %v5286_v0 = vld [vmem:[#allocation12 + $0x38] sm:$0xff]  ;;  %v5285_v1 = vld [vmem:[#allocation12 + $0x30] sm:$0xff]  ;;  %s6185_s22 = smov 32   ;;  %s6186_s9 = smov 64  }
  0x81   : > { %784 = vmatpush.bf16.msra.mxu0 %v5286_v0  ;;  %v5284_v2 = vld [vmem:[#allocation12 + $0x28] sm:$0xff]  ;;  %v5283_v3 = vld [vmem:[#allocation12 + $0x20] sm:$0xff]  ;;  %v5282_v4 = vld [vmem:[#allocation12 + $0x18] sm:$0xff]  ;;  %s6187_s10 = smov 96   ;;  %v6188_v59 = vmov 1983009808  }
  0x82   : > { %v5281_v5 = vld [vmem:[#allocation12 + $0x10] sm:$0xff]  ;;  %v5280_v6 = vld [vmem:[#allocation12 + $0x8] sm:$0xff]  ;;  %v5279_v7 = vld [vmem:[#allocation12] sm:$0xff]  ;;  %v1203_v60 = vunpack.c.l.s4 %v6188_v59  ;;  %vm1212_vm0 = vcmask 1047556   ;;  %vm1896_vm1 = vcmask 261120   ;;  %vm1995_vm2 = vcmask 130048  }
  0x83   : > { %v714_v8 = vld [vmem:[%s6490_s14] sm:$0xff]  ;;  %v715_v9 = vld [vmem:[%s6490_s14 + $0x8] sm:$0xff]  ;;  %s7825_s4 = sld [smem:[#allocation47_spill]]  ;;  %s5375_s8 = sshll.u32 %s6292_s20, 4 }
  0x84   : > { %v5318_v10 = vld [vmem:[#allocation11 + $0x38] sm:$0xff]  ;;  %v716_v11 = vpack.c.bf16 %v715_v9, %v714_v8  ;;  %v5317_v13 = vld [vmem:[#allocation11 + $0x30] sm:$0xff]  ;;  %v5316_v15 = vld [vmem:[#allocation11 + $0x28] sm:$0xff]  ;;  %v6578_v63 = vunpack.c.0.s8 %v1203_v60  ;;  %s7826_s18 = sld [smem:[#allocation49_spill]]  ;;  %s710_s13 = scalar_lea.vmem [#allocation27], %s4853_s26 }
  0x85   : > { %785 = vmatpush.bf16.msra.mxu0 %v5285_v1  ;;  %v5294_v12 = vld [vmem:[#allocation14 + $0x38] sm:$0xff]  ;;  %v5293_v14 = vld [vmem:[#allocation14 + $0x30] sm:$0xff]  ;;  %v5292_v16 = vld [vmem:[#allocation14 + $0x28] sm:$0xff]  ;;  %v6189_v1 = vmov 1934713408   ;;  %s4629_s2 = sshll.u32 %s710_s13, 4  ;;  %s4630_s2 = int_to_ptr.vmem [resolvable:$true] %s4629_s2 }
  0x86   : > { %867 = vmatpush.bf16.msra.mxu1 %v5294_v12  ;;  %v5315_v17 = vld [vmem:[#allocation11 + $0x20] sm:$0xff]  ;;  %v5314_v19 = vld [vmem:[#allocation11 + $0x18] sm:$0xff]  ;;  %v5313_v21 = vld [vmem:[#allocation11 + $0x10] sm:$0xff]  ;;  %s4617_s20 = scalar_lea.sflag [#allocation8], %s6484_s25 }
  0x87   : > { %v5291_v18 = vld [vmem:[#allocation14 + $0x20] sm:$0xff]  ;;  %v5290_v20 = vld [vmem:[#allocation14 + $0x18] sm:$0xff]  ;;  %v5289_v22 = vld [vmem:[#allocation14 + $0x10] sm:$0xff] }
  0x88   : > { %v5312_v23 = vld [vmem:[#allocation11 + $0x8] sm:$0xff]  ;;  %v5311_v25 = vld [vmem:[#allocation11] sm:$0xff]  ;;  %v5310_v51 = vld [vmem:[#allocation20 + $0x38] sm:$0xff] }
  0x89   : > { %786 = vmatpush.bf16.msra.mxu0 %v5284_v2  ;;  %v5288_v24 = vld [vmem:[#allocation14 + $0x8] sm:$0xff]  ;;  %v5287_v26 = vld [vmem:[#allocation14] sm:$0xff]  ;;  %1039 = vmatpush.bf16.msra.mxu3 %v5310_v51  ;;  %v5309_v54 = vld [vmem:[#allocation20 + $0x30] sm:$0xff]  ;;  %v1217_v2 = vunpack.c.l.s4 %v6189_v1 }
  0x8a   : > { %868 = vmatpush.bf16.msra.mxu1 %v5293_v14  ;;  %v712_v27 = vld [vmem:[#allocation26] sm:$0xff]  ;;  %v5308_v55 = vld [vmem:[#allocation20 + $0x28] sm:$0xff]  ;;  %v5306_v58 = vld [vmem:[#allocation20 + $0x18] sm:$0xff]  ;;  %s4628_s6 = scalar_lea.hbm %s7826_s18, %s5375_s8 }
  0x8b   : > { %v735_v29 = vperm.slane %v712_v27, 1  ;;  %v1096_v35 = vperm.slane %v712_v27, 0  ;;  %v818_v46 = vperm.slane %v712_v27, 2  ;;  %v5307_v57 = vld [vmem:[#allocation20 + $0x20] sm:$0xff]  ;;  %v5305_v61 = vld [vmem:[#allocation20 + $0x10] sm:$0xff] }
  0x8d   : > { %787 = vmatpush.bf16.msra.mxu0 %v5283_v3  ;;  %1040 = vmatpush.bf16.msra.mxu3 %v5309_v54 }
  0x8e   : > { %869 = vmatpush.bf16.msra.mxu1 %v5292_v16 }
  0x91   : > { %788 = vmatpush.bf16.msra.mxu0 %v5282_v4  ;;  %1041 = vmatpush.bf16.msra.mxu3 %v5308_v55 }
  0x92   : > { %870 = vmatpush.bf16.msra.mxu1 %v5291_v18 }
  0x95   : > { %789 = vmatpush.bf16.msra.mxu0 %v5281_v5  ;;  %1042 = vmatpush.bf16.msra.mxu3 %v5307_v57 }
  0x96   : > { %871 = vmatpush.bf16.msra.mxu1 %v5290_v20  ;;  %v5303_v20 = vld [vmem:[#allocation20] sm:$0xff] }
  0x99   : > { %790 = vmatpush.bf16.msra.mxu0 %v5280_v6  ;;  %1043 = vmatpush.bf16.msra.mxu3 %v5306_v58 }
  0x9a   : > { %872 = vmatpush.bf16.msra.mxu1 %v5289_v22 }
  0x9d   : > { %791 = vmatpush.bf16.msra.mxu0 %v5279_v7  ;;  %1044 = vmatpush.bf16.msra.mxu3 %v5305_v61  ;;  %v5304_v7 = vld [vmem:[#allocation20 + $0x8] sm:$0xff] }
  0x9e   : > { %873 = vmatpush.bf16.msra.mxu1 %v5288_v24 }
  0xa0   : > { %792 = vmatmul.bf16.vlgmr.msra.gmra.mxu0 %v716_v11 }
  0xa1   : > { %1145 = vmatpush.bf16.msrb.mxu0 %v5318_v10  ;;  %1045 = vmatpush.bf16.msra.mxu3 %v5304_v7 }
  0xa2   : > { %874 = vmatpush.bf16.msra.mxu1 %v5287_v26 }
  0xa5   : > { %1146 = vmatpush.bf16.msrb.mxu0 %v5317_v13  ;;  %875 = vmatmul.bf16.vlgmr.msra.gmra.mxu1 %v716_v11  ;;  %v6583_v13 = vunpack.c.0.s8 %v1217_v2 }
  0xa6   : > { %1046 = vmatpush.bf16.msra.mxu3 %v5303_v20 }
  0xa9   : > { %1147 = vmatpush.bf16.msrb.mxu0 %v5316_v15 }
  0xad   : > { %1148 = vmatpush.bf16.msrb.mxu0 %v5315_v17 }
  0xb1   : > { %1149 = vmatpush.bf16.msrb.mxu0 %v5314_v19 }
  0xb5   : > { %1150 = vmatpush.bf16.msrb.mxu0 %v5313_v21 }
  0xb9   : > { %1151 = vmatpush.bf16.msrb.mxu0 %v5312_v23 }
  0xbd   : > { %1152 = vmatpush.bf16.msrb.mxu0 %v5311_v25 }
  0xc0   : > { %1153 = vmatmul.bf16.vlgmr.msrb.gmra.mxu0 %v716_v11 }
 0x11d   : > { %v793_v28 = vpop.f32.mrf.mxu0 }
 0x11e   : > { %v794_v30 = vadd.f32 %v793_v28, %v735_v29 }
 0x122   : > { %v876_v45 = vpop.f32.mrf.mxu1 }
 0x123   : > { %v877_v47 = vadd.f32 %v876_v45, %v818_v46 }
 0x125   : > { %v795_v31 = vpop.f32.mrf.mxu0 }
 0x126   : > { %v796_v32 = vadd.f32 %v795_v31, %v735_v29 }
 0x128   : > { %v5379_v33 = vpack.c.bf16 %v796_v32, %v794_v30 }
 0x12a   : > { %5380 = vst [vmem:[#allocation2] sm:$0xff] %v5379_v33   ;;  %v878_v48 = vpop.f32.mrf.mxu1 }
 0x12b   : > { %v879_v49 = vadd.f32 %v878_v48, %v818_v46 }
 0x12d   : > { %v5384_v50 = vpack.c.bf16 %v879_v49, %v877_v47 }
 0x12f   : > { %5385 = vst [vmem:[#allocation3] sm:$0xff] %v5384_v50  }
 0x131   : > { %v6530_v34 = vld [vmem:[#allocation2] sm:$0xf]  ;;  %v6538_v36 = vld [vmem:[#allocation2 + $0x4] sm:$0xf] }
 0x132   : > { %1416 = vrot.lane.b32.xlu2 %v6530_v34, %s6185_s22  ;;  %1412 = vrot.lane.b32.xlu1 %v6530_v34, %s6186_s9  ;;  %v1423_v9 = vshrl.u32 %v6530_v34, 16  ;;  %v1435_v23 = vshrl.u32 %v6538_v36, 16 }
 0x133   : > { %1408 = vrot.lane.b32.xlu0 %v6530_v34, %s6187_s10 }
 0x136   : > { %v6562_v52 = vld [vmem:[#allocation3 + $0x4] sm:$0xf]  ;;  %v6564_v53 = vld [vmem:[#allocation3] sm:$0xf] }
 0x13a   : > { %1418 = vrot.lane.b32.xlu2 %v6538_v36, %s6185_s22  ;;  %1414 = vrot.lane.b32.xlu1 %v6538_v36, %s6186_s9 }
 0x13b   : > { %1410 = vrot.lane.b32.xlu0 %v6538_v36, %s6187_s10 }
 0x13d   : > { %v1154_v37 = vpop.f32.mrf.mxu0 }
 0x13e   : > { %v1155_v38 = vadd.f32 %v1154_v37, %v1096_v35 }
 0x140   : > { %v1159_v39 = vmul.f32 0.17677669, %v1155_v38 }
 0x142   : > { %v6546_v40 = vpack.c.bf16 %v1159_v39, %v1159_v39 }
 0x144   : > { %1169 = vrot.lane.b32.xlu2 %v6546_v40, %s6186_s9  ;;  %1165 = vrot.lane.b32.xlu0 %v6546_v40, %s6187_s10  ;;  %v1180_v49 = vshrl.u32 %v6546_v40, 16 }
 0x145   : > { %v1156_v41 = vpop.f32.mrf.mxu0 }
 0x146   : > { %v1157_v42 = vadd.f32 %v1156_v41, %v1096_v35  ;;  %v6597_v35 = vld [vmem:[%s6498_s27] sm:$0xff]  ;;  %s6094_s27 = scalar_lea.hbm %s7826_s18, 32 }
 0x147   : > { %1047 = vmatmul.bf16.vlgmr.msra.gmra.mxu3 %v6597_v35 }
 0x148   : > { %v1160_v43 = vmul.f32 0.17677669, %v1157_v42 }
 0x14a   : > { %v6552_v44 = vpack.c.bf16 %v1160_v43, %v1160_v43 }
 0x14c   : > { %1167 = vrot.lane.b32.xlu1 %v6552_v44, %s6187_s10  ;;  %1175 = vrot.lane.b32.xlu2 %v6552_v44, %s6185_s22  ;;  %v1192_v50 = vshrl.u32 %v6552_v44, 16 }
 0x14d   : > { %1171 = vrot.lane.b32.xlu0 %v6552_v44, %s6186_s9 }
 0x154   : > { %1173 = vrot.lane.b32.xlu1 %v6546_v40, %s6185_s22  ;;  %1654 = vrot.lane.b32.xlu2 %v6564_v53, %s6186_s9 }
 0x155   : > { %1650 = vrot.lane.b32.xlu0 %v6564_v53, %s6187_s10 }
 0x15c   : > { %1652 = vrot.lane.b32.xlu1 %v6562_v52, %s6187_s10  ;;  %1660 = vrot.lane.b32.xlu2 %v6562_v52, %s6185_s22 }
 0x15d   : > { %1656 = vrot.lane.b32.xlu0 %v6562_v52, %s6186_s9 }
 0x164   : > { %1658 = vrot.lane.b32.xlu1 %v6564_v53, %s6185_s22 }
 0x18c   : > { %v1417_v56 = vpop.permute.xlu2 %1416 }
 0x18d   : > { %v1430_v3 = vshrl.u32 %v1417_v56, 16 }
 0x194   : > { %v1419_v62 = vpop.permute.xlu2 %1418 }
 0x195   : > { %v1442_v24 = vshrl.u32 %v1419_v62, 16 }
 0x19e   : > { %v6592_v29 = vpop.permute.xlu2 %1169 }
 0x1a4   : > { %v1413_v0 = vpop.permute.xlu1 %1412 }
 0x1a5   : > { %v1428_v4 = vpack.i.b16 %v1417_v56, %v1413_v0  ;;  %v1429_v5 = vshrl.u32 %v1413_v0, 16  ;;  %v1409_v6 = vpop.permute.xlu0 %1408  ;;  %v1186_v56 = vshrl.u32 %v6592_v29, 16 }
 0x1a6   : > { %v1422_v8 = vpack.i.b16 %v1409_v6, %v6530_v34  ;;  %v1424_v10 = vshrl.u32 %v1409_v6, 16 }
 0x1a7   : > { %v1431_v11 = vpack.i.b16 %v1430_v3, %v1429_v5  ;;  %v1453_v12 = vperm.slane %v1428_v4, %v6578_v63 }
 0x1a8   : > { %v1425_v14 = vpack.i.b16 %v1424_v10, %v1423_v9  ;;  %v1448_v15 = vperm.slane %v1422_v8, %v6578_v63 }
 0x1a9   : > { %v1454_v16 = vrot.slane %v1453_v12, 4  ;;  %v1479_v17 = vperm.slane %v1431_v11, %v6578_v63 }
 0x1aa   : > { %v1456_v18 = vrot.slane %v1448_v15, 4  ;;  %v1474_v19 = vperm.slane %v1425_v14, %v6578_v63 }
 0x1ab   : > { %v1480_v21 = vrot.slane %v1479_v17, 4  ;;  %v1455_v22 = vsel %vm1212_vm0, %v1454_v16, %v1448_v15  ;;  %v1176_v15 = vpop.permute.xlu2 %1175 }
 0x1ac   : > { %v1457_v25 = vsel %vm1212_vm0, %v1453_v12, %v1456_v18  ;;  %v1461_v26 = vperm.slane %v1455_v22, %v6583_v13  ;;  %v1482_v27 = vrot.slane %v1474_v19, 4  ;;  %v1415_v28 = vpop.permute.xlu1 %1414 }
 0x1ad   : > { %v1465_v30 = vperm.slane %v1457_v25, %v6583_v13  ;;  %v1481_v31 = vsel %vm1212_vm0, %v1480_v21, %v1474_v19  ;;  %v1440_v32 = vpack.i.b16 %v1419_v62, %v1415_v28  ;;  %v1441_v33 = vshrl.u32 %v1415_v28, 16  ;;  %v1411_v34 = vpop.permute.xlu0 %1410 }
 0x1ae   : > { %v1466_v37 = vrot.slane %v1461_v26, 4  ;;  %v1483_v38 = vsel %vm1212_vm0, %v1479_v17, %v1482_v27  ;;  %v1487_v39 = vperm.slane %v1481_v31, %v6583_v13  ;;  %v1434_v41 = vpack.i.b16 %v1411_v34, %v6538_v36 }
 0x1af   : > { %v1468_v42 = vrot.slane %v1465_v30, 4  ;;  %v1491_v43 = vperm.slane %v1483_v38, %v6583_v13  ;;  %v1443_v45 = vpack.i.b16 %v1442_v24, %v1441_v33  ;;  %v1505_v46 = vperm.slane %v1440_v32, %v6578_v63 }
 0x1b0   : > { %v1436_v47 = vshrl.u32 %v1411_v34, 16  ;;  %v1500_v48 = vperm.slane %v1434_v41, %v6578_v63  ;;  %v1492_v54 = vrot.slane %v1487_v39, 4  ;;  %v1467_v57 = vsel %vm1212_vm0, 0, %v1466_v37 }
 0x1b1   : > { %v1469_v51 = vsel %vm1212_vm0, 0, %v1468_v42  ;;  %v1494_v55 = vrot.slane %v1491_v43, 4  ;;  %v1506_v36 = vrot.slane %v1505_v46, 4  ;;  %v1531_v59 = vperm.slane %v1443_v45, %v6578_v63 }
 0x1b2   : > { %v1553_v58 = vrot.slane %v1469_v51, 4  ;;  %v1548_v61 = vsel %vm1212_vm0, %v1468_v42, %v1461_v26  ;;  %v1437_v62 = vpack.i.b16 %v1436_v47, %v1435_v23  ;;  %v1508_v4 = vrot.slane %v1500_v48, 4 }
 0x1b3   : > { %v1495_v60 = vsel %vm1212_vm0, 0, %v1494_v55  ;;  %v1507_v0 = vsel %vm1212_vm0, %v1506_v36, %v1500_v48  ;;  %v1532_v3 = vrot.slane %v1531_v59, 4  ;;  %v1493_v5 = vsel %vm1212_vm0, 0, %v1492_v54 }
 0x1b4   : > { %v1554_v1 = vsel %vm1212_vm0, %v1553_v58, %v1467_v57  ;;  %v1572_v2 = vrot.slane %v1495_v60, 4  ;;  %v1513_v6 = vperm.slane %v1507_v0, %v6583_v13  ;;  %v1526_v7 = vperm.slane %v1437_v62, %v6578_v63 }
 0x1b5   : > { %v1558_v9 = vperm.slane %v1554_v1, %v6578_v63  ;;  %v1509_v10 = vsel %vm1212_vm0, %v1505_v46, %v1508_v4  ;;  %v1567_v20 = vsel %vm1212_vm0, %v1494_v55, %v1487_v39  ;;  %v1199_v27 = vshrl.u32 %v1176_v15, 16 }
 0x1b6   : > { %v1166_v8 = vpop.permute.xlu0 %1165  ;;  %v1573_v14 = vsel %vm1212_vm0, %v1572_v2, %v1493_v5  ;;  %v1517_v16 = vperm.slane %v1509_v10, %v6583_v13  ;;  %v1518_v17 = vrot.slane %v1513_v6, 4  ;;  %v1533_v18 = vsel %vm1212_vm0, %v1532_v3, %v1526_v7 }
 0x1b7   : > { %v1179_v11 = vpack.i.b16 %v1166_v8, %v6546_v40  ;;  %v1181_v12 = vshrl.u32 %v1166_v8, 16  ;;  %v1534_v19 = vrot.slane %v1526_v7, 4  ;;  %v1539_v21 = vperm.slane %v1533_v18, %v6583_v13 }
 0x1b8   : > { %v1520_v24 = vrot.slane %v1517_v16, 4  ;;  %v1559_v25 = vrot.slane %v1558_v9, 4  ;;  %v1577_v26 = vperm.slane %v1573_v14, %v6578_v63  ;;  %v1552_v28 = vperm.slane %v1548_v61, %v6578_v63 }
 0x1b9   : > { %v1182_v22 = vpack.i.b16 %v1181_v12, %v1180_v49  ;;  %v6628_v23 = vperm.slane %v1179_v11, %v6578_v63  ;;  %v1535_v40 = vsel %vm1212_vm0, %v1531_v59, %v1534_v19  ;;  %v1544_v31 = vrot.slane %v1539_v21, 4 }
 0x1ba   : > { %v1543_v30 = vperm.slane %v1535_v40, %v6583_v13  ;;  %v1519_v32 = vsel %vm1212_vm0, 0, %v1518_v17  ;;  %v1521_v33 = vsel %vm1212_vm0, 0, %v1520_v24  ;;  %v1571_v38 = vperm.slane %v1567_v20, %v6578_v63 }
 0x1bb   : > { %v1214_v34 = vrot.slane %v6628_v23, 4  ;;  %v1586_v41 = vsel %vm1212_vm0, %v1520_v24, %v1513_v6  ;;  %v1591_v42 = vrot.slane %v1521_v33, 4  ;;  %v6640_v43 = vperm.slane %v1182_v22, %v6578_v63 }
 0x1bc   : > { %v1546_v39 = vrot.slane %v1543_v30, 4  ;;  %v1560_v48 = vsel %vm1212_vm0, %v1559_v25, %v1552_v28  ;;  %v1578_v49 = vrot.slane %v1577_v26, 4  ;;  %v1545_v51 = vsel %vm1212_vm0, 0, %v1544_v31 }
 0x1bd   : > { %v1592_v55 = vsel %vm1212_vm0, %v1591_v42, %v1519_v32  ;;  %v1590_v61 = vperm.slane %v1586_v41, %v6578_v63  ;;  %v6654_v4 = vperm.slane %v1560_v48, %v6583_v13 }
 0x1be   : > { %v1168_v37 = vpop.permute.xlu1 %1167  ;;  %v1547_v54 = vsel %vm1212_vm0, 0, %v1546_v39  ;;  %v1596_v0 = vperm.slane %v1592_v55, %v6578_v63  ;;  %v1579_v6 = vsel %vm1212_vm0, %v1578_v49, %v1571_v38 }
 0x1bf   : > { %v1191_v45 = vpack.i.b16 %v1168_v37, %v6552_v44  ;;  %v1193_v46 = vshrl.u32 %v1168_v37, 16  ;;  %v1172_v47 = vpop.permute.xlu0 %1171  ;;  %v1610_v57 = vrot.slane %v1547_v54, 4  ;;  %v1240_v44 = vrot.slane %v6640_v43, 4 }
 0x1c0   : > { %v1197_v36 = vpack.i.b16 %v1176_v15, %v1172_v47  ;;  %v1198_v60 = vshrl.u32 %v1172_v47, 16  ;;  %v1597_v12 = vrot.slane %v1596_v0, 4  ;;  %v6672_v28 = vperm.slane %v1579_v6, %v6583_v13 }
 0x1c1   : > { %v1194_v58 = vpack.i.b16 %v1193_v46, %v1192_v50  ;;  %v1258_v59 = vperm.slane %v1191_v45, %v6578_v63  ;;  %v1605_v50 = vsel %vm1212_vm0, %v1546_v39, %v1539_v21  ;;  %v1611_v7 = vsel %vm1212_vm0, %v1610_v57, %v1545_v51 }
 0x1c2   : > { %v1263_v62 = vperm.slane %v1197_v36, %v6578_v63  ;;  %v1200_v3 = vpack.i.b16 %v1199_v27, %v1198_v60  ;;  %v1615_v21 = vperm.slane %v1611_v7, %v6578_v63  ;;  %v1609_v25 = vperm.slane %v1605_v50, %v6578_v63 }
 0x1c3   : > { %v1266_v1 = vrot.slane %v1258_v59, 4  ;;  %v1284_v2 = vperm.slane %v1194_v58, %v6578_v63  ;;  %v1598_v30 = vsel %vm1212_vm0, %v1597_v12, %v1590_v61 }
 0x1c4   : > { %v1264_v5 = vrot.slane %v1263_v62, 4  ;;  %v1289_v10 = vperm.slane %v1200_v3, %v6578_v63  ;;  %v1616_v42 = vrot.slane %v1615_v21, 4 }
 0x1c5   : > { %v1292_v8 = vrot.slane %v1284_v2, 4  ;;  %v1267_v9 = vsel %vm1212_vm0, %v1263_v62, %v1266_v1 }
 0x1c6   : > { %v1174_v11 = vpop.permute.xlu1 %1173  ;;  %v1265_v14 = vsel %vm1212_vm0, %v1264_v5, %v1258_v59  ;;  %v1275_v15 = vperm.slane %v1267_v9, %v6583_v13  ;;  %v1290_v19 = vrot.slane %v1289_v10, 4  ;;  %v1617_v59 = vsel %vm1212_vm0, %v1616_v42, %v1609_v25 }
 0x1c7   : > { %v1185_v16 = vpack.i.b16 %v1174_v11, %v6592_v29  ;;  %v1187_v17 = vshrl.u32 %v1174_v11, 16  ;;  %v1271_v18 = vperm.slane %v1265_v14, %v6583_v13  ;;  %v1293_v20 = vsel %vm1212_vm0, %v1289_v10, %v1292_v8 }
 0x1c8   : > { %v1278_v22 = vrot.slane %v1275_v15, 4  ;;  %v1301_v24 = vperm.slane %v1293_v20, %v6583_v13  ;;  %v1291_v27 = vsel %vm1212_vm0, %v1290_v19, %v1284_v2  ;;  %v1621_v50 = vperm.slane %v1617_v59, %v6583_v13 }
 0x1c9   : > { %v1210_v40 = vperm.slane %v1185_v16, %v6578_v63  ;;  %v1276_v26 = vrot.slane %v1271_v18, 4  ;;  %v1297_v32 = vperm.slane %v1291_v27, %v6583_v13  ;;  %v1188_v37 = vpack.i.b16 %v1187_v17, %v1186_v56 }
 0x1ca   : > { %v1279_v31 = vsel %vm1212_vm0, 0, %v1278_v22  ;;  %v1304_v33 = vrot.slane %v1301_v24, 4  ;;  %v6682_v47 = vsel %vm1212_vm0, %v1278_v22, %v1271_v18  ;;  %v1602_v56 = vperm.slane %v1598_v30, %v6583_v13 }
 0x1cb   : > { %v1277_v38 = vsel %vm1212_vm0, 0, %v1276_v26  ;;  %v1349_v39 = vrot.slane %v1279_v31, 4  ;;  %v1211_v41 = vrot.slane %v1210_v40, 4  ;;  %v1302_v45 = vrot.slane %v1297_v32, 4 }
 0x1cc   : > { %v1305_v46 = vsel %vm1212_vm0, 0, %v1304_v33  ;;  %v1215_v48 = vsel %vm1212_vm0, %v1210_v40, %v1214_v34  ;;  %v1348_v34 = vperm.slane %v6682_v47, %v6578_v63  ;;  %v1237_v58 = vperm.slane %v1188_v37, %v6578_v63 }
 0x1cd   : > { %v1350_v49 = vsel %vm1212_vm0, %v1349_v39, %v1277_v38  ;;  %v1368_v51 = vrot.slane %v1305_v46, 4  ;;  %v1213_v29 = vsel %vm1212_vm0, %v1211_v41, %v6628_v23  ;;  %v1303_v54 = vsel %vm1212_vm0, 0, %v1302_v45 }
 0x1ce   : > { %v1354_v55 = vperm.slane %v1350_v49, %v6578_v63  ;;  %v1219_v36 = vperm.slane %v1213_v29, %v6583_v13  ;;  %v1223_v57 = vperm.slane %v1215_v48, %v6583_v13  ;;  %v1626_v23 = vpack.i.b16 %v6672_v28, %v6654_v4 }
 0x1cf   : > { %v6702_v60 = vsel %vm1212_vm0, %v1304_v33, %v1297_v32  ;;  %v6705_v61 = vsel %vm1212_vm0, %v1368_v51, %v1303_v54  ;;  %v1238_v2 = vrot.slane %v1237_v58, 4  ;;  %v1241_v3 = vsel %vm1212_vm0, %v1237_v58, %v1240_v44 }
 0x1d0   : > { %v1224_v62 = vrot.slane %v1219_v36, 4  ;;  %v1226_v0 = vrot.slane %v1223_v57, 4  ;;  %v1355_v1 = vrot.slane %v1354_v55, 4  ;;  %v1249_v7 = vperm.slane %v1241_v3, %v6583_v13 }
 0x1d1   : > { %v1239_v9 = vsel %vm1212_vm0, %v1238_v2, %v6640_v43  ;;  %v1638_v11 = vpack.i.b16 %v1621_v50, %v1602_v56  ;;  %v1893_v12 = vunpack.c.l.b16 %v1626_v23  ;;  %v1628_v16 = vshrl.u32 %v6672_v28, 16 }
 0x1d2   : > { %v1225_v5 = vsel %vm1212_vm0, 0, %v1224_v62  ;;  %v1227_v6 = vsel %vm1212_vm0, 0, %v1226_v0  ;;  %v1306_v8 = vsel %vm1212_vm0, %v1226_v0, %v1219_v36  ;;  %v1245_v14 = vperm.slane %v1239_v9, %v6583_v13 }
 0x1d3   : > { %v1311_v10 = vrot.slane %v1227_v6, 4  ;;  %v1252_v15 = vrot.slane %v1249_v7, 4  ;;  %v1310_v44 = vperm.slane %v1306_v8, %v6578_v63  ;;  %v1894_v18 = vunpack.c.l.b16 %v1638_v11 }
 0x1d4   : > { %v1627_v19 = vshrl.u32 %v6654_v4, 16  ;;  %v1640_v20 = vshrl.u32 %v1621_v50, 16  ;;  %v1250_v21 = vrot.slane %v1245_v14, 4  ;;  %v1639_v24 = vshrl.u32 %v1602_v56, 16 }
 0x1d5   : > { %v1312_v17 = vsel %vm1212_vm0, %v1311_v10, %v1225_v5  ;;  %v1253_v22 = vsel %vm1212_vm0, 0, %v1252_v15  ;;  %v1325_v40 = vsel %vm1212_vm0, %v1252_v15, %v1245_v14  ;;  %v1895_v26 = vpack.c.b16 %v1894_v18, %v1893_v12 }
 0x1d6   : > { %v1316_v43 = vperm.slane %v1312_v17, %v6578_v63  ;;  %v1330_v25 = vrot.slane %v1253_v22, 4  ;;  %v1629_v27 = vpack.i.b16 %v1628_v16, %v1627_v19  ;;  %v1251_v30 = vsel %vm1212_vm0, 0, %v1250_v21 }
 0x1d7   : > { %v1641_v32 = vpack.i.b16 %v1640_v20, %v1639_v24  ;;  %v1565_v33 = vrot.slane %v6654_v4, 4  ;;  %v1901_v38 = vsel %vm1896_vm1, %v1895_v26, 0  ;;  %v1584_v41 = vrot.slane %v6672_v28, 4 }
 0x1d8   : > { %v1317_v31 = vrot.slane %v1316_v43, 4  ;;  %v1331_v37 = vsel %vm1212_vm0, %v1330_v25, %v1251_v30  ;;  %v1920_v39 = vunpack.c.l.b16 %v1629_v27  ;;  %1910 = vmatpush.bf16.xpose.msrb.mxu1 %v1901_v38  ;;  %v1603_v48 = vrot.slane %v1602_v56, 4  ;;  %v5302_v30 = vld [vmem:[#allocation18 + $0x38] sm:$0xff] }
 0x1d9   : > { %v1335_v42 = vperm.slane %v1331_v37, %v6578_v63  ;;  %v1921_v45 = vunpack.c.l.b16 %v1641_v32  ;;  %v1566_v46 = vsel %vm1212_vm0, 0, %v1565_v33  ;;  %v1585_v49 = vsel %vm1212_vm0, 0, %v1584_v41  ;;  %956 = vmatpush.bf16.msra.mxu2 %v5302_v30 }
 0x1da   : > { %v1622_v51 = vrot.slane %v1621_v50, 4  ;;  %v1633_v29 = vshrl.u32 %v1566_v46, 16  ;;  %v1318_v4 = vsel %vm1212_vm0, %v1317_v31, %v1310_v44  ;;  %v1604_v55 = vsel %vm1212_vm0, 0, %v1603_v48 }
 0x1db   : > { %v1922_v54 = vpack.c.b16 %v1921_v45, %v1920_v39  ;;  %v1632_v36 = vpack.i.b16 %v1585_v49, %v1566_v46  ;;  %v1634_v57 = vshrl.u32 %v1585_v49, 16  ;;  %v1373_v28 = vperm.slane %v6705_v61, %v6578_v63 }
 0x1dc   : > { %v1329_v58 = vperm.slane %v1325_v40, %v6578_v63  ;;  %v1623_v59 = vsel %vm1212_vm0, 0, %v1622_v51  ;;  %v1336_v23 = vrot.slane %v1335_v42, 4  ;;  %v1645_v2 = vshrl.u32 %v1604_v55, 16 }
 0x1dd   : > { %v1927_v56 = vsel %vm1896_vm1, %v1922_v54, 0  ;;  %v1644_v62 = vpack.i.b16 %v1623_v59, %v1604_v55  ;;  %v1635_v0 = vpack.i.b16 %v1634_v57, %v1633_v29  ;;  %v1646_v3 = vshrl.u32 %v1623_v59, 16 }
 0x1de   : > { %1936 = vmatpush.bf16.xpose.msrb.mxu3 %v1927_v56  ;;  %v1322_v50 = vperm.slane %v1318_v4, %v6583_v13  ;;  %v1337_v5 = vsel %vm1212_vm0, %v1336_v23, %v1329_v58  ;;  %v1356_v61 = vsel %vm1212_vm0, %v1355_v1, %v1348_v34  ;;  %v1946_v6 = vunpack.c.l.b16 %v1632_v36  ;;  %v1655_v56 = vpop.permute.xlu2 %1654 }
 0x1df   : > { %v1947_v7 = vunpack.c.l.b16 %v1644_v62  ;;  %v1341_v8 = vperm.slane %v1337_v5, %v6583_v13  ;;  %v1367_v9 = vperm.slane %v6702_v60, %v6578_v63  ;;  %v1647_v10 = vpack.i.b16 %v1646_v3, %v1645_v2  ;;  %v5300_v2 = vld [vmem:[#allocation18 + $0x28] sm:$0xff]  ;;  %v1651_v5 = vpop.permute.xlu0 %1650 }
 0x1e0   : > { %v1374_v11 = vrot.slane %v1373_v28, 4  ;;  %v1972_v14 = vunpack.c.l.b16 %v1635_v0  ;;  %v1360_v15 = vperm.slane %v1356_v61, %v6583_v13  ;;  %v1385_v47 = vshrl.u32 %v1322_v50, 16  ;;  %v5301_v0 = vld [vmem:[#allocation18 + $0x30] sm:$0xff] }
 0x1e1   : > { %v1948_v12 = vpack.c.b16 %v1947_v7, %v1946_v6  ;;  %v1384_v44 = vpack.i.b16 %v1341_v8, %v1322_v50  ;;  %v1973_v16 = vunpack.c.l.b16 %v1647_v10  ;;  %v1386_v18 = vshrl.u32 %v1341_v8, 16  ;;  %957 = vmatpush.bf16.msra.mxu2 %v5301_v0  ;;  %v5299_v7 = vld [vmem:[#allocation18 + $0x20] sm:$0xff] }
 0x1e2   : > { %v1375_v17 = vsel %vm1212_vm0, %v1374_v11, %v1367_v9  ;;  %v1397_v22 = vshrl.u32 %v1360_v15, 16  ;;  %v1342_v40 = vrot.slane %v1341_v8, 4  ;;  %v1323_v31 = vrot.slane %v1322_v50, 4  ;;  %v1653_v50 = vpop.permute.xlu1 %1652 }
 0x1e3   : > { %v1953_v34 = vsel %vm1896_vm1, %v1948_v12, 0  ;;  %v1379_v1 = vperm.slane %v1375_v17, %v6583_v13  ;;  %v1974_v19 = vpack.c.b16 %v1973_v16, %v1972_v14  ;;  %v1387_v20 = vpack.i.b16 %v1386_v18, %v1385_v47 }
 0x1e4   : > { %v1890_v21 = vunpack.c.l.b16 %v1384_v44  ;;  %v1361_v38 = vrot.slane %v1360_v15, 4  ;;  %v1343_v39 = vsel %vm1212_vm0, 0, %v1342_v40  ;;  %v1324_v42 = vsel %vm1212_vm0, 0, %v1323_v31 }
 0x1e5   : > { %v1396_v60 = vpack.i.b16 %v1379_v1, %v1360_v15  ;;  %v1398_v43 = vshrl.u32 %v1379_v1, 16  ;;  %v1979_v24 = vsel %vm1896_vm1, %v1974_v19, 0  ;;  %v1917_v27 = vunpack.c.l.b16 %v1387_v20  ;;  %958 = vmatpush.bf16.msra.mxu2 %v5300_v2  ;;  %v5298_v15 = vld [vmem:[#allocation18 + $0x18] sm:$0xff] }
 0x1e6   : > { %1962 = vmatpush.bf16.xpose.msra.mxu3 %v1953_v34  ;;  %1988 = vmatpush.bf16.xpose.msra.mxu1 %v1979_v24  ;;  %v1380_v32 = vrot.slane %v1379_v1, 4  ;;  %v1392_v46 = vshrl.u32 %v1343_v39, 16  ;;  %v1362_v48 = vsel %vm1212_vm0, 0, %v1361_v38  ;;  %v1391_v49 = vshrl.u32 %v1324_v42, 16  ;;  %v1661_v14 = vpop.permute.xlu2 %1660 }
 0x1e7   : > { %v1891_v25 = vunpack.c.l.b16 %v1396_v60  ;;  %v1399_v26 = vpack.i.b16 %v1398_v43, %v1397_v22  ;;  %v1403_v4 = vshrl.u32 %v1362_v48, 16  ;;  %v1390_v55 = vpack.i.b16 %v1343_v39, %v1324_v42  ;;  %v1657_v1 = vpop.permute.xlu0 %1656 }
 0x1e8   : > { %v1381_v45 = vsel %vm1212_vm0, 0, %v1380_v32  ;;  %v1393_v29 = vpack.i.b16 %v1392_v46, %v1391_v49  ;;  %v1665_v3 = vshrl.u32 %v6564_v53, 16  ;;  %v1664_v61 = vpack.i.b16 %v1651_v5, %v6564_v53 }
 0x1e9   : > { %v1892_v33 = vpack.c.b16 %v1891_v25, %v1890_v21  ;;  %v1918_v37 = vunpack.c.l.b16 %v1399_v26  ;;  %v1404_v51 = vshrl.u32 %v1381_v45, 16  ;;  %v1402_v57 = vpack.i.b16 %v1381_v45, %v1362_v48  ;;  %959 = vmatpush.bf16.msra.mxu2 %v5299_v7  ;;  %v5297_v21 = vld [vmem:[#allocation18 + $0x10] sm:$0xff] }
 0x1ea   : > { %v1969_v36 = vunpack.c.l.b16 %v1393_v29  ;;  %v1943_v58 = vunpack.c.l.b16 %v1390_v55  ;;  %v1666_v6 = vshrl.u32 %v1651_v5, 16  ;;  %v1677_v8 = vshrl.u32 %v6562_v52, 16  ;;  %v1659_v34 = vpop.permute.xlu1 %1658 }
 0x1eb   : > { %5031 = vmatmul.msk.bf16.vlgmr.msrb.gmra.mxu1 %vm1896_vm1, %v1892_v33  ;;  %v1919_v41 = vpack.c.b16 %v1918_v37, %v1917_v27  ;;  %v1405_v54 = vpack.i.b16 %v1404_v51, %v1403_v4  ;;  %v1944_v23 = vunpack.c.l.b16 %v1402_v57  ;;  %v1676_v9 = vpack.i.b16 %v1653_v50, %v6562_v52  ;;  %v5296_v37 = vld [vmem:[#allocation18 + $0x8] sm:$0xff] }
 0x1ec   : > { %v1678_v10 = vshrl.u32 %v1653_v50, 16  ;;  %v1667_v11 = vpack.i.b16 %v1666_v6, %v1665_v3  ;;  %v1690_v12 = vperm.slane %v1664_v61, %v6578_v63  ;;  %v1671_v53 = vshrl.u32 %v1655_v56, 16 }
 0x1ed   : > { %5032 = vmatmul.msk.bf16.vlgmr.msrb.gmra.mxu3 %vm1896_vm1, %v1919_v41  ;;  %v1970_v28 = vunpack.c.l.b16 %v1405_v54  ;;  %v1945_v62 = vpack.c.b16 %v1944_v23, %v1943_v58  ;;  %v1742_v16 = vperm.slane %v1676_v9, %v6578_v63  ;;  %v1684_v47 = vshrl.u32 %v1661_v14, 16  ;;  %960 = vmatpush.bf16.msra.mxu2 %v5298_v15 }
 0x1ee   : > { %v1679_v44 = vpack.i.b16 %v1678_v10, %v1677_v8  ;;  %v1716_v17 = vperm.slane %v1667_v11, %v6578_v63  ;;  %v1698_v18 = vrot.slane %v1690_v12, 4  ;;  %v1670_v19 = vpack.i.b16 %v1659_v34, %v1655_v56 }
 0x1ef   : > { %v1971_v59 = vpack.c.b16 %v1970_v28, %v1969_v36  ;;  %v1672_v20 = vshrl.u32 %v1659_v34, 16  ;;  %v1682_v52 = vpack.i.b16 %v1661_v14, %v1657_v1  ;;  %v1683_v60 = vshrl.u32 %v1657_v1, 16  ;;  %v5295_v28 = vld [vmem:[#allocation18] sm:$0xff] }
 0x1f0   : > { %v1750_v22 = vrot.slane %v1742_v16, 4  ;;  %v1768_v43 = vperm.slane %v1679_v44, %v6578_v63  ;;  %v1724_v24 = vrot.slane %v1716_v17, 4  ;;  %v1695_v25 = vperm.slane %v1670_v19, %v6578_v63 }
 0x1f1   : > { %v1673_v40 = vpack.i.b16 %v1672_v20, %v1671_v53  ;;  %v1685_v26 = vpack.i.b16 %v1684_v47, %v1683_v60  ;;  %v1747_v27 = vperm.slane %v1682_v52, %v6578_v63  ;;  %961 = vmatpush.bf16.msra.mxu2 %v5297_v21 }
 0x1f2   : > { %v1696_v30 = vrot.slane %v1695_v25, 4  ;;  %v1699_v31 = vsel %vm1212_vm0, %v1695_v25, %v1698_v18  ;;  %v1776_v38 = vrot.slane %v1768_v43, 4 }
 0x1f3   : > { %v1721_v32 = vperm.slane %v1673_v40, %v6578_v63  ;;  %v1748_v33 = vrot.slane %v1747_v27, 4  ;;  %v1707_v39 = vperm.slane %v1699_v31, %v6583_v13  ;;  %v1751_v41 = vsel %vm1212_vm0, %v1747_v27, %v1750_v22 }
 0x1f4   : > { %v1773_v42 = vperm.slane %v1685_v26, %v6578_v63  ;;  %v1697_v45 = vsel %vm1212_vm0, %v1696_v30, %v1690_v12  ;;  %v1759_v36 = vperm.slane %v1751_v41, %v6583_v13 }
 0x1f5   : > { %v1722_v46 = vrot.slane %v1721_v32, 4  ;;  %v1725_v48 = vsel %vm1212_vm0, %v1721_v32, %v1724_v24  ;;  %v1749_v49 = vsel %vm1212_vm0, %v1748_v33, %v1742_v16  ;;  %v1703_v51 = vperm.slane %v1697_v45, %v6583_v13  ;;  %962 = vmatpush.bf16.msra.mxu2 %v5296_v37 }
 0x1f6   : > { %v1710_v29 = vrot.slane %v1707_v39, 4  ;;  %v1733_v4 = vperm.slane %v1725_v48, %v6583_v13  ;;  %v1755_v54 = vperm.slane %v1749_v49, %v6583_v13  ;;  %v1774_v57 = vrot.slane %v1773_v42, 4 }
 0x1f7   : > { %v1723_v55 = vsel %vm1212_vm0, %v1722_v46, %v1716_v17  ;;  %v1708_v58 = vrot.slane %v1703_v51, 4  ;;  %v1762_v2 = vrot.slane %v1759_v36, 4  ;;  %v1777_v3 = vsel %vm1212_vm0, %v1773_v42, %v1776_v38 }
 0x1f8   : > { %v1729_v23 = vperm.slane %v1723_v55, %v6583_v13  ;;  %v1736_v56 = vrot.slane %v1733_v4, 4  ;;  %v1760_v0 = vrot.slane %v1755_v54, 4  ;;  %v1775_v6 = vsel %vm1212_vm0, %v1774_v57, %v1768_v43 }
 0x1f9   : > { %v1709_v50 = vsel %vm1212_vm0, 0, %v1708_v58  ;;  %v1790_v7 = vsel %vm1212_vm0, %v1710_v29, %v1703_v51  ;;  %v1763_v9 = vsel %vm1212_vm0, 0, %v1762_v2  ;;  %v1781_v10 = vperm.slane %v1775_v6, %v6583_v13  ;;  %963 = vmatpush.bf16.msra.mxu2 %v5295_v28 }
 0x1fa   : > { %v1734_v5 = vrot.slane %v1729_v23, 4  ;;  %v1737_v61 = vsel %vm1212_vm0, 0, %v1736_v56  ;;  %v1761_v12 = vsel %vm1212_vm0, 0, %v1760_v0  ;;  %v1785_v14 = vperm.slane %v1777_v3, %v6583_v13 }
 0x1fb   : > { %5034 = vmatmul.msk.bf16.vlgmr.msra.gmra.mxu1 %vm1896_vm1, %v1971_v59  ;;  %v1711_v59 = vsel %vm1212_vm0, 0, %v1710_v29  ;;  %v1814_v8 = vrot.slane %v1737_v61, 4  ;;  %v1833_v15 = vrot.slane %v1763_v9, 4  ;;  %v1786_v44 = vrot.slane %v1781_v10, 4 }
 0x1fc   : > { %v1735_v11 = vsel %vm1212_vm0, 0, %v1734_v5  ;;  %v1828_v16 = vsel %vm1212_vm0, %v1762_v2, %v1755_v54  ;;  %v1809_v53 = vsel %vm1212_vm0, %v1736_v56, %v1729_v23  ;;  %v1788_v47 = vrot.slane %v1785_v14, 4  ;;  %964 = vmatmul.bf16.vlgmr.msra.gmra.mxu2 %v6597_v35 }
 0x1fd   : > { %5033 = vmatmul.msk.bf16.vlgmr.msra.gmra.mxu3 %vm1896_vm1, %v1945_v62  ;;  %v1795_v62 = vrot.slane %v1711_v59, 4  ;;  %v1794_v18 = vperm.slane %v1790_v7, %v6578_v63  ;;  %v1815_v1 = vsel %vm1212_vm0, %v1814_v8, %v1735_v11  ;;  %v1787_v19 = vsel %vm1212_vm0, 0, %v1786_v44 }
 0x1fe   : > { %v1813_v20 = vperm.slane %v1809_v53, %v6578_v63  ;;  %v1819_v52 = vperm.slane %v1815_v1, %v6578_v63  ;;  %v1834_v60 = vsel %vm1212_vm0, %v1833_v15, %v1761_v12  ;;  %v1789_v21 = vsel %vm1212_vm0, 0, %v1788_v47  ;;  %v6827_v1 = vld [vmem:[#allocation26] sm:$0xff] }
 0x1ff   : > { %v1796_v17 = vsel %vm1212_vm0, %v1795_v62, %v1709_v50  ;;  %v1832_v43 = vperm.slane %v1828_v16, %v6578_v63  ;;  %v1838_v24 = vperm.slane %v1834_v60, %v6578_v63  ;;  %v1852_v40 = vrot.slane %v1789_v21, 4 }
 0x200   : > { %v1800_v34 = vperm.slane %v1796_v17, %v6578_v63  ;;  %v1820_v25 = vrot.slane %v1819_v52, 4  ;;  %v1847_v26 = vsel %vm1212_vm0, %v1788_v47, %v1781_v10 }
 0x201   : > { %v1839_v27 = vrot.slane %v1838_v24, 4  ;;  %v1853_v32 = vsel %vm1212_vm0, %v1852_v40, %v1787_v19  ;;  %v1851_v38 = vperm.slane %v1847_v26, %v6578_v63  ;;  %v990_v19 = vperm.slane %v6827_v1, 6 }
 0x202   : > { %v1801_v22 = vrot.slane %v1800_v34, 4  ;;  %v1821_v31 = vsel %vm1212_vm0, %v1820_v25, %v1813_v20  ;;  %v1857_v39 = vperm.slane %v1853_v32, %v6578_v63  ;;  %v1048_v34 = vpop.f32.mrf.mxu3 }
 0x203   : > { %v1825_v33 = vperm.slane %v1821_v31, %v6583_v13  ;;  %v1840_v37 = vsel %vm1212_vm0, %v1839_v27, %v1832_v43  ;;  %v1049_v20 = vadd.f32 %v1048_v34, %v990_v19 }
 0x204   : > { %v1802_v35 = vsel %vm1212_vm0, %v1801_v22, %v1794_v18  ;;  %v1844_v41 = vperm.slane %v1840_v37, %v6583_v13  ;;  %v1858_v46 = vrot.slane %v1857_v39, 4 }
 0x205   : > { %v1806_v30 = vperm.slane %v1802_v35, %v6583_v13  ;;  %v1870_v48 = vshrl.u32 %v1825_v33, 16  ;;  %v1826_v49 = vrot.slane %v1825_v33, 4 }
 0x206   : > { %v1845_v4 = vrot.slane %v1844_v41, 4  ;;  %v1859_v54 = vsel %vm1212_vm0, %v1858_v46, %v1851_v38  ;;  %v1881_v55 = vshrl.u32 %v1844_v41, 16 }
 0x207   : > { %v1869_v42 = vshrl.u32 %v1806_v30, 16  ;;  %v1807_v45 = vrot.slane %v1806_v30, 4  ;;  %v1868_v51 = vpack.i.b16 %v1825_v33, %v1806_v30  ;;  %v1827_v36 = vsel %vm1212_vm0, 0, %v1826_v49 }
 0x208   : > { %v1863_v57 = vperm.slane %v1859_v54, %v6583_v13  ;;  %v1846_v58 = vsel %vm1212_vm0, 0, %v1845_v4  ;;  %v1876_v56 = vshrl.u32 %v1827_v36, 16 }
 0x209   : > { %v1808_v29 = vsel %vm1212_vm0, 0, %v1807_v45  ;;  %v1871_v28 = vpack.i.b16 %v1870_v48, %v1869_v42  ;;  %v2081_v0 = vunpack.c.l.b16 %v1868_v51  ;;  %v1887_v5 = vshrl.u32 %v1846_v58, 16 }
 0x20a   : > { %v1875_v59 = vshrl.u32 %v1808_v29, 16  ;;  %v1874_v23 = vpack.i.b16 %v1827_v36, %v1808_v29  ;;  %v1880_v62 = vpack.i.b16 %v1863_v57, %v1844_v41  ;;  %v1882_v2 = vshrl.u32 %v1863_v57, 16  ;;  %v1050_v52 = vpop.f32.mrf.mxu3 }
 0x20b   : > { %v1864_v3 = vrot.slane %v1863_v57, 4  ;;  %v2107_v7 = vunpack.c.l.b16 %v1871_v28  ;;  %v1051_v60 = vadd.f32 %v1050_v52, %v990_v19 }
 0x20c   : > { %v1877_v50 = vpack.i.b16 %v1876_v56, %v1875_v59  ;;  %v2082_v61 = vunpack.c.l.b16 %v1880_v62  ;;  %v1883_v6 = vpack.i.b16 %v1882_v2, %v1881_v55  ;;  %v2133_v10 = vunpack.c.l.b16 %v1874_v23 }
 0x20d   : > { %v1865_v8 = vsel %vm1212_vm0, 0, %v1864_v3  ;;  %v5394_v21 = vpack.c.bf16 %v1051_v60, %v1049_v20 }
 0x20e   : > { %v1886_v9 = vpack.i.b16 %v1865_v8, %v1846_v58  ;;  %v1888_v11 = vshrl.u32 %v1865_v8, 16  ;;  %v2083_v12 = vpack.c.b16 %v2082_v61, %v2081_v0  ;;  %v2108_v14 = vunpack.c.l.b16 %v1883_v6 }
 0x20f   : > { %v2159_v16 = vunpack.c.l.b16 %v1877_v50  ;;  %5395 = vst [vmem:[#allocation5] sm:$0xff] %v5394_v21  }
 0x210   : > { %v2134_v15 = vunpack.c.l.b16 %v1886_v9  ;;  %v1889_v44 = vpack.i.b16 %v1888_v11, %v1887_v5  ;;  %2095 = vmatpush.bf16.msrb.mxu2 %v2083_v12  ;;  %v2109_v17 = vpack.c.b16 %v2108_v14, %v2107_v7 }
 0x212   : > { %v2135_v53 = vpack.c.b16 %v2134_v15, %v2133_v10  ;;  %v2160_v47 = vunpack.c.l.b16 %v1889_v44  ;;  %2121 = vmatpush.bf16.msrb.mxu3 %v2109_v17 }
 0x214   : > { %2147 = vmatpush.bf16.msra.mxu0 %v2135_v53  ;;  %v2161_v18 = vpack.c.b16 %v2160_v47, %v2159_v16 }
 0x216   : > { %2173 = vmatpush.bf16.msrb.mxu1 %v2161_v18 }
 0x268   : > { %v1912_v22 = vpop.f32.mrf.mxu1 }
 0x269   : > { %v1996_v43 = vsel %vm1995_vm2, %v1912_v22, -inf }
 0x26a   : > { %1997 = vmax.xlane.f32.xlu0 %v1996_v43 }
 0x270   : > { %v1914_v24 = vpop.f32.mrf.mxu1  ;;  %v1938_v40 = vpop.f32.mrf.mxu3 }
 0x271   : > { %v2002_v25 = vsel %vm1995_vm2, %v1938_v40, -inf  ;;  %v1999_v26 = vsel %vm1995_vm2, %v1914_v24, -inf }
 0x272   : > { %2003 = vmax.xlane.f32.xlu2 %v2002_v25  ;;  %2000 = vmax.xlane.f32.xlu1 %v1999_v26 }
 0x278   : > { %v1940_v35 = vpop.f32.mrf.mxu3  ;;  %v1990_v30 = vpop.f32.mrf.mxu1 }
 0x279   : > { %v2005_v27 = vsel %vm1995_vm2, %v1940_v35, -inf  ;;  %v2014_v32 = vsel %vm1995_vm2, %v1990_v30, -inf }
 0x27a   : > { %2006 = vmax.xlane.f32.xlu2 %v2005_v27 }
 0x280   : > { %v1964_v31 = vpop.f32.mrf.mxu3  ;;  %v1992_v37 = vpop.f32.mrf.mxu1 }
 0x281   : > { %v2008_v33 = vsel %vm1995_vm2, %v1964_v31, -inf  ;;  %v2017_v39 = vsel %vm1995_vm2, %v1992_v37, -inf }
 0x282   : > { %2015 = vmax.xlane.f32.xlu2 %v2014_v32  ;;  %2009 = vmax.xlane.f32.xlu0 %v2008_v33 }
 0x288   : > { %v1966_v38 = vpop.f32.mrf.mxu3 }
 0x289   : > { %v2011_v41 = vsel %vm1995_vm2, %v1966_v38, -inf }
 0x28a   : > { %2018 = vmax.xlane.f32.xlu0 %v2017_v39  ;;  %2012 = vmax.xlane.f32.xlu1 %v2011_v41  ;;  %v965_v41 = vpop.f32.mrf.mxu2 }
 0x2dd   : > { %v1998_v42 = vpop.xlane.xlu0 %1997 }
 0x2de   : > { %v2020_v45 = vsub.f32 %v1912_v22, %v1998_v42  ;;  %v901_v42 = vperm.slane %v6827_v1, 5 }
 0x2e0   : > { %v2028_v46 = vmul.f32 1.442695, %v2020_v45  ;;  %v966_v45 = vadd.f32 %v965_v41, %v901_v42 }
 0x2e2   : > { %5600 = vpow2.f32 %v2028_v46  ;;  %v967_v46 = vpop.f32.mrf.mxu2 }
 0x2e5   : > { %v2004_v48 = vpop.xlane.xlu2 %2003  ;;  %v2001_v49 = vpop.xlane.xlu1 %2000 }
 0x2e6   : > { %v2022_v51 = vsub.f32 %v1938_v40, %v2004_v48  ;;  %v2021_v29 = vsub.f32 %v1914_v24, %v2001_v49  ;;  %v968_v48 = vadd.f32 %v967_v46, %v901_v42 }
 0x2e8   : > { %v5601_v4 = vpop.eup %5600  ;;  %v2030_v54 = vmul.f32 1.442695, %v2021_v29  ;;  %v2032_v36 = vmul.f32 1.442695, %v2022_v51  ;;  %v5389_v49 = vpack.c.bf16 %v968_v48, %v966_v45 }
 0x2e9   : > { %v2044_v55 = vsel %vm1995_vm2, %v5601_v4, 0.0  ;;  %v2068_v58 = vpack.c.bf16 %v5601_v4, %v5601_v4 }
 0x2ea   : > { %2045 = vadd.xlane.f32.xlu0 %v2044_v55  ;;  %5602 = vpow2.f32 %v2030_v54  ;;  %5390 = vst [vmem:[#allocation4] sm:$0xff] %v5389_v49  }
 0x2eb   : > { %5604 = vpow2.f32 %v2032_v36  ;;  %v2078_v2 = vunpack.c.l.b16 %v2068_v58 }
 0x2ed   : > { %v2007_v57 = vpop.xlane.xlu2 %2006 }
 0x2ee   : > { %v2023_v28 = vsub.f32 %v1940_v35, %v2007_v57 }
 0x2f0   : > { %v2034_v59 = vmul.f32 1.442695, %v2023_v28  ;;  %v5603_v23 = vpop.eup %5602 }
 0x2f1   : > { %v2069_v56 = vpack.c.bf16 %v5603_v23, %v5603_v23  ;;  %v2047_v62 = vsel %vm1995_vm2, %v5603_v23, 0.0  ;;  %v5605_v0 = vpop.eup %5604 }
 0x2f2   : > { %5606 = vpow2.f32 %v2034_v59  ;;  %2048 = vadd.xlane.f32.xlu1 %v2047_v62  ;;  %v2070_v8 = vpack.c.bf16 %v5605_v0, %v5605_v0  ;;  %v2050_v35 = vsel %vm1995_vm2, %v5605_v0, 0.0 }
 0x2f3   : > { %v2079_v3 = vunpack.c.l.b16 %v2069_v56 }
 0x2f4   : > { %v2104_v14 = vunpack.c.l.b16 %v2070_v8 }
 0x2f5   : > { %v2016_v50 = vpop.xlane.xlu2 %2015  ;;  %v2010_v5 = vpop.xlane.xlu0 %2009  ;;  %v2080_v7 = vpack.c.b16 %v2079_v3, %v2078_v2 }
 0x2f6   : > { %v2026_v61 = vsub.f32 %v1990_v30, %v2016_v50  ;;  %v2024_v6 = vsub.f32 %v1964_v31, %v2010_v5 }
 0x2f7   : > { %5035 = vmatmul.msk.bf16.vlgmr.msrb.gmra.mxu2 %vm1995_vm2, %v2080_v7 }
 0x2f8   : > { %v5607_v9 = vpop.eup %5606  ;;  %v2040_v10 = vmul.f32 1.442695, %v2026_v61  ;;  %v2036_v11 = vmul.f32 1.442695, %v2024_v6 }
 0x2f9   : > { %v2071_v12 = vpack.c.bf16 %v5607_v9, %v5607_v9  ;;  %v2053_v39 = vsel %vm1995_vm2, %v5607_v9, 0.0 }
 0x2fa   : > { %5608 = vpow2.f32 %v2040_v10 }
 0x2fb   : > { %v2105_v15 = vunpack.c.l.b16 %v2071_v12  ;;  %5610 = vpow2.f32 %v2036_v11 }
 0x2fd   : > { %v2106_v44 = vpack.c.b16 %v2105_v15, %v2104_v14  ;;  %v2019_v16 = vpop.xlane.xlu0 %2018  ;;  %v2013_v17 = vpop.xlane.xlu1 %2012 }
 0x2fe   : > { %v2027_v53 = vsub.f32 %v1992_v37, %v2019_v16  ;;  %v2025_v47 = vsub.f32 %v1966_v38, %v2013_v17 }
 0x2ff   : > { %5036 = vmatmul.msk.bf16.vlgmr.msrb.gmra.mxu3 %vm1995_vm2, %v2106_v44 }
 0x300   : > { %v5609_v18 = vpop.eup %5608  ;;  %v2042_v34 = vmul.f32 1.442695, %v2027_v53  ;;  %v2038_v19 = vmul.f32 1.442695, %v2025_v47 }
 0x301   : > { %v5611_v20 = vpop.eup %5610  ;;  %v2062_v52 = vsel %vm1995_vm2, %v5609_v18, 0.0  ;;  %v2074_v21 = vpack.c.bf16 %v5609_v18, %v5609_v18 }
 0x302   : > { %5612 = vpow2.f32 %v2042_v34  ;;  %2063 = vadd.xlane.f32.xlu2 %v2062_v52  ;;  %v2056_v60 = vsel %vm1995_vm2, %v5611_v20, 0.0  ;;  %v2072_v43 = vpack.c.bf16 %v5611_v20, %v5611_v20 }
 0x303   : > { %5614 = vpow2.f32 %v2038_v19  ;;  %2057 = vadd.xlane.f32.xlu1 %v2056_v60  ;;  %v2156_v30 = vunpack.c.l.b16 %v2074_v21 }
 0x304   : > { %v2130_v32 = vunpack.c.l.b16 %v2072_v43 }
 0x308   : > { %v5613_v22 = vpop.eup %5612 }
 0x309   : > { %v5615_v24 = vpop.eup %5614  ;;  %v2075_v40 = vpack.c.bf16 %v5613_v22, %v5613_v22  ;;  %v2065_v25 = vsel %vm1995_vm2, %v5613_v22, 0.0 }
 0x30a   : > { %v2073_v26 = vpack.c.bf16 %v5615_v24, %v5615_v24  ;;  %2066 = vadd.xlane.f32.xlu0 %v2065_v25  ;;  %v2059_v27 = vsel %vm1995_vm2, %v5615_v24, 0.0 }
 0x30b   : > { %v2157_v31 = vunpack.c.l.b16 %v2075_v40  ;;  %2051 = vadd.xlane.f32.xlu1 %v2050_v35  ;;  %2060 = vadd.xlane.f32.xlu2 %v2059_v27 }
 0x30c   : > { %v2131_v33 = vunpack.c.l.b16 %v2073_v26 }
 0x30d   : > { %v2158_v37 = vpack.c.b16 %v2157_v31, %v2156_v30 }
 0x30e   : > { %v2132_v38 = vpack.c.b16 %v2131_v33, %v2130_v32 }
 0x30f   : > { %5038 = vmatmul.msk.bf16.vlgmr.msrb.gmra.mxu1 %vm1995_vm2, %v2158_v37 }
 0x310   : > { %5037 = vmatmul.msk.bf16.vlgmr.msra.gmra.mxu0 %vm1995_vm2, %v2132_v38 }
 0x313   : > { %2054 = vadd.xlane.f32.xlu2 %v2053_v39 }
 0x35d   : > { %v2046_v51 = vpop.xlane.xlu0 %2045 }
 0x35e   : > { %5616 = vrcp.f32 %v2046_v51  ;;  %v2191_v0 = vand.u32 2147483648, %v2046_v51  ;;  %vm2185_vm4 = vweird.f32 %v2046_v51  ;;  %v2189_v2 = vand.u32 2147483647, %v2046_v51 }
 0x360   : > { %v2192_v5 = vor.u32 1.1754944e-38, %v2191_v0  ;;  %vm2190_vm7 = vcmp.eq.f32.partialorder %v2189_v2, 8.507059e+37 }
 0x364   : > { %v5617_v4 = vpop.eup %5616 }
 0x365   : > { %v2049_v29 = vpop.xlane.xlu1 %2048  ;;  %v2181_v54 = vmul.f32 %v5617_v4, %v2046_v51  ;;  %vm2186_vm3 = vweird.f32 %v5617_v4 }
 0x366   : > { %5618 = vrcp.f32 %v2049_v29  ;;  %vm2187_vm5 = vmor %vm2185_vm4, %vm2186_vm3  ;;  %vm2199_vm8 = vweird.f32 %v2049_v29  ;;  %v2203_v12 = vand.u32 2147483647, %v2049_v29  ;;  %v2205_v14 = vand.u32 2147483648, %v2049_v29 }
 0x367   : > { %v2182_v36 = vsub.f32 1.0, %v2181_v54 }
 0x368   : > { %v2206_v60 = vor.u32 1.1754944e-38, %v2205_v14  ;;  %vm2204_vm10 = vcmp.eq.f32.partialorder %v2203_v12, 8.507059e+37 }
 0x369   : > { %v2183_v58 = vmul.f32 %v5617_v4, %v2182_v36 }
 0x36b   : > { %v2184_v56 = vadd.f32 %v5617_v4, %v2183_v58 }
 0x36c   : > { %v5619_v55 = vpop.eup %5618 }
 0x36d   : > { %v2195_v57 = vmul.f32 %v5619_v55, %v2049_v29  ;;  %v2188_v3 = vsel %vm2187_vm5, %v5617_v4, %v2184_v56  ;;  %vm2200_vm6 = vweird.f32 %v5619_v55 }
 0x36e   : > { %v2193_v9 = vsel %vm2190_vm7, %v2192_v5, %v2188_v3  ;;  %vm6865_vm9 = vmor %vm2199_vm8, %vm2200_vm6 }
 0x36f   : > { %v2196_v28 = vsub.f32 1.0, %v2195_v57 }
 0x371   : > { %v2197_v62 = vmul.f32 %v5619_v55, %v2196_v28 }
 0x373   : > { %v2198_v50 = vadd.f32 %v5619_v55, %v2197_v62 }
 0x375   : > { %v6851_v59 = vpop.xlane.xlu2 %2063  ;;  %v2202_v17 = vsel %vm6865_vm9, %v5619_v55, %v2198_v50 }
 0x376   : > { %5620 = vrcp.f32 %v6851_v59  ;;  %v6854_v23 = vpop.xlane.xlu1 %2057  ;;  %v2273_v53 = vand.u32 2147483647, %v6851_v59  ;;  %v2275_v52 = vand.u32 2147483648, %v6851_v59  ;;  %vm2269_vm11 = vweird.f32 %v6851_v59 }
 0x377   : > { %5622 = vrcp.f32 %v6854_v23  ;;  %v2245_v18 = vand.u32 2147483647, %v6854_v23  ;;  %v2247_v34 = vand.u32 2147483648, %v6854_v23  ;;  %v2207_v43 = vsel %vm2204_vm10, %v2206_v60, %v2202_v17 }
 0x378   : > { %vm2241_vm12 = vweird.f32 %v6854_v23  ;;  %vm6890_vm13 = vcmp.eq.f32.partialorder %v2273_v53, 8.507059e+37  ;;  %v2276_v30 = vor.u32 1.1754944e-38, %v2275_v52 }
 0x379   : > { %v2248_v24 = vor.u32 1.1754944e-38, %v2247_v34  ;;  %vm6898_vm14 = vcmp.eq.f32.partialorder %v2245_v18, 8.507059e+37 }
 0x37a   : > { %v2097_v8 = vpop.f32.mrf.mxu2 }
 0x37b   : > { %v6882_v20 = vmul.f32 %v2193_v9, %v2097_v8 }
 0x37c   : > { %v6857_v61 = vpop.eup %5620 }
 0x37d   : > { %v6859_v6 = vpop.eup %5622  ;;  %v2265_v7 = vmul.f32 %v6857_v61, %v6851_v59  ;;  %v6863_v10 = vpop.xlane.xlu0 %2066  ;;  %v2303_v26 = vrot.slane %v6882_v20, 4  ;;  %vm2270_vm15 = vweird.f32 %v6857_v61 }
 0x37e   : > { %v2237_v15 = vmul.f32 %v6859_v6, %v6854_v23  ;;  %5624 = vrcp.f32 %v6863_v10  ;;  %v6872_v44 = vpop.xlane.xlu2 %2060  ;;  %v6874_v16 = vpop.xlane.xlu1 %2051  ;;  %vm2242_vm3 = vweird.f32 %v6859_v6  ;;  %v2287_v49 = vand.u32 2147483647, %v6863_v10  ;;  %vm6928_vm6 = vmor %vm2269_vm11, %vm2270_vm15 }
 0x37f   : > { %v2266_v47 = vsub.f32 1.0, %v2265_v7  ;;  %5626 = vrcp.f32 %v6872_v44  ;;  %v2217_v35 = vand.u32 2147483647, %v6874_v16  ;;  %v2219_v33 = vand.u32 2147483648, %v6874_v16  ;;  %vm6939_vm8 = vmor %vm2241_vm12, %vm2242_vm3 }
 0x380   : > { %v2238_v19 = vsub.f32 1.0, %v2237_v15  ;;  %5628 = vrcp.f32 %v6874_v16  ;;  %vm2213_vm4 = vweird.f32 %v6874_v16  ;;  %v2261_v45 = vand.u32 2147483648, %v6872_v44 }
 0x381   : > { %v2267_v21 = vmul.f32 %v6857_v61, %v2266_v47  ;;  %vm6920_vm5 = vcmp.eq.f32.partialorder %v2217_v35, 8.507059e+37  ;;  %vm2255_vm7 = vweird.f32 %v6872_v44  ;;  %v2259_v55 = vand.u32 2147483647, %v6872_v44 }
 0x382   : > { %v2239_v22 = vmul.f32 %v6859_v6, %v2238_v19  ;;  %v2099_v29 = vpop.f32.mrf.mxu2  ;;  %v2289_v36 = vand.u32 2147483648, %v6863_v10  ;;  %v2220_v28 = vor.u32 1.1754944e-38, %v2219_v33  ;;  %v2262_v2 = vor.u32 1.1754944e-38, %v2261_v45  ;;  %v2123_v11 = vpop.f32.mrf.mxu3 }
 0x383   : > { %v2268_v37 = vadd.f32 %v6857_v61, %v2267_v21  ;;  %vm2283_vm9 = vweird.f32 %v6863_v10  ;;  %v6952_v23 = vmul.f32 %v2207_v43, %v2099_v29  ;;  %vm6954_vm11 = vcmp.eq.f32.partialorder %v2287_v49, 8.507059e+37 }
 0x384   : > { %v6894_v25 = vpop.eup %5624  ;;  %v2240_v42 = vadd.f32 %v6859_v6, %v2239_v22  ;;  %vm6961_vm12 = vcmp.eq.f32.partialorder %v2259_v55, 8.507059e+37  ;;  %v2290_v8 = vor.u32 1.1754944e-38, %v2289_v36 }
 0x385   : > { %v6903_v31 = vpop.eup %5626  ;;  %v2279_v32 = vmul.f32 %v6894_v25, %v6863_v10  ;;  %v2272_v59 = vsel %vm6928_vm6, %v6857_v61, %v2268_v37  ;;  %vm2284_vm15 = vweird.f32 %v6894_v25  ;;  %v2359_v19 = vrot.slane %v6952_v23, 4 }
 0x386   : > { %v5629_v38 = vpop.eup %5628  ;;  %v2251_v39 = vmul.f32 %v6903_v31, %v6872_v44  ;;  %v6913_v41 = vpop.xlane.xlu2 %2054  ;;  %v2244_v62 = vsel %vm6939_vm8, %v6859_v6, %v2240_v42  ;;  %v2277_v7 = vsel %vm6890_vm13, %v2276_v30, %v2272_v59  ;;  %vm2256_vm3 = vweird.f32 %v6903_v31 }
 0x387   : > { %v2280_v46 = vsub.f32 1.0, %v2279_v32  ;;  %v2209_v48 = vmul.f32 %v5629_v38, %v6874_v16  ;;  %5630 = vrcp.f32 %v6913_v41  ;;  %vm2214_vm10 = vweird.f32 %v5629_v38 }
 0x388   : > { %v2252_v51 = vsub.f32 1.0, %v2251_v39  ;;  %v2231_v5 = vand.u32 2147483647, %v6913_v41  ;;  %v2249_v15 = vsel %vm6898_vm14, %v2248_v24, %v2244_v62  ;;  %vm2215_vm13 = vmor %vm2213_vm4, %vm2214_vm10  ;;  %v2233_v60 = vand.u32 2147483648, %v6913_v41 }
 0x389   : > { %v2210_v57 = vsub.f32 1.0, %v2209_v48  ;;  %v2281_v56 = vmul.f32 %v6894_v25, %v2280_v46  ;;  %vm6986_vm14 = vmor %vm2283_vm9, %vm2284_vm15  ;;  %vm2227_vm4 = vweird.f32 %v6913_v41  ;;  %vm2547_vm9 = vcmask 523264  }
 0x38a   : > { %v2253_v0 = vmul.f32 %v6903_v31, %v2252_v51  ;;  %vm6991_vm6 = vcmp.eq.f32.partialorder %v2231_v5, 8.507059e+37  ;;  %v2234_v45 = vor.u32 1.1754944e-38, %v2233_v60  ;;  %vm2550_vm10 = vcmask 785408  }
 0x38b   : > { %v2211_v3 = vmul.f32 %v5629_v38, %v2210_v57  ;;  %v2282_v53 = vadd.f32 %v6894_v25, %v2281_v56  ;;  %v2125_v57 = vpop.f32.mrf.mxu3 }
 0x38c   : > { %v2175_v61 = vpop.f32.mrf.mxu1  ;;  %v2254_v34 = vadd.f32 %v6903_v31, %v2253_v0 }
 0x38d   : > { %v5631_v9 = vpop.eup %5630  ;;  %v2212_v12 = vadd.f32 %v5629_v38, %v2211_v3  ;;  %v2149_v14 = vpop.f32.mrf.mxu0  ;;  %v2298_v17 = vmul.f32 %v2277_v7, %v2175_v61  ;;  %v2286_v10 = vsel %vm6986_vm14, %v6894_v25, %v2282_v53 }
 0x38e   : > { %v2223_v47 = vmul.f32 %v5631_v9, %v6913_v41  ;;  %v2296_v18 = vmul.f32 %v2249_v15, %v2149_v14  ;;  %vm2228_vm8 = vweird.f32 %v5631_v9  ;;  %v2291_v48 = vsel %vm6954_vm11, %v2290_v8, %v2286_v10 }
 0x38f   : > { %v2216_v52 = vsel %vm2215_vm13, %v5629_v38, %v2212_v12  ;;  %v2313_v21 = vrot.slane %v2298_v17, 4 }
 0x390   : > { %v2221_v22 = vsel %vm6920_vm5, %v2220_v28, %v2216_v52  ;;  %v2224_v43 = vsub.f32 1.0, %v2223_v47  ;;  %v2300_v24 = vrot.slane %v2296_v18, 4  ;;  %v2304_v16 = vsel %vm1212_vm0, %v2296_v18, %v2303_v26  ;;  %vm6997_vm5 = vmor %vm2255_vm7, %vm2256_vm3 }
 0x391   : > { %v2294_v35 = vmul.f32 %v2221_v22, %v2123_v11  ;;  %v2258_v33 = vsel %vm6997_vm5, %v6903_v31, %v2254_v34  ;;  %v2312_v38 = vperm.slane %v2304_v16, %v6578_v63  ;;  %vm2229_vm7 = vmor %vm2227_vm4, %vm2228_vm8 }
 0x392   : > { %v2225_v26 = vmul.f32 %v5631_v9, %v2224_v43  ;;  %v2302_v32 = vsel %vm1212_vm0, %v2300_v24, %v6882_v20  ;;  %v2263_v51 = vsel %vm6961_vm12, %v2262_v2, %v2258_v33 }
 0x393   : > { %v2315_v37 = vrot.slane %v2294_v35, 4  ;;  %v2308_v44 = vperm.slane %v2302_v32, %v6578_v63  ;;  %v2314_v39 = vsel %vm1212_vm0, %v2313_v21, %v2294_v35  ;;  %v2339_v58 = vrot.slane %v2312_v38, 4 }
 0x394   : > { %v2226_v42 = vadd.f32 %v5631_v9, %v2225_v26  ;;  %v2320_v25 = vperm.slane %v2314_v39, %v6578_v63  ;;  %v2177_v46 = vpop.f32.mrf.mxu1 }
 0x395   : > { %v2327_v20 = vrot.slane %v2308_v44, 4  ;;  %v2316_v31 = vsel %vm1212_vm0, %v2298_v17, %v2315_v37  ;;  %v2151_v49 = vpop.f32.mrf.mxu0  ;;  %v2299_v29 = vmul.f32 %v2291_v48, %v2177_v46 }
 0x396   : > { %v2230_v4 = vsel %vm2229_vm7, %v5631_v9, %v2226_v42  ;;  %v2324_v54 = vperm.slane %v2316_v31, %v6578_v63  ;;  %v2325_v55 = vrot.slane %v2320_v25, 4  ;;  %v2297_v36 = vmul.f32 %v2263_v51, %v2151_v49 }
 0x397   : > { %v2235_v28 = vsel %vm6991_vm6, %v2234_v45, %v2230_v4  ;;  %v2328_v41 = vsel %vm1212_vm0, %v2320_v25, %v2327_v20  ;;  %v2369_v59 = vrot.slane %v2299_v29, 4 }
 0x398   : > { %v2295_v56 = vmul.f32 %v2235_v28, %v2125_v57  ;;  %v2326_v62 = vsel %vm1212_vm0, %v2325_v55, %v2308_v44  ;;  %v2336_v0 = vperm.slane %v2328_v41, %v6583_v13  ;;  %v2337_v2 = vrot.slane %v2324_v54, 4 }
 0x399   : > { %v2332_v3 = vperm.slane %v2326_v62, %v6583_v13  ;;  %v2340_v50 = vsel %vm1212_vm0, %v2324_v54, %v2339_v58  ;;  %v2357_v5 = vrot.slane %v2297_v36, 4  ;;  %v2360_v61 = vsel %vm1212_vm0, %v2297_v36, %v2359_v19 }
 0x39a   : > { %v2371_v7 = vrot.slane %v2295_v56, 4  ;;  %v2338_v6 = vsel %vm1212_vm0, %v2337_v2, %v2312_v38  ;;  %v2348_v8 = vperm.slane %v2340_v50, %v6583_v13  ;;  %v2351_v9 = vrot.slane %v2336_v0, 4 }
 0x39b   : > { %v2344_v11 = vperm.slane %v2338_v6, %v6583_v13  ;;  %v2349_v12 = vrot.slane %v2332_v3, 4  ;;  %v2358_v14 = vsel %vm1212_vm0, %v2357_v5, %v6952_v23  ;;  %v2368_v15 = vperm.slane %v2360_v61, %v6578_v63 }
 0x39c   : > { %v2352_v17 = vsel %vm1212_vm0, 0.0, %v2351_v9  ;;  %v2355_v53 = vrot.slane %v2348_v8, 4  ;;  %v2413_v47 = vsel %vm1212_vm0, %v2351_v9, %v2332_v3  ;;  %v2364_v18 = vperm.slane %v2358_v14, %v6578_v63 }
 0x39d   : > { %v2350_v34 = vsel %vm1212_vm0, 0.0, %v2349_v12  ;;  %v2353_v19 = vrot.slane %v2344_v11, 4  ;;  %v2418_v52 = vrot.slane %v2352_v17, 4  ;;  %v2395_v60 = vrot.slane %v2368_v15, 4 }
 0x39e   : > { %v2356_v21 = vsel %vm1212_vm0, 0.0, %v2355_v53  ;;  %v2424_v22 = vsel %vm1212_vm0, %v2355_v53, %v2344_v11  ;;  %v2383_v43 = vrot.slane %v2364_v18, 4  ;;  %v2370_v23 = vsel %vm1212_vm0, %v2369_v59, %v2295_v56 }
 0x39f   : > { %v2354_v24 = vsel %vm1212_vm0, 0.0, %v2353_v19  ;;  %v2429_v16 = vrot.slane %v2356_v21, 4  ;;  %v2372_v40 = vsel %vm1212_vm0, %v2299_v29, %v2371_v7  ;;  %v2376_v35 = vperm.slane %v2370_v23, %v6578_v63 }
 0x3a0   : > { %v2380_v27 = vperm.slane %v2372_v40, %v6578_v63  ;;  %v2417_v30 = vperm.slane %v2413_v47, %v6578_v63  ;;  %v2419_v10 = vsel %vm1212_vm0, %v2418_v52, %v2350_v34  ;;  %v2428_v26 = vperm.slane %v2424_v22, %v6578_v63 }
 0x3a1   : > { %v2381_v32 = vrot.slane %v2376_v35, 4  ;;  %v2384_v33 = vsel %vm1212_vm0, %v2376_v35, %v2383_v43  ;;  %v2423_v37 = vperm.slane %v2419_v10, %v6578_v63  ;;  %v2430_v44 = vsel %vm1212_vm0, %v2429_v16, %v2354_v24 }
 0x3a2   : > { %v2392_v38 = vperm.slane %v2384_v33, %v6583_v13  ;;  %v2393_v39 = vrot.slane %v2380_v27, 4  ;;  %v2396_v42 = vsel %vm1212_vm0, %v2380_v27, %v2395_v60  ;;  %v2434_v45 = vperm.slane %v2430_v44, %v6578_v63 }
 0x3a3   : > { %v2382_v25 = vsel %vm1212_vm0, %v2381_v32, %v2364_v18  ;;  %v2404_v46 = vperm.slane %v2396_v42, %v6583_v13  ;;  %v2437_v48 = vrot.slane %v2417_v30, 4  ;;  %v2449_v20 = vrot.slane %v2428_v26, 4 }
 0x3a4   : > { %v2388_v31 = vperm.slane %v2382_v25, %v6583_v13  ;;  %v2394_v49 = vsel %vm1212_vm0, %v2393_v39, %v2368_v15  ;;  %v2407_v51 = vrot.slane %v2392_v38, 4  ;;  %v2435_v58 = vrot.slane %v2423_v37, 4 }
 0x3a5   : > { %v2400_v29 = vperm.slane %v2394_v49, %v6583_v13  ;;  %v2411_v4 = vrot.slane %v2404_v46, 4  ;;  %v2438_v54 = vsel %vm1212_vm0, %v2423_v37, %v2437_v48  ;;  %v2450_v55 = vsel %vm1212_vm0, %v2434_v45, %v2449_v20  ;;  %v5326_v49 = vld [vmem:[#allocation15 + $0x38] sm:$0xff] }
 0x3a6   : > { %v2405_v36 = vrot.slane %v2388_v31, 4  ;;  %v2408_v57 = vsel %vm1212_vm0, 0.0, %v2407_v51  ;;  %v2467_v28 = vsel %vm1212_vm0, %v2407_v51, %v2388_v31  ;;  %v2446_v3 = vperm.slane %v2438_v54, %v6583_v13  ;;  %2603 = vmatpush.bf16.msra.mxu2 %v5326_v49  ;;  %v5325_v51 = vld [vmem:[#allocation15 + $0x30] sm:$0xff]  ;;  %v5322_v54 = vld [vmem:[#allocation15 + $0x18] sm:$0xff] }
 0x3a7   : > { %v2409_v41 = vrot.slane %v2400_v29, 4  ;;  %v2412_v59 = vsel %vm1212_vm0, 0.0, %v2411_v4  ;;  %v2472_v56 = vrot.slane %v2408_v57, 4  ;;  %v2478_v62 = vsel %vm1212_vm0, %v2411_v4, %v2400_v29  ;;  %v5324_v29 = vld [vmem:[#allocation15 + $0x28] sm:$0xff]  ;;  %v5323_v4 = vld [vmem:[#allocation15 + $0x20] sm:$0xff] }
 0x3a8   : > { %v2406_v0 = vsel %vm1212_vm0, 0.0, %v2405_v36  ;;  %v2483_v2 = vrot.slane %v2412_v59, 4  ;;  %v2458_v50 = vperm.slane %v2450_v55, %v6583_v13  ;;  %v2471_v61 = vperm.slane %v2467_v28, %v6578_v63  ;;  %v5321_v55 = vld [vmem:[#allocation15 + $0x10] sm:$0xff]  ;;  %v5320_v36 = vld [vmem:[#allocation15 + $0x8] sm:$0xff]  ;;  %v5319_v57 = vld [vmem:[#allocation15] sm:$0xff] }
 0x3a9   : > { %v2410_v5 = vsel %vm1212_vm0, 0.0, %v2409_v41  ;;  %v2473_v7 = vsel %vm1212_vm0, %v2472_v56, %v2406_v0  ;;  %v2482_v6 = vperm.slane %v2478_v62, %v6578_v63  ;;  %v2436_v15 = vsel %vm1212_vm0, %v2435_v58, %v2417_v30 }
 0x3aa   : > { %v2477_v8 = vperm.slane %v2473_v7, %v6578_v63  ;;  %v2484_v9 = vsel %vm1212_vm0, %v2483_v2, %v2410_v5  ;;  %v2491_v12 = vrot.slane %v2471_v61, 4  ;;  %v2465_v17 = vrot.slane %v2446_v3, 4  ;;  %2604 = vmatpush.bf16.msra.mxu2 %v5325_v51  ;;  %v5329_v51 = vld [vmem:[#allocation17 + $0x10] sm:$0xff] }
 0x3ab   : > { %v2488_v11 = vperm.slane %v2484_v9, %v6578_v63  ;;  %v2503_v14 = vrot.slane %v2482_v6, 4  ;;  %v2442_v53 = vperm.slane %v2436_v15, %v6583_v13  ;;  %v2447_v47 = vrot.slane %v2434_v45, 4  ;;  %v5679_v15 = vld [vmem:[%s6490_s14] sm:$0xff] }
 0x3ac   : > { %v2489_v18 = vrot.slane %v2477_v8, 4  ;;  %v2492_v34 = vsel %vm1212_vm0, %v2477_v8, %v2491_v12  ;;  %v2463_v52 = vrot.slane %v2458_v50, 4  ;;  %v2466_v32 = vsel %vm1212_vm0, %v2458_v50, %v2465_v17 }
 0x3ad   : > { %v2504_v19 = vsel %vm1212_vm0, %v2488_v11, %v2503_v14  ;;  %v2501_v60 = vrot.slane %v2488_v11, 4  ;;  %v2500_v21 = vperm.slane %v2492_v34, %v6583_v13  ;;  %v2448_v43 = vsel %vm1212_vm0, %v2447_v47, %v2428_v26 }
 0x3ae   : > { %v2512_v22 = vperm.slane %v2504_v19, %v6583_v13  ;;  %v2454_v23 = vperm.slane %v2448_v43, %v6583_v13  ;;  %v2461_v24 = vrot.slane %v2442_v53, 4  ;;  %v2490_v16 = vsel %vm1212_vm0, %v2489_v18, %v2471_v61  ;;  %2605 = vmatpush.bf16.msra.mxu2 %v5324_v29  ;;  %v5680_v18 = vld [vmem:[%s6490_s14 + $0x8] sm:$0xff]  ;;  %v2672_v19 = vld [vmem:[#allocation4] sm:$0xf]  ;;  %s4631_s14 = sshll.u32 %s4628_s6, 4  ;;  %s4632_s14 = int_to_ptr.hbm [resolvable:$true] %s4631_s14 }
 0x3af   : > { %v2502_v40 = vsel %vm1212_vm0, %v2501_v60, %v2482_v6  ;;  %v2519_v35 = vrot.slane %v2500_v21, 4  ;;  %v2496_v30 = vperm.slane %v2490_v16, %v6583_v13  ;;  %v2464_v33 = vsel %vm1212_vm0, %v2463_v52, %v2446_v3  ;;  %s6088_s21 = sshra.s32 %s4632_s14, 4  ;;  %s6089_s21 = int_to_ptr.hbm [resolvable:$true] %s6088_s21 }
 0x3b0   : > { %v2517_v27 = vrot.slane %v2512_v22, 4  ;;  %v2508_v10 = vperm.slane %v2502_v40, %v6583_v13  ;;  %v2459_v37 = vrot.slane %v2454_v23, 4  ;;  %v2462_v46 = vsel %vm1212_vm0, %v2454_v23, %v2461_v24  ;;  %s6090_s17 = scalar_lea.hbm %s6089_s21, 16  ;;  %p6095_p7 = scmp.lt.s32.totalorder %s6089_s21, %s7826_s18 }
 0x3b1   : > { %v2520_v26 = vsel %vm1212_vm0, %v2512_v22, %v2519_v35  ;;  %v2515_v39 = vrot.slane %v2496_v30, 4  ;;  %v2554_v11 = vperm.slane %v6827_v1, 3  ;;  %v6190_v52 = vmov 128.0   ;;  %p6091_p1 = scmp.ne.s32.totalorder %s6089_s21, %s6090_s17  ;;  %p6096_p9 = scmp.lt.s32.totalorder %s6094_s27, %s6090_s17 }
 0x3b2   : > { %v2518_v44 = vsel %vm1212_vm0, %v2517_v27, %v2500_v21  ;;  %v2513_v38 = vrot.slane %v2508_v10, 4  ;;  %v5580_v42 = vpack.i.bf16 %v2520_v26, %v2466_v32  ;;  %v2460_v25 = vsel %vm1212_vm0, %v2459_v37, %v2442_v53  ;;  %2606 = vmatpush.bf16.msra.mxu2 %v5323_v4  ;;  %v5334_v37 = vld [vmem:[#allocation17 + $0x38] sm:$0xff]  ;;  %v5333_v26 = vld [vmem:[#allocation17 + $0x30] sm:$0xff] }
 0x3b3   : > { %v5575_v45 = vpack.i.bf16 %v2518_v44, %v2464_v33  ;;  %v2516_v48 = vsel %vm1212_vm0, %v2508_v10, %v2515_v39  ;;  %5632 = vrcp.f32 %v6190_v52  ;;  %v7123_v33 = vld [vmem:[#allocation4 + $0x4] sm:$0xf]  ;;  %2758 = vmatpush.bf16.msra.mxu3 %v5334_v37  ;;  %v5332_v44 = vld [vmem:[#allocation17 + $0x28] sm:$0xff]  ;;  %p6092_p3 = pnand %p6091_p1, %p6421_p0  ;;  %p6097_p5 = por %p6096_p9, %p6095_p7 }
 0x3b4   : > { %v2514_v20 = vsel %vm1212_vm0, %v2513_v38, %v2496_v30  ;;  %5581 = vrot.lane.b32.xlu2 %v5580_v42, %s6187_s10  ;;  %v5570_v31 = vpack.i.bf16 %v2516_v48, %v2462_v46  ;;  %v5331_v39 = vld [vmem:[#allocation17 + $0x20] sm:$0xff]  ;;  %v5330_v46 = vld [vmem:[#allocation17 + $0x18] sm:$0xff]  ;;  %v3035_v48 = vshrl.u32 %v2672_v19, 16 }
 0x3b5   : > { %5576 = vrot.lane.b32.xlu1 %v5575_v45, %s6186_s9  ;;  %p6093_p13 = pneg %p6092_p3 }
 0x3b6   : > { %5571 = vrot.lane.b32.xlu0 %v5570_v31, %s6185_s22  ;;  %2607 = vmatpush.bf16.msra.mxu2 %v5322_v54 }
 0x3b7   : > { %2759 = vmatpush.bf16.msra.mxu3 %v5333_v26  ;;  %p6098_p8 = pnand %p6097_p5, %p6093_p13 }
 0x3b9   : > { %v5633_v60 = vpop.eup %5632 }
 0x3ba   : > { %2608 = vmatpush.bf16.msra.mxu2 %v5321_v55  ;;  %v2624_v21 = vmul.f32 128.0, %v5633_v60  ;;  %vm2628_vm11 = vweird.f32 %v5633_v60 }
 0x3bb   : > { %2760 = vmatpush.bf16.msra.mxu3 %v5332_v44 }
 0x3bc   : > { %v2625_v1 = vsub.f32 1.0, %v2624_v21 }
 0x3be   : > { %2609 = vmatpush.bf16.msra.mxu2 %v5320_v36  ;;  %v2626_v22 = vmul.f32 %v5633_v60, %v2625_v1 }
 0x3bf   : > { %2761 = vmatpush.bf16.msra.mxu3 %v5331_v39 }
 0x3c0   : > { %v2627_v43 = vadd.f32 %v5633_v60, %v2626_v22 }
 0x3c2   : > { %2610 = vmatpush.bf16.msra.mxu2 %v5319_v57  ;;  %v7110_v23 = vsel %vm2628_vm11, %v5633_v60, %v2627_v43 }
 0x3c3   : > { %2762 = vmatpush.bf16.msra.mxu3 %v5330_v46 }
 0x3c7   : > { %2763 = vmatpush.bf16.msra.mxu3 %v5329_v51 }
 0x40e   : > { %v5582_v58 = vpop.permute.xlu2 %5581 }
 0x40f   : > { %v5584_v2 = vunpack.i.h.bf16 %v5582_v58  ;;  %v5583_v3 = vunpack.i.l.bf16 %v5582_v58 }
 0x427   : > { %v5577_v28 = vpop.permute.xlu1 %5576 }
 0x428   : > { %v5572_v41 = vpop.permute.xlu0 %5571  ;;  %v5579_v62 = vunpack.i.h.bf16 %v5577_v28  ;;  %v5578_v0 = vunpack.i.l.bf16 %v5577_v28 }
 0x429   : > { %v5574_v59 = vunpack.i.h.bf16 %v5572_v41  ;;  %v5573_v56 = vunpack.i.l.bf16 %v5572_v41 }
 0x42b   : > { %v2546_v50 = vsel %vm1896_vm1, %v2514_v20, %v5574_v59  ;;  %v2545_v5 = vsel %vm1896_vm1, %v2460_v25, %v5573_v56  ;;  %v5328_v59 = vld [vmem:[#allocation17 + $0x8] sm:$0xff] }
 0x42c   : > { %v2549_v61 = vsel %vm2547_vm9, %v2546_v50, %v5579_v62  ;;  %v2548_v7 = vsel %vm2547_vm9, %v2545_v5, %v5578_v0  ;;  %2764 = vmatpush.bf16.msra.mxu3 %v5328_v59 }
 0x42d   : > { %v2551_v6 = vsel %vm2550_vm10, %v2548_v7, %v5583_v3  ;;  %v2552_v8 = vsel %vm2550_vm10, %v2549_v61, %v5584_v2 }
 0x42e   : > { %v2553_v9 = vpack.c.bf16 %v2552_v8, %v2551_v6 }
 0x430   : > { %2611 = vmatmul.bf16.vlgmr.msra.gmra.mxu2 %v2553_v9 }
 0x4b3   : > { %v2612_v12 = vpop.f32.mrf.mxu2 }
 0x4b4   : > { %v2613_v14 = vadd.f32 %v2612_v12, %v2554_v11  ;;  %v5327_v12 = vld [vmem:[#allocation17] sm:$0xff] }
 0x4b5   : > { %2765 = vmatpush.bf16.msra.mxu3 %v5327_v12 }
 0x4b6   : > { %v2617_v17 = vadd.f32 %v5679_v15, %v2613_v14 }
 0x4b8   : > { %2619 = vadd.xlane.f32.xlu0 %v2617_v17 }
 0x4bb   : > { %v2614_v53 = vpop.f32.mrf.mxu2 }
 0x4bc   : > { %v2615_v47 = vadd.f32 %v2614_v53, %v2554_v11 }
 0x4be   : > { %v2618_v34 = vadd.f32 %v5680_v18, %v2615_v47 }
 0x4c0   : > { %2621 = vadd.xlane.f32.xlu1 %v2618_v34 }
 0x4d9   : > { %3020 = vrot.lane.b32.xlu1 %v2672_v19, %s6187_s10 }
 0x4e1   : > { %3028 = vrot.lane.b32.xlu1 %v2672_v19, %s6185_s22 }
 0x52b   : > { %v2620_v24 = vpop.xlane.xlu0 %2619 }
 0x52c   : > { %v2630_v16 = vmul.f32 %v7110_v23, %v2620_v24 }
 0x52e   : > { %v7113_v40 = vsub.f32 %v2617_v17, %v2630_v16 }
 0x530   : > { %v2634_v35 = vmul.f32 %v7113_v40, %v7113_v40 }
 0x532   : > { %2636 = vadd.xlane.f32.xlu2 %v2634_v35  ;;  %v713_v35 = vld [vmem:[#allocation26 + $0x8] sm:$0xff] }
 0x533   : > { %v2622_v27 = vpop.xlane.xlu1 %2621  ;;  %v2666_v39 = vperm.slane %v713_v35, 1 }
 0x534   : > { %v2631_v30 = vmul.f32 %v7110_v23, %v2622_v27 }
 0x536   : > { %v7118_v10 = vsub.f32 %v2618_v34, %v2631_v30 }
 0x538   : > { %v2635_v32 = vmul.f32 %v7118_v10, %v7118_v10 }
 0x53a   : > { %2638 = vadd.xlane.f32.xlu0 %v2635_v32 }
 0x54a   : > { %3024 = vrot.lane.b32.xlu2 %v2672_v19, %s6186_s9 }
 0x54b   : > { %v3021_v38 = vpop.permute.xlu1 %3020 }
 0x54c   : > { %v3036_v42 = vshrl.u32 %v3021_v38, 16  ;;  %v3034_v31 = vpack.i.b16 %v3021_v38, %v2672_v19 }
 0x54e   : > { %3022 = vrot.lane.b32.xlu0 %v7123_v33, %s6187_s10  ;;  %v3037_v49 = vpack.i.b16 %v3036_v42, %v3035_v48  ;;  %v3060_v4 = vperm.slane %v3034_v31, %v6578_v63  ;;  %v3047_v31 = vshrl.u32 %v7123_v33, 16 }
 0x550   : > { %v3086_v54 = vperm.slane %v3037_v49, %v6578_v63  ;;  %v3068_v3 = vrot.slane %v3060_v4, 4 }
 0x552   : > { %3030 = vrot.lane.b32.xlu2 %v7123_v33, %s6185_s22  ;;  %v3094_v5 = vrot.slane %v3086_v54, 4 }
 0x553   : > { %v3029_v29 = vpop.permute.xlu1 %3028 }
 0x554   : > { %v3042_v57 = vshrl.u32 %v3029_v29, 16 }
 0x556   : > { %3026 = vrot.lane.b32.xlu0 %v7123_v33, %s6186_s9 }
 0x5a5   : > { %v2637_v45 = vpop.xlane.xlu2 %2636 }
 0x5a6   : > { %v2640_v25 = vmul.f32 %v2637_v45, %v7110_v23 }
 0x5a8   : > { %v2642_v20 = vadd.f32 1e-05, %v2640_v25 }
 0x5aa   : > { %5634 = vrsqrt.f32 %v2642_v20  ;;  %vm2650_vm15 = vweird.f32 %v2642_v20 }
 0x5ad   : > { %v3025_v55 = vpop.permute.xlu2 %3024  ;;  %v2639_v36 = vpop.xlane.xlu0 %2638 }
 0x5ae   : > { %v3040_v28 = vpack.i.b16 %v3029_v29, %v3025_v55  ;;  %v3041_v58 = vshrl.u32 %v3025_v55, 16  ;;  %v2641_v41 = vmul.f32 %v2639_v36, %v7110_v23  ;;  %v2669_v29 = vperm.slane %v713_v35, 2 }
 0x5b0   : > { %v5635_v56 = vpop.eup %5634  ;;  %v3043_v62 = vpack.i.b16 %v3042_v57, %v3041_v58  ;;  %v3065_v0 = vperm.slane %v3040_v28, %v6578_v63  ;;  %v2643_v2 = vadd.f32 1e-05, %v2641_v41 }
 0x5b1   : > { %v2645_v50 = vmul.f32 %v5635_v56, %v2642_v20  ;;  %vm2651_vm12 = vweird.f32 %v5635_v56 }
 0x5b2   : > { %v3066_v61 = vrot.slane %v3065_v0, 4  ;;  %v3091_v7 = vperm.slane %v3043_v62, %v6578_v63  ;;  %5636 = vrsqrt.f32 %v2643_v2  ;;  %v3069_v8 = vsel %vm1212_vm0, %v3065_v0, %v3068_v3  ;;  %vm2652_vm13 = vmor %vm2650_vm15, %vm2651_vm12 }
 0x5b3   : > { %v2646_v6 = vmul.f32 %v5635_v56, %v2645_v50  ;;  %v3077_v17 = vperm.slane %v3069_v8, %v6583_v13  ;;  %vm2660_vm14 = vweird.f32 %v2643_v2 }
 0x5b4   : > { %v3092_v9 = vrot.slane %v3091_v7, 4  ;;  %v3095_v11 = vsel %vm1212_vm0, %v3091_v7, %v3094_v5  ;;  %v3067_v15 = vsel %vm1212_vm0, %v3066_v61, %v3060_v4 }
 0x5b5   : > { %v2647_v14 = vmul.f32 0.5, %v2646_v6  ;;  %v3103_v53 = vperm.slane %v3095_v11, %v6583_v13  ;;  %v3073_v52 = vperm.slane %v3067_v15, %v6583_v13  ;;  %v3080_v60 = vrot.slane %v3077_v17, 4  ;;  %v3031_v36 = vpop.permute.xlu2 %3030 }
 0x5b6   : > { %v3093_v18 = vsel %vm1212_vm0, %v3092_v9, %v3086_v54  ;;  %v3054_v59 = vshrl.u32 %v3031_v36, 16 }
 0x5b7   : > { %v2648_v47 = vsub.f32 1.5, %v2647_v14  ;;  %v3099_v21 = vperm.slane %v3093_v18, %v6583_v13  ;;  %v3106_v1 = vrot.slane %v3103_v53, 4  ;;  %v3078_v16 = vrot.slane %v3073_v52, 4 }
 0x5b8   : > { %v5637_v34 = vpop.eup %5636  ;;  %v3081_v27 = vsel %vm1212_vm0, 0, %v3080_v60  ;;  %v3160_v8 = vsel %vm1212_vm0, %v3080_v60, %v3073_v52 }
 0x5b9   : > { %v2649_v19 = vmul.f32 %v5635_v56, %v2648_v47  ;;  %v2655_v22 = vmul.f32 %v5637_v34, %v2643_v2  ;;  %v3104_v30 = vrot.slane %v3099_v21, 4  ;;  %v3107_v32 = vsel %vm1212_vm0, 0, %v3106_v1 }
 0x5ba   : > { %vm2661_vm3 = vweird.f32 %v5637_v34  ;;  %v3165_v42 = vrot.slane %v3081_v27, 4  ;;  %v3184_v45 = vrot.slane %v3107_v32, 4  ;;  %v3079_v46 = vsel %vm1212_vm0, 0, %v3078_v16 }
 0x5bb   : > { %v2656_v43 = vmul.f32 %v5637_v34, %v2655_v22  ;;  %v2653_v24 = vsel %vm2652_vm13, %v5635_v56, %v2649_v19  ;;  %v3105_v48 = vsel %vm1212_vm0, 0, %v3104_v30  ;;  %vm2662_vm4 = vmor %vm2660_vm14, %vm2661_vm3  ;;  %v3164_v18 = vperm.slane %v3160_v8, %v6578_v63 }
 0x5bc   : > { %v2664_v26 = vmul.f32 %v2653_v24, %v7113_v40  ;;  %v3166_v4 = vsel %vm1212_vm0, %v3165_v42, %v3079_v46  ;;  %v3185_v54 = vsel %vm1212_vm0, %v3184_v45, %v3105_v48 }
 0x5bd   : > { %v2657_v37 = vmul.f32 0.5, %v2656_v43  ;;  %v3170_v41 = vperm.slane %v3166_v4, %v6578_v63 }
 0x5be   : > { %v2667_v40 = vmul.f32 %v2666_v39, %v2664_v26 }
 0x5bf   : > { %v2658_v44 = vsub.f32 1.5, %v2657_v37  ;;  %v3171_v9 = vrot.slane %v3170_v41, 4 }
 0x5c0   : > { %v3023_v38 = vpop.permute.xlu0 %3022  ;;  %v7157_v62 = vadd.f32 %v2669_v29, %v2667_v40 }
 0x5c1   : > { %v3048_v25 = vshrl.u32 %v3023_v38, 16  ;;  %v2659_v20 = vmul.f32 %v5637_v34, %v2658_v44  ;;  %v3046_v49 = vpack.i.b16 %v3023_v38, %v7123_v33  ;;  %v3189_v33 = vperm.slane %v3185_v54, %v6578_v63 }
 0x5c2   : > { %v3172_v24 = vsel %vm1212_vm0, %v3171_v9, %v3164_v18 }
 0x5c3   : > { %v2663_v51 = vsel %vm2662_vm4, %v5637_v34, %v2659_v20  ;;  %v3049_v57 = vpack.i.b16 %v3048_v25, %v3047_v31  ;;  %v3112_v28 = vperm.slane %v3046_v49, %v6578_v63  ;;  %v3190_v11 = vrot.slane %v3189_v33, 4 }
 0x5c4   : > { %v2665_v55 = vmul.f32 %v2663_v51, %v7118_v10  ;;  %v3179_v10 = vsel %vm1212_vm0, %v3106_v1, %v3099_v21  ;;  %v3176_v25 = vperm.slane %v3172_v24, %v6583_v13 }
 0x5c5   : > { %v3138_v0 = vperm.slane %v3049_v57, %v6578_v63  ;;  %v3120_v5 = vrot.slane %v3112_v28, 4  ;;  %v3183_v53 = vperm.slane %v3179_v10, %v6578_v63 }
 0x5c6   : > { %v2668_v58 = vmul.f32 %v2666_v39, %v2665_v55  ;;  %v3177_v4 = vrot.slane %v3176_v25, 4 }
 0x5c7   : > { %v3146_v12 = vrot.slane %v3138_v0, 4  ;;  %v3191_v22 = vsel %vm1212_vm0, %v3190_v11, %v3183_v53 }
 0x5c8   : > { %v3027_v56 = vpop.permute.xlu0 %3026  ;;  %v7161_v50 = vadd.f32 %v2669_v29, %v2668_v58  ;;  %v3195_v37 = vperm.slane %v3191_v22, %v6583_v13 }
 0x5c9   : > { %v3052_v2 = vpack.i.b16 %v3031_v36, %v3027_v56  ;;  %v3053_v3 = vshrl.u32 %v3027_v56, 16 }
 0x5ca   : > { %v2708_v6 = vpack.c.bf16 %v7161_v50, %v7157_v62  ;;  %v3196_v49 = vrot.slane %v3195_v37, 4  ;;  %v3240_v57 = vshrl.u32 %v3195_v37, 16  ;;  %v3238_v33 = vpack.i.b16 %v3195_v37, %v3176_v25 }
 0x5cb   : > { %v3055_v61 = vpack.i.b16 %v3054_v59, %v3053_v3  ;;  %v3117_v7 = vperm.slane %v3052_v2, %v6578_v63  ;;  %v3239_v59 = vshrl.u32 %v3176_v25, 16 }
 0x5cc   : > { %2766 = vmatmul.bf16.vlgmr.msra.gmra.mxu3 %v2708_v6  ;;  %v3197_v58 = vsel %vm1212_vm0, 0, %v3196_v49  ;;  %v7212_v49 = vld [vmem:[#allocation5] sm:$0xf] }
 0x5cd   : > { %v3118_v14 = vrot.slane %v3117_v7, 4  ;;  %v3121_v15 = vsel %vm1212_vm0, %v3117_v7, %v3120_v5  ;;  %v3143_v17 = vperm.slane %v3055_v61, %v6578_v63  ;;  %v3241_v3 = vpack.i.b16 %v3240_v57, %v3239_v59 }
 0x5ce   : > { %v3129_v47 = vperm.slane %v3121_v15, %v6583_v13  ;;  %v3246_v5 = vshrl.u32 %v3197_v58, 16 }
 0x5cf   : > { %v3119_v34 = vsel %vm1212_vm0, %v3118_v14, %v3112_v28  ;;  %v3144_v19 = vrot.slane %v3143_v17, 4  ;;  %v3147_v52 = vsel %vm1212_vm0, %v3143_v17, %v3146_v12  ;;  %v3505_v12 = vunpack.c.l.b16 %v3238_v33 }
 0x5d0   : > { %v3125_v60 = vperm.slane %v3119_v34, %v6583_v13  ;;  %v3132_v21 = vrot.slane %v3129_v47, 4  ;;  %v3155_v1 = vperm.slane %v3147_v52, %v6583_v13  ;;  %v3531_v52 = vunpack.c.l.b16 %v3241_v3 }
 0x5d1   : > { %v3145_v43 = vsel %vm1212_vm0, %v3144_v19, %v3138_v0  ;;  %v3178_v0 = vsel %vm1212_vm0, 0, %v3177_v4 }
 0x5d2   : > { %v3130_v16 = vrot.slane %v3125_v60, 4  ;;  %v3133_v35 = vsel %vm1212_vm0, 0, %v3132_v21  ;;  %v3151_v27 = vperm.slane %v3145_v43, %v6583_v13  ;;  %v3158_v30 = vrot.slane %v3155_v1, 4 }
 0x5d3   : > { %v3203_v32 = vrot.slane %v3133_v35, 4  ;;  %v3198_v39 = vsel %vm1212_vm0, %v3132_v21, %v3125_v60  ;;  %v3244_v9 = vpack.i.b16 %v3197_v58, %v3178_v0  ;;  %v3245_v11 = vshrl.u32 %v3178_v0, 16 }
 0x5d4   : > { %v3131_v26 = vsel %vm1212_vm0, 0, %v3130_v16  ;;  %v3156_v44 = vrot.slane %v3151_v27, 4  ;;  %v3159_v38 = vsel %vm1212_vm0, 0, %v3158_v30  ;;  %v3217_v20 = vsel %vm1212_vm0, %v3158_v30, %v3151_v27 }
 0x5d5   : > { %v3204_v42 = vsel %vm1212_vm0, %v3203_v32, %v3131_v26  ;;  %v3222_v45 = vrot.slane %v3159_v38, 4  ;;  %v3202_v51 = vperm.slane %v3198_v39, %v6578_v63  ;;  %v3221_v54 = vperm.slane %v3217_v20, %v6578_v63 }
 0x5d6   : > { %v3157_v46 = vsel %vm1212_vm0, 0, %v3156_v44  ;;  %v3208_v48 = vperm.slane %v3204_v42, %v6578_v63  ;;  %v3247_v47 = vpack.i.b16 %v3246_v5, %v3245_v11  ;;  %v3557_v21 = vunpack.c.l.b16 %v3244_v9  ;;  %v5681_v44 = vld [vmem:[#allocation26] sm:$0xff] }
 0x5d7   : > { %v3223_v31 = vsel %vm1212_vm0, %v3222_v45, %v3157_v46  ;;  %v2709_v38 = vperm.slane %v5681_v44, 4  ;;  %v3277_v11 = vshrl.u32 %v7212_v49, 16 }
 0x5d8   : > { %v3209_v40 = vrot.slane %v3208_v48, 4  ;;  %v3227_v29 = vperm.slane %v3223_v31, %v6578_v63  ;;  %v3583_v35 = vunpack.c.l.b16 %v3247_v47 }
 0x5da   : > { %v3210_v55 = vsel %vm1212_vm0, %v3209_v40, %v3202_v51  ;;  %v3228_v36 = vrot.slane %v3227_v29, 4  ;;  %v7219_v51 = vld [vmem:[#allocation5 + $0x4] sm:$0xf] }
 0x5db   : > { %v3214_v28 = vperm.slane %v3210_v55, %v6583_v13 }
 0x5dc   : > { %v3229_v41 = vsel %vm1212_vm0, %v3228_v36, %v3221_v54 }
 0x5dd   : > { %v3233_v56 = vperm.slane %v3229_v41, %v6583_v13  ;;  %v3215_v2 = vrot.slane %v3214_v28, 4  ;;  %v3251_v10 = vshrl.u32 %v3214_v28, 16 }
 0x5df   : > { %v3250_v61 = vpack.i.b16 %v3233_v56, %v3214_v28  ;;  %v3252_v7 = vshrl.u32 %v3233_v56, 16  ;;  %v3216_v6 = vsel %vm1212_vm0, 0, %v3215_v2  ;;  %v3234_v8 = vrot.slane %v3233_v56, 4 }
 0x5e0   : > { %v3257_v18 = vshrl.u32 %v3216_v6, 16 }
 0x5e1   : > { %v3506_v14 = vunpack.c.l.b16 %v3250_v61  ;;  %v3253_v15 = vpack.i.b16 %v3252_v7, %v3251_v10  ;;  %v3235_v17 = vsel %vm1212_vm0, 0, %v3234_v8 }
 0x5e2   : > { %v3256_v53 = vpack.i.b16 %v3235_v17, %v3216_v6  ;;  %v3258_v34 = vshrl.u32 %v3235_v17, 16 }
 0x5e3   : > { %v3507_v19 = vpack.c.b16 %v3506_v14, %v3505_v12  ;;  %v3532_v60 = vunpack.c.l.b16 %v3253_v15  ;;  %v3289_v12 = vshrl.u32 %v7219_v51, 16 }
 0x5e4   : > { %v3558_v1 = vunpack.c.l.b16 %v3256_v53  ;;  %v3259_v22 = vpack.i.b16 %v3258_v34, %v3257_v18 }
 0x5e5   : > { %v3512_v43 = vsel %vm1896_vm1, %v3507_v19, 0  ;;  %v3533_v24 = vpack.c.b16 %v3532_v60, %v3531_v52 }
 0x5e6   : > { %3521 = vmatpush.bf16.xpose.msrb.mxu0 %v3512_v43  ;;  %v3559_v16 = vpack.c.b16 %v3558_v1, %v3557_v21  ;;  %v3584_v27 = vunpack.c.l.b16 %v3259_v22 }
 0x5e7   : > { %v3538_v30 = vsel %vm1896_vm1, %v3533_v24, 0 }
 0x5e8   : > { %3547 = vmatpush.bf16.xpose.msra.mxu1 %v3538_v30  ;;  %v3564_v32 = vsel %vm1896_vm1, %v3559_v16, 0  ;;  %v3585_v37 = vpack.c.b16 %v3584_v27, %v3583_v35 }
 0x5ea   : > { %v3590_v26 = vsel %vm1896_vm1, %v3585_v37, 0 }
 0x5ee   : > { %3573 = vmatpush.bf16.xpose.msra.mxu0 %v3564_v32 }
 0x5f0   : > { %3599 = vmatpush.bf16.xpose.msrb.mxu1 %v3590_v26 }
 0x64f   : > { %v2767_v39 = vpop.f32.mrf.mxu3 }
 0x650   : > { %v2768_v42 = vadd.f32 %v2767_v39, %v2709_v38 }
 0x652   : > { %v2772_v45 = vmul.f32 0.17677669, %v2768_v42 }
 0x654   : > { %v2774_v25 = vpack.c.bf16 %v2772_v45, %v2772_v45 }
 0x656   : > { %2782 = vrot.lane.b32.xlu2 %v2774_v25, %s6186_s9  ;;  %2778 = vrot.lane.b32.xlu0 %v2774_v25, %s6187_s10  ;;  %v2793_v57 = vshrl.u32 %v2774_v25, 16 }
 0x657   : > { %v2769_v46 = vpop.f32.mrf.mxu3 }
 0x658   : > { %v2770_v48 = vadd.f32 %v2769_v46, %v2709_v38 }
 0x65a   : > { %v2773_v20 = vmul.f32 0.17677669, %v2770_v48 }
 0x65c   : > { %v2775_v31 = vpack.c.bf16 %v2773_v20, %v2773_v20 }
 0x65e   : > { %2780 = vrot.lane.b32.xlu1 %v2775_v31, %s6187_s10  ;;  %2788 = vrot.lane.b32.xlu2 %v2775_v31, %s6185_s22  ;;  %v2805_v58 = vshrl.u32 %v2775_v31, 16 }
 0x65f   : > { %2784 = vrot.lane.b32.xlu0 %v2775_v31, %s6186_s9 }
 0x666   : > { %2786 = vrot.lane.b32.xlu1 %v2774_v25, %s6185_s22  ;;  %3266 = vrot.lane.b32.xlu2 %v7212_v49, %s6186_s9 }
 0x667   : > { %3262 = vrot.lane.b32.xlu0 %v7212_v49, %s6187_s10 }
 0x66e   : > { %3264 = vrot.lane.b32.xlu1 %v7219_v51, %s6187_s10  ;;  %3272 = vrot.lane.b32.xlu2 %v7219_v51, %s6185_s22 }
 0x66f   : > { %3268 = vrot.lane.b32.xlu0 %v7219_v51, %s6186_s9 }
 0x676   : > { %3270 = vrot.lane.b32.xlu1 %v7212_v49, %s6185_s22 }
 0x6b0   : > { %v2783_v40 = vpop.permute.xlu2 %2782 }
 0x6b1   : > { %v2799_v14 = vshrl.u32 %v2783_v40, 16 }
 0x6b8   : > { %v2789_v29 = vpop.permute.xlu2 %2788 }
 0x6b9   : > { %v2812_v56 = vshrl.u32 %v2789_v29, 16 }
 0x6c0   : > { %v7229_v54 = vpop.permute.xlu2 %3266 }
 0x6c1   : > { %v3283_v47 = vshrl.u32 %v7229_v54, 16 }
 0x6c8   : > { %v2779_v4 = vpop.permute.xlu0 %2778  ;;  %v7233_v6 = vpop.permute.xlu2 %3272 }
 0x6c9   : > { %v2794_v55 = vshrl.u32 %v2779_v4, 16  ;;  %v2792_v33 = vpack.i.b16 %v2779_v4, %v2774_v25  ;;  %v3296_v52 = vshrl.u32 %v7233_v6, 16 }
 0x6cb   : > { %v2795_v3 = vpack.i.b16 %v2794_v55, %v2793_v57  ;;  %v2818_v15 = vperm.slane %v2792_v33, %v6578_v63 }
 0x6cd   : > { %v2844_v18 = vperm.slane %v2795_v3, %v6578_v63  ;;  %v2826_v30 = vrot.slane %v2818_v15, 4 }
 0x6cf   : > { %v2852_v44 = vrot.slane %v2844_v18, 4 }
 0x6d0   : > { %v2781_v36 = vpop.permute.xlu1 %2780 }
 0x6d1   : > { %v2804_v28 = vpack.i.b16 %v2781_v36, %v2775_v31  ;;  %v2806_v41 = vshrl.u32 %v2781_v36, 16  ;;  %v2785_v59 = vpop.permute.xlu0 %2784 }
 0x6d2   : > { %v2810_v0 = vpack.i.b16 %v2789_v29, %v2785_v59  ;;  %v2811_v2 = vshrl.u32 %v2785_v59, 16 }
 0x6d3   : > { %v2807_v10 = vpack.i.b16 %v2806_v41, %v2805_v58  ;;  %v2870_v5 = vperm.slane %v2804_v28, %v6578_v63 }
 0x6d4   : > { %v2813_v61 = vpack.i.b16 %v2812_v56, %v2811_v2  ;;  %v2875_v7 = vperm.slane %v2810_v0, %v6578_v63 }
 0x6d5   : > { %v2878_v8 = vrot.slane %v2870_v5, 4  ;;  %v2896_v9 = vperm.slane %v2807_v10, %v6578_v63 }
 0x6d6   : > { %v2876_v17 = vrot.slane %v2875_v7, 4  ;;  %v2901_v53 = vperm.slane %v2813_v61, %v6578_v63 }
 0x6d7   : > { %v2904_v34 = vrot.slane %v2896_v9, 4  ;;  %v2879_v19 = vsel %vm1212_vm0, %v2875_v7, %v2878_v8 }
 0x6d8   : > { %v2877_v60 = vsel %vm1212_vm0, %v2876_v17, %v2870_v5  ;;  %v2887_v21 = vperm.slane %v2879_v19, %v6583_v13  ;;  %v2902_v1 = vrot.slane %v2901_v53, 4  ;;  %v2787_v22 = vpop.permute.xlu1 %2786 }
 0x6d9   : > { %v2883_v43 = vperm.slane %v2877_v60, %v6583_v13  ;;  %v2905_v24 = vsel %vm1212_vm0, %v2901_v53, %v2904_v34  ;;  %v2798_v16 = vpack.i.b16 %v2787_v22, %v2783_v40  ;;  %v2800_v35 = vshrl.u32 %v2787_v22, 16  ;;  %v3263_v27 = vpop.permute.xlu0 %3262 }
 0x6da   : > { %v2890_v32 = vrot.slane %v2887_v21, 4  ;;  %v2903_v37 = vsel %vm1212_vm0, %v2902_v1, %v2896_v9  ;;  %v2913_v26 = vperm.slane %v2905_v24, %v6583_v13  ;;  %v3276_v48 = vpack.i.b16 %v3263_v27, %v7212_v49 }
 0x6db   : > { %v2888_v38 = vrot.slane %v2883_v43, 4  ;;  %v2909_v39 = vperm.slane %v2903_v37, %v6583_v13  ;;  %v2823_v42 = vperm.slane %v2798_v16, %v6578_v63  ;;  %v2801_v46 = vpack.i.b16 %v2800_v35, %v2799_v14 }
 0x6dc   : > { %v2891_v45 = vsel %vm1212_vm0, 0, %v2890_v32  ;;  %v2916_v25 = vrot.slane %v2913_v26, 4  ;;  %v2956_v31 = vsel %vm1212_vm0, %v2890_v32, %v2883_v43  ;;  %v3278_v29 = vshrl.u32 %v3263_v27, 16 }
 0x6dd   : > { %v2914_v20 = vrot.slane %v2909_v39, 4  ;;  %v2961_v40 = vrot.slane %v2891_v45, 4  ;;  %v2889_v4 = vsel %vm1212_vm0, 0, %v2888_v38  ;;  %v2824_v36 = vrot.slane %v2823_v42, 4 }
 0x6de   : > { %v2917_v55 = vsel %vm1212_vm0, 0, %v2916_v25  ;;  %v2827_v57 = vsel %vm1212_vm0, %v2823_v42, %v2826_v30  ;;  %v7261_v41 = vsel %vm1212_vm0, %v2916_v25, %v2909_v39  ;;  %v2849_v0 = vperm.slane %v2801_v46, %v6578_v63 }
 0x6df   : > { %v2915_v28 = vsel %vm1212_vm0, 0, %v2914_v20  ;;  %v2962_v58 = vsel %vm1212_vm0, %v2961_v40, %v2889_v4  ;;  %v2980_v49 = vrot.slane %v2917_v55, 4  ;;  %v2825_v56 = vsel %vm1212_vm0, %v2824_v36, %v2818_v15 }
 0x6e0   : > { %v2966_v59 = vperm.slane %v2962_v58, %v6578_v63  ;;  %v2835_v33 = vperm.slane %v2827_v57, %v6583_v13  ;;  %v3265_v2 = vpop.permute.xlu1 %3264  ;;  %v2831_v10 = vperm.slane %v2825_v56, %v6583_v13  ;;  %v3279_v5 = vpack.i.b16 %v3278_v29, %v3277_v11 }
 0x6e1   : > { %v2981_v3 = vsel %vm1212_vm0, %v2980_v49, %v2915_v28  ;;  %v7270_v61 = vperm.slane %v3276_v48, %v6578_v63  ;;  %v2850_v14 = vrot.slane %v2849_v0, 4  ;;  %v2960_v15 = vperm.slane %v2956_v31, %v6578_v63  ;;  %v3269_v1 = vpop.permute.xlu0 %3268 }
 0x6e2   : > { %v2967_v7 = vrot.slane %v2966_v59, 4  ;;  %v2985_v8 = vperm.slane %v2981_v3, %v6578_v63  ;;  %v2838_v9 = vrot.slane %v2835_v33, 4  ;;  %v2979_v17 = vperm.slane %v7261_v41, %v6578_v63 }
 0x6e3   : > { %v2836_v53 = vrot.slane %v2831_v10, 4  ;;  %v2853_v34 = vsel %vm1212_vm0, %v2849_v0, %v2852_v44  ;;  %v2851_v11 = vsel %vm1212_vm0, %v2850_v14, %v2844_v18  ;;  %v3310_v60 = vrot.slane %v7270_v61, 4 }
 0x6e4   : > { %v2839_v19 = vsel %vm1212_vm0, 0, %v2838_v9  ;;  %v7281_v21 = vperm.slane %v3279_v5, %v6578_v63  ;;  %v2857_v43 = vperm.slane %v2851_v11, %v6583_v13  ;;  %v2861_v24 = vperm.slane %v2853_v34, %v6583_v13 }
 0x6e5   : > { %v2837_v22 = vsel %vm1212_vm0, 0, %v2836_v53  ;;  %v2918_v16 = vsel %vm1212_vm0, %v2838_v9, %v2831_v10  ;;  %v2968_v35 = vsel %vm1212_vm0, %v2967_v7, %v2960_v15  ;;  %v2986_v27 = vrot.slane %v2985_v8, 4 }
 0x6e6   : > { %v2923_v30 = vrot.slane %v2839_v19, 4  ;;  %v3288_v18 = vpack.i.b16 %v3265_v2, %v7219_v51  ;;  %v2862_v32 = vrot.slane %v2857_v43, 4  ;;  %v2864_v37 = vrot.slane %v2861_v24, 4 }
 0x6e7   : > { %v3290_v26 = vshrl.u32 %v3265_v2, 16  ;;  %v3294_v44 = vpack.i.b16 %v7233_v6, %v3269_v1  ;;  %v2922_v38 = vperm.slane %v2918_v16, %v6578_v63  ;;  %v3295_v45 = vshrl.u32 %v3269_v1, 16 }
 0x6e8   : > { %v2924_v39 = vsel %vm1212_vm0, %v2923_v30, %v2837_v22  ;;  %v3354_v42 = vperm.slane %v3288_v18, %v6578_v63  ;;  %v3271_v25 = vpop.permute.xlu1 %3270  ;;  %v2863_v46 = vsel %vm1212_vm0, 0, %v2862_v32  ;;  %v2865_v48 = vsel %vm1212_vm0, 0, %v2864_v37 }
 0x6e9   : > { %v2928_v20 = vperm.slane %v2924_v39, %v6578_v63  ;;  %v3336_v31 = vrot.slane %v7281_v21, 4  ;;  %v7298_v40 = vsel %vm1212_vm0, %v2864_v37, %v2857_v43  ;;  %v2942_v29 = vrot.slane %v2865_v48, 4 }
 0x6ea   : > { %v3291_v4 = vpack.i.b16 %v3290_v26, %v3289_v12  ;;  %v3362_v55 = vrot.slane %v3354_v42, 4  ;;  %v3297_v57 = vpack.i.b16 %v3296_v52, %v3295_v45  ;;  %v3359_v28 = vperm.slane %v3294_v44, %v6578_v63 }
 0x6eb   : > { %v2929_v36 = vrot.slane %v2928_v20, 4  ;;  %v3282_v58 = vpack.i.b16 %v3271_v25, %v7229_v54  ;;  %v2943_v41 = vsel %vm1212_vm0, %v2942_v29, %v2863_v46  ;;  %v3284_v59 = vshrl.u32 %v3271_v25, 16 }
 0x6ec   : > { %v3380_v49 = vperm.slane %v3291_v4, %v6578_v63  ;;  %v7309_v56 = vperm.slane %v2968_v35, %v6583_v13  ;;  %v2941_v51 = vperm.slane %v7298_v40, %v6578_v63  ;;  %v2947_v12 = vperm.slane %v2943_v41, %v6578_v63 }
 0x6ed   : > { %v3360_v33 = vrot.slane %v3359_v28, 4  ;;  %v3363_v6 = vsel %vm1212_vm0, %v3359_v28, %v3362_v55  ;;  %v3385_v2 = vperm.slane %v3297_v57, %v6578_v63  ;;  %v3285_v3 = vpack.i.b16 %v3284_v59, %v3283_v47 }
 0x6ee   : > { %v3388_v52 = vrot.slane %v3380_v49, 4  ;;  %v3371_v0 = vperm.slane %v3363_v6, %v6583_v13  ;;  %v2930_v10 = vsel %vm1212_vm0, %v2929_v36, %v2922_v38  ;;  %v3307_v7 = vperm.slane %v3282_v58, %v6578_v63 }
 0x6ef   : > { %v3361_v5 = vsel %vm1212_vm0, %v3360_v33, %v3354_v42  ;;  %v2987_v8 = vsel %vm1212_vm0, %v2986_v27, %v2979_v17  ;;  %v3386_v15 = vrot.slane %v3385_v2, 4  ;;  %v3333_v47 = vperm.slane %v3285_v3, %v6578_v63 }
 0x6f0   : > { %v3367_v9 = vperm.slane %v3361_v5, %v6583_v13  ;;  %v3374_v14 = vrot.slane %v3371_v0, 4  ;;  %v3389_v53 = vsel %vm1212_vm0, %v3385_v2, %v3388_v52  ;;  %v3308_v19 = vrot.slane %v3307_v7, 4 }
 0x6f1   : > { %v3397_v34 = vperm.slane %v3389_v53, %v6583_v13  ;;  %v3311_v54 = vsel %vm1212_vm0, %v3307_v7, %v3310_v60  ;;  %v2948_v11 = vrot.slane %v2947_v12, 4  ;;  %v3387_v43 = vsel %vm1212_vm0, %v3386_v15, %v3380_v49 }
 0x6f2   : > { %v3372_v1 = vrot.slane %v3367_v9, 4  ;;  %v3375_v22 = vsel %vm1212_vm0, 0, %v3374_v14  ;;  %v3393_v17 = vperm.slane %v3387_v43, %v6583_v13  ;;  %v7332_v16 = vsel %vm1212_vm0, %v3374_v14, %v3367_v9 }
 0x6f3   : > { %v3400_v24 = vrot.slane %v3397_v34, 4  ;;  %v3445_v35 = vrot.slane %v3375_v22, 4  ;;  %v3309_v60 = vsel %vm1212_vm0, %v3308_v19, %v7270_v61  ;;  %v3319_v30 = vperm.slane %v3311_v54, %v6583_v13 }
 0x6f4   : > { %v3373_v27 = vsel %vm1212_vm0, 0, %v3372_v1  ;;  %v3334_v18 = vrot.slane %v3333_v47, 4  ;;  %v3398_v32 = vrot.slane %v3393_v17, 4  ;;  %v2934_v44 = vperm.slane %v2930_v10, %v6583_v13 }
 0x6f5   : > { %v3401_v37 = vsel %vm1212_vm0, 0, %v3400_v24  ;;  %v3446_v26 = vsel %vm1212_vm0, %v3445_v35, %v3373_v27  ;;  %v3444_v38 = vperm.slane %v7332_v16, %v6578_v63  ;;  %v3315_v45 = vperm.slane %v3309_v60, %v6583_v13 }
 0x6f6   : > { %v3450_v39 = vperm.slane %v3446_v26, %v6578_v63  ;;  %v3464_v42 = vrot.slane %v3401_v37, 4  ;;  %v3399_v61 = vsel %vm1212_vm0, 0, %v3398_v32  ;;  %v3322_v25 = vrot.slane %v3319_v30, 4 }
 0x6f7   : > { %v3335_v46 = vsel %vm1212_vm0, %v3334_v18, %v7281_v21  ;;  %v3337_v48 = vsel %vm1212_vm0, %v3333_v47, %v3336_v31  ;;  %v7350_v20 = vsel %vm1212_vm0, %v3400_v24, %v3393_v17  ;;  %v3320_v29 = vrot.slane %v3315_v45, 4 }
 0x6f8   : > { %v3465_v40 = vsel %vm1212_vm0, %v3464_v42, %v3399_v61  ;;  %v3341_v4 = vperm.slane %v3335_v46, %v6583_v13  ;;  %v3451_v55 = vrot.slane %v3450_v39, 4  ;;  %v3323_v36 = vsel %vm1212_vm0, 0, %v3322_v25 }
 0x6f9   : > { %v3345_v57 = vperm.slane %v3337_v48, %v6583_v13  ;;  %v3402_v28 = vsel %vm1212_vm0, %v3322_v25, %v3315_v45  ;;  %v3469_v58 = vperm.slane %v3465_v40, %v6578_v63  ;;  %v3321_v21 = vsel %vm1212_vm0, 0, %v3320_v29 }
 0x6fa   : > { %v3346_v31 = vrot.slane %v3341_v4, 4  ;;  %v3407_v41 = vrot.slane %v3323_v36, 4  ;;  %v3406_v59 = vperm.slane %v3402_v28, %v6578_v63  ;;  %v2949_v12 = vsel %vm1212_vm0, %v2948_v11, %v2941_v51 }
 0x6fb   : > { %v3348_v49 = vrot.slane %v3345_v57, 4  ;;  %v2991_v33 = vperm.slane %v2987_v8, %v6583_v13  ;;  %v2953_v0 = vperm.slane %v2949_v12, %v6583_v13  ;;  %v2997_v2 = vshrl.u32 %v2934_v44, 16 }
 0x6fc   : > { %v3347_v6 = vsel %vm1212_vm0, 0, %v3346_v31  ;;  %v3408_v52 = vsel %vm1212_vm0, %v3407_v41, %v3321_v21  ;;  %v3009_v7 = vshrl.u32 %v7309_v56, 16  ;;  %v2935_v19 = vrot.slane %v2934_v44, 4 }
 0x6fd   : > { %v3349_v3 = vsel %vm1212_vm0, 0, %v3348_v49  ;;  %v3412_v10 = vperm.slane %v3408_v52, %v6578_v63  ;;  %v3008_v5 = vpack.i.b16 %v2991_v33, %v7309_v56  ;;  %v3421_v9 = vsel %vm1212_vm0, %v3348_v49, %v3341_v4 }
 0x6fe   : > { %v3426_v51 = vrot.slane %v3349_v3, 4  ;;  %v2996_v14 = vpack.i.b16 %v2953_v0, %v2934_v44  ;;  %v2998_v8 = vshrl.u32 %v2953_v0, 16  ;;  %v3010_v34 = vshrl.u32 %v2991_v33, 16 }
 0x6ff   : > { %v3413_v15 = vrot.slane %v3412_v10, 4  ;;  %v3503_v53 = vunpack.c.l.b16 %v3008_v5  ;;  %v2954_v1 = vrot.slane %v2953_v0, 4  ;;  %v3425_v22 = vperm.slane %v3421_v9, %v6578_v63 }
 0x700   : > { %v3427_v54 = vsel %vm1212_vm0, %v3426_v51, %v3347_v6  ;;  %v3502_v47 = vunpack.c.l.b16 %v2996_v14  ;;  %v2999_v11 = vpack.i.b16 %v2998_v8, %v2997_v2  ;;  %v3011_v17 = vpack.i.b16 %v3010_v34, %v3009_v7 }
 0x701   : > { %v3431_v43 = vperm.slane %v3427_v54, %v6578_v63  ;;  %v2973_v24 = vrot.slane %v7309_v56, 4  ;;  %v2955_v27 = vsel %vm1212_vm0, 0, %v2954_v1  ;;  %v2992_v60 = vrot.slane %v2991_v33, 4 }
 0x702   : > { %v3504_v16 = vpack.c.b16 %v3503_v53, %v3502_v47  ;;  %v3528_v35 = vunpack.c.l.b16 %v2999_v11  ;;  %v3529_v30 = vunpack.c.l.b16 %v3011_v17  ;;  %v2936_v18 = vsel %vm1212_vm0, 0, %v2935_v19 }
 0x703   : > { %v2974_v32 = vsel %vm1212_vm0, 0, %v2973_v24  ;;  %v3414_v37 = vsel %vm1212_vm0, %v3413_v15, %v3406_v59  ;;  %v2993_v26 = vsel %vm1212_vm0, 0, %v2992_v60  ;;  %v3002_v44 = vpack.i.b16 %v2955_v27, %v2936_v18 }
 0x704   : > { %5103 = vmatmul.msk.bf16.vlgmr.msrb.gmra.mxu0 %vm1896_vm1, %v3504_v16  ;;  %v3432_v39 = vrot.slane %v3431_v43, 4  ;;  %v3452_v56 = vsel %vm1212_vm0, %v3451_v55, %v3444_v38  ;;  %v3463_v42 = vperm.slane %v7350_v20, %v6578_v63  ;;  %v3530_v45 = vpack.c.b16 %v3529_v30, %v3528_v35 }
 0x705   : > { %v3014_v61 = vpack.i.b16 %v2993_v26, %v2974_v32  ;;  %v3418_v25 = vperm.slane %v3414_v37, %v6583_v13  ;;  %v3470_v48 = vrot.slane %v3469_v58, 4  ;;  %v3004_v40 = vshrl.u32 %v2955_v27, 16 }
 0x706   : > { %v3433_v46 = vsel %vm1212_vm0, %v3432_v39, %v3425_v22  ;;  %5104 = vmatmul.msk.bf16.vlgmr.msra.gmra.mxu1 %vm1896_vm1, %v3530_v45  ;;  %v3456_v4 = vperm.slane %v3452_v56, %v6583_v13  ;;  %v3003_v36 = vshrl.u32 %v2936_v18, 16  ;;  %v3554_v57 = vunpack.c.l.b16 %v3002_v44 }
 0x707   : > { %v3437_v29 = vperm.slane %v3433_v46, %v6583_v13  ;;  %v3555_v38 = vunpack.c.l.b16 %v3014_v61  ;;  %v3471_v55 = vsel %vm1212_vm0, %v3470_v48, %v3463_v42  ;;  %v3015_v20 = vshrl.u32 %v2974_v32, 16 }
 0x708   : > { %v3475_v28 = vperm.slane %v3471_v55, %v6583_v13  ;;  %v3005_v31 = vpack.i.b16 %v3004_v40, %v3003_v36  ;;  %v3016_v41 = vshrl.u32 %v2993_v26, 16  ;;  %v3481_v49 = vshrl.u32 %v3418_v25, 16 }
 0x709   : > { %v3480_v21 = vpack.i.b16 %v3437_v29, %v3418_v25  ;;  %v3482_v58 = vshrl.u32 %v3437_v29, 16  ;;  %v3419_v59 = vrot.slane %v3418_v25, 4  ;;  %v3438_v12 = vrot.slane %v3437_v29, 4 }
 0x70a   : > { %v3492_v33 = vpack.i.b16 %v3475_v28, %v3456_v4  ;;  %v3493_v52 = vshrl.u32 %v3456_v4, 16  ;;  %v3494_v0 = vshrl.u32 %v3475_v28, 16  ;;  %v3457_v5 = vrot.slane %v3456_v4, 4 }
 0x70b   : > { %v3691_v6 = vunpack.c.l.b16 %v3480_v21  ;;  %v3483_v2 = vpack.i.b16 %v3482_v58, %v3481_v49  ;;  %v3420_v3 = vsel %vm1212_vm0, 0, %v3419_v59  ;;  %v3439_v10 = vsel %vm1212_vm0, 0, %v3438_v12 }
 0x70c   : > { %v3692_v7 = vunpack.c.l.b16 %v3492_v33  ;;  %v3017_v9 = vpack.i.b16 %v3016_v41, %v3015_v20  ;;  %v3495_v51 = vpack.i.b16 %v3494_v0, %v3493_v52  ;;  %v3476_v14 = vrot.slane %v3475_v28, 4 }
 0x70d   : > { %v3717_v8 = vunpack.c.l.b16 %v3483_v2  ;;  %v3458_v15 = vsel %vm1212_vm0, 0, %v3457_v5  ;;  %v3486_v53 = vpack.i.b16 %v3439_v10, %v3420_v3  ;;  %v3487_v34 = vshrl.u32 %v3420_v3, 16 }
 0x70e   : > { %v3693_v19 = vpack.c.b16 %v3692_v7, %v3691_v6  ;;  %v3718_v54 = vunpack.c.l.b16 %v3495_v51  ;;  %v3477_v47 = vsel %vm1212_vm0, 0, %v3476_v14  ;;  %v3488_v11 = vshrl.u32 %v3439_v10, 16 }
 0x70f   : > { %v3498_v1 = vpack.i.b16 %v3477_v47, %v3458_v15  ;;  %v3743_v22 = vunpack.c.l.b16 %v3486_v53  ;;  %v3499_v43 = vshrl.u32 %v3458_v15, 16  ;;  %v3500_v17 = vshrl.u32 %v3477_v47, 16 }
 0x710   : > { %3705 = vmatpush.bf16.msrb.mxu2 %v3693_v19  ;;  %v3580_v24 = vunpack.c.l.b16 %v3005_v31  ;;  %v3719_v16 = vpack.c.b16 %v3718_v54, %v3717_v8  ;;  %v3489_v35 = vpack.i.b16 %v3488_v11, %v3487_v34  ;;  %v3556_v27 = vpack.c.b16 %v3555_v38, %v3554_v57 }
 0x711   : > { %v3744_v60 = vunpack.c.l.b16 %v3498_v1  ;;  %v3501_v30 = vpack.i.b16 %v3500_v17, %v3499_v43  ;;  %v3581_v18 = vunpack.c.l.b16 %v3017_v9 }
 0x712   : > { %3731 = vmatpush.bf16.msrb.mxu3 %v3719_v16  ;;  %v3769_v32 = vunpack.c.l.b16 %v3489_v35 }
 0x713   : > { %v3745_v37 = vpack.c.b16 %v3744_v60, %v3743_v22  ;;  %v3770_v26 = vunpack.c.l.b16 %v3501_v30  ;;  %v3582_v44 = vpack.c.b16 %v3581_v18, %v3580_v24 }
 0x714   : > { %5105 = vmatmul.msk.bf16.vlgmr.msra.gmra.mxu0 %vm1896_vm1, %v3556_v27 }
 0x715   : > { %3757 = vmatpush.bf16.msrb.mxu0 %v3745_v37  ;;  %v3771_v39 = vpack.c.b16 %v3770_v26, %v3769_v32 }
 0x716   : > { %5106 = vmatmul.msk.bf16.vlgmr.msrb.gmra.mxu1 %vm1896_vm1, %v3582_v44 }
 0x717   : > { %3783 = vmatpush.bf16.msra.mxu1 %v3771_v39 }
 0x781   : > { %v3523_v56 = vpop.f32.mrf.mxu0 }
 0x782   : > { %v3606_v42 = vsel %vm1995_vm2, %v3523_v56, -inf }
 0x783   : > { %3607 = vmax.xlane.f32.xlu0 %v3606_v42  ;;  %v3549_v45 = vpop.f32.mrf.mxu1 }
 0x784   : > { %v3612_v61 = vsel %vm1995_vm2, %v3549_v45, -inf }
 0x785   : > { %3613 = vmax.xlane.f32.xlu2 %v3612_v61 }
 0x789   : > { %v3525_v25 = vpop.f32.mrf.mxu0 }
 0x78a   : > { %v3609_v46 = vsel %vm1995_vm2, %v3525_v25, -inf }
 0x78b   : > { %3610 = vmax.xlane.f32.xlu1 %v3609_v46  ;;  %v3551_v48 = vpop.f32.mrf.mxu1 }
 0x78c   : > { %v3615_v40 = vsel %vm1995_vm2, %v3551_v48, -inf }
 0x78d   : > { %3616 = vmax.xlane.f32.xlu0 %v3615_v40 }
 0x791   : > { %v3575_v29 = vpop.f32.mrf.mxu0 }
 0x792   : > { %v3618_v4 = vsel %vm1995_vm2, %v3575_v29, -inf }
 0x793   : > { %3619 = vmax.xlane.f32.xlu1 %v3618_v4  ;;  %v3601_v36 = vpop.f32.mrf.mxu1 }
 0x794   : > { %v3624_v57 = vsel %vm1995_vm2, %v3601_v36, -inf }
 0x795   : > { %3625 = vmax.xlane.f32.xlu0 %v3624_v57 }
 0x799   : > { %v3577_v38 = vpop.f32.mrf.mxu0 }
 0x79a   : > { %v3621_v55 = vsel %vm1995_vm2, %v3577_v38, -inf }
 0x79b   : > { %3622 = vmax.xlane.f32.xlu2 %v3621_v55  ;;  %v3603_v20 = vpop.f32.mrf.mxu1 }
 0x79c   : > { %v3627_v28 = vsel %vm1995_vm2, %v3603_v20, -inf }
 0x79d   : > { %3628 = vmax.xlane.f32.xlu1 %v3627_v28 }
 0x7f6   : > { %v3608_v21 = vpop.xlane.xlu0 %3607 }
 0x7f7   : > { %v3630_v31 = vsub.f32 %v3523_v56, %v3608_v21 }
 0x7f8   : > { %v3614_v49 = vpop.xlane.xlu2 %3613 }
 0x7f9   : > { %v3638_v41 = vmul.f32 1.442695, %v3630_v31  ;;  %v3632_v58 = vsub.f32 %v3549_v45, %v3614_v49 }
 0x7fb   : > { %5638 = vpow2.f32 %v3638_v41  ;;  %v3642_v59 = vmul.f32 1.442695, %v3632_v58 }
 0x7fd   : > { %5640 = vpow2.f32 %v3642_v59 }
 0x7fe   : > { %v3611_v12 = vpop.xlane.xlu1 %3610 }
 0x7ff   : > { %v3631_v33 = vsub.f32 %v3525_v25, %v3611_v12 }
 0x800   : > { %v3617_v0 = vpop.xlane.xlu0 %3616 }
 0x801   : > { %v5639_v6 = vpop.eup %5638  ;;  %v3640_v52 = vmul.f32 1.442695, %v3631_v33  ;;  %v3633_v2 = vsub.f32 %v3551_v48, %v3617_v0 }
 0x802   : > { %v3654_v3 = vsel %vm1995_vm2, %v5639_v6, 0.0  ;;  %v3678_v51 = vpack.c.bf16 %v5639_v6, %v5639_v6 }
 0x803   : > { %5642 = vpow2.f32 %v3640_v52  ;;  %3655 = vadd.xlane.f32.xlu1 %v3654_v3  ;;  %v3644_v10 = vmul.f32 1.442695, %v3633_v2  ;;  %v5641_v9 = vpop.eup %5640 }
 0x804   : > { %v3680_v54 = vpack.c.bf16 %v5641_v9, %v5641_v9  ;;  %v3688_v11 = vunpack.c.l.b16 %v3678_v51  ;;  %v3660_v25 = vsel %vm1995_vm2, %v5641_v9, 0.0 }
 0x805   : > { %5644 = vpow2.f32 %v3644_v10 }
 0x806   : > { %v3620_v5 = vpop.xlane.xlu1 %3619  ;;  %v3714_v16 = vunpack.c.l.b16 %v3680_v54 }
 0x807   : > { %v3634_v7 = vsub.f32 %v3575_v29, %v3620_v5 }
 0x808   : > { %v3626_v15 = vpop.xlane.xlu0 %3625 }
 0x809   : > { %v5643_v14 = vpop.eup %5642  ;;  %v3646_v8 = vmul.f32 1.442695, %v3634_v7  ;;  %v3636_v34 = vsub.f32 %v3601_v36, %v3626_v15 }
 0x80a   : > { %v3679_v53 = vpack.c.bf16 %v5643_v14, %v5643_v14  ;;  %v3657_v19 = vsel %vm1995_vm2, %v5643_v14, 0.0 }
 0x80b   : > { %5646 = vpow2.f32 %v3646_v8  ;;  %3658 = vadd.xlane.f32.xlu2 %v3657_v19  ;;  %v5645_v47 = vpop.eup %5644  ;;  %v3650_v22 = vmul.f32 1.442695, %v3636_v34 }
 0x80c   : > { %v3689_v1 = vunpack.c.l.b16 %v3679_v53  ;;  %v3681_v43 = vpack.c.bf16 %v5645_v47, %v5645_v47  ;;  %v3663_v21 = vsel %vm1995_vm2, %v5645_v47, 0.0 }
 0x80d   : > { %5648 = vpow2.f32 %v3650_v22 }
 0x80e   : > { %v3690_v17 = vpack.c.b16 %v3689_v1, %v3688_v11  ;;  %v3623_v24 = vpop.xlane.xlu2 %3622  ;;  %v3715_v35 = vunpack.c.l.b16 %v3681_v43 }
 0x80f   : > { %v3635_v27 = vsub.f32 %v3577_v38, %v3623_v24 }
 0x810   : > { %5107 = vmatmul.msk.bf16.vlgmr.msrb.gmra.mxu2 %vm1995_vm2, %v3690_v17  ;;  %v3716_v30 = vpack.c.b16 %v3715_v35, %v3714_v16  ;;  %v3629_v32 = vpop.xlane.xlu1 %3628 }
 0x811   : > { %v5647_v60 = vpop.eup %5646  ;;  %v3648_v18 = vmul.f32 1.442695, %v3635_v27  ;;  %v3637_v37 = vsub.f32 %v3603_v20, %v3629_v32 }
 0x812   : > { %v3666_v26 = vsel %vm1995_vm2, %v5647_v60, 0.0  ;;  %5108 = vmatmul.msk.bf16.vlgmr.msrb.gmra.mxu3 %vm1995_vm2, %v3716_v30  ;;  %v3682_v42 = vpack.c.bf16 %v5647_v60, %v5647_v60 }
 0x813   : > { %5650 = vpow2.f32 %v3648_v18  ;;  %3667 = vadd.xlane.f32.xlu2 %v3666_v26  ;;  %v5649_v44 = vpop.eup %5648  ;;  %v3652_v39 = vmul.f32 1.442695, %v3637_v37 }
 0x814   : > { %v3672_v56 = vsel %vm1995_vm2, %v5649_v44, 0.0  ;;  %v3684_v46 = vpack.c.bf16 %v5649_v44, %v5649_v44  ;;  %v3740_v40 = vunpack.c.l.b16 %v3682_v42 }
 0x815   : > { %5652 = vpow2.f32 %v3652_v39  ;;  %3673 = vadd.xlane.f32.xlu0 %v3672_v56 }
 0x816   : > { %v3766_v55 = vunpack.c.l.b16 %v3684_v46 }
 0x819   : > { %v5651_v45 = vpop.eup %5650 }
 0x81a   : > { %v3683_v61 = vpack.c.bf16 %v5651_v45, %v5651_v45  ;;  %v3669_v57 = vsel %vm1995_vm2, %v5651_v45, 0.0 }
 0x81b   : > { %3661 = vadd.xlane.f32.xlu2 %v3660_v25  ;;  %v5653_v48 = vpop.eup %5652 }
 0x81c   : > { %v3741_v29 = vunpack.c.l.b16 %v3683_v61  ;;  %v3685_v4 = vpack.c.bf16 %v5653_v48, %v5653_v48  ;;  %v3675_v36 = vsel %vm1995_vm2, %v5653_v48, 0.0 }
 0x81d   : > { %3676 = vadd.xlane.f32.xlu1 %v3675_v36  ;;  %3670 = vadd.xlane.f32.xlu0 %v3669_v57 }
 0x81e   : > { %v3742_v38 = vpack.c.b16 %v3741_v29, %v3740_v40  ;;  %v3767_v20 = vunpack.c.l.b16 %v3685_v4 }
 0x820   : > { %5109 = vmatmul.msk.bf16.vlgmr.msrb.gmra.mxu0 %vm1995_vm2, %v3742_v38  ;;  %v3768_v28 = vpack.c.b16 %v3767_v20, %v3766_v55 }
 0x822   : > { %5110 = vmatmul.msk.bf16.vlgmr.msra.gmra.mxu1 %vm1995_vm2, %v3768_v28 }
 0x825   : > { %3664 = vadd.xlane.f32.xlu0 %v3663_v21 }
 0x876   : > { %v3656_v31 = vpop.xlane.xlu1 %3655 }
 0x877   : > { %5654 = vrcp.f32 %v3656_v31  ;;  %v3799_v3 = vand.u32 2147483647, %v3656_v31  ;;  %v3801_v5 = vand.u32 2147483648, %v3656_v31  ;;  %vm3795_vm6 = vweird.f32 %v3656_v31 }
 0x879   : > { %vm3800_vm8 = vcmp.eq.f32.partialorder %v3799_v3, 8.507059e+37  ;;  %v3802_v19 = vor.u32 1.1754944e-38, %v3801_v5 }
 0x87d   : > { %v5655_v41 = vpop.eup %5654 }
 0x87e   : > { %v3791_v49 = vmul.f32 %v5655_v41, %v3656_v31  ;;  %v3659_v58 = vpop.xlane.xlu2 %3658  ;;  %vm3796_vm2 = vweird.f32 %v5655_v41 }
 0x87f   : > { %5656 = vrcp.f32 %v3659_v58  ;;  %v3813_v9 = vand.u32 2147483647, %v3659_v58  ;;  %vm7424_vm5 = vmor %vm3795_vm6, %vm3796_vm2  ;;  %v3815_v8 = vand.u32 2147483648, %v3659_v58  ;;  %vm3809_vm7 = vweird.f32 %v3659_v58 }
 0x880   : > { %v3792_v59 = vsub.f32 1.0, %v3791_v49 }
 0x881   : > { %vm7437_vm12 = vcmp.eq.f32.partialorder %v3813_v9, 8.507059e+37  ;;  %v3816_v27 = vor.u32 1.1754944e-38, %v3815_v8 }
 0x882   : > { %v3793_v52 = vmul.f32 %v5655_v41, %v3792_v59 }
 0x884   : > { %v3794_v10 = vadd.f32 %v5655_v41, %v3793_v52 }
 0x885   : > { %v5657_v12 = vpop.eup %5656 }
 0x886   : > { %v3805_v33 = vmul.f32 %v5657_v12, %v3659_v58  ;;  %v7416_v6 = vpop.xlane.xlu2 %3667  ;;  %v3798_v34 = vsel %vm7424_vm5, %v5655_v41, %v3794_v10  ;;  %vm3810_vm11 = vweird.f32 %v5657_v12 }
 0x887   : > { %5658 = vrcp.f32 %v7416_v6  ;;  %v3855_v22 = vand.u32 2147483647, %v7416_v6  ;;  %v3857_v43 = vand.u32 2147483648, %v7416_v6  ;;  %v3803_v35 = vsel %vm3800_vm8, %v3802_v19, %v3798_v34  ;;  %vm7453_vm15 = vmor %vm3809_vm7, %vm3810_vm11 }
 0x888   : > { %v3806_v0 = vsub.f32 1.0, %v3805_v33  ;;  %v7419_v2 = vpop.xlane.xlu0 %3673  ;;  %vm3851_vm13 = vweird.f32 %v7416_v6 }
 0x889   : > { %5660 = vrcp.f32 %v7419_v2  ;;  %v3885_v60 = vand.u32 2147483648, %v7419_v2  ;;  %v3883_v37 = vand.u32 2147483647, %v7419_v2  ;;  %vm7464_vm3 = vcmp.eq.f32.partialorder %v3855_v22, 8.507059e+37 }
 0x88a   : > { %v3807_v7 = vmul.f32 %v5657_v12, %v3806_v0  ;;  %v3858_v45 = vor.u32 1.1754944e-38, %v3857_v43  ;;  %vm3879_vm14 = vweird.f32 %v7419_v2 }
 0x88b   : > { %v3886_v48 = vor.u32 1.1754944e-38, %v3885_v60  ;;  %vm7480_vm5 = vcmp.eq.f32.partialorder %v3883_v37, 8.507059e+37 }
 0x88c   : > { %v3808_v54 = vadd.f32 %v5657_v12, %v3807_v7 }
 0x88d   : > { %v7422_v51 = vpop.eup %5658 }
 0x88e   : > { %v3847_v15 = vmul.f32 %v7422_v51, %v7416_v6  ;;  %v7430_v53 = vpop.xlane.xlu2 %3661  ;;  %v3812_v39 = vsel %vm7453_vm15, %v5657_v12, %v3808_v54  ;;  %vm3852_vm4 = vweird.f32 %v7422_v51 }
 0x88f   : > { %5662 = vrcp.f32 %v7430_v53  ;;  %v7435_v47 = vpop.eup %5660  ;;  %v3827_v30 = vand.u32 2147483647, %v7430_v53  ;;  %v3829_v44 = vand.u32 2147483648, %v7430_v53  ;;  %vm3823_vm2 = vweird.f32 %v7430_v53  ;;  %vm7490_vm8 = vmor %vm3851_vm13, %vm3852_vm4 }
 0x890   : > { %v3848_v11 = vsub.f32 1.0, %v3847_v15  ;;  %v3875_v17 = vmul.f32 %v7435_v47, %v7419_v2  ;;  %v7445_v24 = vpop.xlane.xlu1 %3676  ;;  %v7447_v16 = vpop.xlane.xlu0 %3670  ;;  %v3817_v4 = vsel %vm7437_vm12, %v3816_v27, %v3812_v39  ;;  %vm3880_vm7 = vweird.f32 %v7435_v47 }
 0x891   : > { %5664 = vrcp.f32 %v7445_v24  ;;  %vm7474_vm6 = vcmp.eq.f32.partialorder %v3827_v30, 8.507059e+37  ;;  %v3830_v38 = vor.u32 1.1754944e-38, %v3829_v44  ;;  %v3869_v55 = vand.u32 2147483647, %v7447_v16  ;;  %vm7513_vm13 = vmor %vm3879_vm14, %vm3880_vm7 }
 0x892   : > { %v3849_v32 = vmul.f32 %v7422_v51, %v3848_v11  ;;  %v3876_v26 = vsub.f32 1.0, %v3875_v17  ;;  %5666 = vrcp.f32 %v7447_v16  ;;  %v3871_v20 = vand.u32 2147483648, %v7447_v16 }
 0x893   : > { %v3707_v56 = vpop.f32.mrf.mxu2  ;;  %vm3865_vm11 = vweird.f32 %v7447_v16  ;;  %v3897_v33 = vand.u32 2147483647, %v7445_v24  ;;  %v3899_v6 = vand.u32 2147483648, %v7445_v24  ;;  %vm3893_vm15 = vweird.f32 %v7445_v24 }
 0x894   : > { %v3850_v25 = vadd.f32 %v7422_v51, %v3849_v32  ;;  %v3877_v46 = vmul.f32 %v7435_v47, %v3876_v26  ;;  %v3902_v57 = vmul.f32 %v3803_v35, %v3707_v56  ;;  %vm7517_vm4 = vcmp.eq.f32.partialorder %v3869_v55, 8.507059e+37 }
 0x895   : > { %v5663_v61 = vpop.eup %5662  ;;  %v3872_v9 = vor.u32 1.1754944e-38, %v3871_v20  ;;  %v3900_v54 = vor.u32 1.1754944e-38, %v3899_v6  ;;  %vm7531_vm7 = vcmp.eq.f32.partialorder %v3897_v33, 8.507059e+37 }
 0x896   : > { %v3819_v40 = vmul.f32 %v5663_v61, %v7430_v53  ;;  %v3878_v41 = vadd.f32 %v7435_v47, %v3877_v46  ;;  %v3854_v12 = vsel %vm7490_vm8, %v7422_v51, %v3850_v25  ;;  %vm3824_vm12 = vweird.f32 %v5663_v61 }
 0x897   : > { %v7486_v28 = vpop.eup %5664  ;;  %v3912_v10 = vrot.slane %v3902_v57, 4  ;;  %v3859_v8 = vsel %vm7464_vm3, %v3858_v45, %v3854_v12  ;;  %vm3825_vm14 = vmor %vm3823_vm2, %vm3824_vm12 }
 0x898   : > { %v3820_v21 = vsub.f32 1.0, %v3819_v40  ;;  %v5667_v49 = vpop.eup %5666  ;;  %v3889_v58 = vmul.f32 %v7486_v28, %v7445_v24  ;;  %v7499_v59 = vpop.xlane.xlu0 %3664  ;;  %v3882_v15 = vsel %vm7513_vm13, %v7435_v47, %v3878_v41  ;;  %vm3894_vm8 = vweird.f32 %v7486_v28 }
 0x899   : > { %v3861_v52 = vmul.f32 %v5667_v49, %v7447_v16  ;;  %5668 = vrcp.f32 %v7499_v59  ;;  %v3841_v2 = vand.u32 2147483647, %v7499_v59  ;;  %vm3866_vm3 = vweird.f32 %v5667_v49  ;;  %v3733_v47 = vpop.f32.mrf.mxu3  ;;  %vm7558_vm13 = vmor %vm3893_vm15, %vm3894_vm8 }
 0x89a   : > { %v3821_v0 = vmul.f32 %v5663_v61, %v3820_v21  ;;  %v3890_v3 = vsub.f32 1.0, %v3889_v58  ;;  %vm3837_vm2 = vweird.f32 %v7499_v59  ;;  %v3843_v35 = vand.u32 2147483648, %v7499_v59 }
 0x89b   : > { %v3862_v51 = vsub.f32 1.0, %v3861_v52  ;;  %v3709_v1 = vpop.f32.mrf.mxu2  ;;  %v3887_v27 = vsel %vm7480_vm5, %v3886_v48, %v3882_v15  ;;  %vm7548_vm5 = vcmp.eq.f32.partialorder %v3841_v2, 8.507059e+37 }
 0x89c   : > { %v3822_v14 = vadd.f32 %v5663_v61, %v3821_v0  ;;  %v3891_v19 = vmul.f32 %v7486_v28, %v3890_v3  ;;  %v3903_v56 = vmul.f32 %v3817_v4, %v3709_v1  ;;  %v3844_v58 = vor.u32 1.1754944e-38, %v3843_v35 }
 0x89d   : > { %v3759_v34 = vpop.f32.mrf.mxu0  ;;  %v3863_v43 = vmul.f32 %v5667_v49, %v3862_v51 }
 0x89e   : > { %v3826_v11 = vsel %vm3825_vm14, %v5663_v61, %v3822_v14  ;;  %v3906_v22 = vmul.f32 %v3859_v8, %v3759_v34  ;;  %v3892_v60 = vadd.f32 %v7486_v28, %v3891_v19 }
 0x89f   : > { %v3831_v53 = vsel %vm7474_vm6, %v3830_v38, %v3826_v11  ;;  %v5669_v30 = vpop.eup %5668  ;;  %v3785_v26 = vpop.f32.mrf.mxu1  ;;  %v3864_v44 = vadd.f32 %v5667_v49, %v3863_v43  ;;  %vm3867_vm6 = vmor %vm3865_vm11, %vm3866_vm3 }
 0x8a0   : > { %v3904_v18 = vmul.f32 %v3831_v53, %v3733_v47  ;;  %v3910_v32 = vrot.slane %v3906_v22, 4  ;;  %v3913_v37 = vsel %vm1212_vm0, %v3906_v22, %v3912_v10  ;;  %v3833_v39 = vmul.f32 %v5669_v30, %v7499_v59 }
 0x8a1   : > { %v3921_v42 = vperm.slane %v3913_v37, %v6578_v63  ;;  %v3908_v45 = vmul.f32 %v3887_v27, %v3785_v26  ;;  %v3868_v48 = vsel %vm3867_vm6, %v5667_v49, %v3864_v44  ;;  %vm3838_vm12 = vweird.f32 %v5669_v30  ;;  %v3735_v15 = vpop.f32.mrf.mxu3 }
 0x8a2   : > { %v3924_v61 = vrot.slane %v3904_v18, 4  ;;  %v3911_v46 = vsel %vm1212_vm0, %v3910_v32, %v3902_v57  ;;  %v3834_v40 = vsub.f32 1.0, %v3833_v39  ;;  %v3873_v57 = vsel %vm7517_vm4, %v3872_v9, %v3868_v48  ;;  %vm3839_vm11 = vmor %vm3837_vm2, %vm3838_vm12 }
 0x8a3   : > { %v3917_v29 = vperm.slane %v3911_v46, %v6578_v63  ;;  %v3922_v4 = vrot.slane %v3908_v45, 4  ;;  %v3948_v36 = vrot.slane %v3921_v42, 4  ;;  %v3896_v55 = vsel %vm7558_vm13, %v7486_v28, %v3892_v60 }
 0x8a4   : > { %v3925_v38 = vsel %vm1212_vm0, %v3908_v45, %v3924_v61  ;;  %v3835_v20 = vmul.f32 %v5669_v30, %v3834_v40  ;;  %v3968_v49 = vrot.slane %v3903_v56, 4  ;;  %v3901_v3 = vsel %vm7531_vm7, %v3900_v54, %v3896_v55 }
 0x8a5   : > { %v3936_v21 = vrot.slane %v3917_v29, 4  ;;  %v3923_v31 = vsel %vm1212_vm0, %v3922_v4, %v3904_v18  ;;  %v3933_v24 = vperm.slane %v3925_v38, %v6578_v63  ;;  %v3761_v41 = vpop.f32.mrf.mxu0 }
 0x8a6   : > { %v3929_v12 = vperm.slane %v3923_v31, %v6578_v63  ;;  %v3907_v33 = vmul.f32 %v3873_v57, %v3761_v41  ;;  %v3836_v6 = vadd.f32 %v5669_v30, %v3835_v20 }
 0x8a7   : > { %v3946_v52 = vrot.slane %v3933_v24, 4  ;;  %v3949_v0 = vsel %vm1212_vm0, %v3933_v24, %v3948_v36  ;;  %v3787_v35 = vpop.f32.mrf.mxu1 }
 0x8a8   : > { %v3934_v28 = vrot.slane %v3929_v12, 4  ;;  %v3937_v10 = vsel %vm1212_vm0, %v3929_v12, %v3936_v21  ;;  %v3957_v5 = vperm.slane %v3949_v0, %v6583_v13  ;;  %v3966_v7 = vrot.slane %v3907_v33, 4 }
 0x8a9   : > { %v3840_v9 = vsel %vm3839_vm11, %v5669_v30, %v3836_v6  ;;  %v3945_v51 = vperm.slane %v3937_v10, %v6583_v13  ;;  %v3947_v14 = vsel %vm1212_vm0, %v3946_v52, %v3921_v42  ;;  %v3969_v8 = vsel %vm1212_vm0, %v3907_v33, %v3968_v49 }
 0x8aa   : > { %v3845_v2 = vsel %vm7548_vm5, %v3844_v58, %v3840_v9  ;;  %v3935_v59 = vsel %vm1212_vm0, %v3934_v28, %v3917_v29  ;;  %v3953_v34 = vperm.slane %v3947_v14, %v6583_v13  ;;  %v3964_v19 = vrot.slane %v3957_v5, 4 }
 0x8ab   : > { %v3905_v54 = vmul.f32 %v3845_v2, %v3735_v15  ;;  %v3941_v11 = vperm.slane %v3935_v59, %v6583_v13  ;;  %v3960_v1 = vrot.slane %v3945_v51, 4  ;;  %v3967_v22 = vsel %vm1212_vm0, %v3966_v7, %v3903_v56 }
 0x8ac   : > { %v3962_v43 = vrot.slane %v3953_v34, 4  ;;  %v3965_v17 = vsel %vm1212_vm0, 0.0, %v3964_v19  ;;  %v4033_v47 = vsel %vm1212_vm0, %v3964_v19, %v3953_v34  ;;  %v3973_v53 = vperm.slane %v3967_v22, %v6578_v63 }
 0x8ad   : > { %v3980_v27 = vrot.slane %v3905_v54, 4  ;;  %v3958_v60 = vrot.slane %v3941_v11, 4  ;;  %v3961_v30 = vsel %vm1212_vm0, 0.0, %v3960_v1  ;;  %v4022_v18 = vsel %vm1212_vm0, %v3960_v1, %v3941_v11 }
 0x8ae   : > { %v3963_v32 = vsel %vm1212_vm0, 0.0, %v3962_v43  ;;  %v4027_v37 = vrot.slane %v3961_v30, 4  ;;  %v4038_v26 = vrot.slane %v3965_v17, 4  ;;  %v3977_v44 = vperm.slane %v3969_v8, %v6578_v63 }
 0x8af   : > { %v3959_v39 = vsel %vm1212_vm0, 0.0, %v3958_v60  ;;  %v3909_v56 = vmul.f32 %v3901_v3, %v3787_v35  ;;  %v4026_v42 = vperm.slane %v4022_v18, %v6578_v63  ;;  %v4037_v61 = vperm.slane %v4033_v47, %v6578_v63 }
 0x8b0   : > { %v4028_v45 = vsel %vm1212_vm0, %v4027_v37, %v3959_v39  ;;  %v4039_v25 = vsel %vm1212_vm0, %v4038_v26, %v3963_v32  ;;  %v3992_v46 = vrot.slane %v3973_v53, 4  ;;  %v4004_v4 = vrot.slane %v3977_v44, 4 }
 0x8b1   : > { %v3978_v48 = vrot.slane %v3909_v56, 4  ;;  %v3981_v40 = vsel %vm1212_vm0, %v3909_v56, %v3980_v27  ;;  %v4032_v29 = vperm.slane %v4028_v45, %v6578_v63  ;;  %v4043_v36 = vperm.slane %v4039_v25, %v6578_v63 }
 0x8b2   : > { %v3989_v16 = vperm.slane %v3981_v40, %v6578_v63  ;;  %v4046_v38 = vrot.slane %v4026_v42, 4  ;;  %v4058_v55 = vrot.slane %v4037_v61, 4 }
 0x8b3   : > { %v3979_v57 = vsel %vm1212_vm0, %v3978_v48, %v3905_v54  ;;  %v4056_v33 = vrot.slane %v4043_v36, 4  ;;  %v4044_v5 = vrot.slane %v4032_v29, 4 }
 0x8b4   : > { %v3985_v20 = vperm.slane %v3979_v57, %v6578_v63  ;;  %v4002_v21 = vrot.slane %v3989_v16, 4  ;;  %v4005_v31 = vsel %vm1212_vm0, %v3989_v16, %v4004_v4  ;;  %v4047_v41 = vsel %vm1212_vm0, %v4032_v29, %v4046_v38 }
 0x8b5   : > { %v4013_v24 = vperm.slane %v4005_v31, %v6583_v13  ;;  %v4059_v3 = vsel %vm1212_vm0, %v4043_v36, %v4058_v55  ;;  %v4055_v10 = vperm.slane %v4047_v41, %v6583_v13  ;;  %v4057_v59 = vsel %vm1212_vm0, %v4056_v33, %v4037_v61 }
 0x8b6   : > { %v3990_v49 = vrot.slane %v3985_v20, 4  ;;  %v3993_v58 = vsel %vm1212_vm0, %v3985_v20, %v3992_v46  ;;  %v4003_v12 = vsel %vm1212_vm0, %v4002_v21, %v3977_v44  ;;  %v4067_v2 = vperm.slane %v4059_v3, %v6583_v13  ;;  %v5339_v3 = vld [vmem:[#allocation21 + $0x20] sm:$0xff] }
 0x8b7   : > { %v4001_v6 = vperm.slane %v3993_v58, %v6583_v13  ;;  %v4009_v52 = vperm.slane %v4003_v12, %v6583_v13  ;;  %v4020_v0 = vrot.slane %v4013_v24, 4  ;;  %v4045_v35 = vsel %vm1212_vm0, %v4044_v5, %v4026_v42  ;;  %v5336_v5 = vld [vmem:[#allocation21 + $0x8] sm:$0xff] }
 0x8b8   : > { %v3991_v28 = vsel %vm1212_vm0, %v3990_v49, %v3973_v53  ;;  %v4063_v27 = vperm.slane %v4057_v59, %v6583_v13  ;;  %v4074_v44 = vrot.slane %v4055_v10, 4  ;;  %v4072_v56 = vrot.slane %v4067_v2, 4 }
 0x8b9   : > { %v3997_v7 = vperm.slane %v3991_v28, %v6583_v13  ;;  %v4016_v9 = vrot.slane %v4001_v6, 4  ;;  %v4018_v51 = vrot.slane %v4009_v52, 4  ;;  %v4021_v14 = vsel %vm1212_vm0, 0.0, %v4020_v0  ;;  %v5342_v6 = vld [vmem:[#allocation21 + $0x38] sm:$0xff] }
 0x8ba   : > { %v4087_v8 = vsel %vm1212_vm0, %v4020_v0, %v4009_v52  ;;  %v4092_v15 = vrot.slane %v4021_v14, 4  ;;  %v4068_v37 = vrot.slane %v4063_v27, 4  ;;  %v4051_v45 = vperm.slane %v4045_v35, %v6583_v13  ;;  %4210 = vmatpush.bf16.msra.mxu2 %v5342_v6  ;;  %v5341_v52 = vld [vmem:[#allocation21 + $0x30] sm:$0xff]  ;;  %v5340_v0 = vld [vmem:[#allocation21 + $0x28] sm:$0xff]  ;;  %v5338_v28 = vld [vmem:[#allocation21 + $0x18] sm:$0xff] }
 0x8bb   : > { %v4014_v34 = vrot.slane %v3997_v7, 4  ;;  %v4017_v19 = vsel %vm1212_vm0, 0.0, %v4016_v9  ;;  %v4019_v54 = vsel %vm1212_vm0, 0.0, %v4018_v51  ;;  %v4076_v11 = vsel %vm1212_vm0, %v4016_v9, %v3997_v7  ;;  %v5335_v7 = vld [vmem:[#allocation21] sm:$0xff] }
 0x8bc   : > { %v4081_v1 = vrot.slane %v4017_v19, 4  ;;  %v4080_v22 = vperm.slane %v4076_v11, %v6578_v63  ;;  %v4091_v43 = vperm.slane %v4087_v8, %v6578_v63  ;;  %v4093_v17 = vsel %vm1212_vm0, %v4092_v15, %v4019_v54 }
 0x8bd   : > { %v4015_v47 = vsel %vm1212_vm0, 0.0, %v4014_v34  ;;  %v4097_v53 = vperm.slane %v4093_v17, %v6578_v63  ;;  %v4070_v36 = vrot.slane %v4051_v45, 4  ;;  %v4075_v55 = vsel %vm1212_vm0, %v4067_v2, %v4074_v44 }
 0x8be   : > { %v4082_v60 = vsel %vm1212_vm0, %v4081_v1, %v4015_v47  ;;  %v4100_v30 = vrot.slane %v4080_v22, 4  ;;  %v4112_v18 = vrot.slane %v4091_v43, 4  ;;  %v4073_v20 = vsel %vm1212_vm0, %v4072_v56, %v4055_v10  ;;  %4211 = vmatpush.bf16.msra.mxu2 %v5341_v52  ;;  %v5337_v10 = vld [vmem:[#allocation21 + $0x10] sm:$0xff] }
 0x8bf   : > { %v4086_v32 = vperm.slane %v4082_v60, %v6578_v63  ;;  %v4110_v26 = vrot.slane %v4097_v53, 4  ;;  %v4069_v63 = vsel %vm1212_vm0, %v4068_v37, %v4051_v45  ;;  %v4071_v12 = vsel %vm1212_vm0, %v4063_v27, %v4070_v36  ;;  %v5169_v52 = vld [vmem:[#allocation23 + $0x30] sm:$0xf] }
 0x8c0   : > { %v4113_v39 = vsel %vm1212_vm0, %v4097_v53, %v4112_v18  ;;  %v5682_v53 = vld [vmem:[#allocation26] sm:$0xff] }
 0x8c1   : > { %v4101_v61 = vsel %vm1212_vm0, %v4086_v32, %v4100_v30  ;;  %v4121_v42 = vperm.slane %v4113_v39, %v6583_v13  ;;  %v4098_v25 = vrot.slane %v4086_v32, 4  ;;  %v4111_v46 = vsel %vm1212_vm0, %v4110_v26, %v4091_v43 }
 0x8c2   : > { %v4109_v48 = vperm.slane %v4101_v61, %v6583_v13  ;;  %v4117_v40 = vperm.slane %v4111_v46, %v6583_v13  ;;  %4212 = vmatpush.bf16.msra.mxu2 %v5340_v0  ;;  %v4161_v35 = vperm.slane %v5682_v53, 7  ;;  %v5357_v46 = vld [vmem:[#allocation23 + $0x74] sm:$0xf]  ;;  %v5350_v0 = vld [vmem:[#allocation23 + $0x34] sm:$0xf0] }
 0x8c3   : > { %v4126_v29 = vrot.slane %v4121_v42, 4  ;;  %v4099_v4 = vsel %vm1212_vm0, %v4098_v25, %v4080_v22  ;;  %v5358_v25 = vld [vmem:[#allocation23 + $0x74] sm:$0xf0]  ;;  %v5343_v53 = vld [vmem:[#allocation23 + $0x4] sm:$0xf] }
 0x8c4   : > { %v4128_v16 = vrot.slane %v4109_v48, 4  ;;  %v4105_v38 = vperm.slane %v4099_v4, %v6583_v13  ;;  %v4122_v57 = vrot.slane %v4117_v40, 4  ;;  %v5356_v4 = vld [vmem:[#allocation23 + $0x64] sm:$0xf0] }
 0x8c5   : > { %v4127_v21 = vsel %vm1212_vm0, %v4126_v29, %v4109_v48  ;;  %v5193_v29 = vld [vmem:[#allocation23 + $0x60] sm:$0xf] }
 0x8c6   : > { %v4129_v31 = vsel %vm1212_vm0, %v4121_v42, %v4128_v16  ;;  %v5590_v24 = vpack.i.bf16 %v4127_v21, %v4073_v20  ;;  %v4124_v41 = vrot.slane %v4105_v38, 4  ;;  %v4123_v49 = vsel %vm1212_vm0, %v4122_v57, %v4105_v38  ;;  %4213 = vmatpush.bf16.msra.mxu2 %v5339_v3  ;;  %v5355_v16 = vld [vmem:[#allocation23 + $0x64] sm:$0xf]  ;;  %v5195_v38 = vld [vmem:[#allocation23 + $0x68] sm:$0xf0] }
 0x8c7   : > { %v5595_v58 = vpack.i.bf16 %v4129_v31, %v4075_v55  ;;  %v5194_v36 = vor.u32 %v5356_v4, %v5193_v29  ;;  %v5198_v57 = vor.u32 %v5355_v16, %v5195_v38  ;;  %v5185_v55 = vld [vmem:[#allocation23 + $0x50] sm:$0xf]  ;;  %v5354_v20 = vld [vmem:[#allocation23 + $0x54] sm:$0xf0]  ;;  %v5353_v21 = vld [vmem:[#allocation23 + $0x54] sm:$0xf] }
 0x8c8   : > { %5591 = vrot.lane.b32.xlu2 %v5590_v24, %s6186_s9  ;;  %v4125_v13 = vsel %vm1212_vm0, %v4117_v40, %v4124_v41  ;;  %v5203_v40 = vld [vmem:[#allocation23 + $0x78] sm:$0xf0]  ;;  %v5186_v31 = vor.u32 %v5354_v20, %v5185_v55  ;;  %v5349_v3 = vld [vmem:[#allocation23 + $0x34] sm:$0xf]  ;;  %v7674_v20 = vld [vmem:[#allocation26 + $0x8] sm:$0xff] }
 0x8c9   : > { %5596 = vrot.lane.b32.xlu0 %v5595_v58, %s6187_s10  ;;  %v5585_v33 = vpack.i.bf16 %v4125_v13, %v4071_v12  ;;  %v5187_v24 = vld [vmem:[#allocation23 + $0x58] sm:$0xf0]  ;;  %v5352_v58 = vld [vmem:[#allocation23 + $0x44] sm:$0xf0]  ;;  %v5351_v12 = vld [vmem:[#allocation23 + $0x44] sm:$0xf] }
 0x8ca   : > { %4214 = vmatpush.bf16.msra.mxu2 %v5338_v28  ;;  %v5190_v41 = vor.u32 %v5353_v21, %v5187_v24  ;;  %v5170_v28 = vor.u32 %v5350_v0, %v5169_v52  ;;  %v4266_v21 = vperm.slane %v7674_v20, 3  ;;  %v5363_v52 = vld [vmem:[#allocation24 + $0x20] sm:$0xff]  ;;  %v5369_v0 = vld [vmem:[#allocation24 + $0x50] sm:$0xff] }
 0x8cb   : > { %5586 = vrot.lane.b32.xlu1 %v5585_v33, %s6185_s22  ;;  %v5179_v33 = vld [vmem:[#allocation23 + $0x48] sm:$0xf0] }
 0x8cc   : > { %v5182_v6 = vor.u32 %v5351_v12, %v5179_v33 }
 0x8ce   : > { %4215 = vmatpush.bf16.msra.mxu2 %v5337_v10  ;;  %v5171_v10 = vld [vmem:[#allocation23 + $0x38] sm:$0xf0] }
 0x8d2   : > { %4216 = vmatpush.bf16.msra.mxu2 %v5336_v5  ;;  %v5174_v5 = vor.u32 %v5349_v3, %v5171_v10  ;;  %v5362_v3 = vld [vmem:[#allocation24 + $0x18] sm:$0xff]  ;;  %v5361_v10 = vld [vmem:[#allocation24 + $0x10] sm:$0xff] }
 0x8d6   : > { %4217 = vmatpush.bf16.msra.mxu2 %v5335_v7  ;;  %v5161_v7 = vld [vmem:[#allocation23 + $0x20] sm:$0xf] }
 0x922   : > { %v5592_v9 = vpop.permute.xlu2 %5591 }
 0x923   : > { %v5594_v2 = vunpack.i.h.bf16 %v5592_v9  ;;  %v5593_v59 = vunpack.i.l.bf16 %v5592_v9  ;;  %v5348_v9 = vld [vmem:[#allocation23 + $0x24] sm:$0xf0] }
 0x93b   : > { %v5597_v51 = vpop.permute.xlu0 %5596 }
 0x93c   : > { %v5599_v34 = vunpack.i.h.bf16 %v5597_v51  ;;  %v5598_v19 = vunpack.i.l.bf16 %v5597_v51  ;;  %v5347_v51 = vld [vmem:[#allocation23 + $0x24] sm:$0xf] }
 0x93d   : > { %v5587_v14 = vpop.permute.xlu1 %5586 }
 0x93e   : > { %v5589_v8 = vunpack.i.h.bf16 %v5587_v14  ;;  %v5588_v15 = vunpack.i.l.bf16 %v5587_v14 }
 0x940   : > { %v4154_v54 = vsel %vm1896_vm1, %v4069_v63, %v5588_v15  ;;  %v4155_v11 = vsel %vm1896_vm1, %v4123_v49, %v5589_v8  ;;  %v5206_v63 = vor.u32 %v5357_v46, %v5203_v40  ;;  %v5177_v49 = vld [vmem:[#allocation23 + $0x40] sm:$0xf]  ;;  %v5162_v8 = vor.u32 %v5348_v9, %v5161_v7  ;;  %v5163_v15 = vld [vmem:[#allocation23 + $0x28] sm:$0xf0]  ;;  %v4289_v9 = vld [vmem:[%s7825_s4] sm:$0x3] }
 0x941   : > { %v4156_v1 = vsel %vm2547_vm9, %v4154_v54, %v5593_v59  ;;  %v4157_v22 = vsel %vm2547_vm9, %v4155_v11, %v5594_v2  ;;  %v5178_v13 = vor.u32 %v5352_v58, %v5177_v49  ;;  %v5153_v2 = vld [vmem:[#allocation23 + $0x10] sm:$0xf]  ;;  %v5346_v59 = vld [vmem:[#allocation23 + $0x14] sm:$0xf0]  ;;  %v5345_v54 = vld [vmem:[#allocation23 + $0x14] sm:$0xf] }
 0x942   : > { %v4158_v43 = vsel %vm2550_vm10, %v4156_v1, %v5598_v19  ;;  %v4159_v17 = vsel %vm2550_vm10, %v4157_v22, %v5599_v34  ;;  %4389 = vmatpush.bf16.msra.mxu0 %v5206_v63  ;;  %v5166_v19 = vor.u32 %v5347_v51, %v5163_v15  ;;  %v5155_v11 = vld [vmem:[#allocation23 + $0x18] sm:$0xf0]  ;;  %v5154_v22 = vor.u32 %v5346_v59, %v5153_v2  ;;  %v5359_v7 = vld [vmem:[#allocation24] sm:$0xff] }
 0x943   : > { %v4160_v47 = vpack.c.bf16 %v4159_v17, %v4158_v43  ;;  %v5158_v43 = vor.u32 %v5345_v54, %v5155_v11  ;;  %v5145_v17 = vld [vmem:[#allocation23] sm:$0xf]  ;;  %v4269_v58 = vperm.slane %v7674_v20, 4  ;;  %v4291_v59 = vperm.slane %v4289_v9, 0 }
 0x945   : > { %4218 = vmatmul.bf16.vlgmr.msra.gmra.mxu2 %v4160_v47  ;;  %v5344_v47 = vld [vmem:[#allocation23 + $0x4] sm:$0xf0] }
 0x946   : > { %4390 = vmatpush.bf16.msra.mxu0 %v5198_v57 }
 0x94a   : > { %4391 = vmatpush.bf16.msra.mxu0 %v5190_v41 }
 0x94e   : > { %4392 = vmatpush.bf16.msra.mxu0 %v5182_v6 }
 0x952   : > { %4393 = vmatpush.bf16.msra.mxu0 %v5174_v5  ;;  %v5360_v5 = vld [vmem:[#allocation24 + $0x8] sm:$0xff] }
 0x956   : > { %4394 = vmatpush.bf16.msra.mxu0 %v5166_v19 }
 0x95a   : > { %4395 = vmatpush.bf16.msra.mxu0 %v5158_v43 }
 0x9c8   : > { %v4219_v27 = vpop.f32.mrf.mxu2 }
 0x9c9   : > { %v4220_v60 = vadd.f32 %v4219_v27, %v4161_v35  ;;  %v5146_v27 = vor.u32 %v5344_v47, %v5145_v17 }
 0x9cb   : > { %v4224_v30 = vadd.f32 %v4220_v60, %v7157_v62  ;;  %v5374_v60 = vld [vmem:[#allocation24 + $0x78] sm:$0xff] }
 0x9cc   : > { %4552 = vmatpush.bf16.msrb.mxu2 %v5374_v60 }
 0x9cd   : > { %4226 = vadd.xlane.f32.xlu1 %v4224_v30 }
 0x9d0   : > { %v4221_v18 = vpop.f32.mrf.mxu2 }
 0x9d1   : > { %v4222_v32 = vadd.f32 %v4221_v18, %v4161_v35  ;;  %v5147_v35 = vld [vmem:[#allocation23 + $0x8] sm:$0xf0] }
 0x9d3   : > { %v4225_v37 = vadd.f32 %v4222_v32, %v7161_v50  ;;  %v5201_v50 = vld [vmem:[#allocation23 + $0x70] sm:$0xf]  ;;  %v5150_v32 = vor.u32 %v5343_v53, %v5147_v35  ;;  %v4441_v35 = vperm.slane %v7674_v20, 0 }
 0x9d4   : > { %v5202_v48 = vor.u32 %v5358_v25, %v5201_v50  ;;  %v5364_v50 = vld [vmem:[#allocation24 + $0x28] sm:$0xff] }
 0x9d5   : > { %4228 = vadd.xlane.f32.xlu0 %v4225_v37  ;;  %4396 = vmatpush.bf16.msra.mxu0 %v5150_v32 }
 0x9d6   : > { %4375 = vmatpush.bf16.msra.mxu3 %v5202_v48  ;;  %v5371_v48 = vld [vmem:[#allocation24 + $0x60] sm:$0xff] }
 0x9da   : > { %4376 = vmatpush.bf16.msra.mxu3 %v5194_v36 }
 0x9de   : > { %4377 = vmatpush.bf16.msra.mxu3 %v5186_v31 }
 0x9e2   : > { %4378 = vmatpush.bf16.msra.mxu3 %v5178_v13 }
 0x9e6   : > { %4379 = vmatpush.bf16.msra.mxu3 %v5170_v28  ;;  %v5368_v28 = vld [vmem:[#allocation24 + $0x48] sm:$0xff] }
 0x9ea   : > { %4380 = vmatpush.bf16.msra.mxu3 %v5162_v8 }
 0x9ee   : > { %4381 = vmatpush.bf16.msra.mxu3 %v5154_v22 }
 0x9f2   : > { %4382 = vmatpush.bf16.msra.mxu3 %v5146_v27 }
 0xa40   : > { %v4227_v26 = vpop.xlane.xlu1 %4226 }
 0xa41   : > { %v4230_v44 = vmul.f32 %v4227_v26, %v7110_v23  ;;  %v5373_v26 = vld [vmem:[#allocation24 + $0x70] sm:$0xff] }
 0xa42   : > { %4553 = vmatpush.bf16.msrb.mxu2 %v5373_v26 }
 0xa43   : > { %v7662_v39 = vsub.f32 %v4224_v30, %v4230_v44  ;;  %v5366_v30 = vld [vmem:[#allocation24 + $0x38] sm:$0xff]  ;;  %v5365_v44 = vld [vmem:[#allocation24 + $0x30] sm:$0xff] }
 0xa44   : > { %4538 = vmatpush.bf16.msrb.mxu1 %v5366_v30 }
 0xa45   : > { %v4234_v56 = vmul.f32 %v7662_v39, %v7662_v39 }
 0xa47   : > { %4236 = vadd.xlane.f32.xlu2 %v4234_v56 }
 0xa48   : > { %v4229_v45 = vpop.xlane.xlu0 %4228  ;;  %4539 = vmatpush.bf16.msrb.mxu1 %v5365_v44 }
 0xa49   : > { %v4231_v61 = vmul.f32 %v4229_v45, %v7110_v23 }
 0xa4b   : > { %v7667_v42 = vsub.f32 %v4225_v37, %v4231_v61 }
 0xa4c   : > { %4540 = vmatpush.bf16.msrb.mxu1 %v5364_v50 }
 0xa4d   : > { %v4235_v62 = vmul.f32 %v7667_v42, %v7667_v42 }
 0xa4f   : > { %4238 = vadd.xlane.f32.xlu1 %v4235_v62  ;;  %v5372_v62 = vld [vmem:[#allocation24 + $0x68] sm:$0xff] }
 0xa50   : > { %4554 = vmatpush.bf16.msrb.mxu2 %v5372_v62  ;;  %4541 = vmatpush.bf16.msrb.mxu1 %v5363_v52 }
 0xa54   : > { %4555 = vmatpush.bf16.msrb.mxu2 %v5371_v48  ;;  %4542 = vmatpush.bf16.msrb.mxu1 %v5362_v3 }
 0xa58   : > { %4543 = vmatpush.bf16.msrb.mxu1 %v5361_v10 }
 0xa5c   : > { %4544 = vmatpush.bf16.msrb.mxu1 %v5360_v5 }
 0xa60   : > { %4545 = vmatpush.bf16.msrb.mxu1 %v5359_v7 }
 0xaba   : > { %v4237_v14 = vpop.xlane.xlu2 %4236 }
 0xabb   : > { %v4240_v34 = vmul.f32 %v4237_v14, %v7110_v23  ;;  %v4292_v14 = vperm.slane %v4289_v9, 1 }
 0xabd   : > { %v4242_v1 = vadd.f32 1e-05, %v4240_v34 }
 0xabf   : > { %5670 = vrsqrt.f32 %v4242_v1  ;;  %vm4250_vm1 = vweird.f32 %v4242_v1 }
 0xac2   : > { %v4239_v18 = vpop.xlane.xlu1 %4238 }
 0xac3   : > { %v4241_v37 = vmul.f32 %v4239_v18, %v7110_v23 }
 0xac5   : > { %v5671_v56 = vpop.eup %5670  ;;  %v4243_v45 = vadd.f32 1e-05, %v4241_v37 }
 0xac6   : > { %v4245_v61 = vmul.f32 %v5671_v56, %v4242_v1  ;;  %vm4251_vm0 = vweird.f32 %v5671_v56 }
 0xac7   : > { %5672 = vrsqrt.f32 %v4243_v45  ;;  %vm4252_vm9 = vmor %vm4250_vm1, %vm4251_vm0  ;;  %vm4260_vm15 = vweird.f32 %v4243_v45 }
 0xac8   : > { %v4246_v25 = vmul.f32 %v5671_v56, %v4245_v61 }
 0xaca   : > { %v4247_v46 = vmul.f32 0.5, %v4246_v25 }
 0xacc   : > { %v4248_v40 = vsub.f32 1.5, %v4247_v46 }
 0xacd   : > { %v5673_v63 = vpop.eup %5672 }
 0xace   : > { %v4249_v29 = vmul.f32 %v5671_v56, %v4248_v40  ;;  %v4255_v4 = vmul.f32 %v5673_v63, %v4243_v45  ;;  %vm4261_vm10 = vweird.f32 %v5673_v63 }
 0xacf   : > { %vm4262_vm4 = vmor %vm4260_vm15, %vm4261_vm10 }
 0xad0   : > { %v4256_v16 = vmul.f32 %v5673_v63, %v4255_v4  ;;  %v4253_v36 = vsel %vm4252_vm9, %v5671_v56, %v4249_v29 }
 0xad1   : > { %v4264_v55 = vmul.f32 %v4253_v36, %v7662_v39  ;;  %v5370_v39 = vld [vmem:[#allocation24 + $0x58] sm:$0xff] }
 0xad2   : > { %v4257_v38 = vmul.f32 0.5, %v4256_v16  ;;  %4556 = vmatpush.bf16.msrb.mxu2 %v5370_v39 }
 0xad3   : > { %v4267_v49 = vmul.f32 %v4266_v21, %v4264_v55 }
 0xad4   : > { %v4258_v57 = vsub.f32 1.5, %v4257_v38 }
 0xad5   : > { %v4270_v13 = vadd.f32 %v4269_v58, %v4267_v49 }
 0xad6   : > { %v4259_v31 = vmul.f32 %v5673_v63, %v4258_v57  ;;  %4557 = vmatpush.bf16.msrb.mxu2 %v5369_v0 }
 0xad8   : > { %v4263_v24 = vsel %vm4262_vm4, %v5673_v63, %v4259_v31 }
 0xad9   : > { %v4265_v41 = vmul.f32 %v4263_v24, %v7667_v42  ;;  %v5367_v42 = vld [vmem:[#allocation24 + $0x40] sm:$0xff] }
 0xada   : > { %4558 = vmatpush.bf16.msrb.mxu2 %v5368_v28 }
 0xadb   : > { %v4268_v12 = vmul.f32 %v4266_v21, %v4265_v41 }
 0xadd   : > { %v4271_v33 = vadd.f32 %v4269_v58, %v4268_v12 }
 0xade   : > { %4559 = vmatpush.bf16.msrb.mxu2 %v5367_v42 }
 0xadf   : > { %v4272_v6 = vpack.c.bf16 %v4271_v33, %v4270_v13 }
 0xae1   : > { %4383 = vmatmul.bf16.vlgmr.msra.gmra.mxu3 %v4272_v6  ;;  %4397 = vmatmul.bf16.vlgmr.msra.gmra.mxu0 %v4272_v6 }
 0xb5e   : > { %v4398_v51 = vpop.f32.mrf.mxu0 }
 0xb5f   : > { %v4399_v15 = vadd.f32 %v4398_v51, %v4292_v14 }
 0xb61   : > { %v4404_v19 = vmax.f32 %v4399_v15, 0.0 }
 0xb64   : > { %v4384_v8 = vpop.f32.mrf.mxu3 }
 0xb65   : > { %v4385_v11 = vadd.f32 %v4384_v8, %v4291_v59 }
 0xb66   : > { %v4400_v2 = vpop.f32.mrf.mxu0 }
 0xb67   : > { %v4401_v34 = vadd.f32 %v4400_v2, %v4292_v14  ;;  %v4403_v17 = vmax.f32 %v4385_v11, 0.0 }
 0xb69   : > { %v4406_v54 = vmax.f32 %v4401_v34, 0.0 }
 0xb6b   : > { %v4408_v1 = vpack.c.bf16 %v4406_v54, %v4404_v19 }
 0xb6c   : > { %v4386_v22 = vpop.f32.mrf.mxu3 }
 0xb6d   : > { %v4387_v43 = vadd.f32 %v4386_v22, %v4291_v59  ;;  %4560 = vmatmul.bf16.vlgmr.msrb.gmra.mxu2 %v4408_v1 }
 0xb6f   : > { %v4405_v47 = vmax.f32 %v4387_v43, 0.0 }
 0xb71   : > { %v4407_v53 = vpack.c.bf16 %v4405_v47, %v4403_v17 }
 0xb73   : > { %4546 = vmatmul.bf16.vlgmr.msrb.gmra.mxu1 %v4407_v53 }
 0xbf0   : > { %v4547_v27 = vpop.f32.mrf.mxu1  ;;  %v4561_v60 = vpop.f32.mrf.mxu2 }
 0xbf1   : > { %v4548_v30 = vadd.f32 %v4547_v27, %v4441_v35 }
 0xbf3   : > { %v4562_v18 = vadd.f32 %v4561_v60, %v4548_v30 }
 0xbf5   : > { %v4566_v32 = vadd.f32 %v4562_v18, %v4270_v13  ;;  %v4608_v13 = vperm.slane %v7674_v20, 5 }
 0xbf7   : > { %4568 = vadd.xlane.f32.xlu0 %v4566_v32 }
 0xbf8   : > { %v4549_v37 = vpop.f32.mrf.mxu1  ;;  %v4563_v44 = vpop.f32.mrf.mxu2 }
 0xbf9   : > { %v4550_v26 = vadd.f32 %v4549_v37, %v4441_v35 }
 0xbfb   : > { %v4564_v56 = vadd.f32 %v4563_v44, %v4550_v26 }
 0xbfd   : > { %v4567_v45 = vadd.f32 %v4564_v56, %v4271_v33 }
 0xbff   : > { %4570 = vadd.xlane.f32.xlu2 %v4567_v45 }
 0xc6a   : > { %v4569_v61 = vpop.xlane.xlu0 %4568 }
 0xc6b   : > { %v4572_v62 = vmul.f32 %v4569_v61, %v7110_v23 }
 0xc6d   : > { %v4574_v50 = vsub.f32 %v4566_v32, %v4572_v62 }
 0xc6f   : > { %v4576_v25 = vmul.f32 %v4574_v50, %v4574_v50 }
 0xc71   : > { %4578 = vadd.xlane.f32.xlu1 %v4576_v25 }
 0xc72   : > { %v4571_v46 = vpop.xlane.xlu2 %4570 }
 0xc73   : > { %v4573_v48 = vmul.f32 %v4571_v46, %v7110_v23 }
 0xc75   : > { %v4575_v40 = vsub.f32 %v4567_v45, %v4573_v48 }
 0xc77   : > { %v4577_v63 = vmul.f32 %v4575_v40, %v4575_v40 }
 0xc79   : > { %4580 = vadd.xlane.f32.xlu0 %v4577_v63 }
 0xce4   : > { %v4579_v29 = vpop.xlane.xlu1 %4578 }
 0xce5   : > { %v4582_v4 = vmul.f32 %v4579_v29, %v7110_v23 }
 0xce7   : > { %v4584_v16 = vadd.f32 1e-05, %v4582_v4 }
 0xce9   : > { %5674 = vrsqrt.f32 %v4584_v16  ;;  %vm4592_vm8 = vweird.f32 %v4584_v16 }
 0xcec   : > { %v4581_v36 = vpop.xlane.xlu0 %4580 }
 0xced   : > { %v4583_v38 = vmul.f32 %v4581_v36, %v7110_v23  ;;  %v4611_v23 = vperm.slane %v7674_v20, 6 }
 0xcef   : > { %v5675_v57 = vpop.eup %5674  ;;  %v4585_v55 = vadd.f32 1e-05, %v4583_v38 }
 0xcf0   : > { %v4587_v21 = vmul.f32 %v5675_v57, %v4584_v16  ;;  %vm4593_vm14 = vweird.f32 %v5675_v57 }
 0xcf1   : > { %5676 = vrsqrt.f32 %v4585_v55  ;;  %vm4594_vm3 = vmor %vm4592_vm8, %vm4593_vm14  ;;  %vm4602_vm2 = vweird.f32 %v4585_v55 }
 0xcf2   : > { %v4588_v31 = vmul.f32 %v5675_v57, %v4587_v21 }
 0xcf4   : > { %v4589_v24 = vmul.f32 0.5, %v4588_v31 }
 0xcf6   : > { %v4590_v41 = vsub.f32 1.5, %v4589_v24 }
 0xcf7   : > { %v5677_v49 = vpop.eup %5676 }
 0xcf8   : > { %v4591_v58 = vmul.f32 %v5675_v57, %v4590_v41  ;;  %v4597_v12 = vmul.f32 %v5677_v49, %v4585_v55  ;;  %vm4603_vm7 = vweird.f32 %v5677_v49 }
 0xcf9   : > { %vm4604_vm6 = vmor %vm4602_vm2, %vm4603_vm7 }
 0xcfa   : > { %v4595_v33 = vsel %vm4594_vm3, %v5675_v57, %v4591_v58  ;;  %v4598_v6 = vmul.f32 %v5677_v49, %v4597_v12 }
 0xcfb   : > { %v4606_v39 = vmul.f32 %v4595_v33, %v4574_v50 }
 0xcfc   : > { %v4599_v52 = vmul.f32 0.5, %v4598_v6 }
 0xcfd   : > { %v4609_v0 = vmul.f32 %v4608_v13, %v4606_v39 }
 0xcfe   : > { %v4600_v3 = vsub.f32 1.5, %v4599_v52 }
 0xcff   : > { %v4612_v28 = vadd.f32 %v4611_v23, %v4609_v0 }
 0xd00   : > { %v4601_v10 = vmul.f32 %v5677_v49, %v4600_v3 }
 0xd01   : > { %4614 = vst [vmem:[%s710_s13] sm:$0xff] %v4612_v28 }
 0xd02   : > { %v4605_v20 = vsel %vm4604_vm6, %v5677_v49, %v4601_v10 }
 0xd03   : > { %v4607_v42 = vmul.f32 %v4605_v20, %v4575_v40 }
 0xd05   : > { %v4610_v5 = vmul.f32 %v4608_v13, %v4607_v42 }
 0xd07   : > { %v4613_v7 = vadd.f32 %v4611_v23, %v4610_v5 }
 0xd09   : > { %4615 = vst [vmem:[%s710_s13 + $0x8] sm:$0xff] %v4613_v7 }
 0xd0a   : > { %6101 = shalt.err (!%p6098_p8)
}
 0xd0b   : > { %s6191_s25 = smov 128   ;;  %s6192_s10 = smov 8  }
 0xd0c   : > { %5444 = dma.vmem_to_hbm [thread:$0]  (%p6421_p0), %s4630_s2, 256, %s4632_s14, %s4617_s20, %s6191_s25, %s6191_s25, %s6192_s10  }
 0xd0d PF: > { %s4646_s3 = sand.u32 1, %s6156_s29   ;;  %p7827_p10 = scmp.ge.s32.totalorder %s6168_s16, 2 }
 0xd0e   : > { %s4647_s23 = scalar_lea.sflag [#allocation8], %s4646_s3 }
 0xd0f   : > { %p5488_p11 = pnand %p7827_p10, %p6429_p6 }
 0xd11   : > { %p5489_p12 = pneg %p5488_p11 }
 0xd13   : > { %6151 = dma.done.wait (%p5489_p12), %s4647_s23, 256  }
 0xd14   : > { %6153 = vsyncadd (%p5489_p12), %s4647_s23, 4294967040  ;;  %p35_p2 = scmp.ge.s32.totalorder %s6397_s28, 4   ;;  %s7828_s29 = smov %s6160_s30 }
 0xd15   : > { %s7829_s30 = smov %s6164_s15  ;;  %s7830_s15 = smov %s6409_s24 }
 0xd16   : > { %s7831_s16 = smov %s6397_s28  ;;  %37 = sbr.rel (!%p35_p2) target bundleno = 26 (0x1a), region = 178 }
 0xd1b   :  { %4653 = vsyncpa [#allocation7], 1 }
 0xd1c   :  { %4655 = vsyncpa [#allocation7 + $0x1], 1 }
 0xd1d   :  { %4656 = vsyncpa [#allocation10], 1 }
 0xd1e   :  { %4658 = vsyncpa [#allocation10 + $0x1], 1 }
 0xd1f   :  { %4659 = vsyncpa [#allocation13], 1 }
 0xd20   :  { %4660 = vsyncpa [#allocation16], 1 }
 0xd21   :  { %4661 = vsyncpa [#allocation19], 1 }
 0xd22   :  { %4662 = vsyncpa [#allocation22], 1 }
 0xd23   :  { %4663 = vsyncpa [#allocation25], 1 }
 0xd24   :  { %4664 = vsyncpa [#allocation8], 1 }
 0xd25   :  { %4666 = vsyncpa [#allocation8 + $0x1], 1 }

</bundles_post_ra>
